<compile_context>
chip_gen: v7x
topology: tpu7x:2x2x1
jax: 0.10.0
libtpu: 0.0.40
codegen_flags: <defaults>
</compile_context>

<pallas_src>
import functools

import jax
import jax.numpy as jnp
from jax.experimental import pallas as pl
from jax.experimental.pallas import tpu as pltpu

_EPS = 1e-5
_VMEM_LIMIT = 48 * 1024 * 1024    # headroom under v7x's 64 MiB physical VMEM


def _cparams():
    return pltpu.CompilerParams(dimension_semantics=("parallel",),
                                vmem_limit_bytes=_VMEM_LIMIT)


def _bn_coeffs(s_ref, g_ref, b_ref, inv_m, eps):
    """(scale, shift) with h*scale+shift == (h-mean)*rsqrt(var+eps)*g + b."""
    mean = s_ref[0:1, :] * inv_m
    var = s_ref[1:2, :] * inv_m - mean * mean      # biased, single-pass
    scale = g_ref[...] * jax.lax.rsqrt(var + eps)
    shift = b_ref[...] - mean * scale
    return scale, shift


# ----------------------------------------------------------------------------
# Stage 1: h1 = conv1(x)  (1x1 conv == matmul) + per-tile bn1 partial stats.
# ----------------------------------------------------------------------------
def _conv1_kernel(x_ref, w_ref, h_ref, s_ref):
    h = jnp.dot(x_ref[...], w_ref[...], preferred_element_type=jnp.float32)
    h_ref[...] = h.astype(h_ref.dtype)
    s_ref[0, 0:1, :] = jnp.sum(h, axis=0, keepdims=True)
    s_ref[0, 1:2, :] = jnp.sum(h * h, axis=0, keepdims=True)


# ----------------------------------------------------------------------------
# Stage 2: a1 = relu(bn1(h1)); h2 = conv2_3x3(a1) as ONE im2col matmul
#          (K = 9*P) + per-image bn2 partial stats.  One image per grid step,
#          so the 3x3 window needs no cross-tile halo.
# ----------------------------------------------------------------------------
def _conv2_kernel(inv_m, eps, H, W,
                  h_ref, s_ref, g_ref, b_ref, w_ref,
                  o_ref, so_ref, pad_ref, win_ref):
    P = h_ref.shape[-1]
    scale, shift = _bn_coeffs(s_ref, g_ref, b_ref, inv_m, eps)
    h = h_ref[...].astype(jnp.float32).reshape(H * W, P)
    a = jnp.maximum(h * scale + shift, 0.0)

    # Zero-padded activation: zero only the halo border, then the interior.
    # Re-zeroed every step on purpose: scratch is per-core and with "parallel"
    # semantics this step may be the first one a given core executes.
    pad_ref[:, 0:1, :, :] = jnp.zeros((1, 1, W + 2, P), pad_ref.dtype)
    pad_ref[:, H + 1:H + 2, :, :] = jnp.zeros((1, 1, W + 2, P), pad_ref.dtype)
    pad_ref[:, 1:H + 1, 0:1, :] = jnp.zeros((1, H, 1, P), pad_ref.dtype)
    pad_ref[:, 1:H + 1, W + 1:W + 2, :] = jnp.zeros((1, H, 1, P), pad_ref.dtype)
    pad_ref[:, 1:H + 1, 1:W + 1, :] = a.reshape(1, H, W, P).astype(pad_ref.dtype)

    # im2col: lay the 9 shifted taps side by side along the channel (lane)
    # axis, then contract once over K = 9*P on the MXU.
    # TODO(synk): the dx=1,2 taps are sublane-shifted reads; pltpu.roll along
    # the W axis would keep them on the XLU instead of relayout copies
    # (biggest payoff on v5e's single vst slot).
    for k in range(9):
        dy, dx = k // 3, k % 3
        win_ref[:, :, :, k * P:(k + 1) * P] = pad_ref[:, dy:dy + H, dx:dx + W, :]

    h2 = jnp.dot(win_ref[...].reshape(H * W, 9 * P), w_ref[...],
                 preferred_element_type=jnp.float32)
    o_ref[...] = h2.reshape(1, H, W, P).astype(o_ref.dtype)
    so_ref[0, 0:1, :] = jnp.sum(h2, axis=0, keepdims=True)
    so_ref[0, 1:2, :] = jnp.sum(h2 * h2, axis=0, keepdims=True)


# ----------------------------------------------------------------------------
# Stage 3: a2 = relu(bn2(h2)); h3 = conv3(a2) (1x1) + per-tile bn3 stats.
# ----------------------------------------------------------------------------
def _conv3_kernel(inv_m, eps, h_ref, s_ref, g_ref, b_ref, w_ref, o_ref, so_ref):
    scale, shift = _bn_coeffs(s_ref, g_ref, b_ref, inv_m, eps)
    a = jnp.maximum(h_ref[...].astype(jnp.float32) * scale + shift, 0.0)
    h = jnp.dot(a.astype(w_ref.dtype), w_ref[...],
                preferred_element_type=jnp.float32)
    o_ref[...] = h.astype(o_ref.dtype)
    so_ref[0, 0:1, :] = jnp.sum(h, axis=0, keepdims=True)
    so_ref[0, 1:2, :] = jnp.sum(h * h, axis=0, keepdims=True)


# ----------------------------------------------------------------------------
# Stage 4: out = relu(bn3(h3) + x)   (identity residual: downsample=None).
#          x is read only here (not held live across the other stages).
#          Output is bf16 (memory-bound stage; halves the largest HBM write).
# ----------------------------------------------------------------------------
def _bn_add_relu_kernel(inv_m, eps, h_ref, s_ref, g_ref, b_ref, x_ref, o_ref):
    scale, shift = _bn_coeffs(s_ref, g_ref, b_ref, inv_m, eps)
    h = h_ref[...].astype(jnp.float32) * scale + shift
    o_ref[...] = jnp.maximum(h + x_ref[...].astype(jnp.float32),
                             0.0).astype(o_ref.dtype)


def _pick_tile(m, target):
    """Largest divisor of m <= target, preferring multiples of 16 (bf16
    sublane packing), then multiples of 8, then any divisor (fallback m)."""
    t = min(target, m)
    for step in (16, 8):
        c = t - (t % step)
        while c >= step:
            if m % c == 0:
                return c
            c -= step
    for c in range(t, 0, -1):
        if m % c == 0:
            return c
    return m


def bottleneck_forward(x_nchw, params, *, row_tile=512):
    # row_tile: rows of the flattened (M, C) activation per grid step for the
    # HBM-bound 1x1/BN stages.  512 sits near the measured HBM roofline knee;
    # sweep 512-1024 for large feature maps (still only a few MB of VMEM).
    N, C, H, W = x_nchw.shape
    P = params["w1"].shape[1]
    assert C == 4 * P, "identity residual requires inplanes == planes * 4"
    M = N * H * W
    bm = _pick_tile(M, row_tile)
    T = M // bm
    inv_m = 1.0 / M

    # glue: cast to bf16 FIRST, then NCHW -> NHWC -> (M, C), so the layout
    # pass moves half the bytes (f32 accumulation stays inside the kernels).
    xb = jnp.transpose(x_nchw.astype(jnp.bfloat16), (0, 2, 3, 1)).reshape(M, C)
    w1 = params["w1"].astype(jnp.bfloat16)                      # (C, P)
    w2 = params["w2"].reshape(9 * P, P).astype(jnp.bfloat16)    # (9P, P) tap-major
    w3 = params["w3"].astype(jnp.bfloat16)                      # (P, 4P)
    g1, b1 = params["g1"], params["b1"]
    g2, b2 = params["g2"], params["b2"]
    g3, b3 = params["g3"], params["b3"]

    # --- stage 1 -------------------------------------------------------------
    h1, s1p = pl.pallas_call(
        _conv1_kernel,
        out_shape=(jax.ShapeDtypeStruct((M, P), jnp.bfloat16),
                   jax.ShapeDtypeStruct((T, 2, P), jnp.float32)),
        grid=(T,),
        in_specs=[pl.BlockSpec((bm, C), lambda i: (i, 0)),
                  pl.BlockSpec((C, P), lambda i: (0, 0))],
        out_specs=(pl.BlockSpec((bm, P), lambda i: (i, 0)),
                   pl.BlockSpec((1, 2, P), lambda i: (i, 0, 0))),
        compiler_params=_cparams(),
        cost_estimate=pl.CostEstimate(
            flops=2 * M * C * P, transcendentals=0,
            bytes_accessed=2 * (M * C + C * P + M * P)),
    )(xb, w1)
    s1 = jnp.sum(s1p, axis=0)          # (2, P) global sums (tiny glue reduce)

    # --- stage 2 -------------------------------------------------------------
    h2, s2p = pl.pallas_call(
        functools.partial(_conv2_kernel, inv_m, _EPS, H, W),
        out_shape=(jax.ShapeDtypeStruct((N, H, W, P), jnp.bfloat16),
                   jax.ShapeDtypeStruct((N, 2, P), jnp.float32)),
        grid=(N,),
        in_specs=[pl.BlockSpec((1, H, W, P), lambda n: (n, 0, 0, 0)),
                  pl.BlockSpec((2, P), lambda n: (0, 0)),
                  pl.BlockSpec((1, P), lambda n: (0, 0)),
                  pl.BlockSpec((1, P), lambda n: (0, 0)),
                  pl.BlockSpec((9 * P, P), lambda n: (0, 0))],
        out_specs=(pl.BlockSpec((1, H, W, P), lambda n: (n, 0, 0, 0)),
                   pl.BlockSpec((1, 2, P), lambda n: (n, 0, 0))),
        scratch_shapes=[pltpu.VMEM((1, H + 2, W + 2, P), jnp.bfloat16),
                        pltpu.VMEM((1, H, W, 9 * P), jnp.bfloat16)],
        compiler_params=_cparams(),
        cost_estimate=pl.CostEstimate(
            flops=2 * M * 9 * P * P, transcendentals=N * P,
            bytes_accessed=2 * (2 * M * P + 9 * P * P)),
    )(h1.reshape(N, H, W, P), s1, g1, b1, w2)
    s2 = jnp.sum(s2p, axis=0)

    # --- stage 3 -------------------------------------------------------------
    h3, s3p = pl.pallas_call(
        functools.partial(_conv3_kernel, inv_m, _EPS),
        out_shape=(jax.ShapeDtypeStruct((M, 4 * P), jnp.bfloat16),
                   jax.ShapeDtypeStruct((T, 2, 4 * P), jnp.float32)),
        grid=(T,),
        in_specs=[pl.BlockSpec((bm, P), lambda i: (i, 0)),
                  pl.BlockSpec((2, P), lambda i: (0, 0)),
                  pl.BlockSpec((1, P), lambda i: (0, 0)),
                  pl.BlockSpec((1, P), lambda i: (0, 0)),
                  pl.BlockSpec((P, 4 * P), lambda i: (0, 0))],
        out_specs=(pl.BlockSpec((bm, 4 * P), lambda i: (i, 0)),
                   pl.BlockSpec((1, 2, 4 * P), lambda i: (i, 0, 0))),
        compiler_params=_cparams(),
        cost_estimate=pl.CostEstimate(
            flops=2 * M * P * 4 * P, transcendentals=T * P,
            bytes_accessed=2 * (M * P + M * 4 * P + P * 4 * P)),
    )(h2.reshape(M, P), s2, g2, b2, w3)
    s3 = jnp.sum(s3p, axis=0)

    # --- stage 4 -------------------------------------------------------------
    out = pl.pallas_call(
        functools.partial(_bn_add_relu_kernel, inv_m, _EPS),
        out_shape=jax.ShapeDtypeStruct((M, 4 * P), jnp.bfloat16),
        grid=(T,),
        in_specs=[pl.BlockSpec((bm, 4 * P), lambda i: (i, 0)),
                  pl.BlockSpec((2, 4 * P), lambda i: (0, 0)),
                  pl.BlockSpec((1, 4 * P), lambda i: (0, 0)),
                  pl.BlockSpec((1, 4 * P), lambda i: (0, 0)),
                  pl.BlockSpec((bm, C), lambda i: (i, 0))],
        out_specs=pl.BlockSpec((bm, 4 * P), lambda i: (i, 0)),
        compiler_params=_cparams(),
        cost_estimate=pl.CostEstimate(
            flops=6 * M * 4 * P, transcendentals=T * 4 * P,
            bytes_accessed=2 * M * 4 * P + 2 * M * C + 2 * M * 4 * P),
    )(h3, s3, g3, b3, xb)

    # (M, 4P) -> NHWC -> NCHW glue, done in bf16 (caller may cast to f32).
    return jnp.transpose(out.reshape(N, H, W, 4 * P), (0, 3, 1, 2))


def bottleneck_ref(x_nchw, params):
    """Pure-JAX f32 reference (same training-mode BN math) for the check."""
    N, C, H, W = x_nchw.shape
    P = params["w1"].shape[1]
    x = jnp.transpose(x_nchw, (0, 2, 3, 1))                  # NHWC

    def bn(h, g, b, eps=_EPS):
        mean = jnp.mean(h, axis=(0, 1, 2), keepdims=True)
        var = jnp.mean((h - mean) ** 2, axis=(0, 1, 2), keepdims=True)
        return (h - mean) * jax.lax.rsqrt(var + eps) * g + b

    h = jnp.einsum("nhwc,cp->nhwp", x, params["w1"])
    h = jnp.maximum(bn(h, params["g1"], params["b1"]), 0.0)

    hp = jnp.pad(h, ((0, 0), (1, 1), (1, 1), (0, 0)))
    acc = jnp.zeros((N, H, W, P), jnp.float32)
    for k in range(9):
        dy, dx = k // 3, k % 3
        acc = acc + jnp.einsum("nhwp,pq->nhwq",
                               hp[:, dy:dy + H, dx:dx + W, :], params["w2"][k])
    h = jnp.maximum(bn(acc, params["g2"], params["b2"]), 0.0)

    h = jnp.einsum("nhwp,pq->nhwq", h, params["w3"])
    h = bn(h, params["g3"], params["b3"])
    out = jnp.maximum(h + x, 0.0)
    return jnp.transpose(out, (0, 3, 1, 2))


if __name__ == "__main__":
    key = jax.random.PRNGKey(0)
    N, H, W = 2, 16, 16
    planes = 32
    inplanes = 4 * planes          # identity residual path (downsample=None)

    ks = jax.random.split(key, 10)
    x = jax.random.normal(ks[0], (N, inplanes, H, W), jnp.float32)

    # Deterministic synthetic parameters (shapes match the module __init__):
    #   conv1.weight (planes, inplanes, 1, 1)  -> w1[i, o]          (inplanes, planes)
    #   conv2.weight (planes, planes, 3, 3)    -> w2[ky*3+kx, i, o] (9, planes, planes)
    #   conv3.weight (4*planes, planes, 1, 1)  -> w3[i, o]          (planes, 4*planes)
    params = dict(
        w1=0.05 * jax.random.normal(ks[1], (inplanes, planes), jnp.float32),
        w2=0.05 * jax.random.normal(ks[2], (9, planes, planes), jnp.float32),
        w3=0.05 * jax.random.normal(ks[3], (planes, 4 * planes), jnp.float32),
        g1=1.0 + 0.1 * jax.random.normal(ks[4], (1, planes), jnp.float32),
        b1=0.1 * jax.random.normal(ks[5], (1, planes), jnp.float32),
        g2=1.0 + 0.1 * jax.random.normal(ks[6], (1, planes), jnp.float32),
        b2=0.1 * jax.random.normal(ks[7], (1, planes), jnp.float32),
        g3=1.0 + 0.1 * jax.random.normal(ks[8], (1, 4 * planes), jnp.float32),
        b3=0.1 * jax.random.normal(ks[9], (1, 4 * planes), jnp.float32),
    )

    fwd = jax.jit(bottleneck_forward)
    out = jax.block_until_ready(fwd(x, params))
    ref = jax.block_until_ready(bottleneck_ref(x, params))

    err = float(jnp.max(jnp.abs(out.astype(jnp.float32) - ref)))
    # bf16 activations/weights/output vs. the f32 reference: expected max-abs
    # error is a few 1e-2 at these value scales.
    if out.shape == (N, inplanes, H, W) and err < 1e-1:
        print("KERNEL_OK")
    else:
        print(f"MISMATCH max_abs_err={err} shape={out.shape}")
</pallas_src>

<mosaic_0001>
module attributes {stable_mosaic.version = 11 : i64} {
  func.func @_conv1_kernel(%arg0: i32, %arg1: memref<512x128xbf16, #tpu.memory_space<vmem>>, %arg2: memref<128x32xbf16, #tpu.memory_space<vmem>>, %arg3: memref<512x32xbf16, #tpu.memory_space<vmem>>, %arg4: memref<1x2x32xf32, #tpu.memory_space<vmem>>) attributes {dimension_semantics = [#tpu.dimension_semantics<parallel>], iteration_bounds = array<i64: 1>, scalar_prefetch = 0 : i64, scratch_operands = 0 : i64, tpu.core_type = #tpu.core_type<tc>, window_params = [{transform_indices = @transform_0, window_bounds = array<i64: 512, 128>}, {pipeline_mode = #tpu.pipeline_mode<synchronous>, transform_indices = @transform_1, window_bounds = array<i64: 128, 32>}, {transform_indices = @transform_2, window_bounds = array<i64: 512, 32>}, {transform_indices = @transform_3, window_bounds = array<i64: 1, 2, 32>}]} {
    %c0 = arith.constant 0 : index
    %c0_0 = arith.constant 0 : index
    %0 = vector.load %arg1[%c0, %c0_0] : memref<512x128xbf16, #tpu.memory_space<vmem>>, vector<512x128xbf16>
    %c0_1 = arith.constant 0 : index
    %c0_2 = arith.constant 0 : index
    %1 = vector.load %arg2[%c0_1, %c0_2] : memref<128x32xbf16, #tpu.memory_space<vmem>>, vector<128x32xbf16>
    %cst = arith.constant dense<0.000000e+00> : vector<512x32xf32>
    %2 = tpu.matmul %0, %1, %cst {dimension_numbers = #tpu.dot_dimension_numbers<[1], [0], [0], [1], [0, 0, 1, 1], [], []>} : vector<512x128xbf16>, vector<128x32xbf16>, vector<512x32xf32> -> vector<512x32xf32>
    %3 = arith.truncf %2 : vector<512x32xf32> to vector<512x32xbf16>
    %c0_3 = arith.constant 0 : index
    %c0_4 = arith.constant 0 : index
    %4 = vector.load %arg3[%c0_3, %c0_4] : memref<512x32xbf16, #tpu.memory_space<vmem>>, vector<512x32xbf16>
    tpu.vector_store %arg3[%c0_3, %c0_4], %3 {strides = array<i32>} : memref<512x32xbf16, #tpu.memory_space<vmem>>, vector<512x32xbf16>,
    %cst_5 = arith.constant dense<0.000000e+00> : vector<32xf32>
    %5 = vector.multi_reduction <add>, %2, %cst_5 [0] : vector<512x32xf32> to vector<32xf32>
    %6 = vector.shape_cast %5 : vector<32xf32> to vector<1x32xf32>
    %c0_6 = arith.constant 0 : index
    %c0_7 = arith.constant 0 : index
    %c0_8 = arith.constant 0 : index
    %7 = vector.load %arg4[%c0_6, %c0_7, %c0_8] : memref<1x2x32xf32, #tpu.memory_space<vmem>>, vector<1x1x32xf32>
    %8 = vector.shape_cast %7 : vector<1x1x32xf32> to vector<1x32xf32>
    %9 = vector.shape_cast %6 : vector<1x32xf32> to vector<1x1x32xf32>
    tpu.vector_store %arg4[%c0_6, %c0_7, %c0_8], %9 {strides = array<i32>} : memref<1x2x32xf32, #tpu.memory_space<vmem>>, vector<1x1x32xf32>,
    %10 = arith.mulf %2, %2 : vector<512x32xf32>
    %cst_9 = arith.constant dense<0.000000e+00> : vector<32xf32>
    %11 = vector.multi_reduction <add>, %10, %cst_9 [0] : vector<512x32xf32> to vector<32xf32>
    %12 = vector.shape_cast %11 : vector<32xf32> to vector<1x32xf32>
    %c0_10 = arith.constant 0 : index
    %c1 = arith.constant 1 : index
    %c0_11 = arith.constant 0 : index
    %13 = vector.load %arg4[%c0_10, %c1, %c0_11] : memref<1x2x32xf32, #tpu.memory_space<vmem>>, vector<1x1x32xf32>
    %14 = vector.shape_cast %13 : vector<1x1x32xf32> to vector<1x32xf32>
    %15 = vector.shape_cast %12 : vector<1x32xf32> to vector<1x1x32xf32>
    tpu.vector_store %arg4[%c0_10, %c1, %c0_11], %15 {strides = array<i32>} : memref<1x2x32xf32, #tpu.memory_space<vmem>>, vector<1x1x32xf32>,
    return
  }
  func.func @transform_0(%arg0: i32) -> (i32, i32) {
    %c0_i32 = arith.constant 0 : i32
    %c0_i32_0 = arith.constant 0 : i32
    return %arg0, %c0_i32 : i32, i32
  }
  func.func @transform_1(%arg0: i32) -> (i32, i32) {
    %c0_i32 = arith.constant 0 : i32
    %c0_i32_0 = arith.constant 0 : i32
    %c0_i32_1 = arith.constant 0 : i32
    return %c0_i32, %c0_i32_0 : i32, i32
  }
  func.func @transform_2(%arg0: i32) -> (i32, i32) {
    %c0_i32 = arith.constant 0 : i32
    %c0_i32_0 = arith.constant 0 : i32
    return %arg0, %c0_i32 : i32, i32
  }
  func.func @transform_3(%arg0: i32) -> (i32, i32, i32) {
    %c0_i32 = arith.constant 0 : i32
    %c0_i32_0 = arith.constant 0 : i32
    %c0_i32_1 = arith.constant 0 : i32
    return %arg0, %c0_i32, %c0_i32_0 : i32, i32, i32
  }
}

module attributes {stable_mosaic.version = 11 : i64} {
  func.func @_conv2_kernel(%arg0: i32, %arg1: memref<1x16x16x32xbf16, #tpu.memory_space<vmem>>, %arg2: memref<2x32xf32, #tpu.memory_space<vmem>>, %arg3: memref<1x32xf32, #tpu.memory_space<vmem>>, %arg4: memref<1x32xf32, #tpu.memory_space<vmem>>, %arg5: memref<288x32xbf16, #tpu.memory_space<vmem>>, %arg6: memref<1x16x16x32xbf16, #tpu.memory_space<vmem>>, %arg7: memref<1x2x32xf32, #tpu.memory_space<vmem>>, %arg8: memref<1x18x18x32xbf16, #tpu.memory_space<vmem>>, %arg9: memref<1x16x16x288xbf16, #tpu.memory_space<vmem>>) attributes {dimension_semantics = [#tpu.dimension_semantics<parallel>], iteration_bounds = array<i64: 2>, scalar_prefetch = 0 : i64, scratch_operands = 2 : i64, tpu.core_type = #tpu.core_type<tc>, window_params = [{transform_indices = @transform_0, window_bounds = array<i64: 1, 16, 16, 32>}, {pipeline_mode = #tpu.pipeline_mode<synchronous>, transform_indices = @transform_1, window_bounds = array<i64: 2, 32>}, {pipeline_mode = #tpu.pipeline_mode<synchronous>, transform_indices = @transform_2, window_bounds = array<i64: 1, 32>}, {pipeline_mode = #tpu.pipeline_mode<synchronous>, transform_indices = @transform_3, window_bounds = array<i64: 1, 32>}, {pipeline_mode = #tpu.pipeline_mode<synchronous>, transform_indices = @transform_4, window_bounds = array<i64: 288, 32>}, {transform_indices = @transform_5, window_bounds = array<i64: 1, 16, 16, 32>}, {transform_indices = @transform_6, window_bounds = array<i64: 1, 2, 32>}]} {
    %c0 = arith.constant 0 : index
    %c0_0 = arith.constant 0 : index
    %0 = vector.load %arg2[%c0, %c0_0] : memref<2x32xf32, #tpu.memory_space<vmem>>, vector<1x32xf32>
    %cst = arith.constant 0.001953125 : f32
    %1 = vector.broadcast %cst : f32 to vector<1x32xf32>
    %2 = arith.mulf %0, %1 : vector<1x32xf32>
    %c1 = arith.constant 1 : index
    %c0_1 = arith.constant 0 : index
    %3 = vector.load %arg2[%c1, %c0_1] : memref<2x32xf32, #tpu.memory_space<vmem>>, vector<1x32xf32>
    %cst_2 = arith.constant 0.001953125 : f32
    %4 = vector.broadcast %cst_2 : f32 to vector<1x32xf32>
    %5 = arith.mulf %3, %4 : vector<1x32xf32>
    %6 = arith.mulf %2, %2 : vector<1x32xf32>
    %7 = arith.subf %5, %6 : vector<1x32xf32>
    %c0_3 = arith.constant 0 : index
    %c0_4 = arith.constant 0 : index
    %8 = vector.load %arg3[%c0_3, %c0_4] : memref<1x32xf32, #tpu.memory_space<vmem>>, vector<1x32xf32>
    %cst_5 = arith.constant 9.99999974E-6 : f32
    %9 = vector.broadcast %cst_5 : f32 to vector<1x32xf32>
    %10 = arith.addf %7, %9 : vector<1x32xf32>
    %11 = math.rsqrt %10 : vector<1x32xf32>
    %12 = arith.mulf %8, %11 : vector<1x32xf32>
    %c0_6 = arith.constant 0 : index
    %c0_7 = arith.constant 0 : index
    %13 = vector.load %arg4[%c0_6, %c0_7] : memref<1x32xf32, #tpu.memory_space<vmem>>, vector<1x32xf32>
    %14 = arith.mulf %2, %12 : vector<1x32xf32>
    %15 = arith.subf %13, %14 : vector<1x32xf32>
    %c0_8 = arith.constant 0 : index
    %c0_9 = arith.constant 0 : index
    %c0_10 = arith.constant 0 : index
    %c0_11 = arith.constant 0 : index
    %16 = vector.load %arg1[%c0_8, %c0_9, %c0_10, %c0_11] : memref<1x16x16x32xbf16, #tpu.memory_space<vmem>>, vector<1x16x16x32xbf16>
    %17 = arith.extf %16 : vector<1x16x16x32xbf16> to vector<1x16x16x32xf32>
    %18 = vector.shape_cast %17 : vector<1x16x16x32xf32> to vector<256x32xf32>
    %19 = vector.broadcast %12 : vector<1x32xf32> to vector<256x32xf32>
    %20 = arith.mulf %18, %19 : vector<256x32xf32>
    %21 = vector.broadcast %15 : vector<1x32xf32> to vector<256x32xf32>
    %22 = arith.addf %20, %21 : vector<256x32xf32>
    %cst_12 = arith.constant 0.000000e+00 : f32
    %23 = vector.broadcast %cst_12 : f32 to vector<256x32xf32>
    %24 = arith.maximumf %22, %23 : vector<256x32xf32>
    %cst_13 = arith.constant 0.000000e+00 : bf16
    %25 = vector.broadcast %cst_13 : bf16 to vector<1x1x18x32xbf16>
    %c0_14 = arith.constant 0 : index
    %c0_15 = arith.constant 0 : index
    %c0_16 = arith.constant 0 : index
    %c0_17 = arith.constant 0 : index
    %26 = vector.load %arg8[%c0_14, %c0_15, %c0_16, %c0_17] : memref<1x18x18x32xbf16, #tpu.memory_space<vmem>>, vector<1x1x18x32xbf16>
    tpu.vector_store %arg8[%c0_14, %c0_15, %c0_16, %c0_17], %25 {strides = array<i32>} : memref<1x18x18x32xbf16, #tpu.memory_space<vmem>>, vector<1x1x18x32xbf16>,
    %cst_18 = arith.constant 0.000000e+00 : bf16
    %27 = vector.broadcast %cst_18 : bf16 to vector<1x1x18x32xbf16>
    %c0_19 = arith.constant 0 : index
    %c17 = arith.constant 17 : index
    %c0_20 = arith.constant 0 : index
    %c0_21 = arith.constant 0 : index
    %28 = vector.load %arg8[%c0_19, %c17, %c0_20, %c0_21] : memref<1x18x18x32xbf16, #tpu.memory_space<vmem>>, vector<1x1x18x32xbf16>
    tpu.vector_store %arg8[%c0_19, %c17, %c0_20, %c0_21], %27 {strides = array<i32>} : memref<1x18x18x32xbf16, #tpu.memory_space<vmem>>, vector<1x1x18x32xbf16>,
    %cst_22 = arith.constant 0.000000e+00 : bf16
    %29 = vector.broadcast %cst_22 : bf16 to vector<1x16x1x32xbf16>
    %c0_23 = arith.constant 0 : index
    %c1_24 = arith.constant 1 : index
    %c0_25 = arith.constant 0 : index
    %c0_26 = arith.constant 0 : index
    %30 = vector.load %arg8[%c0_23, %c1_24, %c0_25, %c0_26] : memref<1x18x18x32xbf16, #tpu.memory_space<vmem>>, vector<1x16x1x32xbf16>
    tpu.vector_store %arg8[%c0_23, %c1_24, %c0_25, %c0_26], %29 {strides = array<i32>} : memref<1x18x18x32xbf16, #tpu.memory_space<vmem>>, vector<1x16x1x32xbf16>,
    %cst_27 = arith.constant 0.000000e+00 : bf16
    %31 = vector.broadcast %cst_27 : bf16 to vector<1x16x1x32xbf16>
    %c0_28 = arith.constant 0 : index
    %c1_29 = arith.constant 1 : index
    %c17_30 = arith.constant 17 : index
    %c0_31 = arith.constant 0 : index
    %32 = vector.load %arg8[%c0_28, %c1_29, %c17_30, %c0_31] : memref<1x18x18x32xbf16, #tpu.memory_space<vmem>>, vector<1x16x1x32xbf16>
    tpu.vector_store %arg8[%c0_28, %c1_29, %c17_30, %c0_31], %31 {strides = array<i32>} : memref<1x18x18x32xbf16, #tpu.memory_space<vmem>>, vector<1x16x1x32xbf16>,
    %33 = vector.shape_cast %24 : vector<256x32xf32> to vector<1x16x16x32xf32>
    %34 = arith.truncf %33 : vector<1x16x16x32xf32> to vector<1x16x16x32xbf16>
    %c0_32 = arith.constant 0 : index
    %c1_33 = arith.constant 1 : index
    %c1_34 = arith.constant 1 : index
    %c0_35 = arith.constant 0 : index
    %35 = vector.load %arg8[%c0_32, %c1_33, %c1_34, %c0_35] : memref<1x18x18x32xbf16, #tpu.memory_space<vmem>>, vector<1x16x16x32xbf16>
    tpu.vector_store %arg8[%c0_32, %c1_33, %c1_34, %c0_35], %34 {strides = array<i32>} : memref<1x18x18x32xbf16, #tpu.memory_space<vmem>>, vector<1x16x16x32xbf16>,
    %c0_36 = arith.constant 0 : index
    %c0_37 = arith.constant 0 : index
    %c0_38 = arith.constant 0 : index
    %c0_39 = arith.constant 0 : index
    %36 = vector.load %arg8[%c0_36, %c0_37, %c0_38, %c0_39] : memref<1x18x18x32xbf16, #tpu.memory_space<vmem>>, vector<1x16x16x32xbf16>
    %c0_40 = arith.constant 0 : index
    %c0_41 = arith.constant 0 : index
    %c0_42 = arith.constant 0 : index
    %c0_43 = arith.constant 0 : index
    %37 = vector.load %arg9[%c0_40, %c0_41, %c0_42, %c0_43] : memref<1x16x16x288xbf16, #tpu.memory_space<vmem>>, vector<1x16x16x32xbf16>
    tpu.vector_store %arg9[%c0_40, %c0_41, %c0_42, %c0_43], %36 {strides = array<i32>} : memref<1x16x16x288xbf16, #tpu.memory_space<vmem>>, vector<1x16x16x32xbf16>,
    %c0_44 = arith.constant 0 : index
    %c0_45 = arith.constant 0 : index
    %c1_46 = arith.constant 1 : index
    %c0_47 = arith.constant 0 : index
    %38 = vector.load %arg8[%c0_44, %c0_45, %c1_46, %c0_47] : memref<1x18x18x32xbf16, #tpu.memory_space<vmem>>, vector<1x16x16x32xbf16>
    %c0_48 = arith.constant 0 : index
    %c0_49 = arith.constant 0 : index
    %c0_50 = arith.constant 0 : index
    %c32 = arith.constant 32 : index
    %39 = vector.load %arg9[%c0_48, %c0_49, %c0_50, %c32] : memref<1x16x16x288xbf16, #tpu.memory_space<vmem>>, vector<1x16x16x32xbf16>
    tpu.vector_store %arg9[%c0_48, %c0_49, %c0_50, %c32], %38 {strides = array<i32>} : memref<1x16x16x288xbf16, #tpu.memory_space<vmem>>, vector<1x16x16x32xbf16>,
    %c0_51 = arith.constant 0 : index
    %c0_52 = arith.constant 0 : index
    %c2 = arith.constant 2 : index
    %c0_53 = arith.constant 0 : index
    %40 = vector.load %arg8[%c0_51, %c0_52, %c2, %c0_53] : memref<1x18x18x32xbf16, #tpu.memory_space<vmem>>, vector<1x16x16x32xbf16>
    %c0_54 = arith.constant 0 : index
    %c0_55 = arith.constant 0 : index
    %c0_56 = arith.constant 0 : index
    %c64 = arith.constant 64 : index
    %41 = vector.load %arg9[%c0_54, %c0_55, %c0_56, %c64] : memref<1x16x16x288xbf16, #tpu.memory_space<vmem>>, vector<1x16x16x32xbf16>
    tpu.vector_store %arg9[%c0_54, %c0_55, %c0_56, %c64], %40 {strides = array<i32>} : memref<1x16x16x288xbf16, #tpu.memory_space<vmem>>, vector<1x16x16x32xbf16>,
    %c0_57 = arith.constant 0 : index
    %c1_58 = arith.constant 1 : index
    %c0_59 = arith.constant 0 : index
    %c0_60 = arith.constant 0 : index
    %42 = vector.load %arg8[%c0_57, %c1_58, %c0_59, %c0_60] : memref<1x18x18x32xbf16, #tpu.memory_space<vmem>>, vector<1x16x16x32xbf16>
    %c0_61 = arith.constant 0 : index
    %c0_62 = arith.constant 0 : index
    %c0_63 = arith.constant 0 : index
    %c96 = arith.constant 96 : index
    %43 = vector.load %arg9[%c0_61, %c0_62, %c0_63, %c96] : memref<1x16x16x288xbf16, #tpu.memory_space<vmem>>, vector<1x16x16x32xbf16>
    tpu.vector_store %arg9[%c0_61, %c0_62, %c0_63, %c96], %42 {strides = array<i32>} : memref<1x16x16x288xbf16, #tpu.memory_space<vmem>>, vector<1x16x16x32xbf16>,
    %c0_64 = arith.constant 0 : index
    %c1_65 = arith.constant 1 : index
    %c1_66 = arith.constant 1 : index
    %c0_67 = arith.constant 0 : index
    %44 = vector.load %arg8[%c0_64, %c1_65, %c1_66, %c0_67] : memref<1x18x18x32xbf16, #tpu.memory_space<vmem>>, vector<1x16x16x32xbf16>
    %c0_68 = arith.constant 0 : index
    %c0_69 = arith.constant 0 : index
    %c0_70 = arith.constant 0 : index
    %c128 = arith.constant 128 : index
    %45 = vector.load %arg9[%c0_68, %c0_69, %c0_70, %c128] : memref<1x16x16x288xbf16, #tpu.memory_space<vmem>>, vector<1x16x16x32xbf16>
    tpu.vector_store %arg9[%c0_68, %c0_69, %c0_70, %c128], %44 {strides = array<i32>} : memref<1x16x16x288xbf16, #tpu.memory_space<vmem>>, vector<1x16x16x32xbf16>,
    %c0_71 = arith.constant 0 : index
    %c1_72 = arith.constant 1 : index
    %c2_73 = arith.constant 2 : index
    %c0_74 = arith.constant 0 : index
    %46 = vector.load %arg8[%c0_71, %c1_72, %c2_73, %c0_74] : memref<1x18x18x32xbf16, #tpu.memory_space<vmem>>, vector<1x16x16x32xbf16>
    %c0_75 = arith.constant 0 : index
    %c0_76 = arith.constant 0 : index
    %c0_77 = arith.constant 0 : index
    %c160 = arith.constant 160 : index
    %47 = vector.load %arg9[%c0_75, %c0_76, %c0_77, %c160] : memref<1x16x16x288xbf16, #tpu.memory_space<vmem>>, vector<1x16x16x32xbf16>
    tpu.vector_store %arg9[%c0_75, %c0_76, %c0_77, %c160], %46 {strides = array<i32>} : memref<1x16x16x288xbf16, #tpu.memory_space<vmem>>, vector<1x16x16x32xbf16>,
    %c0_78 = arith.constant 0 : index
    %c2_79 = arith.constant 2 : index
    %c0_80 = arith.constant 0 : index
    %c0_81 = arith.constant 0 : index
    %48 = vector.load %arg8[%c0_78, %c2_79, %c0_80, %c0_81] : memref<1x18x18x32xbf16, #tpu.memory_space<vmem>>, vector<1x16x16x32xbf16>
    %c0_82 = arith.constant 0 : index
    %c0_83 = arith.constant 0 : index
    %c0_84 = arith.constant 0 : index
    %c192 = arith.constant 192 : index
    %49 = vector.load %arg9[%c0_82, %c0_83, %c0_84, %c192] : memref<1x16x16x288xbf16, #tpu.memory_space<vmem>>, vector<1x16x16x32xbf16>
    tpu.vector_store %arg9[%c0_82, %c0_83, %c0_84, %c192], %48 {strides = array<i32>} : memref<1x16x16x288xbf16, #tpu.memory_space<vmem>>, vector<1x16x16x32xbf16>,
    %c0_85 = arith.constant 0 : index
    %c2_86 = arith.constant 2 : index
    %c1_87 = arith.constant 1 : index
    %c0_88 = arith.constant 0 : index
    %50 = vector.load %arg8[%c0_85, %c2_86, %c1_87, %c0_88] : memref<1x18x18x32xbf16, #tpu.memory_space<vmem>>, vector<1x16x16x32xbf16>
    %c0_89 = arith.constant 0 : index
    %c0_90 = arith.constant 0 : index
    %c0_91 = arith.constant 0 : index
    %c224 = arith.constant 224 : index
    %51 = vector.load %arg9[%c0_89, %c0_90, %c0_91, %c224] : memref<1x16x16x288xbf16, #tpu.memory_space<vmem>>, vector<1x16x16x32xbf16>
    tpu.vector_store %arg9[%c0_89, %c0_90, %c0_91, %c224], %50 {strides = array<i32>} : memref<1x16x16x288xbf16, #tpu.memory_space<vmem>>, vector<1x16x16x32xbf16>,
    %c0_92 = arith.constant 0 : index
    %c2_93 = arith.constant 2 : index
    %c2_94 = arith.constant 2 : index
    %c0_95 = arith.constant 0 : index
    %52 = vector.load %arg8[%c0_92, %c2_93, %c2_94, %c0_95] : memref<1x18x18x32xbf16, #tpu.memory_space<vmem>>, vector<1x16x16x32xbf16>
    %c0_96 = arith.constant 0 : index
    %c0_97 = arith.constant 0 : index
    %c0_98 = arith.constant 0 : index
    %c256 = arith.constant 256 : index
    %53 = vector.load %arg9[%c0_96, %c0_97, %c0_98, %c256] : memref<1x16x16x288xbf16, #tpu.memory_space<vmem>>, vector<1x16x16x32xbf16>
    tpu.vector_store %arg9[%c0_96, %c0_97, %c0_98, %c256], %52 {strides = array<i32>} : memref<1x16x16x288xbf16, #tpu.memory_space<vmem>>, vector<1x16x16x32xbf16>,
    %c0_99 = arith.constant 0 : index
    %c0_100 = arith.constant 0 : index
    %c0_101 = arith.constant 0 : index
    %c0_102 = arith.constant 0 : index
    %54 = vector.load %arg9[%c0_99, %c0_100, %c0_101, %c0_102] : memref<1x16x16x288xbf16, #tpu.memory_space<vmem>>, vector<1x16x16x288xbf16>
    %55 = vector.shape_cast %54 : vector<1x16x16x288xbf16> to vector<256x288xbf16>
    %c0_103 = arith.constant 0 : index
    %c0_104 = arith.constant 0 : index
    %56 = vector.load %arg5[%c0_103, %c0_104] : memref<288x32xbf16, #tpu.memory_space<vmem>>, vector<288x32xbf16>
    %cst_105 = arith.constant dense<0.000000e+00> : vector<256x32xf32>
    %57 = tpu.matmul %55, %56, %cst_105 {dimension_numbers = #tpu.dot_dimension_numbers<[1], [0], [0], [1], [0, 0, 1, 1], [], []>} : vector<256x288xbf16>, vector<288x32xbf16>, vector<256x32xf32> -> vector<256x32xf32>
    %58 = vector.shape_cast %57 : vector<256x32xf32> to vector<1x16x16x32xf32>
    %59 = arith.truncf %58 : vector<1x16x16x32xf32> to vector<1x16x16x32xbf16>
    %c0_106 = arith.constant 0 : index
    %c0_107 = arith.constant 0 : index
    %c0_108 = arith.constant 0 : index
    %c0_109 = arith.constant 0 : index
    %60 = vector.load %arg6[%c0_106, %c0_107, %c0_108, %c0_109] : memref<1x16x16x32xbf16, #tpu.memory_space<vmem>>, vector<1x16x16x32xbf16>
    tpu.vector_store %arg6[%c0_106, %c0_107, %c0_108, %c0_109], %59 {strides = array<i32>} : memref<1x16x16x32xbf16, #tpu.memory_space<vmem>>, vector<1x16x16x32xbf16>,
    %cst_110 = arith.constant dense<0.000000e+00> : vector<32xf32>
    %61 = vector.multi_reduction <add>, %57, %cst_110 [0] : vector<256x32xf32> to vector<32xf32>
    %62 = vector.shape_cast %61 : vector<32xf32> to vector<1x32xf32>
    %c0_111 = arith.constant 0 : index
    %c0_112 = arith.constant 0 : index
    %c0_113 = arith.constant 0 : index
    %63 = vector.load %arg7[%c0_111, %c0_112, %c0_113] : memref<1x2x32xf32, #tpu.memory_space<vmem>>, vector<1x1x32xf32>
    %64 = vector.shape_cast %63 : vector<1x1x32xf32> to vector<1x32xf32>
    %65 = vector.shape_cast %62 : vector<1x32xf32> to vector<1x1x32xf32>
    tpu.vector_store %arg7[%c0_111, %c0_112, %c0_113], %65 {strides = array<i32>} : memref<1x2x32xf32, #tpu.memory_space<vmem>>, vector<1x1x32xf32>,
    %66 = arith.mulf %57, %57 : vector<256x32xf32>
    %cst_114 = arith.constant dense<0.000000e+00> : vector<32xf32>
    %67 = vector.multi_reduction <add>, %66, %cst_114 [0] : vector<256x32xf32> to vector<32xf32>
    %68 = vector.shape_cast %67 : vector<32xf32> to vector<1x32xf32>
    %c0_115 = arith.constant 0 : index
    %c1_116 = arith.constant 1 : index
    %c0_117 = arith.constant 0 : index
    %69 = vector.load %arg7[%c0_115, %c1_116, %c0_117] : memref<1x2x32xf32, #tpu.memory_space<vmem>>, vector<1x1x32xf32>
    %70 = vector.shape_cast %69 : vector<1x1x32xf32> to vector<1x32xf32>
    %71 = vector.shape_cast %68 : vector<1x32xf32> to vector<1x1x32xf32>
    tpu.vector_store %arg7[%c0_115, %c1_116, %c0_117], %71 {strides = array<i32>} : memref<1x2x32xf32, #tpu.memory_space<vmem>>, vector<1x1x32xf32>,
    return
  }
  func.func @transform_0(%arg0: i32) -> (i32, i32, i32, i32) {
    %c0_i32 = arith.constant 0 : i32
    %c0_i32_0 = arith.constant 0 : i32
    %c0_i32_1 = arith.constant 0 : i32
    %c0_i32_2 = arith.constant 0 : i32
    return %arg0, %c0_i32, %c0_i32_0, %c0_i32_1 : i32, i32, i32, i32
  }
  func.func @transform_1(%arg0: i32) -> (i32, i32) {
    %c0_i32 = arith.constant 0 : i32
    %c0_i32_0 = arith.constant 0 : i32
    %c0_i32_1 = arith.constant 0 : i32
    return %c0_i32, %c0_i32_0 : i32, i32
  }
  func.func @transform_2(%arg0: i32) -> (i32, i32) {
    %c0_i32 = arith.constant 0 : i32
    %c0_i32_0 = arith.constant 0 : i32
    %c0_i32_1 = arith.constant 0 : i32
    return %c0_i32, %c0_i32_0 : i32, i32
  }
  func.func @transform_3(%arg0: i32) -> (i32, i32) {
    %c0_i32 = arith.constant 0 : i32
    %c0_i32_0 = arith.constant 0 : i32
    %c0_i32_1 = arith.constant 0 : i32
    return %c0_i32, %c0_i32_0 : i32, i32
  }
  func.func @transform_4(%arg0: i32) -> (i32, i32) {
    %c0_i32 = arith.constant 0 : i32
    %c0_i32_0 = arith.constant 0 : i32
    %c0_i32_1 = arith.constant 0 : i32
    return %c0_i32, %c0_i32_0 : i32, i32
  }
  func.func @transform_5(%arg0: i32) -> (i32, i32, i32, i32) {
    %c0_i32 = arith.constant 0 : i32
    %c0_i32_0 = arith.constant 0 : i32
    %c0_i32_1 = arith.constant 0 : i32
    %c0_i32_2 = arith.constant 0 : i32
    return %arg0, %c0_i32, %c0_i32_0, %c0_i32_1 : i32, i32, i32, i32
  }
  func.func @transform_6(%arg0: i32) -> (i32, i32, i32) {
    %c0_i32 = arith.constant 0 : i32
    %c0_i32_0 = arith.constant 0 : i32
    %c0_i32_1 = arith.constant 0 : i32
    return %arg0, %c0_i32, %c0_i32_0 : i32, i32, i32
  }
}

module attributes {stable_mosaic.version = 11 : i64} {
  func.func @_bn_add_relu_kernel(%arg0: i32, %arg1: memref<512x128xbf16, #tpu.memory_space<vmem>>, %arg2: memref<2x128xf32, #tpu.memory_space<vmem>>, %arg3: memref<1x128xf32, #tpu.memory_space<vmem>>, %arg4: memref<1x128xf32, #tpu.memory_space<vmem>>, %arg5: memref<512x128xbf16, #tpu.memory_space<vmem>>, %arg6: memref<512x128xbf16, #tpu.memory_space<vmem>>) attributes {dimension_semantics = [#tpu.dimension_semantics<parallel>], iteration_bounds = array<i64: 1>, scalar_prefetch = 0 : i64, scratch_operands = 0 : i64, tpu.core_type = #tpu.core_type<tc>, window_params = [{transform_indices = @transform_0, window_bounds = array<i64: 512, 128>}, {pipeline_mode = #tpu.pipeline_mode<synchronous>, transform_indices = @transform_1, window_bounds = array<i64: 2, 128>}, {pipeline_mode = #tpu.pipeline_mode<synchronous>, transform_indices = @transform_2, window_bounds = array<i64: 1, 128>}, {pipeline_mode = #tpu.pipeline_mode<synchronous>, transform_indices = @transform_3, window_bounds = array<i64: 1, 128>}, {transform_indices = @transform_4, window_bounds = array<i64: 512, 128>}, {transform_indices = @transform_5, window_bounds = array<i64: 512, 128>}]} {
    %c0 = arith.constant 0 : index
    %c0_0 = arith.constant 0 : index
    %0 = vector.load %arg2[%c0, %c0_0] : memref<2x128xf32, #tpu.memory_space<vmem>>, vector<1x128xf32>
    %cst = arith.constant 0.001953125 : f32
    %1 = vector.broadcast %cst : f32 to vector<1x128xf32>
    %2 = arith.mulf %0, %1 : vector<1x128xf32>
    %c1 = arith.constant 1 : index
    %c0_1 = arith.constant 0 : index
    %3 = vector.load %arg2[%c1, %c0_1] : memref<2x128xf32, #tpu.memory_space<vmem>>, vector<1x128xf32>
    %cst_2 = arith.constant 0.001953125 : f32
    %4 = vector.broadcast %cst_2 : f32 to vector<1x128xf32>
    %5 = arith.mulf %3, %4 : vector<1x128xf32>
    %6 = arith.mulf %2, %2 : vector<1x128xf32>
    %7 = arith.subf %5, %6 : vector<1x128xf32>
    %c0_3 = arith.constant 0 : index
    %c0_4 = arith.constant 0 : index
    %8 = vector.load %arg3[%c0_3, %c0_4] : memref<1x128xf32, #tpu.memory_space<vmem>>, vector<1x128xf32>
    %cst_5 = arith.constant 9.99999974E-6 : f32
    %9 = vector.broadcast %cst_5 : f32 to vector<1x128xf32>
    %10 = arith.addf %7, %9 : vector<1x128xf32>
    %11 = math.rsqrt %10 : vector<1x128xf32>
    %12 = arith.mulf %8, %11 : vector<1x128xf32>
    %c0_6 = arith.constant 0 : index
    %c0_7 = arith.constant 0 : index
    %13 = vector.load %arg4[%c0_6, %c0_7] : memref<1x128xf32, #tpu.memory_space<vmem>>, vector<1x128xf32>
    %14 = arith.mulf %2, %12 : vector<1x128xf32>
    %15 = arith.subf %13, %14 : vector<1x128xf32>
    %c0_8 = arith.constant 0 : index
    %c0_9 = arith.constant 0 : index
    %16 = vector.load %arg1[%c0_8, %c0_9] : memref<512x128xbf16, #tpu.memory_space<vmem>>, vector<512x128xbf16>
    %17 = arith.extf %16 : vector<512x128xbf16> to vector<512x128xf32>
    %18 = vector.broadcast %12 : vector<1x128xf32> to vector<512x128xf32>
    %19 = arith.mulf %17, %18 : vector<512x128xf32>
    %20 = vector.broadcast %15 : vector<1x128xf32> to vector<512x128xf32>
    %21 = arith.addf %19, %20 : vector<512x128xf32>
    %c0_10 = arith.constant 0 : index
    %c0_11 = arith.constant 0 : index
    %22 = vector.load %arg5[%c0_10, %c0_11] : memref<512x128xbf16, #tpu.memory_space<vmem>>, vector<512x128xbf16>
    %23 = arith.extf %22 : vector<512x128xbf16> to vector<512x128xf32>
    %24 = arith.addf %21, %23 : vector<512x128xf32>
    %cst_12 = arith.constant 0.000000e+00 : f32
    %25 = vector.broadcast %cst_12 : f32 to vector<512x128xf32>
    %26 = arith.maximumf %24, %25 : vector<512x128xf32>
    %27 = arith.truncf %26 : vector<512x128xf32> to vector<512x128xbf16>
    %c0_13 = arith.constant 0 : index
    %c0_14 = arith.constant 0 : index
    %28 = vector.load %arg6[%c0_13, %c0_14] : memref<512x128xbf16, #tpu.memory_space<vmem>>, vector<512x128xbf16>
    tpu.vector_store %arg6[%c0_13, %c0_14], %27 {strides = array<i32>} : memref<512x128xbf16, #tpu.memory_space<vmem>>, vector<512x128xbf16>,
    return
  }
  func.func @transform_0(%arg0: i32) -> (i32, i32) {
    %c0_i32 = arith.constant 0 : i32
    %c0_i32_0 = arith.constant 0 : i32
    return %arg0, %c0_i32 : i32, i32
  }
  func.func @transform_1(%arg0: i32) -> (i32, i32) {
    %c0_i32 = arith.constant 0 : i32
    %c0_i32_0 = arith.constant 0 : i32
    %c0_i32_1 = arith.constant 0 : i32
    return %c0_i32, %c0_i32_0 : i32, i32
  }
  func.func @transform_2(%arg0: i32) -> (i32, i32) {
    %c0_i32 = arith.constant 0 : i32
    %c0_i32_0 = arith.constant 0 : i32
    %c0_i32_1 = arith.constant 0 : i32
    return %c0_i32, %c0_i32_0 : i32, i32
  }
  func.func @transform_3(%arg0: i32) -> (i32, i32) {
    %c0_i32 = arith.constant 0 : i32
    %c0_i32_0 = arith.constant 0 : i32
    %c0_i32_1 = arith.constant 0 : i32
    return %c0_i32, %c0_i32_0 : i32, i32
  }
  func.func @transform_4(%arg0: i32) -> (i32, i32) {
    %c0_i32 = arith.constant 0 : i32
    %c0_i32_0 = arith.constant 0 : i32
    return %arg0, %c0_i32 : i32, i32
  }
  func.func @transform_5(%arg0: i32) -> (i32, i32) {
    %c0_i32 = arith.constant 0 : i32
    %c0_i32_0 = arith.constant 0 : i32
    return %arg0, %c0_i32 : i32, i32
  }
}

module attributes {stable_mosaic.version = 11 : i64} {
  func.func @_conv3_kernel(%arg0: i32, %arg1: memref<512x32xbf16, #tpu.memory_space<vmem>>, %arg2: memref<2x32xf32, #tpu.memory_space<vmem>>, %arg3: memref<1x32xf32, #tpu.memory_space<vmem>>, %arg4: memref<1x32xf32, #tpu.memory_space<vmem>>, %arg5: memref<32x128xbf16, #tpu.memory_space<vmem>>, %arg6: memref<512x128xbf16, #tpu.memory_space<vmem>>, %arg7: memref<1x2x128xf32, #tpu.memory_space<vmem>>) attributes {dimension_semantics = [#tpu.dimension_semantics<parallel>], iteration_bounds = array<i64: 1>, scalar_prefetch = 0 : i64, scratch_operands = 0 : i64, tpu.core_type = #tpu.core_type<tc>, window_params = [{transform_indices = @transform_0, window_bounds = array<i64: 512, 32>}, {pipeline_mode = #tpu.pipeline_mode<synchronous>, transform_indices = @transform_1, window_bounds = array<i64: 2, 32>}, {pipeline_mode = #tpu.pipeline_mode<synchronous>, transform_indices = @transform_2, window_bounds = array<i64: 1, 32>}, {pipeline_mode = #tpu.pipeline_mode<synchronous>, transform_indices = @transform_3, window_bounds = array<i64: 1, 32>}, {pipeline_mode = #tpu.pipeline_mode<synchronous>, transform_indices = @transform_4, window_bounds = array<i64: 32, 128>}, {transform_indices = @transform_5, window_bounds = array<i64: 512, 128>}, {transform_indices = @transform_6, window_bounds = array<i64: 1, 2, 128>}]} {
    %c0 = arith.constant 0 : index
    %c0_0 = arith.constant 0 : index
    %0 = vector.load %arg2[%c0, %c0_0] : memref<2x32xf32, #tpu.memory_space<vmem>>, vector<1x32xf32>
    %cst = arith.constant 0.001953125 : f32
    %1 = vector.broadcast %cst : f32 to vector<1x32xf32>
    %2 = arith.mulf %0, %1 : vector<1x32xf32>
    %c1 = arith.constant 1 : index
    %c0_1 = arith.constant 0 : index
    %3 = vector.load %arg2[%c1, %c0_1] : memref<2x32xf32, #tpu.memory_space<vmem>>, vector<1x32xf32>
    %cst_2 = arith.constant 0.001953125 : f32
    %4 = vector.broadcast %cst_2 : f32 to vector<1x32xf32>
    %5 = arith.mulf %3, %4 : vector<1x32xf32>
    %6 = arith.mulf %2, %2 : vector<1x32xf32>
    %7 = arith.subf %5, %6 : vector<1x32xf32>
    %c0_3 = arith.constant 0 : index
    %c0_4 = arith.constant 0 : index
    %8 = vector.load %arg3[%c0_3, %c0_4] : memref<1x32xf32, #tpu.memory_space<vmem>>, vector<1x32xf32>
    %cst_5 = arith.constant 9.99999974E-6 : f32
    %9 = vector.broadcast %cst_5 : f32 to vector<1x32xf32>
    %10 = arith.addf %7, %9 : vector<1x32xf32>
    %11 = math.rsqrt %10 : vector<1x32xf32>
    %12 = arith.mulf %8, %11 : vector<1x32xf32>
    %c0_6 = arith.constant 0 : index
    %c0_7 = arith.constant 0 : index
    %13 = vector.load %arg4[%c0_6, %c0_7] : memref<1x32xf32, #tpu.memory_space<vmem>>, vector<1x32xf32>
    %14 = arith.mulf %2, %12 : vector<1x32xf32>
    %15 = arith.subf %13, %14 : vector<1x32xf32>
    %c0_8 = arith.constant 0 : index
    %c0_9 = arith.constant 0 : index
    %16 = vector.load %arg1[%c0_8, %c0_9] : memref<512x32xbf16, #tpu.memory_space<vmem>>, vector<512x32xbf16>
    %17 = arith.extf %16 : vector<512x32xbf16> to vector<512x32xf32>
    %18 = vector.broadcast %12 : vector<1x32xf32> to vector<512x32xf32>
    %19 = arith.mulf %17, %18 : vector<512x32xf32>
    %20 = vector.broadcast %15 : vector<1x32xf32> to vector<512x32xf32>
    %21 = arith.addf %19, %20 : vector<512x32xf32>
    %cst_10 = arith.constant 0.000000e+00 : f32
    %22 = vector.broadcast %cst_10 : f32 to vector<512x32xf32>
    %23 = arith.maximumf %21, %22 : vector<512x32xf32>
    %24 = arith.truncf %23 : vector<512x32xf32> to vector<512x32xbf16>
    %c0_11 = arith.constant 0 : index
    %c0_12 = arith.constant 0 : index
    %25 = vector.load %arg5[%c0_11, %c0_12] : memref<32x128xbf16, #tpu.memory_space<vmem>>, vector<32x128xbf16>
    %cst_13 = arith.constant dense<0.000000e+00> : vector<512x128xf32>
    %26 = tpu.matmul %24, %25, %cst_13 {dimension_numbers = #tpu.dot_dimension_numbers<[1], [0], [0], [1], [0, 0, 1, 1], [], []>} : vector<512x32xbf16>, vector<32x128xbf16>, vector<512x128xf32> -> vector<512x128xf32>
    %27 = arith.truncf %26 : vector<512x128xf32> to vector<512x128xbf16>
    %c0_14 = arith.constant 0 : index
    %c0_15 = arith.constant 0 : index
    %28 = vector.load %arg6[%c0_14, %c0_15] : memref<512x128xbf16, #tpu.memory_space<vmem>>, vector<512x128xbf16>
    tpu.vector_store %arg6[%c0_14, %c0_15], %27 {strides = array<i32>} : memref<512x128xbf16, #tpu.memory_space<vmem>>, vector<512x128xbf16>,
    %cst_16 = arith.constant dense<0.000000e+00> : vector<128xf32>
    %29 = vector.multi_reduction <add>, %26, %cst_16 [0] : vector<512x128xf32> to vector<128xf32>
    %30 = vector.shape_cast %29 : vector<128xf32> to vector<1x128xf32>
    %c0_17 = arith.constant 0 : index
    %c0_18 = arith.constant 0 : index
    %c0_19 = arith.constant 0 : index
    %31 = vector.load %arg7[%c0_17, %c0_18, %c0_19] : memref<1x2x128xf32, #tpu.memory_space<vmem>>, vector<1x1x128xf32>
    %32 = vector.shape_cast %31 : vector<1x1x128xf32> to vector<1x128xf32>
    %33 = vector.shape_cast %30 : vector<1x128xf32> to vector<1x1x128xf32>
    tpu.vector_store %arg7[%c0_17, %c0_18, %c0_19], %33 {strides = array<i32>} : memref<1x2x128xf32, #tpu.memory_space<vmem>>, vector<1x1x128xf32>,
    %34 = arith.mulf %26, %26 : vector<512x128xf32>
    %cst_20 = arith.constant dense<0.000000e+00> : vector<128xf32>
    %35 = vector.multi_reduction <add>, %34, %cst_20 [0] : vector<512x128xf32> to vector<128xf32>
    %36 = vector.shape_cast %35 : vector<128xf32> to vector<1x128xf32>
    %c0_21 = arith.constant 0 : index
    %c1_22 = arith.constant 1 : index
    %c0_23 = arith.constant 0 : index
    %37 = vector.load %arg7[%c0_21, %c1_22, %c0_23] : memref<1x2x128xf32, #tpu.memory_space<vmem>>, vector<1x1x128xf32>
    %38 = vector.shape_cast %37 : vector<1x1x128xf32> to vector<1x128xf32>
    %39 = vector.shape_cast %36 : vector<1x128xf32> to vector<1x1x128xf32>
    tpu.vector_store %arg7[%c0_21, %c1_22, %c0_23], %39 {strides = array<i32>} : memref<1x2x128xf32, #tpu.memory_space<vmem>>, vector<1x1x128xf32>,
    return
  }
  func.func @transform_0(%arg0: i32) -> (i32, i32) {
    %c0_i32 = arith.constant 0 : i32
    %c0_i32_0 = arith.constant 0 : i32
    return %arg0, %c0_i32 : i32, i32
  }
  func.func @transform_1(%arg0: i32) -> (i32, i32) {
    %c0_i32 = arith.constant 0 : i32
    %c0_i32_0 = arith.constant 0 : i32
    %c0_i32_1 = arith.constant 0 : i32
    return %c0_i32, %c0_i32_0 : i32, i32
  }
  func.func @transform_2(%arg0: i32) -> (i32, i32) {
    %c0_i32 = arith.constant 0 : i32
    %c0_i32_0 = arith.constant 0 : i32
    %c0_i32_1 = arith.constant 0 : i32
    return %c0_i32, %c0_i32_0 : i32, i32
  }
  func.func @transform_3(%arg0: i32) -> (i32, i32) {
    %c0_i32 = arith.constant 0 : i32
    %c0_i32_0 = arith.constant 0 : i32
    %c0_i32_1 = arith.constant 0 : i32
    return %c0_i32, %c0_i32_0 : i32, i32
  }
  func.func @transform_4(%arg0: i32) -> (i32, i32) {
    %c0_i32 = arith.constant 0 : i32
    %c0_i32_0 = arith.constant 0 : i32
    %c0_i32_1 = arith.constant 0 : i32
    return %c0_i32, %c0_i32_0 : i32, i32
  }
  func.func @transform_5(%arg0: i32) -> (i32, i32) {
    %c0_i32 = arith.constant 0 : i32
    %c0_i32_0 = arith.constant 0 : i32
    return %arg0, %c0_i32 : i32, i32
  }
  func.func @transform_6(%arg0: i32) -> (i32, i32, i32) {
    %c0_i32 = arith.constant 0 : i32
    %c0_i32_0 = arith.constant 0 : i32
    %c0_i32_1 = arith.constant 0 : i32
    return %arg0, %c0_i32, %c0_i32_0 : i32, i32, i32
  }
}

</mosaic_0001>

<bundles_post_ra>
// kernel: bottleneck_forward.4
= control target key start
LH: loop header
LB: loop body
LE: loop exit
PB: predicated region body
PF: predicated region fallthrough
CT: control target
= control target key end

     0   :  { %vm879_vm0 = vcmask 257024   ;;  %vm944_vm1 = vcmask 261120   ;;  %vm1078_vm2 = vcmask 253952   ;;  %s2384_s1 = inlined_call_operand.vmem [shape: bf16[128,32], index: 1, kind: input, shape index: {}]   ;;  %s2385_s0 = inlined_call_operand.vmem [shape: bf16[512,128], index: 0, kind: input, shape index: {}]   ;;  %s2386_s2 = inlined_call_operand.vmem [shape: bf16[512,32], index: 2, kind: output, shape index: {0}]   ;;  %s2387_s3 = inlined_call_operand.vmem [shape: f32[1,2,32], index: 3, kind: output, shape index: {1}]  }
   0x1   :  { %v1590_v0 = vld [vmem:[%s2384_s1] sm:$0xff]   ;;  %v1591_v1 = vld [vmem:[%s2384_s1 + $0x8] sm:$0xff]   ;;  %v1592_v2 = vld [vmem:[%s2384_s1 + $0x10] sm:$0xff]  }
   0x2   :  { %1494 = vmatprep.subr.bf16.mxu0 %v1590_v0  ;;  %1574 = vmatprep.subr.bf16.mxu1 %v1590_v0  ;;  %v1593_v3 = vld [vmem:[%s2384_s1 + $0x18] sm:$0xff]   ;;  %v1598_v4 = vld [vmem:[%s2385_s0] sm:$0xff]   ;;  %v1595_v6 = vld [vmem:[%s2384_s1 + $0x28] sm:$0xff]  }
   0x3   :  { %1495 = vmatpush3.bf16.msra.mxu0 %v1590_v0  ;;  %1582 = vmatpush3.bf16.msra.mxu1 %v1590_v0  ;;  %v1594_v5 = vld [vmem:[%s2384_s1 + $0x20] sm:$0xff]   ;;  %v1596_v7 = vld [vmem:[%s2384_s1 + $0x30] sm:$0xff]   ;;  %v1597_v8 = vld [vmem:[%s2384_s1 + $0x38] sm:$0xff]  }
   0x4   :  { %1496 = vmatprep.subr.bf16.mxu0 %v1591_v1  ;;  %1575 = vmatprep.subr.bf16.mxu1 %v1591_v1  ;;  %v1614_v9 = vld [vmem:[%s2385_s0 + $0x80] sm:$0xff]   ;;  %v1599_v10 = vld [vmem:[%s2385_s0 + $0x8] sm:$0xff]   ;;  %v1600_v11 = vld [vmem:[%s2385_s0 + $0x10] sm:$0xff]  }
   0x5   :  { %1510 = vmatprep.mubr.bf16.mxu0 %v1598_v4  ;;  %1542 = vmatprep.mubr.bf16.mxu1 %v1614_v9  ;;  %v1615_v12 = vld [vmem:[%s2385_s0 + $0x88] sm:$0xff]   ;;  %v1616_v13 = vld [vmem:[%s2385_s0 + $0x90] sm:$0xff]   ;;  %v1601_v14 = vld [vmem:[%s2385_s0 + $0x18] sm:$0xff]  }
   0x6   :  { %v1602_v15 = vld [vmem:[%s2385_s0 + $0x20] sm:$0xff]   ;;  %v1617_v16 = vld [vmem:[%s2385_s0 + $0x98] sm:$0xff]   ;;  %v1603_v18 = vld [vmem:[%s2385_s0 + $0x28] sm:$0xff]  }
   0x7   :  { %1497 = vmatpush3.bf16.msra.mxu0 %v1591_v1  ;;  %1583 = vmatpush3.bf16.msra.mxu1 %v1591_v1  ;;  %v1618_v17 = vld [vmem:[%s2385_s0 + $0xa0] sm:$0xff]   ;;  %v1619_v19 = vld [vmem:[%s2385_s0 + $0xa8] sm:$0xff]   ;;  %v1604_v20 = vld [vmem:[%s2385_s0 + $0x30] sm:$0xff]  }
   0x8   :  { %1498 = vmatprep.subr.bf16.mxu0 %v1592_v2  ;;  %1576 = vmatprep.subr.bf16.mxu1 %v1592_v2  ;;  %v1620_v21 = vld [vmem:[%s2385_s0 + $0xb0] sm:$0xff]   ;;  %v1605_v22 = vld [vmem:[%s2385_s0 + $0x38] sm:$0xff]   ;;  %v1606_v24 = vld [vmem:[%s2385_s0 + $0x40] sm:$0xff]  }
   0x9   :  { %v1621_v23 = vld [vmem:[%s2385_s0 + $0xb8] sm:$0xff]   ;;  %v1622_v25 = vld [vmem:[%s2385_s0 + $0xc0] sm:$0xff]   ;;  %v1607_v26 = vld [vmem:[%s2385_s0 + $0x48] sm:$0xff]  }
   0xa   :  { %v1623_v27 = vld [vmem:[%s2385_s0 + $0xc8] sm:$0xff]   ;;  %v1608_v28 = vld [vmem:[%s2385_s0 + $0x50] sm:$0xff]   ;;  %v1609_v30 = vld [vmem:[%s2385_s0 + $0x58] sm:$0xff]  }
   0xb   :  { %1499 = vmatpush3.bf16.msra.mxu0 %v1592_v2  ;;  %1584 = vmatpush3.bf16.msra.mxu1 %v1592_v2  ;;  %v1624_v29 = vld [vmem:[%s2385_s0 + $0xd0] sm:$0xff]   ;;  %v1625_v31 = vld [vmem:[%s2385_s0 + $0xd8] sm:$0xff]   ;;  %v1610_v32 = vld [vmem:[%s2385_s0 + $0x60] sm:$0xff]  }
   0xc   :  { %1500 = vmatprep.subr.bf16.mxu0 %v1593_v3  ;;  %1577 = vmatprep.subr.bf16.mxu1 %v1593_v3  ;;  %v1626_v33 = vld [vmem:[%s2385_s0 + $0xe0] sm:$0xff]   ;;  %v1611_v34 = vld [vmem:[%s2385_s0 + $0x68] sm:$0xff]   ;;  %v1612_v36 = vld [vmem:[%s2385_s0 + $0x70] sm:$0xff]  }
   0xd   :  { %v1627_v35 = vld [vmem:[%s2385_s0 + $0xe8] sm:$0xff]   ;;  %v1628_v37 = vld [vmem:[%s2385_s0 + $0xf0] sm:$0xff]   ;;  %v1613_v38 = vld [vmem:[%s2385_s0 + $0x78] sm:$0xff]  }
   0xe   :  { %v1629_v39 = vld [vmem:[%s2385_s0 + $0xf8] sm:$0xff]  }
   0xf   :  { %1501 = vmatpush3.bf16.msra.mxu0 %v1593_v3  ;;  %1585 = vmatpush3.bf16.msra.mxu1 %v1593_v3 }
  0x10   :  { %1502 = vmatprep.subr.bf16.mxu0 %v1594_v5  ;;  %1578 = vmatprep.subr.bf16.mxu1 %v1594_v5 }
  0x13   :  { %1503 = vmatpush3.bf16.msra.mxu0 %v1594_v5  ;;  %1586 = vmatpush3.bf16.msra.mxu1 %v1594_v5 }
  0x14   :  { %1504 = vmatprep.subr.bf16.mxu0 %v1595_v6  ;;  %1579 = vmatprep.subr.bf16.mxu1 %v1595_v6 }
  0x17   :  { %1505 = vmatpush3.bf16.msra.mxu0 %v1595_v6  ;;  %1587 = vmatpush3.bf16.msra.mxu1 %v1595_v6 }
  0x18   :  { %1506 = vmatprep.subr.bf16.mxu0 %v1596_v7  ;;  %1580 = vmatprep.subr.bf16.mxu1 %v1596_v7 }
  0x1b   :  { %1507 = vmatpush3.bf16.msra.mxu0 %v1596_v7  ;;  %1588 = vmatpush3.bf16.msra.mxu1 %v1596_v7 }
  0x1c   :  { %1508 = vmatprep.subr.bf16.mxu0 %v1597_v8  ;;  %1581 = vmatprep.subr.bf16.mxu1 %v1597_v8 }
  0x1f   :  { %1509 = vmatpush3.bf16.msra.mxu0 %v1597_v8  ;;  %1589 = vmatpush3.bf16.msra.mxu1 %v1597_v8 }
  0x22   :  { %1511 = vmatmul.mubr.bf16.vlgmr.msra.gmra.mrb[0].mxu0 %v1599_v10  ;;  %1543 = vmatmul.mubr.bf16.vlgmr.msra.gmra.mrb[0].mxu1 %v1615_v12 }
  0x23   :  { %1514 = vmatprep.mubr.bf16.mxu0 %v1600_v11  ;;  %1546 = vmatprep.mubr.bf16.mxu1 %v1616_v13 }
  0x2a   :  { %1515 = vmatmul.mubr.bf16.gmra.mrb[4].mxu0 %v1601_v14  ;;  %1547 = vmatmul.mubr.bf16.gmra.mrb[4].mxu1 %v1617_v16 }
  0x2b   :  { %1518 = vmatprep.mubr.bf16.mxu0 %v1602_v15  ;;  %1550 = vmatprep.mubr.bf16.mxu1 %v1618_v17 }
  0x32   :  { %1519 = vmatmul.mubr.bf16.gmra.mrb[8].mxu0 %v1603_v18  ;;  %1551 = vmatmul.mubr.bf16.gmra.mrb[8].mxu1 %v1619_v19 }
  0x33   :  { %1522 = vmatprep.mubr.bf16.mxu0 %v1604_v20  ;;  %1554 = vmatprep.mubr.bf16.mxu1 %v1620_v21 }
  0x3a   :  { %1523 = vmatmul.mubr.bf16.gmra.mrb[12].mxu0 %v1605_v22  ;;  %1555 = vmatmul.mubr.bf16.gmra.mrb[12].mxu1 %v1621_v23 }
  0x3b   :  { %1526 = vmatprep.mubr.bf16.mxu0 %v1606_v24  ;;  %1558 = vmatprep.mubr.bf16.mxu1 %v1622_v25 }
  0x42   :  { %1527 = vmatmul.mubr.bf16.gmra.mrb[16].mxu0 %v1607_v26  ;;  %1559 = vmatmul.mubr.bf16.gmra.mrb[16].mxu1 %v1623_v27 }
  0x43   :  { %1530 = vmatprep.mubr.bf16.mxu0 %v1608_v28  ;;  %1562 = vmatprep.mubr.bf16.mxu1 %v1624_v29 }
  0x4a   :  { %1531 = vmatmul.mubr.bf16.gmra.mrb[20].mxu0 %v1609_v30  ;;  %1563 = vmatmul.mubr.bf16.gmra.mrb[20].mxu1 %v1625_v31 }
  0x4b   :  { %1534 = vmatprep.mubr.bf16.mxu0 %v1610_v32  ;;  %1566 = vmatprep.mubr.bf16.mxu1 %v1626_v33 }
  0x52   :  { %1535 = vmatmul.mubr.bf16.gmra.mrb[24].mxu0 %v1611_v34  ;;  %1567 = vmatmul.mubr.bf16.gmra.mrb[24].mxu1 %v1627_v35 }
  0x53   :  { %1538 = vmatprep.mubr.bf16.mxu0 %v1612_v36  ;;  %1570 = vmatprep.mubr.bf16.mxu1 %v1628_v37 }
  0x5a   :  { %1539 = vmatmul.mubr.bf16.gmra.mrb[28].mxu0 %v1613_v38  ;;  %1571 = vmatmul.mubr.bf16.gmra.mrb[28].mxu1 %v1629_v39 }
  0xf5   :  { %v1512_v40 = vpop.f32.mrb[0].mxu0  ;;  %v1770_v41 = vpop.f32.mrb[0].mxu1 }
  0xf6   :  { %v1392_v42 = vpack.c.bf16 %v1512_v40, %v1512_v40  ;;  %v368_v43 = vpop.f32.mrb[1].mxu0  ;;  %v1424_v44 = vpack.c.bf16 %v1770_v41, %v1770_v41  ;;  %v1774_v45 = vpop.f32.mrb[1].mxu1  ;;  %v1082_v50 = vmul.f32 %v1512_v40, %v1512_v40  ;;  %v948_v61 = vsel %vm944_vm1, %v1512_v40, 0.0 }
  0xf7   :  { %v1390_v46 = vpack.c.bf16 %v368_v43, %v368_v43  ;;  %v1080_v47 = vmul.f32 %v368_v43, %v368_v43  ;;  %v1513_v48 = vpop.f32.mrb[2].mxu0  ;;  %v1776_v49 = vpop.f32.mrb[2].mxu1  ;;  %v945_v54 = vsel %vm944_vm1, %v368_v43, 0.0  ;;  %v1422_v60 = vpack.c.bf16 %v1774_v45, %v1774_v45 }
  0xf8   :  { %882 = vst.msk [vmem:[%s2386_s2 + $0x8] sm:$0xf] %vm879_vm0, %v1392_v42  ;;  %v1393_v51 = vpack.c.bf16 %v1513_v48, %v1513_v48  ;;  %v371_v52 = vpop.f32.mrb[3].mxu0  ;;  %914 = vst.msk [vmem:[%s2386_s2 + $0x88] sm:$0xf] %vm879_vm0, %v1424_v44  ;;  %v1786_v53 = vpop.f32.mrb[3].mxu1  ;;  %v1083_v58 = vmul.f32 %v1513_v48, %v1513_v48  ;;  %v1425_v0 = vpack.c.bf16 %v1776_v49, %v1776_v49 }
  0xf9   :  { %880 = vst.msk [vmem:[%s2386_s2] sm:$0xf] %vm879_vm0, %v1390_v46  ;;  %v1391_v55 = vpack.c.bf16 %v371_v52, %v371_v52  ;;  %v946_v56 = vsel %vm944_vm1, %v371_v52, 0.0  ;;  %v1081_v57 = vmul.f32 %v371_v52, %v371_v52  ;;  %v1144_v62 = vsel %vm944_vm1, %v1080_v47, 0.0  ;;  %912 = vst.msk [vmem:[%s2386_s2 + $0x80] sm:$0xf] %vm879_vm0, %v1422_v60 }
  0xfa   :  { %883 = vst.msk [vmem:[%s2386_s2 + $0xc] sm:$0xf] %vm879_vm0, %v1393_v51  ;;  %v947_v59 = vadd.f32 %v946_v56, %v945_v54  ;;  %v1147_v3 = vsel %vm944_vm1, %v1082_v50, 0.0  ;;  %915 = vst.msk [vmem:[%s2386_s2 + $0x8c] sm:$0xf] %vm879_vm0, %v1425_v0  ;;  %v1423_v5 = vpack.c.bf16 %v1786_v53, %v1786_v53  ;;  %v950_v7 = vsel %vm944_vm1, %v1513_v48, 0.0 }
  0xfb   :  { %881 = vst.msk [vmem:[%s2386_s2 + $0x4] sm:$0xf] %vm879_vm0, %v1391_v55  ;;  %v1145_v63 = vsel %vm944_vm1, %v1081_v57, 0.0  ;;  %v1149_v8 = vsel %vm944_vm1, %v1083_v58, 0.0 }
  0xfc   :  { %v949_v1 = vadd.f32 %v948_v61, %v947_v59  ;;  %v1146_v2 = vadd.f32 %v1145_v63, %v1144_v62  ;;  %913 = vst.msk [vmem:[%s2386_s2 + $0x84] sm:$0xf] %vm879_vm0, %v1423_v5 }
  0xfd   :  { %v1516_v4 = vpop.f32.mrb[4].mxu0  ;;  %v1820_v6 = vpop.f32.mrb[4].mxu1 }
  0xfe   :  { %v1148_v9 = vadd.f32 %v1147_v3, %v1146_v2  ;;  %v1396_v10 = vpack.c.bf16 %v1516_v4, %v1516_v4  ;;  %v384_v11 = vpop.f32.mrb[5].mxu0  ;;  %v1824_v12 = vpop.f32.mrb[5].mxu1  ;;  %v951_v14 = vadd.f32 %v950_v7, %v949_v1  ;;  %v1086_v26 = vmul.f32 %v1516_v4, %v1516_v4 }
  0xff   :  { %v1394_v13 = vpack.c.bf16 %v384_v11, %v384_v11  ;;  %v952_v15 = vsel %vm944_vm1, %v384_v11, 0.0  ;;  %v1084_v16 = vmul.f32 %v384_v11, %v384_v11  ;;  %v1517_v17 = vpop.f32.mrb[6].mxu0  ;;  %v1831_v18 = vpop.f32.mrb[6].mxu1  ;;  %v1428_v31 = vpack.c.bf16 %v1820_v6, %v1820_v6 }
 0x100   :  { %886 = vst.msk [vmem:[%s2386_s2 + $0x18] sm:$0xf] %vm879_vm0, %v1396_v10  ;;  %v1150_v19 = vadd.f32 %v1149_v8, %v1148_v9  ;;  %v1397_v20 = vpack.c.bf16 %v1517_v17, %v1517_v17  ;;  %v387_v21 = vpop.f32.mrb[7].mxu0  ;;  %v1837_v22 = vpop.f32.mrb[7].mxu1  ;;  %v953_v23 = vadd.f32 %v952_v15, %v951_v14  ;;  %v956_v32 = vsel %vm944_vm1, %v1516_v4, 0.0 }
 0x101   :  { %884 = vst.msk [vmem:[%s2386_s2 + $0x10] sm:$0xf] %vm879_vm0, %v1394_v13  ;;  %v1151_v24 = vsel %vm944_vm1, %v1084_v16, 0.0  ;;  %v1395_v25 = vpack.c.bf16 %v387_v21, %v387_v21  ;;  %v954_v28 = vsel %vm944_vm1, %v387_v21, 0.0  ;;  %v1085_v29 = vmul.f32 %v387_v21, %v387_v21  ;;  %918 = vst.msk [vmem:[%s2386_s2 + $0x98] sm:$0xf] %vm879_vm0, %v1428_v31 }
 0x102   :  { %v1152_v27 = vadd.f32 %v1151_v24, %v1150_v19  ;;  %887 = vst.msk [vmem:[%s2386_s2 + $0x1c] sm:$0xf] %vm879_vm0, %v1397_v20  ;;  %v955_v30 = vadd.f32 %v954_v28, %v953_v23  ;;  %v1087_v33 = vmul.f32 %v1517_v17, %v1517_v17  ;;  %v1426_v35 = vpack.c.bf16 %v1824_v12, %v1824_v12 }
 0x103   :  { %885 = vst.msk [vmem:[%s2386_s2 + $0x14] sm:$0xf] %vm879_vm0, %v1395_v25  ;;  %v1153_v34 = vsel %vm944_vm1, %v1085_v29, 0.0  ;;  %v1155_v40 = vsel %vm944_vm1, %v1086_v26, 0.0  ;;  %v958_v42 = vsel %vm944_vm1, %v1517_v17, 0.0  ;;  %v1429_v5 = vpack.c.bf16 %v1831_v18, %v1831_v18 }
 0x104   :  { %v957_v36 = vadd.f32 %v956_v32, %v955_v30  ;;  %v1154_v37 = vadd.f32 %v1153_v34, %v1152_v27  ;;  %916 = vst.msk [vmem:[%s2386_s2 + $0x90] sm:$0xf] %vm879_vm0, %v1426_v35  ;;  %v1157_v55 = vsel %vm944_vm1, %v1087_v33, 0.0  ;;  %v1427_v14 = vpack.c.bf16 %v1837_v22, %v1837_v22 }
 0x105   :  { %v1520_v38 = vpop.f32.mrb[8].mxu0  ;;  %v1863_v39 = vpop.f32.mrb[8].mxu1  ;;  %919 = vst.msk [vmem:[%s2386_s2 + $0x9c] sm:$0xf] %vm879_vm0, %v1429_v5 }
 0x106   :  { %v1400_v43 = vpack.c.bf16 %v1520_v38, %v1520_v38  ;;  %v400_v44 = vpop.f32.mrb[9].mxu0  ;;  %v1871_v46 = vpop.f32.mrb[9].mxu1  ;;  %v1156_v47 = vadd.f32 %v1155_v40, %v1154_v37  ;;  %v959_v50 = vadd.f32 %v958_v42, %v957_v36  ;;  %v1090_v63 = vmul.f32 %v1520_v38, %v1520_v38  ;;  %917 = vst.msk [vmem:[%s2386_s2 + $0x94] sm:$0xf] %vm879_vm0, %v1427_v14 }
 0x107   :  { %v1398_v48 = vpack.c.bf16 %v400_v44, %v400_v44  ;;  %v960_v51 = vsel %vm944_vm1, %v400_v44, 0.0  ;;  %v1521_v52 = vpop.f32.mrb[10].mxu0  ;;  %v1874_v54 = vpop.f32.mrb[10].mxu1  ;;  %v1088_v56 = vmul.f32 %v400_v44, %v400_v44  ;;  %v964_v7 = vsel %vm944_vm1, %v1520_v38, 0.0 }
 0x108   :  { %890 = vst.msk [vmem:[%s2386_s2 + $0x28] sm:$0xf] %vm879_vm0, %v1400_v43  ;;  %v1401_v57 = vpack.c.bf16 %v1521_v52, %v1521_v52  ;;  %v403_v58 = vpop.f32.mrb[11].mxu0  ;;  %v1881_v59 = vpop.f32.mrb[11].mxu1  ;;  %v961_v60 = vadd.f32 %v960_v51, %v959_v50  ;;  %v1158_v61 = vadd.f32 %v1157_v55, %v1156_v47  ;;  %v1091_v8 = vmul.f32 %v1521_v52, %v1521_v52 }
 0x109   :  { %888 = vst.msk [vmem:[%s2386_s2 + $0x20] sm:$0xf] %vm879_vm0, %v1398_v48  ;;  %v1399_v62 = vpack.c.bf16 %v403_v58, %v403_v58  ;;  %v1159_v0 = vsel %vm944_vm1, %v1088_v56, 0.0  ;;  %v962_v1 = vsel %vm944_vm1, %v403_v58, 0.0  ;;  %v1089_v2 = vmul.f32 %v403_v58, %v403_v58 }
 0x10a   :  { %891 = vst.msk [vmem:[%s2386_s2 + $0x2c] sm:$0xf] %vm879_vm0, %v1401_v57  ;;  %v1160_v3 = vadd.f32 %v1159_v0, %v1158_v61  ;;  %v963_v4 = vadd.f32 %v962_v1, %v961_v60  ;;  %v1163_v16 = vsel %vm944_vm1, %v1090_v63, 0.0  ;;  %v966_v17 = vsel %vm944_vm1, %v1521_v52, 0.0 }
 0x10b   :  { %889 = vst.msk [vmem:[%s2386_s2 + $0x24] sm:$0xf] %vm879_vm0, %v1399_v62  ;;  %v1161_v9 = vsel %vm944_vm1, %v1089_v2, 0.0  ;;  %v1165_v29 = vsel %vm944_vm1, %v1091_v8, 0.0  ;;  %v1432_v47 = vpack.c.bf16 %v1863_v39, %v1863_v39  ;;  %v1430_v57 = vpack.c.bf16 %v1871_v46, %v1871_v46 }
 0x10c   :  { %v965_v10 = vadd.f32 %v964_v7, %v963_v4  ;;  %v1162_v11 = vadd.f32 %v1161_v9, %v1160_v3 }
 0x10d   :  { %v1524_v13 = vpop.f32.mrb[12].mxu0  ;;  %v1907_v15 = vpop.f32.mrb[12].mxu1  ;;  %922 = vst.msk [vmem:[%s2386_s2 + $0xa8] sm:$0xf] %vm879_vm0, %v1432_v47  ;;  %920 = vst.msk [vmem:[%s2386_s2 + $0xa0] sm:$0xf] %vm879_vm0, %v1430_v57 }
 0x10e   :  { %v1404_v19 = vpack.c.bf16 %v1524_v13, %v1524_v13  ;;  %v416_v20 = vpop.f32.mrb[13].mxu0  ;;  %v1911_v21 = vpop.f32.mrb[13].mxu1  ;;  %v1164_v23 = vadd.f32 %v1163_v16, %v1162_v11  ;;  %v967_v25 = vadd.f32 %v966_v17, %v965_v10  ;;  %v1094_v37 = vmul.f32 %v1524_v13, %v1524_v13 }
 0x10f   :  { %v1402_v24 = vpack.c.bf16 %v416_v20, %v416_v20  ;;  %v968_v26 = vsel %vm944_vm1, %v416_v20, 0.0  ;;  %v1525_v27 = vpop.f32.mrb[14].mxu0  ;;  %v1918_v28 = vpop.f32.mrb[14].mxu1  ;;  %v1092_v30 = vmul.f32 %v416_v20, %v416_v20  ;;  %v972_v48 = vsel %vm944_vm1, %v1524_v13, 0.0 }
 0x110   :  { %894 = vst.msk [vmem:[%s2386_s2 + $0x38] sm:$0xf] %vm879_vm0, %v1404_v19  ;;  %v1405_v31 = vpack.c.bf16 %v1525_v27, %v1525_v27  ;;  %v419_v32 = vpop.f32.mrb[15].mxu0  ;;  %v1925_v33 = vpop.f32.mrb[15].mxu1  ;;  %v969_v34 = vadd.f32 %v968_v26, %v967_v25  ;;  %v1166_v35 = vadd.f32 %v1165_v29, %v1164_v23  ;;  %v1095_v50 = vmul.f32 %v1525_v27, %v1525_v27 }
 0x111   :  { %892 = vst.msk [vmem:[%s2386_s2 + $0x30] sm:$0xf] %vm879_vm0, %v1402_v24  ;;  %v1403_v36 = vpack.c.bf16 %v419_v32, %v419_v32  ;;  %v1167_v38 = vsel %vm944_vm1, %v1092_v30, 0.0  ;;  %v970_v40 = vsel %vm944_vm1, %v419_v32, 0.0  ;;  %v1093_v42 = vmul.f32 %v419_v32, %v419_v32 }
 0x112   :  { %895 = vst.msk [vmem:[%s2386_s2 + $0x3c] sm:$0xf] %vm879_vm0, %v1405_v31  ;;  %v1168_v43 = vadd.f32 %v1167_v38, %v1166_v35  ;;  %v971_v44 = vadd.f32 %v970_v40, %v969_v34  ;;  %v1171_v60 = vsel %vm944_vm1, %v1094_v37, 0.0  ;;  %v974_v61 = vsel %vm944_vm1, %v1525_v27, 0.0 }
 0x113   :  { %893 = vst.msk [vmem:[%s2386_s2 + $0x34] sm:$0xf] %vm879_vm0, %v1403_v36  ;;  %v1169_v51 = vsel %vm944_vm1, %v1093_v42, 0.0  ;;  %v1173_v8 = vsel %vm944_vm1, %v1095_v50, 0.0  ;;  %v1433_v27 = vpack.c.bf16 %v1874_v54, %v1874_v54  ;;  %v1431_v36 = vpack.c.bf16 %v1881_v59, %v1881_v59 }
 0x114   :  { %v973_v52 = vadd.f32 %v972_v48, %v971_v44  ;;  %v1170_v55 = vadd.f32 %v1169_v51, %v1168_v43 }
 0x115   :  { %v1528_v56 = vpop.f32.mrb[16].mxu0  ;;  %v1951_v58 = vpop.f32.mrb[16].mxu1  ;;  %923 = vst.msk [vmem:[%s2386_s2 + $0xac] sm:$0xf] %vm879_vm0, %v1433_v27  ;;  %921 = vst.msk [vmem:[%s2386_s2 + $0xa4] sm:$0xf] %vm879_vm0, %v1431_v36 }
 0x116   :  { %v1408_v62 = vpack.c.bf16 %v1528_v56, %v1528_v56  ;;  %v432_v63 = vpop.f32.mrb[17].mxu0  ;;  %v1955_v0 = vpop.f32.mrb[17].mxu1  ;;  %v1172_v1 = vadd.f32 %v1171_v60, %v1170_v55  ;;  %v975_v3 = vadd.f32 %v974_v61, %v973_v52  ;;  %v1098_v19 = vmul.f32 %v1528_v56, %v1528_v56 }
 0x117   :  { %v1406_v2 = vpack.c.bf16 %v432_v63, %v432_v63  ;;  %v976_v4 = vsel %vm944_vm1, %v432_v63, 0.0  ;;  %v1529_v5 = vpop.f32.mrb[18].mxu0  ;;  %v1962_v7 = vpop.f32.mrb[18].mxu1  ;;  %v1096_v9 = vmul.f32 %v432_v63, %v432_v63  ;;  %v980_v29 = vsel %vm944_vm1, %v1528_v56, 0.0 }
 0x118   :  { %898 = vst.msk [vmem:[%s2386_s2 + $0x48] sm:$0xf] %vm879_vm0, %v1408_v62  ;;  %v1409_v10 = vpack.c.bf16 %v1529_v5, %v1529_v5  ;;  %v435_v11 = vpop.f32.mrb[19].mxu0  ;;  %v1969_v13 = vpop.f32.mrb[19].mxu1  ;;  %v977_v14 = vadd.f32 %v976_v4, %v975_v3  ;;  %v1174_v16 = vadd.f32 %v1173_v8, %v1172_v1  ;;  %v1099_v30 = vmul.f32 %v1529_v5, %v1529_v5 }
 0x119   :  { %896 = vst.msk [vmem:[%s2386_s2 + $0x40] sm:$0xf] %vm879_vm0, %v1406_v2  ;;  %v1407_v17 = vpack.c.bf16 %v435_v11, %v435_v11  ;;  %v1175_v20 = vsel %vm944_vm1, %v1096_v9, 0.0  ;;  %v978_v23 = vsel %vm944_vm1, %v435_v11, 0.0  ;;  %v1097_v24 = vmul.f32 %v435_v11, %v435_v11 }
 0x11a   :  { %899 = vst.msk [vmem:[%s2386_s2 + $0x4c] sm:$0xf] %vm879_vm0, %v1409_v10  ;;  %v1176_v25 = vadd.f32 %v1175_v20, %v1174_v16  ;;  %v979_v26 = vadd.f32 %v978_v23, %v977_v14  ;;  %v1179_v38 = vsel %vm944_vm1, %v1098_v19, 0.0  ;;  %v982_v40 = vsel %vm944_vm1, %v1529_v5, 0.0 }
 0x11b   :  { %897 = vst.msk [vmem:[%s2386_s2 + $0x44] sm:$0xf] %vm879_vm0, %v1407_v17  ;;  %v1177_v31 = vsel %vm944_vm1, %v1097_v24, 0.0  ;;  %v1181_v56 = vsel %vm944_vm1, %v1099_v30, 0.0  ;;  %v1436_v11 = vpack.c.bf16 %v1907_v15, %v1907_v15  ;;  %v1434_v24 = vpack.c.bf16 %v1911_v21, %v1911_v21 }
 0x11c   :  { %v981_v32 = vadd.f32 %v980_v29, %v979_v26  ;;  %v1178_v34 = vadd.f32 %v1177_v31, %v1176_v25 }
 0x11d   :  { %v1532_v35 = vpop.f32.mrb[20].mxu0  ;;  %v1995_v37 = vpop.f32.mrb[20].mxu1  ;;  %926 = vst.msk [vmem:[%s2386_s2 + $0xb8] sm:$0xf] %vm879_vm0, %v1436_v11  ;;  %924 = vst.msk [vmem:[%s2386_s2 + $0xb0] sm:$0xf] %vm879_vm0, %v1434_v24 }
 0x11e   :  { %v1412_v42 = vpack.c.bf16 %v1532_v35, %v1532_v35  ;;  %v448_v43 = vpop.f32.mrb[21].mxu0  ;;  %v1999_v44 = vpop.f32.mrb[21].mxu1  ;;  %v1180_v47 = vadd.f32 %v1179_v38, %v1178_v34  ;;  %v983_v50 = vadd.f32 %v982_v40, %v981_v32  ;;  %v1102_v3 = vmul.f32 %v1532_v35, %v1532_v35 }
 0x11f   :  { %v1410_v48 = vpack.c.bf16 %v448_v43, %v448_v43  ;;  %v984_v51 = vsel %vm944_vm1, %v448_v43, 0.0  ;;  %v1533_v52 = vpop.f32.mrb[22].mxu0  ;;  %v2006_v55 = vpop.f32.mrb[22].mxu1  ;;  %v1100_v57 = vmul.f32 %v448_v43, %v448_v43  ;;  %v988_v14 = vsel %vm944_vm1, %v1532_v35, 0.0 }
 0x120   :  { %902 = vst.msk [vmem:[%s2386_s2 + $0x58] sm:$0xf] %vm879_vm0, %v1412_v42  ;;  %v1413_v60 = vpack.c.bf16 %v1533_v52, %v1533_v52  ;;  %v451_v61 = vpop.f32.mrb[23].mxu0  ;;  %v2013_v62 = vpop.f32.mrb[23].mxu1  ;;  %v985_v63 = vadd.f32 %v984_v51, %v983_v50  ;;  %v1182_v1 = vadd.f32 %v1181_v56, %v1180_v47  ;;  %v1103_v16 = vmul.f32 %v1533_v52, %v1533_v52 }
 0x121   :  { %900 = vst.msk [vmem:[%s2386_s2 + $0x50] sm:$0xf] %vm879_vm0, %v1410_v48  ;;  %v1411_v2 = vpack.c.bf16 %v451_v61, %v451_v61  ;;  %v1183_v4 = vsel %vm944_vm1, %v1100_v57, 0.0  ;;  %v986_v5 = vsel %vm944_vm1, %v451_v61, 0.0  ;;  %v1101_v8 = vmul.f32 %v451_v61, %v451_v61 }
 0x122   :  { %903 = vst.msk [vmem:[%s2386_s2 + $0x5c] sm:$0xf] %vm879_vm0, %v1413_v60  ;;  %v1184_v9 = vadd.f32 %v1183_v4, %v1182_v1  ;;  %v987_v10 = vadd.f32 %v986_v5, %v985_v63  ;;  %v1187_v26 = vsel %vm944_vm1, %v1102_v3, 0.0  ;;  %v990_v27 = vsel %vm944_vm1, %v1533_v52, 0.0 }
 0x123   :  { %901 = vst.msk [vmem:[%s2386_s2 + $0x54] sm:$0xf] %vm879_vm0, %v1411_v2  ;;  %v1185_v17 = vsel %vm944_vm1, %v1101_v8, 0.0  ;;  %v1189_v42 = vsel %vm944_vm1, %v1103_v16, 0.0  ;;  %v1437_v3 = vpack.c.bf16 %v1918_v28, %v1918_v28 }
 0x124   :  { %v989_v19 = vadd.f32 %v988_v14, %v987_v10  ;;  %v1186_v20 = vadd.f32 %v1185_v17, %v1184_v9  ;;  %v1435_v14 = vpack.c.bf16 %v1925_v33, %v1925_v33 }
 0x125   :  { %v1536_v23 = vpop.f32.mrb[24].mxu0  ;;  %v2039_v25 = vpop.f32.mrb[24].mxu1  ;;  %927 = vst.msk [vmem:[%s2386_s2 + $0xbc] sm:$0xf] %vm879_vm0, %v1437_v3 }
 0x126   :  { %v1416_v29 = vpack.c.bf16 %v1536_v23, %v1536_v23  ;;  %v464_v30 = vpop.f32.mrb[25].mxu0  ;;  %v2043_v31 = vpop.f32.mrb[25].mxu1  ;;  %v1188_v32 = vadd.f32 %v1187_v26, %v1186_v20  ;;  %v991_v35 = vadd.f32 %v990_v27, %v989_v19  ;;  %v1106_v57 = vmul.f32 %v1536_v23, %v1536_v23  ;;  %925 = vst.msk [vmem:[%s2386_s2 + $0xb4] sm:$0xf] %vm879_vm0, %v1435_v14 }
 0x127   :  { %v1414_v34 = vpack.c.bf16 %v464_v30, %v464_v30  ;;  %v992_v36 = vsel %vm944_vm1, %v464_v30, 0.0  ;;  %v1537_v38 = vpop.f32.mrb[26].mxu0  ;;  %v2050_v40 = vpop.f32.mrb[26].mxu1  ;;  %v1104_v43 = vmul.f32 %v464_v30, %v464_v30  ;;  %v996_v4 = vsel %vm944_vm1, %v1536_v23, 0.0 }
 0x128   :  { %906 = vst.msk [vmem:[%s2386_s2 + $0x68] sm:$0xf] %vm879_vm0, %v1416_v29  ;;  %v1417_v47 = vpack.c.bf16 %v1537_v38, %v1537_v38  ;;  %v467_v48 = vpop.f32.mrb[27].mxu0  ;;  %v2057_v50 = vpop.f32.mrb[27].mxu1  ;;  %v993_v51 = vadd.f32 %v992_v36, %v991_v35  ;;  %v1190_v52 = vadd.f32 %v1189_v42, %v1188_v32  ;;  %v1107_v5 = vmul.f32 %v1537_v38, %v1537_v38 }
 0x129   :  { %904 = vst.msk [vmem:[%s2386_s2 + $0x60] sm:$0xf] %vm879_vm0, %v1414_v34  ;;  %v1415_v56 = vpack.c.bf16 %v467_v48, %v467_v48  ;;  %v1191_v60 = vsel %vm944_vm1, %v1104_v43, 0.0  ;;  %v994_v61 = vsel %vm944_vm1, %v467_v48, 0.0  ;;  %v1105_v63 = vmul.f32 %v467_v48, %v467_v48 }
 0x12a   :  { %907 = vst.msk [vmem:[%s2386_s2 + $0x6c] sm:$0xf] %vm879_vm0, %v1417_v47  ;;  %v1192_v1 = vadd.f32 %v1191_v60, %v1190_v52  ;;  %v995_v2 = vadd.f32 %v994_v61, %v993_v51  ;;  %v1195_v17 = vsel %vm944_vm1, %v1106_v57, 0.0  ;;  %v998_v19 = vsel %vm944_vm1, %v1537_v38, 0.0 }
 0x12b   :  { %905 = vst.msk [vmem:[%s2386_s2 + $0x64] sm:$0xf] %vm879_vm0, %v1415_v56  ;;  %v1193_v8 = vsel %vm944_vm1, %v1105_v63, 0.0  ;;  %v1197_v35 = vsel %vm944_vm1, %v1107_v5, 0.0  ;;  %v1112_v5 = vmul.f32 %v1774_v45, %v1774_v45 }
 0x12c   :  { %v997_v9 = vadd.f32 %v996_v4, %v995_v2  ;;  %v1194_v10 = vadd.f32 %v1193_v8, %v1192_v1  ;;  %v1440_v1 = vpack.c.bf16 %v1951_v58, %v1951_v58 }
 0x12d   :  { %v1540_v11 = vpop.f32.mrb[28].mxu0  ;;  %v2083_v16 = vpop.f32.mrb[28].mxu1 }
 0x12e   :  { %v1420_v20 = vpack.c.bf16 %v1540_v11, %v1540_v11  ;;  %v480_v23 = vpop.f32.mrb[29].mxu0  ;;  %v2087_v24 = vpop.f32.mrb[29].mxu1  ;;  %v1196_v26 = vadd.f32 %v1195_v17, %v1194_v10  ;;  %v999_v29 = vadd.f32 %v998_v19, %v997_v9  ;;  %v1110_v52 = vmul.f32 %v1540_v11, %v1540_v11  ;;  %930 = vst.msk [vmem:[%s2386_s2 + $0xc8] sm:$0xf] %vm879_vm0, %v1440_v1 }
 0x12f   :  { %v1418_v27 = vpack.c.bf16 %v480_v23, %v480_v23  ;;  %v1000_v30 = vsel %vm944_vm1, %v480_v23, 0.0  ;;  %v1541_v32 = vpop.f32.mrb[30].mxu0  ;;  %v2094_v34 = vpop.f32.mrb[30].mxu1  ;;  %v1108_v36 = vmul.f32 %v480_v23, %v480_v23  ;;  %v1004_v2 = vsel %vm944_vm1, %v1540_v11, 0.0 }
 0x130   :  { %910 = vst.msk [vmem:[%s2386_s2 + $0x78] sm:$0xf] %vm879_vm0, %v1420_v20  ;;  %v1421_v38 = vpack.c.bf16 %v1541_v32, %v1541_v32  ;;  %v483_v42 = vpop.f32.mrb[31].mxu0  ;;  %v2101_v43 = vpop.f32.mrb[31].mxu1  ;;  %v1001_v47 = vadd.f32 %v1000_v30, %v999_v29  ;;  %v1198_v48 = vadd.f32 %v1197_v35, %v1196_v26  ;;  %v1111_v3 = vmul.f32 %v1541_v32, %v1541_v32 }
 0x131   :  { %908 = vst.msk [vmem:[%s2386_s2 + $0x70] sm:$0xf] %vm879_vm0, %v1418_v27  ;;  %v1419_v51 = vpack.c.bf16 %v483_v42, %v483_v42  ;;  %v1199_v56 = vsel %vm944_vm1, %v1108_v36, 0.0  ;;  %v1002_v57 = vsel %vm944_vm1, %v483_v42, 0.0  ;;  %v1109_v60 = vmul.f32 %v483_v42, %v483_v42 }
 0x132   :  { %911 = vst.msk [vmem:[%s2386_s2 + $0x7c] sm:$0xf] %vm879_vm0, %v1421_v38  ;;  %v1200_v61 = vadd.f32 %v1199_v56, %v1198_v48  ;;  %v1003_v63 = vadd.f32 %v1002_v57, %v1001_v47  ;;  %v1438_v10 = vpack.c.bf16 %v1955_v0, %v1955_v0  ;;  %v1203_v14 = vsel %vm944_vm1, %v1110_v52, 0.0 }
 0x133   :  { %909 = vst.msk [vmem:[%s2386_s2 + $0x74] sm:$0xf] %vm879_vm0, %v1419_v51  ;;  %v1201_v4 = vsel %vm944_vm1, %v1109_v60, 0.0  ;;  %v1006_v11 = vsel %vm944_vm1, %v1541_v32, 0.0  ;;  %v1008_v17 = vsel %vm944_vm1, %v1774_v45, 0.0  ;;  %v1441_v19 = vpack.c.bf16 %v1962_v7, %v1962_v7 }
 0x134   :  { %v1005_v8 = vadd.f32 %v1004_v2, %v1003_v63  ;;  %v1202_v9 = vadd.f32 %v1201_v4, %v1200_v61  ;;  %928 = vst.msk [vmem:[%s2386_s2 + $0xc0] sm:$0xf] %vm879_vm0, %v1438_v10  ;;  %v1439_v26 = vpack.c.bf16 %v1969_v13, %v1969_v13  ;;  %v1205_v27 = vsel %vm944_vm1, %v1111_v3, 0.0 }
 0x135   :  { %v1207_v29 = vsel %vm944_vm1, %v1112_v5, 0.0  ;;  %v1113_v45 = vmul.f32 %v1786_v53, %v1786_v53  ;;  %931 = vst.msk [vmem:[%s2386_s2 + $0xcc] sm:$0xf] %vm879_vm0, %v1441_v19  ;;  %v1444_v30 = vpack.c.bf16 %v1995_v37, %v1995_v37  ;;  %v1114_v36 = vmul.f32 %v1770_v41, %v1770_v41 }
 0x136   :  { %v1204_v20 = vadd.f32 %v1203_v14, %v1202_v9  ;;  %v1007_v23 = vadd.f32 %v1006_v11, %v1005_v8  ;;  %929 = vst.msk [vmem:[%s2386_s2 + $0xc4] sm:$0xf] %vm879_vm0, %v1439_v26  ;;  %v1010_v38 = vsel %vm944_vm1, %v1786_v53, 0.0  ;;  %v1442_v42 = vpack.c.bf16 %v1999_v44, %v1999_v44 }
 0x137   :  { %934 = vst.msk [vmem:[%s2386_s2 + $0xd8] sm:$0xf] %vm879_vm0, %v1444_v30  ;;  %v1012_v47 = vsel %vm944_vm1, %v1770_v41, 0.0  ;;  %v1445_v52 = vpack.c.bf16 %v2006_v55, %v2006_v55  ;;  %v1115_v56 = vmul.f32 %v1776_v49, %v1776_v49  ;;  %v1209_v53 = vsel %vm944_vm1, %v1113_v45, 0.0 }
 0x138   :  { %v1009_v32 = vadd.f32 %v1008_v17, %v1007_v23  ;;  %v1206_v35 = vadd.f32 %v1205_v27, %v1204_v20  ;;  %v1116_v57 = vmul.f32 %v1824_v12, %v1824_v12  ;;  %932 = vst.msk [vmem:[%s2386_s2 + $0xd0] sm:$0xf] %vm879_vm0, %v1442_v42  ;;  %v1443_v41 = vpack.c.bf16 %v2013_v62, %v2013_v62 }
 0x139   :  { %935 = vst.msk [vmem:[%s2386_s2 + $0xdc] sm:$0xf] %vm879_vm0, %v1445_v52  ;;  %v1211_v63 = vsel %vm944_vm1, %v1114_v36, 0.0  ;;  %v1014_v1 = vsel %vm944_vm1, %v1776_v49, 0.0  ;;  %v1016_v2 = vsel %vm944_vm1, %v1824_v12, 0.0  ;;  %v1448_v3 = vpack.c.bf16 %v2039_v25, %v2039_v25 }
 0x13a   :  { %v1208_v48 = vadd.f32 %v1207_v29, %v1206_v35  ;;  %v1011_v51 = vadd.f32 %v1010_v38, %v1009_v32  ;;  %933 = vst.msk [vmem:[%s2386_s2 + $0xd4] sm:$0xf] %vm879_vm0, %v1443_v41  ;;  %v1446_v8 = vpack.c.bf16 %v2043_v31, %v2043_v31  ;;  %v1213_v9 = vsel %vm944_vm1, %v1115_v56, 0.0 }
 0x13b   :  { %v1215_v49 = vsel %vm944_vm1, %v1116_v57, 0.0  ;;  %v1117_v12 = vmul.f32 %v1837_v22, %v1837_v22  ;;  %938 = vst.msk [vmem:[%s2386_s2 + $0xe8] sm:$0xf] %vm879_vm0, %v1448_v3  ;;  %v1449_v10 = vpack.c.bf16 %v2050_v40, %v2050_v40  ;;  %v1118_v17 = vmul.f32 %v1820_v6, %v1820_v6 }
 0x13c   :  { %v1013_v60 = vadd.f32 %v1012_v47, %v1011_v51  ;;  %v1210_v61 = vadd.f32 %v1209_v53, %v1208_v48  ;;  %936 = vst.msk [vmem:[%s2386_s2 + $0xe0] sm:$0xf] %vm879_vm0, %v1446_v8  ;;  %v1018_v19 = vsel %vm944_vm1, %v1837_v22, 0.0  ;;  %v1447_v20 = vpack.c.bf16 %v2057_v50, %v2057_v50 }
 0x13d   :  { %939 = vst.msk [vmem:[%s2386_s2 + $0xec] sm:$0xf] %vm879_vm0, %v1449_v10  ;;  %v1020_v23 = vsel %vm944_vm1, %v1820_v6, 0.0  ;;  %v1452_v29 = vpack.c.bf16 %v2083_v16, %v2083_v16  ;;  %v1119_v45 = vmul.f32 %v1831_v18, %v1831_v18  ;;  %v1217_v22 = vsel %vm944_vm1, %v1117_v12, 0.0 }
 0x13e   :  { %v1212_v4 = vadd.f32 %v1211_v63, %v1210_v61  ;;  %v1015_v5 = vadd.f32 %v1014_v1, %v1013_v60  ;;  %v1120_v30 = vmul.f32 %v1871_v46, %v1871_v46  ;;  %937 = vst.msk [vmem:[%s2386_s2 + $0xe4] sm:$0xf] %vm879_vm0, %v1447_v20  ;;  %v1450_v6 = vpack.c.bf16 %v2087_v24, %v2087_v24 }
 0x13f   :  { %942 = vst.msk [vmem:[%s2386_s2 + $0xf8] sm:$0xf] %vm879_vm0, %v1452_v29  ;;  %v1219_v36 = vsel %vm944_vm1, %v1118_v17, 0.0  ;;  %v1022_v38 = vsel %vm944_vm1, %v1831_v18, 0.0  ;;  %v1024_v42 = vsel %vm944_vm1, %v1871_v46, 0.0  ;;  %v1453_v47 = vpack.c.bf16 %v2094_v34, %v2094_v34 }
 0x140   :  { %v1017_v14 = vadd.f32 %v1016_v2, %v1015_v5  ;;  %v1214_v11 = vadd.f32 %v1213_v9, %v1212_v4  ;;  %940 = vst.msk [vmem:[%s2386_s2 + $0xf0] sm:$0xf] %vm879_vm0, %v1450_v6  ;;  %v1451_v52 = vpack.c.bf16 %v2101_v43, %v2101_v43  ;;  %v1221_v56 = vsel %vm944_vm1, %v1119_v45, 0.0 }
 0x141   :  { %v1223_v18 = vsel %vm944_vm1, %v1120_v30, 0.0  ;;  %v1121_v46 = vmul.f32 %v1881_v59, %v1881_v59  ;;  %943 = vst.msk [vmem:[%s2386_s2 + $0xfc] sm:$0xf] %vm879_vm0, %v1453_v47  ;;  %v1122_v41 = vmul.f32 %v1863_v39, %v1863_v39  ;;  %v1026_v60 = vsel %vm944_vm1, %v1881_v59, 0.0 }
 0x142   :  { %v1216_v26 = vadd.f32 %v1215_v49, %v1214_v11  ;;  %v1019_v27 = vadd.f32 %v1018_v19, %v1017_v14  ;;  %941 = vst.msk [vmem:[%s2386_s2 + $0xf4] sm:$0xf] %vm879_vm0, %v1451_v52  ;;  %v1028_v1 = vsel %vm944_vm1, %v1863_v39, 0.0  ;;  %v1123_v2 = vmul.f32 %v1874_v54, %v1874_v54 }
 0x143   :  { %v1225_v3 = vsel %vm944_vm1, %v1121_v46, 0.0  ;;  %v1124_v4 = vmul.f32 %v1911_v21, %v1911_v21  ;;  %v1227_v9 = vsel %vm944_vm1, %v1122_v41, 0.0  ;;  %v1030_v59 = vsel %vm944_vm1, %v1874_v54, 0.0 }
 0x144   :  { %v1021_v32 = vadd.f32 %v1020_v23, %v1019_v27  ;;  %v1218_v35 = vadd.f32 %v1217_v22, %v1216_v26  ;;  %v1032_v49 = vsel %vm944_vm1, %v1911_v21, 0.0  ;;  %v1229_v10 = vsel %vm944_vm1, %v1123_v2, 0.0 }
 0x145   :  { %v1231_v14 = vsel %vm944_vm1, %v1124_v4, 0.0  ;;  %v1125_v11 = vmul.f32 %v1925_v33, %v1925_v33  ;;  %v1126_v20 = vmul.f32 %v1907_v15, %v1907_v15  ;;  %v1034_v54 = vsel %vm944_vm1, %v1925_v33, 0.0 }
 0x146   :  { %v1220_v48 = vadd.f32 %v1219_v36, %v1218_v35  ;;  %v1023_v51 = vadd.f32 %v1022_v38, %v1021_v32  ;;  %v1036_v21 = vsel %vm944_vm1, %v1907_v15, 0.0  ;;  %v1127_v27 = vmul.f32 %v1918_v28, %v1918_v28 }
 0x147   :  { %v1233_v29 = vsel %vm944_vm1, %v1125_v11, 0.0  ;;  %v1128_v45 = vmul.f32 %v1955_v0, %v1955_v0  ;;  %v1235_v6 = vsel %vm944_vm1, %v1126_v20, 0.0  ;;  %v1038_v33 = vsel %vm944_vm1, %v1918_v28, 0.0 }
 0x148   :  { %v1025_v53 = vadd.f32 %v1024_v42, %v1023_v51  ;;  %v1222_v57 = vadd.f32 %v1221_v56, %v1220_v48  ;;  %v1040_v32 = vsel %vm944_vm1, %v1955_v0, 0.0  ;;  %v1237_v36 = vsel %vm944_vm1, %v1127_v27, 0.0 }
 0x149   :  { %v1239_v38 = vsel %vm944_vm1, %v1128_v45, 0.0  ;;  %v1129_v42 = vmul.f32 %v1969_v13, %v1969_v13  ;;  %v1130_v51 = vmul.f32 %v1951_v58, %v1951_v58  ;;  %v1042_v28 = vsel %vm944_vm1, %v1969_v13, 0.0 }
 0x14a   :  { %v1224_v61 = vadd.f32 %v1223_v18, %v1222_v57  ;;  %v1027_v63 = vadd.f32 %v1026_v60, %v1025_v53  ;;  %v1044_v0 = vsel %vm944_vm1, %v1951_v58, 0.0  ;;  %v1131_v18 = vmul.f32 %v1962_v7, %v1962_v7 }
 0x14b   :  { %v1241_v46 = vsel %vm944_vm1, %v1129_v42, 0.0  ;;  %v1132_v53 = vmul.f32 %v1999_v44, %v1999_v44  ;;  %v1243_v60 = vsel %vm944_vm1, %v1130_v51, 0.0  ;;  %v1046_v13 = vsel %vm944_vm1, %v1962_v7, 0.0 }
 0x14c   :  { %v1029_v5 = vadd.f32 %v1028_v1, %v1027_v63  ;;  %v1226_v8 = vadd.f32 %v1225_v3, %v1224_v61  ;;  %v1048_v61 = vsel %vm944_vm1, %v1999_v44, 0.0  ;;  %v1245_v1 = vsel %vm944_vm1, %v1131_v18, 0.0 }
 0x14d   :  { %v1247_v2 = vsel %vm944_vm1, %v1132_v53, 0.0  ;;  %v1133_v3 = vmul.f32 %v2013_v62, %v2013_v62  ;;  %v1050_v7 = vsel %vm944_vm1, %v2013_v62, 0.0  ;;  %v1052_v44 = vsel %vm944_vm1, %v1995_v37, 0.0 }
 0x14e   :  { %v1228_v12 = vadd.f32 %v1227_v9, %v1226_v8  ;;  %v1031_v39 = vadd.f32 %v1030_v59, %v1029_v5  ;;  %v1134_v8 = vmul.f32 %v1995_v37, %v1995_v37  ;;  %v1054_v62 = vsel %vm944_vm1, %v2006_v55, 0.0 }
 0x14f   :  { %v1138_v27 = vmul.f32 %v2039_v25, %v2039_v25 }
 0x150   :  { %v1033_v17 = vadd.f32 %v1032_v49, %v1031_v39  ;;  %v1230_v19 = vadd.f32 %v1229_v10, %v1228_v12  ;;  %v1135_v49 = vmul.f32 %v2006_v55, %v2006_v55  ;;  %v1249_v12 = vsel %vm944_vm1, %v1133_v3, 0.0 }
 0x151   :  { %v1136_v39 = vmul.f32 %v2043_v31, %v2043_v31  ;;  %v1251_v11 = vsel %vm944_vm1, %v1134_v8, 0.0  ;;  %v1058_v55 = vsel %vm944_vm1, %v2057_v50, 0.0 }
 0x152   :  { %v1232_v23 = vadd.f32 %v1231_v14, %v1230_v19  ;;  %v1035_v26 = vadd.f32 %v1034_v54, %v1033_v17  ;;  %v1056_v17 = vsel %vm944_vm1, %v2043_v31, 0.0  ;;  %v1253_v20 = vsel %vm944_vm1, %v1135_v49, 0.0 }
 0x153   :  { %v1255_v54 = vsel %vm944_vm1, %v1136_v39, 0.0  ;;  %v1060_v31 = vsel %vm944_vm1, %v2039_v25, 0.0 }
 0x154   :  { %v1037_v22 = vadd.f32 %v1036_v21, %v1035_v26  ;;  %v1234_v30 = vadd.f32 %v1233_v29, %v1232_v23  ;;  %v1137_v23 = vmul.f32 %v2057_v50, %v2057_v50  ;;  %v1062_v50 = vsel %vm944_vm1, %v2050_v40, 0.0 }
 0x156   :  { %v1236_v35 = vadd.f32 %v1235_v6, %v1234_v30  ;;  %v1039_v15 = vadd.f32 %v1038_v33, %v1037_v22  ;;  %v1139_v22 = vmul.f32 %v2050_v40, %v2050_v40  ;;  %v1257_v30 = vsel %vm944_vm1, %v1137_v23, 0.0 }
 0x157   :  { %v1140_v6 = vmul.f32 %v2087_v24, %v2087_v24  ;;  %v1066_v40 = vsel %vm944_vm1, %v2101_v43, 0.0 }
 0x158   :  { %v1041_v47 = vadd.f32 %v1040_v32, %v1039_v15  ;;  %v1238_v48 = vadd.f32 %v1237_v36, %v1236_v35  ;;  %v1259_v35 = vsel %vm944_vm1, %v1138_v27, 0.0  ;;  %v1064_v15 = vsel %vm944_vm1, %v2087_v24, 0.0 }
 0x159   :  { %v1263_v42 = vsel %vm944_vm1, %v1140_v6, 0.0  ;;  %v1068_v24 = vsel %vm944_vm1, %v2083_v16, 0.0 }
 0x15a   :  { %v1240_v52 = vadd.f32 %v1239_v38, %v1238_v48  ;;  %v1043_v56 = vadd.f32 %v1042_v28, %v1041_v47  ;;  %v1261_v38 = vsel %vm944_vm1, %v1139_v22, 0.0  ;;  %v1141_v47 = vmul.f32 %v2101_v43, %v2101_v43 }
 0x15b   :  { %v1142_v28 = vmul.f32 %v2083_v16, %v2083_v16 }
 0x15c   :  { %v1045_v57 = vadd.f32 %v1044_v0, %v1043_v56  ;;  %v1242_v41 = vadd.f32 %v1241_v46, %v1240_v52  ;;  %v1143_v0 = vmul.f32 %v2094_v34, %v2094_v34  ;;  %v1265_v18 = vsel %vm944_vm1, %v1141_v47, 0.0 }
 0x15e   :  { %v1244_v63 = vadd.f32 %v1243_v60, %v1242_v41  ;;  %v1047_v58 = vadd.f32 %v1046_v13, %v1045_v57  ;;  %v1267_v57 = vsel %vm944_vm1, %v1142_v28, 0.0  ;;  %v1070_v41 = vsel %vm944_vm1, %v2094_v34, 0.0 }
 0x15f   :  { %v1269_v43 = vsel %vm944_vm1, %v1143_v0, 0.0 }
 0x160   :  { %v1049_v4 = vadd.f32 %v1048_v61, %v1047_v58  ;;  %v1246_v5 = vadd.f32 %v1245_v1, %v1244_v63 }
 0x162   :  { %v1248_v9 = vadd.f32 %v1247_v2, %v1246_v5  ;;  %v1051_v59 = vadd.f32 %v1050_v7, %v1049_v4 }
 0x164   :  { %v1053_v10 = vadd.f32 %v1052_v44, %v1051_v59  ;;  %v1250_v14 = vadd.f32 %v1249_v12, %v1248_v9 }
 0x166   :  { %v1252_v19 = vadd.f32 %v1251_v11, %v1250_v14  ;;  %v1055_v37 = vadd.f32 %v1054_v62, %v1053_v10 }
 0x168   :  { %v1057_v26 = vadd.f32 %v1056_v17, %v1055_v37  ;;  %v1254_v21 = vadd.f32 %v1253_v20, %v1252_v19 }
 0x16a   :  { %v1256_v29 = vadd.f32 %v1255_v54, %v1254_v21  ;;  %v1059_v45 = vadd.f32 %v1058_v55, %v1057_v26 }
 0x16c   :  { %v1061_v33 = vadd.f32 %v1060_v31, %v1059_v45  ;;  %v1258_v32 = vadd.f32 %v1257_v30, %v1256_v29 }
 0x16e   :  { %v1260_v36 = vadd.f32 %v1259_v35, %v1258_v32  ;;  %v1063_v25 = vadd.f32 %v1062_v50, %v1061_v33 }
 0x170   :  { %v1065_v48 = vadd.f32 %v1064_v15, %v1063_v25  ;;  %v1262_v51 = vadd.f32 %v1261_v38, %v1260_v36 }
 0x172   :  { %v1264_v52 = vadd.f32 %v1263_v42, %v1262_v51  ;;  %v1067_v56 = vadd.f32 %v1066_v40, %v1065_v48 }
 0x174   :  { %v1069_v46 = vadd.f32 %v1068_v24, %v1067_v56  ;;  %v1266_v53 = vadd.f32 %v1265_v18, %v1264_v52 }
 0x176   :  { %v1071_v60 = vadd.f32 %v1070_v41, %v1069_v46  ;;  %v1268_v13 = vadd.f32 %v1267_v57, %v1266_v53 }
 0x178   :  { %v1072_v61 = vrot.slane %v1071_v60, 4  ;;  %v1270_v63 = vadd.f32 %v1269_v43, %v1268_v13 }
 0x17a   :  { %v1073_v58 = vadd.f32 %v1072_v61, %v1071_v60  ;;  %v1271_v16 = vrot.slane %v1270_v63, 4 }
 0x17c   :  { %v1074_v1 = vrot.slane %v1073_v58, 2  ;;  %v1272_v2 = vadd.f32 %v1271_v16, %v1270_v63 }
 0x17e   :  { %v1075_v3 = vadd.f32 %v1074_v1, %v1073_v58  ;;  %v1273_v4 = vrot.slane %v1272_v2, 2 }
 0x180   :  { %v1076_v5 = vrot.slane %v1075_v3, 1  ;;  %v1274_v8 = vadd.f32 %v1273_v4, %v1272_v2 }
 0x182   :  { %v1077_v7 = vadd.f32 %v1076_v5, %v1075_v3  ;;  %v1275_v9 = vrot.slane %v1274_v8, 1 }
 0x184   :  { %1079 = vst.msk [vmem:[%s2387_s3] sm:$0x1] %vm1078_vm2, %v1077_v7  ;;  %v1276_v34 = vadd.f32 %v1275_v9, %v1274_v8 }
 0x186   :  { %1277 = vst.msk [vmem:[%s2387_s3 + $0x1] sm:$0x1] %vm1078_vm2, %v1276_v34 }

// kernel: bottleneck_forward.7
= control target key start
LH: loop header
LB: loop body
LE: loop exit
PB: predicated region body
PF: predicated region fallthrough
CT: control target
= control target key end

     0   :  { %v163_v2 = vlaneseq  ;;  %s2271_s0 = inlined_call_operand.vmem [shape: bf16[512,128], index: 0, kind: input, shape index: {}]   ;;  %s2272_s1 = inlined_call_operand.vmem [shape: f32[2,128], index: 1, kind: input, shape index: {}]   ;;  %s2273_s2 = inlined_call_operand.vmem [shape: f32[1,128], index: 2, kind: input, shape index: {}]   ;;  %s2274_s3 = inlined_call_operand.vmem [shape: f32[1,128], index: 3, kind: input, shape index: {}]   ;;  %s2275_s4 = inlined_call_operand.vmem [shape: bf16[512,128], index: 4, kind: input, shape index: {}]   ;;  %s2276_s5 = inlined_call_operand.hbm [shape: bf16[512,128], index: 5, kind: output, shape index: {}]  }
   0x1   :  { %v21_v0 = vld [vmem:[%s2272_s1] sm:$0x1]  ;;  %v23_v1 = vld [vmem:[%s2272_s1 + $0x1] sm:$0x1]  ;;  %v1619_v11 = vld [vmem:[%s2271_s0 + $0x8] sm:$0xff]  }
   0x2   :  { %v1599_v3 = vmul.f32 0.001953125, %v21_v0  ;;  %v24_v4 = vmul.f32 0.001953125, %v23_v1  ;;  %v1604_v5 = vld [vmem:[%s2271_s0] sm:$0xff]   ;;  %v1613_v9 = vshrl.u32 %v163_v2, 7  ;;  %v1624_v12 = vld [vmem:[%s2275_s4 + $0x8] sm:$0xff]   ;;  %v1629_v13 = vld [vmem:[%s2271_s0 + $0x10] sm:$0xff]   ;;  %v1028_v16 = vunpack.c.l.bf16 %v1619_v11 }
   0x3   :  { %v1609_v6 = vld [vmem:[%s2275_s4] sm:$0xff]   ;;  %v1024_v7 = vunpack.c.l.bf16 %v1604_v5  ;;  %v1025_v8 = vunpack.c.h.bf16 %v1604_v5  ;;  %v1029_v17 = vunpack.c.h.bf16 %v1619_v11  ;;  %v1639_v18 = vld [vmem:[%s2275_s4 + $0x10] sm:$0xff]   ;;  %v1644_v19 = vld [vmem:[%s2271_s0 + $0x18] sm:$0xff]   ;;  %v1032_v24 = vunpack.c.l.bf16 %v1629_v13 }
   0x4   :  { %v25_v14 = vmul.f32 %v1599_v3, %v1599_v3  ;;  %v1649_v20 = vld [vmem:[%s2275_s4 + $0x18] sm:$0xff]   ;;  %v165_v21 = vsub.s32 0, %v1613_v9  ;;  %v1658_v25 = vld [vmem:[%s2271_s0 + $0x20] sm:$0xff]   ;;  %v1033_v28 = vunpack.c.h.bf16 %v1629_v13  ;;  %v1671_v31 = vld [vmem:[%s2271_s0 + $0x28] sm:$0xff]   ;;  %v1036_v33 = vunpack.c.l.bf16 %v1644_v19 }
   0x5   :  { %v1663_v26 = vld [vmem:[%s2275_s4 + $0x20] sm:$0xff]   ;;  %v1676_v32 = vld [vmem:[%s2275_s4 + $0x28] sm:$0xff]   ;;  %v1037_v34 = vunpack.c.h.bf16 %v1644_v19  ;;  %v1685_v37 = vld [vmem:[%s2271_s0 + $0x30] sm:$0xff]   ;;  %v1040_v39 = vunpack.c.l.bf16 %v1658_v25  ;;  %v1041_v40 = vunpack.c.h.bf16 %v1658_v25 }
   0x6   :  { %v26_v27 = vsub.f32 %v24_v4, %v25_v14  ;;  %v1693_v42 = vld [vmem:[%s2275_s4 + $0x30] sm:$0xff]   ;;  %v1698_v43 = vld [vmem:[%s2271_s0 + $0x38] sm:$0xff]   ;;  %v1712_v49 = vld [vmem:[%s2271_s0 + $0x40] sm:$0xff]  }
   0x7   :  { %v1707_v48 = vld [vmem:[%s2275_s4 + $0x38] sm:$0xff]   ;;  %v1720_v53 = vld [vmem:[%s2275_s4 + $0x40] sm:$0xff]   ;;  %v1725_v54 = vld [vmem:[%s2271_s0 + $0x48] sm:$0xff]  }
   0x8   :  { %v28_v38 = vadd.f32 1e-05, %v26_v27  ;;  %v1734_v59 = vld [vmem:[%s2275_s4 + $0x48] sm:$0xff]   ;;  %v1739_v60 = vld [vmem:[%s2271_s0 + $0x50] sm:$0xff]   ;;  %v1753_v2 = vld [vmem:[%s2271_s0 + $0x58] sm:$0xff]  }
   0x9   :  { %v1748_v1 = vld [vmem:[%s2275_s4 + $0x50] sm:$0xff]   ;;  %v1762_v0 = vld [vmem:[%s2275_s4 + $0x58] sm:$0xff]   ;;  %v1767_v62 = vld [vmem:[%s2271_s0 + $0x60] sm:$0xff]  }
   0xa   :  { %1534 = vrsqrt.f32 %v28_v38  ;;  %v1776_v38 = vld [vmem:[%s2275_s4 + $0x60] sm:$0xff]   ;;  %v1781_v63 = vld [vmem:[%s2271_s0 + $0x68] sm:$0xff]   ;;  %v1795_v55 = vld [vmem:[%s2271_s0 + $0x70] sm:$0xff]  }
   0xb   :  { %v1790_v27 = vld [vmem:[%s2275_s4 + $0x68] sm:$0xff]   ;;  %v1804_v14 = vld [vmem:[%s2275_s4 + $0x70] sm:$0xff]   ;;  %v1809_v57 = vld [vmem:[%s2271_s0 + $0x78] sm:$0xff]  }
   0xc   :  { %v1818_v4 = vld [vmem:[%s2275_s4 + $0x78] sm:$0xff]   ;;  %v1823_v47 = vld [vmem:[%s2271_s0 + $0x80] sm:$0xff]   ;;  %v1840_v36 = vld [vmem:[%s2271_s0 + $0x88] sm:$0xff]  }
   0xd   :  { %v27_v50 = vld [vmem:[%s2273_s2] sm:$0x1]  ;;  %v1849_v44 = vld [vmem:[%s2275_s4 + $0x88] sm:$0xff]   ;;  %v1854_v30 = vld [vmem:[%s2271_s0 + $0x90] sm:$0xff]  }
   0xe   :  { %v1835_v41 = vld [vmem:[%s2275_s4 + $0x80] sm:$0xff]   ;;  %v1863_v61 = vld [vmem:[%s2275_s4 + $0x90] sm:$0xff]   ;;  %v1871_v35 = vld [vmem:[%s2271_s0 + $0x98] sm:$0xff]  }
   0xf   :  { %v1876_v56 = vld [vmem:[%s2275_s4 + $0x98] sm:$0xff]  }
  0x10   :  { %2279 = vst [vmem:[#allocation5_spill] sm:$0xff] %v1876_v56 }
  0x14   :  { %v1535_v29 = vpop.eup %1534 }
  0x15   :  { %v30_v22 = vmul.f32 %v1535_v29, %v27_v50  ;;  %v31_v29 = vld [vmem:[%s2274_s3] sm:$0x1] }
  0x17   :  { %v32_v23 = vmul.f32 %v30_v22, %v1599_v3  ;;  %v1888_v58 = vrot.slane %v30_v22, %v165_v21 }
  0x18   :  { %10 = vsyncpa [#allocation3], 0  ;;  %v2281_v9 = vunpack.c.h.bf16 %v1671_v31  ;;  %v2282_v19 = vunpack.c.l.bf16 %v1685_v37 }
  0x19   :  { %v33_v52 = vsub.f32 %v31_v29, %v32_v23  ;;  %v168_v3 = vmul.f32 %v1024_v7, %v1888_v58  ;;  %v169_v22 = vmul.f32 %v1025_v8, %v1888_v58  ;;  %v170_v46 = vmul.f32 %v1028_v16, %v1888_v58 }
  0x1a   :  { %v171_v45 = vmul.f32 %v1029_v17, %v1888_v58  ;;  %v172_v23 = vmul.f32 %v1032_v24, %v1888_v58  ;;  %v173_v7 = vmul.f32 %v1033_v28, %v1888_v58  ;;  %v174_v5 = vmul.f32 %v1036_v33, %v1888_v58 }
  0x1b   :  { %v1919_v8 = vrot.slane %v33_v52, %v165_v21  ;;  %v175_v11 = vmul.f32 %v1037_v34, %v1888_v58  ;;  %v176_v16 = vmul.f32 %v1040_v39, %v1888_v58  ;;  %v177_v13 = vmul.f32 %v1041_v40, %v1888_v58 }
  0x1c   :  { %v2280_v17 = vunpack.c.l.bf16 %v1671_v31  ;;  %v179_v21 = vmul.f32 %v2281_v9, %v1888_v58  ;;  %v180_v28 = vmul.f32 %v2282_v19, %v1888_v58  ;;  %v2283_v33 = vunpack.c.h.bf16 %v1685_v37 }
  0x1d   :  { %v238_v39 = vadd.f32 %v1919_v8, %v168_v3  ;;  %v239_v25 = vadd.f32 %v1919_v8, %v169_v22  ;;  %v240_v40 = vadd.f32 %v1919_v8, %v170_v46  ;;  %v241_v52 = vadd.f32 %v1919_v8, %v171_v45 }
  0x1e   :  { %v178_v24 = vmul.f32 %v2280_v17, %v1888_v58  ;;  %v181_v34 = vmul.f32 %v2283_v33, %v1888_v58  ;;  %v242_v29 = vadd.f32 %v1919_v8, %v172_v23  ;;  %v243_v31 = vadd.f32 %v1919_v8, %v173_v7 }
  0x1f   :  { %v244_v17 = vadd.f32 %v1919_v8, %v174_v5  ;;  %v245_v9 = vadd.f32 %v1919_v8, %v175_v11  ;;  %v2284_v19 = vunpack.c.l.bf16 %v1609_v6  ;;  %v2285_v33 = vunpack.c.h.bf16 %v1609_v6 }
  0x20   :  { %v2286_v22 = vunpack.c.l.bf16 %v1624_v12  ;;  %v2287_v46 = vunpack.c.h.bf16 %v1624_v12  ;;  %v2288_v23 = vunpack.c.l.bf16 %v1639_v18  ;;  %v2289_v7 = vunpack.c.h.bf16 %v1639_v18 }
  0x21   :  { %v430_v37 = vadd.f32 %v2284_v19, %v238_v39  ;;  %v431_v3 = vadd.f32 %v2285_v33, %v239_v25  ;;  %v2290_v11 = vunpack.c.l.bf16 %v1649_v20  ;;  %v2291_v39 = vunpack.c.h.bf16 %v1649_v20 }
  0x22   :  { %v432_v15 = vadd.f32 %v2286_v22, %v240_v40  ;;  %v433_v45 = vadd.f32 %v2287_v46, %v241_v52  ;;  %v434_v10 = vadd.f32 %v2288_v23, %v242_v29  ;;  %v435_v5 = vadd.f32 %v2289_v7, %v243_v31 }
  0x23   :  { %v436_v50 = vadd.f32 %v2290_v11, %v244_v17  ;;  %v437_v19 = vadd.f32 %v2291_v39, %v245_v9  ;;  %v494_v6 = vmax.f32 %v430_v37, 0.0  ;;  %v495_v25 = vmax.f32 %v431_v3, 0.0 }
  0x24   :  { %v496_v33 = vmax.f32 %v432_v15, 0.0  ;;  %v497_v51 = vmax.f32 %v433_v45, 0.0  ;;  %v498_v40 = vmax.f32 %v434_v10, 0.0  ;;  %v499_v22 = vmax.f32 %v435_v5, 0.0 }
  0x25   :  { %v500_v12 = vmax.f32 %v436_v50, 0.0  ;;  %v501_v52 = vmax.f32 %v437_v19, 0.0  ;;  %v1281_v46 = vpack.c.bf16 %v495_v25, %v494_v6  ;;  %v246_v29 = vadd.f32 %v1919_v8, %v176_v16 }
  0x26   :  { %v1286_v56 = vpack.c.bf16 %v497_v51, %v496_v33  ;;  %v247_v18 = vadd.f32 %v1919_v8, %v177_v13  ;;  %v1291_v31 = vpack.c.bf16 %v499_v22, %v498_v40  ;;  %v248_v17 = vadd.f32 %v1919_v8, %v178_v24 }
  0x27   :  { %v1296_v23 = vpack.c.bf16 %v501_v52, %v500_v12  ;;  %v249_v20 = vadd.f32 %v1919_v8, %v179_v21  ;;  %1282 = vst [vmem:[#allocation2] sm:$0xff] %v1281_v46   ;;  %v2292_v15 = vunpack.c.l.bf16 %v1663_v26  ;;  %v2293_v50 = vunpack.c.h.bf16 %v1663_v26 }
  0x28   :  { %1500 = vst [vmem:[#allocation2 + $0x8] sm:$0xff] %v1286_v56   ;;  %v250_v51 = vadd.f32 %v1919_v8, %v180_v28  ;;  %v251_v16 = vadd.f32 %v1919_v8, %v181_v34  ;;  %1501 = vst [vmem:[#allocation2 + $0x10] sm:$0xff] %v1291_v31   ;;  %v2294_v13 = vunpack.c.l.bf16 %v1676_v32  ;;  %v2295_v24 = vunpack.c.h.bf16 %v1676_v32 }
  0x29   :  { %v438_v10 = vadd.f32 %v2292_v15, %v246_v29  ;;  %v439_v9 = vadd.f32 %v2293_v50, %v247_v18  ;;  %1502 = vst [vmem:[#allocation2 + $0x18] sm:$0xff] %v1296_v23   ;;  %v2296_v56 = vunpack.c.l.bf16 %v1698_v43  ;;  %v2297_v26 = vunpack.c.h.bf16 %v1698_v43 }
  0x2a   :  { %v440_v37 = vadd.f32 %v2294_v13, %v248_v17  ;;  %v441_v21 = vadd.f32 %v2295_v24, %v249_v20  ;;  %v2298_v34 = vunpack.c.l.bf16 %v1693_v42  ;;  %v2299_v11 = vunpack.c.h.bf16 %v1693_v42 }
  0x2b   :  { %v182_v3 = vmul.f32 %v2296_v56, %v1888_v58  ;;  %v183_v45 = vmul.f32 %v2297_v26, %v1888_v58  ;;  %v502_v7 = vmax.f32 %v438_v10, 0.0  ;;  %v503_v28 = vmax.f32 %v439_v9, 0.0 }
  0x2c   :  { %v442_v5 = vadd.f32 %v2298_v34, %v250_v51  ;;  %v443_v39 = vadd.f32 %v2299_v11, %v251_v16  ;;  %v504_v19 = vmax.f32 %v440_v37, 0.0  ;;  %v505_v6 = vmax.f32 %v441_v21, 0.0 }
  0x2d   :  { %v252_v32 = vadd.f32 %v1919_v8, %v182_v3  ;;  %v253_v25 = vadd.f32 %v1919_v8, %v183_v45  ;;  %v1301_v33 = vpack.c.bf16 %v503_v28, %v502_v7  ;;  %v2300_v43 = vunpack.c.l.bf16 %v1712_v49 }
  0x2e   :  { %v506_v40 = vmax.f32 %v442_v5, 0.0  ;;  %v507_v22 = vmax.f32 %v443_v39, 0.0  ;;  %v1306_v52 = vpack.c.bf16 %v505_v6, %v504_v19  ;;  %v2301_v46 = vunpack.c.l.bf16 %v1707_v48 }
  0x2f   :  { %v184_v12 = vmul.f32 %v2300_v43, %v1888_v58  ;;  %v2302_v42 = vunpack.c.h.bf16 %v1707_v48  ;;  %v2303_v31 = vunpack.c.h.bf16 %v1712_v49  ;;  %1503 = vst [vmem:[#allocation2 + $0x20] sm:$0xff] %v1301_v33   ;;  %v2304_v15 = vunpack.c.l.bf16 %v1725_v54 }
  0x30   :  { %v444_v29 = vadd.f32 %v2301_v46, %v252_v32  ;;  %v1311_v17 = vpack.c.bf16 %v507_v22, %v506_v40  ;;  %v2305_v50 = vunpack.c.h.bf16 %v1725_v54  ;;  %1504 = vst [vmem:[#allocation2 + $0x28] sm:$0xff] %v1306_v52   ;;  %v2306_v49 = vunpack.c.l.bf16 %v1739_v60 }
  0x31   :  { %v445_v18 = vadd.f32 %v2302_v42, %v253_v25  ;;  %v185_v23 = vmul.f32 %v2303_v31, %v1888_v58  ;;  %v254_v20 = vadd.f32 %v1919_v8, %v184_v12  ;;  %v186_v10 = vmul.f32 %v2304_v15, %v1888_v58 }
  0x32   :  { %v187_v9 = vmul.f32 %v2305_v50, %v1888_v58  ;;  %v508_v51 = vmax.f32 %v444_v29, 0.0  ;;  %v188_v13 = vmul.f32 %v2306_v49, %v1888_v58  ;;  %1505 = vst [vmem:[#allocation2 + $0x30] sm:$0xff] %v1311_v17   ;;  %v2307_v37 = vunpack.c.l.bf16 %v1720_v53 }
  0x33   :  { %v509_v48 = vmax.f32 %v445_v18, 0.0  ;;  %v255_v16 = vadd.f32 %v1919_v8, %v185_v23  ;;  %v256_v21 = vadd.f32 %v1919_v8, %v186_v10  ;;  %v2308_v54 = vunpack.c.h.bf16 %v1739_v60 }
  0x34   :  { %v446_v24 = vadd.f32 %v2307_v37, %v254_v20  ;;  %v257_v56 = vadd.f32 %v1919_v8, %v187_v9  ;;  %v2309_v45 = vunpack.c.h.bf16 %v1720_v53  ;;  %v258_v28 = vadd.f32 %v1919_v8, %v188_v13 }
  0x35   :  { %v189_v3 = vmul.f32 %v2308_v54, %v1888_v58  ;;  %v1316_v26 = vpack.c.bf16 %v509_v48, %v508_v51  ;;  %v2310_v34 = vunpack.c.l.bf16 %v1753_v2  ;;  %v2311_v39 = vunpack.c.l.bf16 %v1734_v59 }
  0x36   :  { %v447_v7 = vadd.f32 %v2309_v45, %v255_v16  ;;  %v510_v11 = vmax.f32 %v446_v24, 0.0  ;;  %v2312_v6 = vunpack.c.h.bf16 %v1734_v59  ;;  %v2313_v53 = vunpack.c.l.bf16 %v1748_v1 }
  0x37   :  { %v190_v5 = vmul.f32 %v2310_v34, %v1888_v58  ;;  %v448_v19 = vadd.f32 %v2311_v39, %v256_v21  ;;  %v259_v60 = vadd.f32 %v1919_v8, %v189_v3  ;;  %1506 = vst [vmem:[#allocation2 + $0x38] sm:$0xff] %v1316_v26   ;;  %v2314_v40 = vunpack.c.h.bf16 %v1753_v2 }
  0x38   :  { %v449_v32 = vadd.f32 %v2312_v6, %v257_v56  ;;  %v511_v25 = vmax.f32 %v447_v7, 0.0  ;;  %v450_v33 = vadd.f32 %v2313_v53, %v258_v28  ;;  %v2315_v46 = vunpack.c.h.bf16 %v1748_v1 }
  0x39   :  { %v191_v22 = vmul.f32 %v2314_v40, %v1888_v58  ;;  %v260_v43 = vadd.f32 %v1919_v8, %v190_v5  ;;  %v512_v12 = vmax.f32 %v448_v19, 0.0  ;;  %v2316_v59 = vunpack.c.l.bf16 %v1767_v62 }
  0x3a   :  { %v513_v52 = vmax.f32 %v449_v32, 0.0  ;;  %v451_v29 = vadd.f32 %v2315_v46, %v259_v60  ;;  %v1321_v18 = vpack.c.bf16 %v511_v25, %v510_v11  ;;  %v514_v31 = vmax.f32 %v450_v33, 0.0 }
  0x3b   :  { %v192_v42 = vmul.f32 %v2316_v59, %v1888_v58  ;;  %v261_v23 = vadd.f32 %v1919_v8, %v191_v22  ;;  %v2317_v17 = vunpack.c.l.bf16 %v1762_v0  ;;  %v2318_v10 = vunpack.c.h.bf16 %v1767_v62 }
  0x3c   :  { %v1326_v2 = vpack.c.bf16 %v513_v52, %v512_v12  ;;  %v515_v15 = vmax.f32 %v451_v29, 0.0  ;;  %1507 = vst [vmem:[#allocation2 + $0x40] sm:$0xff] %v1321_v18   ;;  %v2319_v9 = vunpack.c.h.bf16 %v1762_v0  ;;  %v2320_v16 = vunpack.c.l.bf16 %v1781_v63 }
  0x3d   :  { %v452_v20 = vadd.f32 %v2317_v17, %v260_v43  ;;  %v193_v50 = vmul.f32 %v2318_v10, %v1888_v58  ;;  %v262_v1 = vadd.f32 %v1919_v8, %v192_v42  ;;  %v2321_v13 = vunpack.c.h.bf16 %v1781_v63 }
  0x3e   :  { %v453_v51 = vadd.f32 %v2319_v9, %v261_v23  ;;  %v194_v49 = vmul.f32 %v2320_v16, %v1888_v58  ;;  %1508 = vst [vmem:[#allocation2 + $0x48] sm:$0xff] %v1326_v2   ;;  %v1331_v24 = vpack.c.bf16 %v515_v15, %v514_v31  ;;  %v2322_v21 = vunpack.c.l.bf16 %v1776_v38 }
  0x3f   :  { %v516_v48 = vmax.f32 %v452_v20, 0.0  ;;  %v195_v37 = vmul.f32 %v2321_v13, %v1888_v58  ;;  %v263_v62 = vadd.f32 %v1919_v8, %v193_v50  ;;  %v2323_v0 = vunpack.c.l.bf16 %v1795_v55 }
  0x40   :  { %v454_v56 = vadd.f32 %v2322_v21, %v262_v1  ;;  %v517_v3 = vmax.f32 %v453_v51, 0.0  ;;  %v264_v26 = vadd.f32 %v1919_v8, %v194_v49  ;;  %v2324_v63 = vunpack.c.h.bf16 %v1795_v55  ;;  %1509 = vst [vmem:[#allocation2 + $0x50] sm:$0xff] %v1331_v24  }
  0x41   :  { %v196_v54 = vmul.f32 %v2323_v0, %v1888_v58  ;;  %v265_v45 = vadd.f32 %v1919_v8, %v195_v37  ;;  %v2325_v28 = vunpack.c.h.bf16 %v1776_v38  ;;  %v2326_v39 = vunpack.c.l.bf16 %v1809_v57 }
  0x42   :  { %v197_v7 = vmul.f32 %v2324_v63, %v1888_v58  ;;  %v518_v5 = vmax.f32 %v454_v56, 0.0  ;;  %v1336_v6 = vpack.c.bf16 %v517_v3, %v516_v48  ;;  %v2327_v32 = vunpack.c.l.bf16 %v1790_v27 }
  0x43   :  { %v455_v34 = vadd.f32 %v2325_v28, %v263_v62  ;;  %v266_v11 = vadd.f32 %v1919_v8, %v196_v54  ;;  %v198_v19 = vmul.f32 %v2326_v39, %v1888_v58  ;;  %v2328_v25 = vunpack.c.h.bf16 %v1790_v27 }
  0x44   :  { %v456_v60 = vadd.f32 %v2327_v32, %v264_v26  ;;  %v267_v55 = vadd.f32 %v1919_v8, %v197_v7  ;;  %v2329_v38 = vunpack.c.l.bf16 %v1804_v14  ;;  %v2330_v22 = vunpack.c.h.bf16 %v1809_v57  ;;  %1510 = vst [vmem:[#allocation2 + $0x58] sm:$0xff] %v1336_v6  }
  0x45   :  { %v457_v53 = vadd.f32 %v2328_v25, %v265_v45  ;;  %v519_v33 = vmax.f32 %v455_v34, 0.0  ;;  %v268_v12 = vadd.f32 %v1919_v8, %v198_v19  ;;  %v2331_v29 = vunpack.c.h.bf16 %v1804_v14 }
  0x46   :  { %v458_v40 = vadd.f32 %v2329_v38, %v266_v11  ;;  %v199_v43 = vmul.f32 %v2330_v22, %v1888_v58  ;;  %v520_v52 = vmax.f32 %v456_v60, 0.0  ;;  %v2332_v27 = vunpack.c.l.bf16 %v1823_v47  ;;  %v2348_v22 = vld [vmem:[#allocation5_spill] sm:$0xff] }
  0x47   :  { %v521_v46 = vmax.f32 %v457_v53, 0.0  ;;  %v459_v59 = vadd.f32 %v2331_v29, %v267_v55  ;;  %v1341_v18 = vpack.c.bf16 %v519_v33, %v518_v5  ;;  %v2333_v17 = vunpack.c.l.bf16 %v1818_v4  ;;  %v1457_v55 = vld [vmem:[%s2271_s0 + $0xa0] sm:$0xff]  }
  0x48   :  { %v200_v42 = vmul.f32 %v2332_v27, %v1888_v58  ;;  %v522_v31 = vmax.f32 %v458_v40, 0.0  ;;  %v269_v23 = vadd.f32 %v1919_v8, %v199_v43  ;;  %v2334_v15 = vunpack.c.h.bf16 %v1823_v47  ;;  %v1458_v27 = vld [vmem:[%s2271_s0 + $0xa8] sm:$0xff]  }
  0x49   :  { %v460_v57 = vadd.f32 %v2333_v17, %v268_v12  ;;  %v1346_v20 = vpack.c.bf16 %v521_v46, %v520_v52  ;;  %v523_v2 = vmax.f32 %v459_v59, 0.0  ;;  %1511 = vst [vmem:[#allocation2 + $0x60] sm:$0xff] %v1341_v18   ;;  %v2335_v50 = vunpack.c.h.bf16 %v1818_v4  ;;  %v1488_v12 = vld [vmem:[%s2275_s4 + $0xa0] sm:$0xff]  }
  0x4a   :  { %v201_v10 = vmul.f32 %v2334_v15, %v1888_v58  ;;  %v270_v14 = vadd.f32 %v1919_v8, %v200_v42  ;;  %v2336_v51 = vunpack.c.l.bf16 %v1840_v36  ;;  %v2337_v16 = vunpack.c.h.bf16 %v1840_v36  ;;  %v1459_v15 = vld [vmem:[%s2271_s0 + $0xb0] sm:$0xff]  }
  0x4b   :  { %v461_v1 = vadd.f32 %v2335_v50, %v269_v23  ;;  %v524_v9 = vmax.f32 %v460_v57, 0.0  ;;  %1512 = vst [vmem:[#allocation2 + $0x68] sm:$0xff] %v1346_v20   ;;  %v1351_v13 = vpack.c.bf16 %v523_v2, %v522_v31  ;;  %v2338_v37 = vunpack.c.l.bf16 %v1835_v41  ;;  %v1489_v23 = vld [vmem:[%s2275_s4 + $0xa8] sm:$0xff]  }
  0x4c   :  { %v202_v48 = vmul.f32 %v2336_v51, %v1888_v58  ;;  %v203_v49 = vmul.f32 %v2337_v16, %v1888_v58  ;;  %v271_v47 = vadd.f32 %v1919_v8, %v201_v10  ;;  %v2339_v4 = vunpack.c.l.bf16 %v1854_v30 }
  0x4d   :  { %v462_v24 = vadd.f32 %v2338_v37, %v270_v14  ;;  %v525_v21 = vmax.f32 %v461_v1, 0.0  ;;  %v2340_v36 = vunpack.c.h.bf16 %v1854_v30  ;;  %1513 = vst [vmem:[#allocation2 + $0x70] sm:$0xff] %v1351_v13   ;;  %v2341_v3 = vunpack.c.h.bf16 %v1835_v41 }
  0x4e   :  { %v204_v62 = vmul.f32 %v2339_v4, %v1888_v58  ;;  %v272_v56 = vadd.f32 %v1919_v8, %v202_v48  ;;  %v273_v0 = vadd.f32 %v1919_v8, %v203_v49  ;;  %v2342_v7 = vunpack.c.l.bf16 %v1871_v35  ;;  %v1460_v4 = vld [vmem:[%s2271_s0 + $0xb8] sm:$0xff]  }
  0x4f   :  { %v205_v54 = vmul.f32 %v2340_v36, %v1888_v58  ;;  %v463_v26 = vadd.f32 %v2341_v3, %v271_v47  ;;  %v526_v45 = vmax.f32 %v462_v24, 0.0  ;;  %v1356_v34 = vpack.c.bf16 %v525_v21, %v524_v9  ;;  %v1490_v9 = vld [vmem:[%s2275_s4 + $0xb0] sm:$0xff]  }
  0x50   :  { %v274_v63 = vadd.f32 %v1919_v8, %v204_v62  ;;  %v206_v28 = vmul.f32 %v2342_v7, %v1888_v58  ;;  %v2343_v5 = vunpack.c.l.bf16 %v1849_v44  ;;  %v2344_v39 = vunpack.c.h.bf16 %v1849_v44 }
  0x51   :  { %v275_v30 = vadd.f32 %v1919_v8, %v205_v54  ;;  %v527_v6 = vmax.f32 %v463_v26, 0.0  ;;  %v2345_v41 = vunpack.c.l.bf16 %v1863_v61  ;;  %v2346_v60 = vunpack.c.h.bf16 %v1871_v35  ;;  %1514 = vst [vmem:[#allocation2 + $0x78] sm:$0xff] %v1356_v34   ;;  %v1491_v34 = vld [vmem:[%s2275_s4 + $0xb8] sm:$0xff]  }
  0x52   :  { %v464_v11 = vadd.f32 %v2343_v5, %v272_v56  ;;  %v465_v19 = vadd.f32 %v2344_v39, %v273_v0  ;;  %v276_v53 = vadd.f32 %v1919_v8, %v206_v28  ;;  %v2347_v38 = vunpack.c.h.bf16 %v1863_v61 }
  0x53   :  { %v466_v32 = vadd.f32 %v2345_v41, %v274_v63  ;;  %v207_v25 = vmul.f32 %v2346_v60, %v1888_v58  ;;  %v1229_v43 = vunpack.c.h.bf16 %v2348_v22  ;;  %v1361_v35 = vpack.c.bf16 %v527_v6, %v526_v45  ;;  %v1461_v60 = vld [vmem:[%s2271_s0 + $0xc0] sm:$0xff]  }
  0x54   :  { %v528_v33 = vmax.f32 %v464_v11, 0.0  ;;  %v529_v44 = vmax.f32 %v465_v19, 0.0  ;;  %v467_v40 = vadd.f32 %v2347_v38, %v275_v30  ;;  %v2349_v29 = vunpack.c.l.bf16 %v2348_v22 }
  0x55   :  { %v530_v52 = vmax.f32 %v466_v32, 0.0  ;;  %v277_v46 = vadd.f32 %v1919_v8, %v207_v25  ;;  %v1104_v18 = vunpack.c.l.bf16 %v1457_v55  ;;  %v1105_v31 = vunpack.c.h.bf16 %v1457_v55  ;;  %1515 = vst [vmem:[#allocation2 + $0x80] sm:$0xff] %v1361_v35  }
  0x56   :  { %v468_v59 = vadd.f32 %v2349_v29, %v276_v53  ;;  %v1366_v42 = vpack.c.bf16 %v529_v44, %v528_v33  ;;  %v531_v61 = vmax.f32 %v467_v40, 0.0  ;;  %v1232_v20 = vunpack.c.l.bf16 %v1488_v12  ;;  %v1462_v29 = vld [vmem:[%s2271_s0 + $0xc8] sm:$0xff]  }
  0x57   :  { %v469_v17 = vadd.f32 %v1229_v43, %v277_v46  ;;  %v1233_v2 = vunpack.c.h.bf16 %v1488_v12  ;;  %v208_v14 = vmul.f32 %v1104_v18, %v1888_v58  ;;  %v209_v50 = vmul.f32 %v1105_v31, %v1888_v58  ;;  %v1492_v43 = vld [vmem:[%s2275_s4 + $0xc0] sm:$0xff]   ;;  %v1493_v18 = vld [vmem:[%s2275_s4 + $0xc8] sm:$0xff]  }
  0x58   :  { %v532_v57 = vmax.f32 %v468_v59, 0.0  ;;  %1516 = vst [vmem:[#allocation2 + $0x88] sm:$0xff] %v1366_v42   ;;  %v1371_v10 = vpack.c.bf16 %v531_v61, %v530_v52  ;;  %v1108_v1 = vunpack.c.l.bf16 %v1458_v27  ;;  %v1109_v48 = vunpack.c.h.bf16 %v1458_v27 }
  0x59   :  { %v533_v51 = vmax.f32 %v469_v17, 0.0  ;;  %v1236_v16 = vunpack.c.l.bf16 %v1489_v23  ;;  %v1237_v49 = vunpack.c.h.bf16 %v1489_v23  ;;  %v278_v13 = vadd.f32 %v1919_v8, %v208_v14 }
  0x5a   :  { %1517 = vst [vmem:[#allocation2 + $0x90] sm:$0xff] %v1371_v10   ;;  %v279_v47 = vadd.f32 %v1919_v8, %v209_v50  ;;  %v210_v37 = vmul.f32 %v1108_v1, %v1888_v58  ;;  %v1112_v24 = vunpack.c.l.bf16 %v1459_v15  ;;  %v211_v21 = vmul.f32 %v1109_v48, %v1888_v58  ;;  %v1494_v48 = vld [vmem:[%s2275_s4 + $0xd0] sm:$0xff]  }
  0x5b   :  { %v1376_v62 = vpack.c.bf16 %v533_v51, %v532_v57  ;;  %v1113_v56 = vunpack.c.h.bf16 %v1459_v15  ;;  %v1240_v0 = vunpack.c.l.bf16 %v1490_v9  ;;  %v470_v36 = vadd.f32 %v1232_v20, %v278_v13  ;;  %v1463_v20 = vld [vmem:[%s2271_s0 + $0xd0] sm:$0xff]  }
  0x5c   :  { %v471_v54 = vadd.f32 %v1233_v2, %v279_v47  ;;  %v280_v3 = vadd.f32 %v1919_v8, %v210_v37  ;;  %v212_v26 = vmul.f32 %v1112_v24, %v1888_v58  ;;  %v281_v45 = vadd.f32 %v1919_v8, %v211_v21  ;;  %v1464_v21 = vld [vmem:[%s2271_s0 + $0xd8] sm:$0xff]  }
  0x5d   :  { %1518 = vst [vmem:[#allocation2 + $0x98] sm:$0xff] %v1376_v62   ;;  %v213_v63 = vmul.f32 %v1113_v56, %v1888_v58  ;;  %v1241_v7 = vunpack.c.h.bf16 %v1490_v9  ;;  %v1116_v28 = vunpack.c.l.bf16 %v1460_v4  ;;  %v534_v5 = vmax.f32 %v470_v36, 0.0 }
  0x5e   :  { %v535_v11 = vmax.f32 %v471_v54, 0.0  ;;  %v472_v39 = vadd.f32 %v1236_v16, %v280_v3  ;;  %v282_v19 = vadd.f32 %v1919_v8, %v212_v26  ;;  %v473_v30 = vadd.f32 %v1237_v49, %v281_v45 }
  0x5f   :  { %v283_v6 = vadd.f32 %v1919_v8, %v213_v63  ;;  %v1117_v41 = vunpack.c.h.bf16 %v1460_v4  ;;  %v214_v32 = vmul.f32 %v1116_v28, %v1888_v58  ;;  %v1244_v33 = vunpack.c.l.bf16 %v1491_v34 }
  0x60   :  { %v1381_v25 = vpack.c.bf16 %v535_v11, %v534_v5  ;;  %v536_v53 = vmax.f32 %v472_v39, 0.0  ;;  %v474_v55 = vadd.f32 %v1240_v0, %v282_v19  ;;  %v537_v44 = vmax.f32 %v473_v30, 0.0 }
  0x61   :  { %v475_v38 = vadd.f32 %v1241_v7, %v283_v6  ;;  %v215_v40 = vmul.f32 %v1117_v41, %v1888_v58  ;;  %v284_v22 = vadd.f32 %v1919_v8, %v214_v32  ;;  %v1245_v35 = vunpack.c.h.bf16 %v1491_v34  ;;  %v1495_v7 = vld [vmem:[%s2275_s4 + $0xd8] sm:$0xff]   ;;  %v1465_v41 = vld [vmem:[%s2271_s0 + $0xe0] sm:$0xff]  }
  0x62   :  { %1519 = vst [vmem:[#allocation2 + $0xa0] sm:$0xff] %v1381_v25   ;;  %v538_v12 = vmax.f32 %v474_v55, 0.0  ;;  %v1120_v52 = vunpack.c.l.bf16 %v1461_v60  ;;  %v1121_v46 = vunpack.c.h.bf16 %v1461_v60  ;;  %v1386_v59 = vpack.c.bf16 %v537_v44, %v536_v53  ;;  %v1496_v55 = vld [vmem:[%s2275_s4 + $0xe0] sm:$0xff]  }
  0x63   :  { %v539_v27 = vmax.f32 %v475_v38, 0.0  ;;  %v285_v42 = vadd.f32 %v1919_v8, %v215_v40  ;;  %v476_v61 = vadd.f32 %v1244_v33, %v284_v22  ;;  %v1248_v17 = vunpack.c.l.bf16 %v1492_v43 }
  0x64   :  { %v216_v31 = vmul.f32 %v1120_v52, %v1888_v58  ;;  %v217_v23 = vmul.f32 %v1121_v46, %v1888_v58  ;;  %v1249_v57 = vunpack.c.h.bf16 %v1492_v43  ;;  %1520 = vst [vmem:[#allocation2 + $0xa8] sm:$0xff] %v1386_v59   ;;  %v1124_v14 = vunpack.c.l.bf16 %v1462_v29  ;;  %v1466_v52 = vld [vmem:[%s2271_s0 + $0xe8] sm:$0xff]  }
  0x65   :  { %v1391_v2 = vpack.c.bf16 %v539_v27, %v538_v12  ;;  %v477_v15 = vadd.f32 %v1245_v35, %v285_v42  ;;  %v540_v10 = vmax.f32 %v476_v61, 0.0  ;;  %v1125_v9 = vunpack.c.h.bf16 %v1462_v29  ;;  %v1497_v42 = vld [vmem:[%s2275_s4 + $0xe8] sm:$0xff]  }
  0x66   :  { %v286_v50 = vadd.f32 %v1919_v8, %v216_v31  ;;  %v287_v1 = vadd.f32 %v1919_v8, %v217_v23  ;;  %v1252_v51 = vunpack.c.l.bf16 %v1493_v18  ;;  %v218_v49 = vmul.f32 %v1124_v14, %v1888_v58 }
  0x67   :  { %1521 = vst [vmem:[#allocation2 + $0xb0] sm:$0xff] %v1391_v2   ;;  %v541_v16 = vmax.f32 %v477_v15, 0.0  ;;  %v1253_v13 = vunpack.c.h.bf16 %v1493_v18  ;;  %v1128_v47 = vunpack.c.l.bf16 %v1463_v20  ;;  %v219_v4 = vmul.f32 %v1125_v9, %v1888_v58  ;;  %v1467_v15 = vld [vmem:[%s2271_s0 + $0xf0] sm:$0xff]  }
  0x68   :  { %v478_v37 = vadd.f32 %v1248_v17, %v286_v50  ;;  %v479_v24 = vadd.f32 %v1249_v57, %v287_v1  ;;  %v1129_v62 = vunpack.c.h.bf16 %v1463_v20  ;;  %v288_v0 = vadd.f32 %v1919_v8, %v218_v49  ;;  %v1498_v9 = vld [vmem:[%s2275_s4 + $0xf0] sm:$0xff]  }
  0x69   :  { %v1396_v56 = vpack.c.bf16 %v541_v16, %v540_v10  ;;  %v220_v36 = vmul.f32 %v1128_v47, %v1888_v58  ;;  %v1256_v54 = vunpack.c.l.bf16 %v1494_v48  ;;  %v289_v45 = vadd.f32 %v1919_v8, %v219_v4  ;;  %v1468_v4 = vld [vmem:[%s2271_s0 + $0xf8] sm:$0xff]   ;;  %s1560_s0 = smov [#allocation2]  }
  0x6a   :  { %v542_v3 = vmax.f32 %v478_v37, 0.0  ;;  %v543_v26 = vmax.f32 %v479_v24, 0.0  ;;  %v221_v63 = vmul.f32 %v1129_v62, %v1888_v58  ;;  %v480_v28 = vadd.f32 %v1252_v51, %v288_v0 }
  0x6b   :  { %1522 = vst [vmem:[#allocation2 + $0xb8] sm:$0xff] %v1396_v56   ;;  %v290_v34 = vadd.f32 %v1919_v8, %v220_v36  ;;  %v1257_v5 = vunpack.c.h.bf16 %v1494_v48  ;;  %v1132_v11 = vunpack.c.l.bf16 %v1464_v21  ;;  %v481_v19 = vadd.f32 %v1253_v13, %v289_v45  ;;  %v1499_v45 = vld [vmem:[%s2275_s4 + $0xf8] sm:$0xff]   ;;  %s883_s4 = sshll.u32 %s1560_s0, 4  ;;  %s884_s4 = int_to_ptr.vmem [resolvable:$true] %s883_s4 }
  0x6c   :  { %v1401_v39 = vpack.c.bf16 %v543_v26, %v542_v3  ;;  %v291_v30 = vadd.f32 %v1919_v8, %v221_v63  ;;  %v1133_v6 = vunpack.c.h.bf16 %v1464_v21  ;;  %v544_v32 = vmax.f32 %v480_v28, 0.0  ;;  %s1536_s19 = scalar_lea.vmem %s884_s4, 4096  ;;  %p1541_p1 = scmp.lt.s32.totalorder %s884_s4, %s884_s4 }
  0x6d   :  { %v482_v60 = vadd.f32 %v1256_v54, %v290_v34  ;;  %v222_v25 = vmul.f32 %v1132_v11, %v1888_v58  ;;  %v1260_v53 = vunpack.c.l.bf16 %v1495_v7  ;;  %v545_v33 = vmax.f32 %v481_v19, 0.0  ;;  %p1537_p0 = scmp.ne.s32.totalorder %s884_s4, %s1536_s19  ;;  %p1542_p2 = scmp.lt.s32.totalorder %s1536_s19, %s1536_s19 }
  0x6e   :  { %1523 = vst [vmem:[#allocation2 + $0xc0] sm:$0xff] %v1401_v39   ;;  %v483_v44 = vadd.f32 %v1257_v5, %v291_v30  ;;  %v223_v38 = vmul.f32 %v1133_v6, %v1888_v58  ;;  %v1261_v40 = vunpack.c.h.bf16 %v1495_v7  ;;  %v1136_v12 = vunpack.c.l.bf16 %v1465_v41 }
  0x6f   :  { %v546_v22 = vmax.f32 %v482_v60, 0.0  ;;  %v292_v43 = vadd.f32 %v1919_v8, %v222_v25  ;;  %v1137_v35 = vunpack.c.h.bf16 %v1465_v41  ;;  %v1406_v46 = vpack.c.bf16 %v545_v33, %v544_v32  ;;  %p1543_p3 = por %p1542_p2, %p1541_p1 }
  0x70   :  { %v547_v29 = vmax.f32 %v483_v44, 0.0  ;;  %v293_v59 = vadd.f32 %v1919_v8, %v223_v38  ;;  %v1264_v27 = vunpack.c.l.bf16 %v1496_v55  ;;  %v224_v18 = vmul.f32 %v1136_v12, %v1888_v58 }
  0x71   :  { %v484_v61 = vadd.f32 %v1260_v53, %v292_v43  ;;  %v225_v31 = vmul.f32 %v1137_v35, %v1888_v58  ;;  %v1265_v23 = vunpack.c.h.bf16 %v1496_v55  ;;  %1524 = vst [vmem:[#allocation2 + $0xc8] sm:$0xff] %v1406_v46   ;;  %v1140_v20 = vunpack.c.l.bf16 %v1466_v52  ;;  %p1544_p4 = pnand %p1543_p3, %p1537_p0 }
  0x72   :  { %v1411_v17 = vpack.c.bf16 %v547_v29, %v546_v22  ;;  %v485_v57 = vadd.f32 %v1261_v40, %v293_v59  ;;  %v1141_v2 = vunpack.c.h.bf16 %v1466_v52  ;;  %v294_v14 = vadd.f32 %v1919_v8, %v224_v18 }
  0x73   :  { %v548_v10 = vmax.f32 %v484_v61, 0.0  ;;  %v295_v50 = vadd.f32 %v1919_v8, %v225_v31  ;;  %v1268_v1 = vunpack.c.l.bf16 %v1497_v42  ;;  %v226_v48 = vmul.f32 %v1140_v20, %v1888_v58 }
  0x74   :  { %1525 = vst [vmem:[#allocation2 + $0xd0] sm:$0xff] %v1411_v17   ;;  %v549_v51 = vmax.f32 %v485_v57, 0.0  ;;  %v227_v16 = vmul.f32 %v1141_v2, %v1888_v58  ;;  %v1269_v49 = vunpack.c.h.bf16 %v1497_v42  ;;  %v486_v13 = vadd.f32 %v1264_v27, %v294_v14 }
  0x75   :  { %v487_v47 = vadd.f32 %v1265_v23, %v295_v50  ;;  %v1144_v37 = vunpack.c.l.bf16 %v1467_v15  ;;  %v1145_v24 = vunpack.c.h.bf16 %v1467_v15  ;;  %v296_v21 = vadd.f32 %v1919_v8, %v226_v48 }
  0x76   :  { %v1416_v62 = vpack.c.bf16 %v549_v51, %v548_v10  ;;  %v297_v56 = vadd.f32 %v1919_v8, %v227_v16  ;;  %v1272_v0 = vunpack.c.l.bf16 %v1498_v9  ;;  %v550_v36 = vmax.f32 %v486_v13, 0.0 }
  0x77   :  { %v551_v54 = vmax.f32 %v487_v47, 0.0  ;;  %v228_v3 = vmul.f32 %v1144_v37, %v1888_v58  ;;  %v229_v26 = vmul.f32 %v1145_v24, %v1888_v58  ;;  %v488_v63 = vadd.f32 %v1268_v1, %v296_v21 }
  0x78   :  { %1526 = vst [vmem:[#allocation2 + $0xd8] sm:$0xff] %v1416_v62   ;;  %v489_v7 = vadd.f32 %v1269_v49, %v297_v56  ;;  %v1273_v28 = vunpack.c.h.bf16 %v1498_v9  ;;  %v1148_v34 = vunpack.c.l.bf16 %v1468_v4  ;;  %v1149_v19 = vunpack.c.h.bf16 %v1468_v4 }
  0x79   :  { %v1421_v5 = vpack.c.bf16 %v551_v54, %v550_v36  ;;  %v298_v11 = vadd.f32 %v1919_v8, %v228_v3  ;;  %v299_v39 = vadd.f32 %v1919_v8, %v229_v26  ;;  %v552_v30 = vmax.f32 %v488_v63, 0.0 }
  0x7a   :  { %v553_v6 = vmax.f32 %v489_v7, 0.0  ;;  %v230_v41 = vmul.f32 %v1148_v34, %v1888_v58  ;;  %v1276_v32 = vunpack.c.l.bf16 %v1499_v45  ;;  %v231_v53 = vmul.f32 %v1149_v19, %v1888_v58 }
  0x7b   :  { %1527 = vst [vmem:[#allocation2 + $0xe0] sm:$0xff] %v1421_v5   ;;  %v490_v60 = vadd.f32 %v1272_v0, %v298_v11  ;;  %v491_v25 = vadd.f32 %v1273_v28, %v299_v39  ;;  %v1277_v55 = vunpack.c.h.bf16 %v1499_v45 }
  0x7c   :  { %v1426_v33 = vpack.c.bf16 %v553_v6, %v552_v30  ;;  %v300_v44 = vadd.f32 %v1919_v8, %v230_v41  ;;  %v301_v22 = vadd.f32 %v1919_v8, %v231_v53 }
  0x7d   :  { %v554_v38 = vmax.f32 %v490_v60, 0.0  ;;  %v555_v40 = vmax.f32 %v491_v25, 0.0 }
  0x7e   :  { %1528 = vst [vmem:[#allocation2 + $0xe8] sm:$0xff] %v1426_v33   ;;  %v492_v43 = vadd.f32 %v1276_v32, %v300_v44  ;;  %v493_v35 = vadd.f32 %v1277_v55, %v301_v22 }
  0x7f   :  { %v1431_v12 = vpack.c.bf16 %v555_v40, %v554_v38 }
  0x80   :  { %v556_v52 = vmax.f32 %v492_v43, 0.0  ;;  %v557_v46 = vmax.f32 %v493_v35, 0.0 }
  0x81   :  { %1529 = vst [vmem:[#allocation2 + $0xf0] sm:$0xff] %v1431_v12  }
  0x82   :  { %v1436_v29 = vpack.c.bf16 %v557_v46, %v556_v52 }
  0x84   :  { %1530 = vst [vmem:[#allocation2 + $0xf8] sm:$0xff] %v1436_v29  }
  0x85   :  { %1547 = shalt.err (!%p1544_p4)
}
  0x86   :  { %s1548_s22 = scalar_lea.hbm %s2276_s5, 4096 }
  0x87   :  { %p1549_p5 = scmp.ne.s32.totalorder %s2276_s5, %s1548_s22  ;;  %p1552_p6 = scmp.lt.u32.totalorder %s1548_s22, %s2276_s5 }
  0x89   :  { %p1554_p7 = pnand %p1552_p6, %p1549_p5 }
  0x8b   :  { %1557 = shalt.err (!%p1554_p7)
}
  0x8c   :  { %s1561_s3 = smov 64   ;;  %s1562_s26 = smov 4  }
  0x8d   :  { %889 = dma.vmem_to_hbm [thread:$0]  %s884_s4, 4096, %s2276_s5, [#allocation3], %s1561_s3, %s1561_s3, %s1562_s26  }
  0x8e   :  { %1558 = dma.done.wait [#allocation3], 4096  }
  0x8f   :  { %1559 = vsyncadd [#allocation3], 4294963200 }
  0x90   :  { %893 = vsyncpa [#allocation3], 1 }

// kernel: bottleneck_forward.6
= control target key start
LH: loop header
LB: loop body
LE: loop exit
PB: predicated region body
PF: predicated region fallthrough
CT: control target
= control target key end

     0   :  { %v165_v7 = vlaneseq  ;;  %vm416_vm0 = vcmask 261120   ;;  %s2870_s4 = inlined_call_operand.vmem [shape: bf16[32,128], index: 4, kind: input, shape index: {}]   ;;  %s2871_s1 = inlined_call_operand.vmem [shape: f32[2,32], index: 1, kind: input, shape index: {}]   ;;  %s2872_s0 = inlined_call_operand.vmem [shape: bf16[512,32], index: 0, kind: input, shape index: {}]   ;;  %s2873_s2 = inlined_call_operand.vmem [shape: f32[1,32], index: 2, kind: input, shape index: {}]   ;;  %s2874_s3 = inlined_call_operand.vmem [shape: f32[1,32], index: 3, kind: input, shape index: {}]   ;;  %s2875_s5 = inlined_call_operand.vmem [shape: bf16[512,128], index: 5, kind: output, shape index: {0}]   ;;  %s2876_s6 = inlined_call_operand.vmem [shape: f32[1,2,128], index: 6, kind: output, shape index: {1}]  }
   0x1   :  { %v1952_v0 = vld [vmem:[%s2870_s4] sm:$0xff]   ;;  %v1953_v1 = vld [vmem:[%s2870_s4 + $0x8] sm:$0xff]   ;;  %v2022_v13 = vld [vmem:[%s2872_s0 + $0x10] sm:$0xff]  }
   0x2   :  { %1880 = vmatprep.subr.bf16.mxu0 %v1952_v0  ;;  %v23_v2 = vld [vmem:[%s2871_s1] sm:$0x1]  ;;  %v25_v3 = vld [vmem:[%s2871_s1 + $0x1] sm:$0x1]  ;;  %1948 = vmatprep.subr.bf16.mxu1 %v1952_v0  ;;  %v2007_v10 = vshrl.u32 %v165_v7, 7  ;;  %v2017_v12 = vld [vmem:[%s2872_s0 + $0x8] sm:$0xff]   ;;  %v1506_v24 = vunpack.c.l.bf16 %v2022_v13  ;;  %v1507_v25 = vunpack.c.h.bf16 %v2022_v13 }
   0x3   :  { %1881 = vmatpush3.bf16.msra.mxu0 %v1952_v0  ;;  %v2003_v4 = vmul.f32 0.001953125, %v23_v2  ;;  %v26_v5 = vmul.f32 0.001953125, %v25_v3  ;;  %1950 = vmatpush3.bf16.msra.mxu1 %v1952_v0  ;;  %v2012_v11 = vld [vmem:[%s2872_s0] sm:$0xff]   ;;  %v2027_v14 = vld [vmem:[%s2872_s0 + $0x18] sm:$0xff]   ;;  %v2037_v16 = vld [vmem:[%s2872_s0 + $0x28] sm:$0xff]   ;;  %v1502_v20 = vunpack.c.l.bf16 %v2017_v12  ;;  %v1503_v23 = vunpack.c.h.bf16 %v2017_v12 }
   0x4   :  { %1882 = vmatprep.subr.bf16.mxu0 %v1953_v1  ;;  %1949 = vmatprep.subr.bf16.mxu1 %v1953_v1  ;;  %v2032_v15 = vld [vmem:[%s2872_s0 + $0x20] sm:$0xff]   ;;  %v1498_v17 = vunpack.c.l.bf16 %v2012_v11  ;;  %v1499_v18 = vunpack.c.h.bf16 %v2012_v11  ;;  %v167_v19 = vsub.s32 0, %v2007_v10  ;;  %v2046_v21 = vld [vmem:[%s2872_s0 + $0x30] sm:$0xff]   ;;  %v2051_v22 = vld [vmem:[%s2872_s0 + $0x38] sm:$0xff]   ;;  %v1510_v26 = vunpack.c.l.bf16 %v2027_v14 }
   0x5   :  { %v27_v6 = vmul.f32 %v2003_v4, %v2003_v4  ;;  %v2060_v27 = vld [vmem:[%s2872_s0 + $0x40] sm:$0xff]   ;;  %v2065_v28 = vld [vmem:[%s2872_s0 + $0x48] sm:$0xff]   ;;  %v1511_v29 = vunpack.c.h.bf16 %v2027_v14  ;;  %v1514_v30 = vunpack.c.l.bf16 %v2032_v15  ;;  %v1515_v31 = vunpack.c.h.bf16 %v2032_v15  ;;  %v2074_v33 = vld [vmem:[%s2872_s0 + $0x50] sm:$0xff]  }
   0x6   :  { %v1518_v32 = vunpack.c.l.bf16 %v2037_v16  ;;  %v2079_v34 = vld [vmem:[%s2872_s0 + $0x58] sm:$0xff]   ;;  %v1519_v35 = vunpack.c.h.bf16 %v2037_v16  ;;  %v1522_v36 = vunpack.c.l.bf16 %v2046_v21  ;;  %v1523_v37 = vunpack.c.h.bf16 %v2046_v21  ;;  %v2088_v39 = vld [vmem:[%s2872_s0 + $0x60] sm:$0xff]   ;;  %v2093_v40 = vld [vmem:[%s2872_s0 + $0x68] sm:$0xff]  }
   0x7   :  { %1883 = vmatpush3.bf16.msra.mxu0 %v1953_v1  ;;  %v28_v8 = vsub.f32 %v26_v5, %v27_v6  ;;  %1951 = vmatpush3.bf16.msra.mxu1 %v1953_v1  ;;  %v1526_v38 = vunpack.c.l.bf16 %v2051_v22  ;;  %v1527_v41 = vunpack.c.h.bf16 %v2051_v22  ;;  %v1530_v42 = vunpack.c.l.bf16 %v2060_v27  ;;  %v2102_v45 = vld [vmem:[%s2872_s0 + $0x70] sm:$0xff]   ;;  %v2107_v46 = vld [vmem:[%s2872_s0 + $0x78] sm:$0xff]   ;;  %v2116_v51 = vld [vmem:[%s2872_s0 + $0x80] sm:$0xff]  }
   0x8   :  { %v1531_v43 = vunpack.c.h.bf16 %v2060_v27  ;;  %v1534_v44 = vunpack.c.l.bf16 %v2065_v28  ;;  %v1535_v47 = vunpack.c.h.bf16 %v2065_v28  ;;  %v1538_v48 = vunpack.c.l.bf16 %v2074_v33  ;;  %v2121_v52 = vld [vmem:[%s2872_s0 + $0x88] sm:$0xff]   ;;  %v29_v53 = vld [vmem:[%s2873_s2] sm:$0x1]  ;;  %v2133_v58 = vld [vmem:[%s2872_s0 + $0x90] sm:$0xff]  }
   0x9   :  { %v30_v9 = vadd.f32 1e-05, %v28_v8  ;;  %v1539_v49 = vunpack.c.h.bf16 %v2074_v33  ;;  %v1542_v50 = vunpack.c.l.bf16 %v2079_v34  ;;  %v1543_v54 = vunpack.c.h.bf16 %v2079_v34  ;;  %v2142_v63 = vld [vmem:[%s2872_s0 + $0x98] sm:$0xff]   ;;  %v2147_v0 = vld [vmem:[%s2872_s0 + $0xa0] sm:$0xff]   ;;  %v2156_v7 = vld [vmem:[%s2872_s0 + $0xa8] sm:$0xff]  }
   0xa   :  { %v1546_v55 = vunpack.c.l.bf16 %v2088_v39  ;;  %v1547_v56 = vunpack.c.h.bf16 %v2088_v39  ;;  %v2164_v2 = vld [vmem:[%s2872_s0 + $0xb0] sm:$0xff]   ;;  %v2169_v6 = vld [vmem:[%s2872_s0 + $0xb8] sm:$0xff]   ;;  %v2206_v61 = vld [vmem:[%s2872_s0 + $0xc8] sm:$0xff]   ;;  %v2877_v39 = vunpack.c.l.bf16 %v2093_v40 }
   0xb   :  { %1954 = vrsqrt.f32 %v30_v9  ;;  %v1579_v9 = vunpack.c.h.bf16 %v2147_v0  ;;  %v2313_v27 = vld [vmem:[%s2872_s0 + $0xf0] sm:$0xff]  }
  0x15   :  { %v1955_v1 = vpop.eup %1954 }
  0x16   :  { %v32_v8 = vmul.f32 %v1955_v1, %v29_v53  ;;  %v33_v53 = vld [vmem:[%s2874_s3] sm:$0x1] }
  0x18   :  { %v34_v5 = vmul.f32 %v32_v8, %v2003_v4  ;;  %v2181_v60 = vrot.slane %v32_v8, %v167_v19  ;;  %v2192_v4 = vld [vmem:[%s2872_s0 + $0xc0] sm:$0xff]  }
  0x1a   :  { %v35_v8 = vsub.f32 %v33_v53, %v34_v5  ;;  %v170_v3 = vmul.f32 %v1498_v17, %v2181_v60  ;;  %v171_v57 = vmul.f32 %v1499_v18, %v2181_v60  ;;  %v172_v62 = vmul.f32 %v1502_v20, %v2181_v60 }
  0x1b   :  { %v173_v5 = vmul.f32 %v1503_v23, %v2181_v60  ;;  %v174_v17 = vmul.f32 %v1506_v24, %v2181_v60  ;;  %v175_v11 = vmul.f32 %v1507_v25, %v2181_v60  ;;  %v176_v18 = vmul.f32 %v1510_v26, %v2181_v60 }
  0x1c   :  { %v2222_v20 = vrot.slane %v35_v8, %v167_v19  ;;  %v177_v12 = vmul.f32 %v1511_v29, %v2181_v60  ;;  %v178_v13 = vmul.f32 %v1514_v30, %v2181_v60  ;;  %v179_v25 = vmul.f32 %v1515_v31, %v2181_v60  ;;  %v2244_v30 = vld [vmem:[%s2872_s0 + $0xd0] sm:$0xff]  }
  0x1d   :  { %v1602_v1 = vunpack.c.l.bf16 %v2244_v30  ;;  %v183_v16 = vmul.f32 %v1523_v37, %v2181_v60  ;;  %v187_v21 = vmul.f32 %v1531_v43, %v2181_v60  ;;  %v193_v33 = vmul.f32 %v1543_v54, %v2181_v60  ;;  %v2349_v54 = vld [vmem:[%s2872_s0 + $0xf8] sm:$0xff]  }
  0x1e   :  { %v240_v26 = vadd.f32 %v2222_v20, %v170_v3  ;;  %v241_v14 = vadd.f32 %v2222_v20, %v171_v57  ;;  %v242_v29 = vadd.f32 %v2222_v20, %v172_v62  ;;  %v243_v53 = vadd.f32 %v2222_v20, %v173_v5  ;;  %v2253_v62 = vld [vmem:[%s2872_s0 + $0xd8] sm:$0xff]  }
  0x1f   :  { %v244_v15 = vadd.f32 %v2222_v20, %v174_v17  ;;  %v245_v31 = vadd.f32 %v2222_v20, %v175_v11  ;;  %v246_v8 = vadd.f32 %v2222_v20, %v176_v18  ;;  %v247_v19 = vadd.f32 %v2222_v20, %v177_v12  ;;  %v2260_v11 = vld [vmem:[%s2872_s0 + $0xe0] sm:$0xff]  }
  0x20   :  { %v304_v3 = vmax.f32 %v240_v26, 0.0  ;;  %v305_v10 = vmax.f32 %v241_v14, 0.0  ;;  %v306_v57 = vmax.f32 %v242_v29, 0.0  ;;  %v307_v24 = vmax.f32 %v243_v53, 0.0 }
  0x21   :  { %v308_v5 = vmax.f32 %v244_v15, 0.0  ;;  %v309_v23 = vmax.f32 %v245_v31, 0.0  ;;  %v1603_v17 = vunpack.c.h.bf16 %v2244_v30  ;;  %v248_v26 = vadd.f32 %v2222_v20, %v178_v13 }
  0x22   :  { %v368_v18 = vpack.c.bf16 %v305_v10, %v304_v3  ;;  %v369_v12 = vpack.c.bf16 %v307_v24, %v306_v57  ;;  %v249_v14 = vadd.f32 %v2222_v20, %v179_v25  ;;  %v310_v53 = vmax.f32 %v246_v8, 0.0 }
  0x23   :  { %v370_v29 = vpack.c.bf16 %v309_v23, %v308_v5  ;;  %v311_v59 = vmax.f32 %v247_v19, 0.0  ;;  %v1606_v15 = vunpack.c.l.bf16 %v2253_v62  ;;  %v180_v31 = vmul.f32 %v1518_v32, %v2181_v60  ;;  %v2277_v23 = vld [vmem:[%s2872_s0 + $0xe8] sm:$0xff]  }
  0x24   :  { %1884 = vmatprep.mubr.msk.bf16.mxu0 %vm416_vm0, %v368_v18  ;;  %v181_v10 = vmul.f32 %v1519_v35, %v2181_v60  ;;  %v1607_v24 = vunpack.c.h.bf16 %v2253_v62  ;;  %v1610_v13 = vunpack.c.l.bf16 %v2260_v11  ;;  %v312_v25 = vmax.f32 %v248_v26, 0.0 }
  0x25   :  { %1885 = vmatmul.mubr.msk.bf16.vlgmr.msra.gmra.mrb[0].mxu0 %vm416_vm0, %v369_v12  ;;  %v313_v19 = vmax.f32 %v249_v14, 0.0  ;;  %v182_v32 = vmul.f32 %v1522_v36, %v2181_v60  ;;  %v184_v35 = vmul.f32 %v1526_v38, %v2181_v60  ;;  %v185_v8 = vmul.f32 %v1527_v41, %v2181_v60 }
  0x26   :  { %1888 = vmatprep.mubr.msk.bf16.mxu0 %vm416_vm0, %v370_v29  ;;  %v186_v3 = vmul.f32 %v1530_v42, %v2181_v60  ;;  %v1611_v36 = vunpack.c.h.bf16 %v2260_v11  ;;  %v371_v57 = vpack.c.bf16 %v311_v59, %v310_v53  ;;  %v1614_v37 = vunpack.c.l.bf16 %v2277_v23 }
  0x27   :  { %v1615_v5 = vunpack.c.h.bf16 %v2277_v23  ;;  %v250_v38 = vadd.f32 %v2222_v20, %v180_v31  ;;  %v251_v22 = vadd.f32 %v2222_v20, %v181_v10  ;;  %v188_v41 = vmul.f32 %v1534_v44, %v2181_v60 }
  0x28   :  { %v189_v42 = vmul.f32 %v1535_v47, %v2181_v60  ;;  %v372_v43 = vpack.c.bf16 %v313_v19, %v312_v25  ;;  %v252_v59 = vadd.f32 %v2222_v20, %v182_v32  ;;  %v253_v18 = vadd.f32 %v2222_v20, %v183_v16 }
  0x29   :  { %v190_v12 = vmul.f32 %v1538_v48, %v2181_v60  ;;  %v254_v44 = vadd.f32 %v2222_v20, %v184_v35  ;;  %v255_v26 = vadd.f32 %v2222_v20, %v185_v8  ;;  %v256_v28 = vadd.f32 %v2222_v20, %v186_v3 }
  0x2a   :  { %v191_v47 = vmul.f32 %v1539_v49, %v2181_v60  ;;  %v257_v14 = vadd.f32 %v2222_v20, %v187_v21  ;;  %v258_v29 = vadd.f32 %v2222_v20, %v188_v41  ;;  %v259_v53 = vadd.f32 %v2222_v20, %v189_v42 }
  0x2b   :  { %v1618_v31 = vunpack.c.l.bf16 %v2313_v27  ;;  %v260_v48 = vadd.f32 %v2222_v20, %v190_v12  ;;  %v192_v25 = vmul.f32 %v1542_v50, %v2181_v60  ;;  %v314_v49 = vmax.f32 %v250_v38, 0.0 }
  0x2c   :  { %v261_v10 = vadd.f32 %v2222_v20, %v191_v47  ;;  %v315_v19 = vmax.f32 %v251_v22, 0.0  ;;  %v316_v32 = vmax.f32 %v252_v59, 0.0  ;;  %v194_v16 = vmul.f32 %v1546_v55, %v2181_v60 }
  0x2d   :  { %1889 = vmatmul.mubr.msk.bf16.gmra.mrb[4].mxu0 %vm416_vm0, %v371_v57  ;;  %v317_v35 = vmax.f32 %v253_v18, 0.0  ;;  %v318_v8 = vmax.f32 %v254_v44, 0.0  ;;  %v319_v3 = vmax.f32 %v255_v26, 0.0  ;;  %v320_v21 = vmax.f32 %v256_v28, 0.0 }
  0x2e   :  { %1892 = vmatprep.mubr.msk.bf16.mxu0 %vm416_vm0, %v372_v43  ;;  %v321_v50 = vmax.f32 %v257_v14, 0.0  ;;  %v322_v41 = vmax.f32 %v258_v29, 0.0  ;;  %v323_v42 = vmax.f32 %v259_v53, 0.0  ;;  %v195_v34 = vmul.f32 %v1547_v56, %v2181_v60 }
  0x2f   :  { %v324_v57 = vmax.f32 %v260_v48, 0.0  ;;  %v325_v55 = vmax.f32 %v261_v10, 0.0  ;;  %v2352_v38 = vadd.f32 %v2222_v20, %v192_v25  ;;  %v2355_v22 = vadd.f32 %v2222_v20, %v193_v33 }
  0x30   :  { %v373_v43 = vpack.c.bf16 %v315_v19, %v314_v49  ;;  %v2358_v59 = vadd.f32 %v2222_v20, %v194_v16  ;;  %v196_v56 = vmul.f32 %v2877_v39, %v2181_v60  ;;  %v1619_v18 = vunpack.c.h.bf16 %v2313_v27 }
  0x31   :  { %v374_v12 = vpack.c.bf16 %v317_v35, %v316_v32  ;;  %v2878_v44 = vunpack.c.h.bf16 %v2093_v40  ;;  %v1622_v28 = vunpack.c.l.bf16 %v2349_v54  ;;  %v1623_v47 = vunpack.c.h.bf16 %v2349_v54 }
  0x32   :  { %v375_v14 = vpack.c.bf16 %v319_v3, %v318_v8  ;;  %v376_v29 = vpack.c.bf16 %v321_v50, %v320_v21  ;;  %v2369_v53 = vpack.c.bf16 %v323_v42, %v322_v41  ;;  %v2372_v48 = vadd.f32 %v2222_v20, %v195_v34 }
  0x33   :  { %v197_v26 = vmul.f32 %v2878_v44, %v2181_v60  ;;  %v2374_v10 = vpack.c.bf16 %v325_v55, %v324_v57  ;;  %v326_v25 = vmax.f32 %v2352_v38, 0.0  ;;  %v327_v33 = vmax.f32 %v2355_v22, 0.0 }
  0x34   :  { %v2879_v40 = vunpack.c.l.bf16 %v2116_v51  ;;  %v328_v19 = vmax.f32 %v2358_v59, 0.0  ;;  %v2384_v32 = vadd.f32 %v2222_v20, %v196_v56  ;;  %v2880_v16 = vunpack.c.l.bf16 %v2102_v45 }
  0x35   :  { %1893 = vmatmul.mubr.msk.bf16.gmra.mrb[8].mxu0 %vm416_vm0, %v373_v43  ;;  %v2881_v8 = vunpack.c.h.bf16 %v2116_v51  ;;  %v2394_v21 = vadd.f32 %v2222_v20, %v197_v26  ;;  %v2882_v41 = vunpack.c.l.bf16 %v2121_v52  ;;  %v2883_v34 = vunpack.c.h.bf16 %v2121_v52 }
  0x36   :  { %v202_v49 = vmul.f32 %v2879_v40, %v2181_v60  ;;  %v198_v35 = vmul.f32 %v2880_v16, %v2181_v60  ;;  %1896 = vmatprep.mubr.msk.bf16.mxu0 %vm416_vm0, %v374_v12  ;;  %v329_v55 = vmax.f32 %v2372_v48, 0.0  ;;  %v2884_v51 = vunpack.c.h.bf16 %v2102_v45 }
  0x37   :  { %v203_v3 = vmul.f32 %v2881_v8, %v2181_v60  ;;  %v204_v42 = vmul.f32 %v2882_v41, %v2181_v60  ;;  %v205_v57 = vmul.f32 %v2883_v34, %v2181_v60  ;;  %v2885_v56 = vunpack.c.l.bf16 %v2133_v58 }
  0x38   :  { %v272_v50 = vadd.f32 %v2222_v20, %v202_v49  ;;  %v199_v43 = vmul.f32 %v2884_v51, %v2181_v60  ;;  %v2886_v52 = vunpack.c.h.bf16 %v2133_v58  ;;  %v2417_v48 = vadd.f32 %v2222_v20, %v198_v35 }
  0x39   :  { %v273_v39 = vadd.f32 %v2222_v20, %v203_v3  ;;  %v206_v12 = vmul.f32 %v2885_v56, %v2181_v60  ;;  %v274_v26 = vadd.f32 %v2222_v20, %v204_v42  ;;  %v275_v40 = vadd.f32 %v2222_v20, %v205_v57 }
  0x3a   :  { %v336_v44 = vmax.f32 %v272_v50, 0.0  ;;  %v207_v49 = vmul.f32 %v2886_v52, %v2181_v60  ;;  %v2887_v8 = vunpack.c.l.bf16 %v2142_v63  ;;  %v2888_v34 = vunpack.c.h.bf16 %v2142_v63 }
  0x3b   :  { %v337_v45 = vmax.f32 %v273_v39, 0.0  ;;  %v276_v16 = vadd.f32 %v2222_v20, %v206_v12  ;;  %v338_v41 = vmax.f32 %v274_v26, 0.0  ;;  %v339_v50 = vmax.f32 %v275_v40, 0.0 }
  0x3c   :  { %v208_v3 = vmul.f32 %v2887_v8, %v2181_v60  ;;  %v277_v42 = vadd.f32 %v2222_v20, %v207_v49  ;;  %v209_v57 = vmul.f32 %v2888_v34, %v2181_v60  ;;  %v2889_v39 = vunpack.c.l.bf16 %v2147_v0 }
  0x3d   :  { %v384_v58 = vpack.c.bf16 %v337_v45, %v336_v44  ;;  %v340_v51 = vmax.f32 %v276_v16, 0.0  ;;  %v385_v12 = vpack.c.bf16 %v339_v50, %v338_v41  ;;  %v211_v26 = vmul.f32 %v1579_v9, %v2181_v60  ;;  %1897 = vmatmul.mubr.msk.bf16.gmra.mrb[12].mxu0 %vm416_vm0, %v375_v14 }
  0x3e   :  { %v278_v35 = vadd.f32 %v2222_v20, %v208_v3  ;;  %v210_v56 = vmul.f32 %v2889_v39, %v2181_v60  ;;  %v341_v52 = vmax.f32 %v277_v42, 0.0  ;;  %v279_v8 = vadd.f32 %v2222_v20, %v209_v57  ;;  %1900 = vmatprep.mubr.msk.bf16.mxu0 %vm416_vm0, %v376_v29 }
  0x3f   :  { %1916 = vmatprep.mubr.msk.bf16.mxu1 %vm416_vm0, %v384_v58  ;;  %v2890_v40 = vunpack.c.l.bf16 %v2156_v7  ;;  %v2891_v45 = vunpack.c.h.bf16 %v2156_v7  ;;  %v281_v14 = vadd.f32 %v2222_v20, %v211_v26  ;;  %v2892_v3 = vunpack.c.l.bf16 %v2164_v2 }
  0x40   :  { %v342_v63 = vmax.f32 %v278_v35, 0.0  ;;  %v280_v44 = vadd.f32 %v2222_v20, %v210_v56  ;;  %1917 = vmatmul.mubr.msk.bf16.vlgmr.msra.gmra.mrb[0].mxu1 %vm416_vm0, %v385_v12  ;;  %v386_v0 = vpack.c.bf16 %v341_v52, %v340_v51  ;;  %v343_v9 = vmax.f32 %v279_v8, 0.0 }
  0x41   :  { %v212_v49 = vmul.f32 %v2890_v40, %v2181_v60  ;;  %v213_v16 = vmul.f32 %v2891_v45, %v2181_v60  ;;  %v214_v41 = vmul.f32 %v2892_v3, %v2181_v60  ;;  %v2893_v7 = vunpack.c.h.bf16 %v2164_v2 }
  0x42   :  { %v344_v50 = vmax.f32 %v280_v44, 0.0  ;;  %v2894_v29 = vunpack.c.l.bf16 %v2107_v46  ;;  %1920 = vmatprep.mubr.msk.bf16.mxu1 %vm416_vm0, %v386_v0  ;;  %v345_v51 = vmax.f32 %v281_v14, 0.0  ;;  %v2895_v39 = vunpack.c.l.bf16 %v2169_v6 }
  0x43   :  { %v282_v42 = vadd.f32 %v2222_v20, %v212_v49  ;;  %v283_v34 = vadd.f32 %v2222_v20, %v213_v16  ;;  %v215_v57 = vmul.f32 %v2893_v7, %v2181_v60  ;;  %v284_v35 = vadd.f32 %v2222_v20, %v214_v41 }
  0x44   :  { %v200_v58 = vmul.f32 %v2894_v29, %v2181_v60  ;;  %v216_v56 = vmul.f32 %v2895_v39, %v2181_v60  ;;  %v330_v12 = vmax.f32 %v2384_v32, 0.0  ;;  %v331_v52 = vmax.f32 %v2394_v21, 0.0 }
  0x45   :  { %v285_v2 = vadd.f32 %v2222_v20, %v215_v57  ;;  %v2896_v8 = vunpack.c.h.bf16 %v2169_v6  ;;  %v2470_v44 = vadd.f32 %v2222_v20, %v199_v43  ;;  %v2897_v40 = vunpack.c.h.bf16 %v2107_v46  ;;  %1901 = vmatmul.mubr.msk.bf16.gmra.mrb[16].mxu0 %vm416_vm0, %v2369_v53 }
  0x46   :  { %v387_v45 = vpack.c.bf16 %v343_v9, %v342_v63  ;;  %v2898_v16 = vunpack.c.l.bf16 %v2192_v4  ;;  %v388_v0 = vpack.c.bf16 %v345_v51, %v344_v50  ;;  %v346_v21 = vmax.f32 %v282_v42, 0.0  ;;  %1904 = vmatprep.mubr.msk.bf16.mxu0 %vm416_vm0, %v2374_v10 }
  0x47   :  { %v217_v26 = vmul.f32 %v2896_v8, %v2181_v60  ;;  %v201_v49 = vmul.f32 %v2897_v40, %v2181_v60  ;;  %v347_v14 = vmax.f32 %v283_v34, 0.0  ;;  %v2479_v3 = vadd.f32 %v2222_v20, %v216_v56 }
  0x48   :  { %v218_v32 = vmul.f32 %v2898_v16, %v2181_v60  ;;  %v379_v6 = vpack.c.bf16 %v327_v33, %v326_v25  ;;  %v348_v43 = vmax.f32 %v284_v35, 0.0  ;;  %v349_v41 = vmax.f32 %v285_v2, 0.0  ;;  %1921 = vmatmul.mubr.msk.bf16.gmra.mrb[4].mxu1 %vm416_vm0, %v387_v45 }
  0x49   :  { %v2899_v46 = vunpack.c.h.bf16 %v2192_v4  ;;  %v380_v9 = vpack.c.bf16 %v329_v55, %v328_v19  ;;  %v332_v50 = vmax.f32 %v2417_v48, 0.0  ;;  %v2494_v42 = vadd.f32 %v2222_v20, %v200_v58  ;;  %1924 = vmatprep.mubr.msk.bf16.mxu1 %vm416_vm0, %v388_v0 }
  0x4a   :  { %v287_v38 = vadd.f32 %v2222_v20, %v217_v26  ;;  %v381_v22 = vpack.c.bf16 %v331_v52, %v330_v12  ;;  %v333_v4 = vmax.f32 %v2470_v44, 0.0  ;;  %v2501_v25 = vadd.f32 %v2222_v20, %v201_v49 }
  0x4b   :  { %v219_v63 = vmul.f32 %v2899_v46, %v2181_v60  ;;  %v288_v59 = vadd.f32 %v2222_v20, %v218_v32  ;;  %v389_v53 = vpack.c.bf16 %v347_v14, %v346_v21  ;;  %v350_v33 = vmax.f32 %v2479_v3, 0.0 }
  0x4c   :  { %v2900_v19 = vunpack.c.l.bf16 %v2206_v61  ;;  %v224_v10 = vmul.f32 %v1606_v15, %v2181_v60  ;;  %v390_v48 = vpack.c.bf16 %v349_v41, %v348_v43  ;;  %v2901_v7 = vunpack.c.h.bf16 %v2206_v61 }
  0x4d   :  { %v289_v34 = vadd.f32 %v2222_v20, %v219_v63  ;;  %v225_v29 = vmul.f32 %v1607_v24, %v2181_v60  ;;  %v351_v58 = vmax.f32 %v287_v38, 0.0  ;;  %v222_v51 = vmul.f32 %v1602_v1, %v2181_v60  ;;  %1905 = vmatmul.mubr.msk.bf16.gmra.mrb[20].mxu0 %vm416_vm0, %v379_v6 }
  0x4e   :  { %v220_v55 = vmul.f32 %v2900_v19, %v2181_v60  ;;  %v221_v57 = vmul.f32 %v2901_v7, %v2181_v60  ;;  %v294_v35 = vadd.f32 %v2222_v20, %v224_v10  ;;  %v226_v15 = vmul.f32 %v1610_v13, %v2181_v60  ;;  %1908 = vmatprep.mubr.msk.bf16.mxu0 %vm416_vm0, %v380_v9 }
  0x4f   :  { %v352_v39 = vmax.f32 %v288_v59, 0.0  ;;  %v223_v61 = vmul.f32 %v1603_v17, %v2181_v60  ;;  %v295_v56 = vadd.f32 %v2222_v20, %v225_v29  ;;  %v227_v62 = vmul.f32 %v1611_v36, %v2181_v60 }
  0x50   :  { %v358_v24 = vmax.f32 %v294_v35, 0.0  ;;  %v296_v1 = vadd.f32 %v2222_v20, %v226_v15  ;;  %v228_v12 = vmul.f32 %v1614_v37, %v2181_v60  ;;  %v229_v13 = vmul.f32 %v1615_v5, %v2181_v60  ;;  %1925 = vmatmul.mubr.msk.bf16.gmra.mrb[8].mxu1 %vm416_vm0, %v389_v53 }
  0x51   :  { %v353_v52 = vmax.f32 %v289_v34, 0.0  ;;  %v359_v30 = vmax.f32 %v295_v56, 0.0  ;;  %v297_v17 = vadd.f32 %v2222_v20, %v227_v62  ;;  %v230_v11 = vmul.f32 %v1618_v31, %v2181_v60  ;;  %1928 = vmatprep.mubr.msk.bf16.mxu1 %vm416_vm0, %v390_v48 }
  0x52   :  { %v360_v36 = vmax.f32 %v296_v1, 0.0  ;;  %v298_v2 = vadd.f32 %v2222_v20, %v228_v12  ;;  %v299_v8 = vadd.f32 %v2222_v20, %v229_v13  ;;  %v231_v23 = vmul.f32 %v1619_v18, %v2181_v60 }
  0x53   :  { %v395_v37 = vpack.c.bf16 %v359_v30, %v358_v24  ;;  %v361_v5 = vmax.f32 %v297_v17, 0.0  ;;  %v300_v26 = vadd.f32 %v2222_v20, %v230_v11  ;;  %v232_v31 = vmul.f32 %v1622_v28, %v2181_v60 }
  0x54   :  { %v362_v44 = vmax.f32 %v298_v2, 0.0  ;;  %v363_v40 = vmax.f32 %v299_v8, 0.0  ;;  %v301_v49 = vadd.f32 %v2222_v20, %v231_v23  ;;  %v233_v27 = vmul.f32 %v1623_v47, %v2181_v60 }
  0x55   :  { %v382_v18 = vpack.c.bf16 %v333_v4, %v332_v50  ;;  %v396_v45 = vpack.c.bf16 %v361_v5, %v360_v36  ;;  %v364_v16 = vmax.f32 %v300_v26, 0.0  ;;  %v302_v32 = vadd.f32 %v2222_v20, %v232_v31  ;;  %1909 = vmatmul.mubr.msk.bf16.gmra.mrb[24].mxu0 %vm416_vm0, %v381_v22 }
  0x56   :  { %v290_v0 = vadd.f32 %v2222_v20, %v220_v55  ;;  %v397_v21 = vpack.c.bf16 %v363_v40, %v362_v44  ;;  %v365_v14 = vmax.f32 %v301_v49, 0.0  ;;  %v303_v28 = vadd.f32 %v2222_v20, %v233_v27 }
  0x57   :  { %v391_v3 = vpack.c.bf16 %v351_v58, %v350_v33  ;;  %v291_v6 = vadd.f32 %v2222_v20, %v221_v57  ;;  %v292_v43 = vadd.f32 %v2222_v20, %v222_v51  ;;  %v366_v41 = vmax.f32 %v302_v32, 0.0  ;;  %1912 = vmatprep.mubr.msk.bf16.mxu0 %vm416_vm0, %v382_v18 }
  0x58   :  { %v392_v46 = vpack.c.bf16 %v353_v52, %v352_v39  ;;  %v293_v60 = vadd.f32 %v2222_v20, %v223_v61  ;;  %v398_v54 = vpack.c.bf16 %v365_v14, %v364_v16  ;;  %v367_v47 = vmax.f32 %v303_v28, 0.0 }
  0x59   :  { %v334_v63 = vmax.f32 %v2494_v42, 0.0  ;;  %v335_v9 = vmax.f32 %v2501_v25, 0.0  ;;  %1929 = vmatmul.mubr.msk.bf16.gmra.mrb[12].mxu1 %vm416_vm0, %v391_v3  ;;  %v354_v38 = vmax.f32 %v290_v0, 0.0  ;;  %v355_v4 = vmax.f32 %v291_v6, 0.0 }
  0x5a   :  { %v399_v50 = vpack.c.bf16 %v367_v47, %v366_v41  ;;  %1932 = vmatprep.mubr.msk.bf16.mxu1 %vm416_vm0, %v392_v46  ;;  %v356_v59 = vmax.f32 %v292_v43, 0.0  ;;  %v357_v53 = vmax.f32 %v293_v60, 0.0 }
  0x5b   :  { %v383_v20 = vpack.c.bf16 %v335_v9, %v334_v63  ;;  %v393_v33 = vpack.c.bf16 %v355_v4, %v354_v38 }
  0x5c   :  { %v394_v19 = vpack.c.bf16 %v357_v53, %v356_v59 }
  0x5d   :  { %1913 = vmatmul.mubr.msk.bf16.gmra.mrb[28].mxu0 %vm416_vm0, %v383_v20 }
  0x61   :  { %1933 = vmatmul.mubr.msk.bf16.gmra.mrb[16].mxu1 %vm416_vm0, %v393_v33 }
  0x62   :  { %1936 = vmatprep.mubr.msk.bf16.mxu1 %vm416_vm0, %v394_v19 }
  0x69   :  { %1937 = vmatmul.mubr.msk.bf16.gmra.mrb[20].mxu1 %vm416_vm0, %v395_v37 }
  0x6a   :  { %1940 = vmatprep.mubr.msk.bf16.mxu1 %vm416_vm0, %v396_v45 }
  0x71   :  { %1941 = vmatmul.mubr.msk.bf16.gmra.mrb[24].mxu1 %vm416_vm0, %v397_v21 }
  0x72   :  { %1944 = vmatprep.mubr.msk.bf16.mxu1 %vm416_vm0, %v398_v54 }
  0x79   :  { %1945 = vmatmul.mubr.msk.bf16.gmra.mrb[28].mxu1 %vm416_vm0, %v399_v50 }
  0xf8   :  { %v1886_v42 = vpop.f32.mrb[0].mxu0 }
  0xf9   :  { %v547_v22 = vpop.f32.mrb[1].mxu0  ;;  %v1194_v29 = vmul.f32 %v1886_v42, %v1886_v42 }
  0xfa   :  { %v1887_v25 = vpop.f32.mrb[2].mxu0  ;;  %v1192_v48 = vmul.f32 %v547_v22, %v547_v22 }
  0xfb   :  { %v1632_v55 = vpack.c.bf16 %v1887_v25, %v1886_v42  ;;  %v550_v10 = vpop.f32.mrb[3].mxu0  ;;  %v1195_v35 = vmul.f32 %v1887_v25, %v1887_v25 }
  0xfc   :  { %v1627_v34 = vpack.c.bf16 %v550_v10, %v547_v22  ;;  %v1122_v7 = vadd.f32 %v550_v10, %v547_v22  ;;  %v1193_v57 = vmul.f32 %v550_v10, %v550_v10 }
  0xfd   :  { %1815 = vst [vmem:[%s2875_s5 + $0x8] sm:$0xff] %v1632_v55  }
  0xfe   :  { %1628 = vst [vmem:[%s2875_s5] sm:$0xff] %v1627_v34   ;;  %v1123_v58 = vadd.f32 %v1886_v42, %v1122_v7  ;;  %v1256_v51 = vadd.f32 %v1193_v57, %v1192_v48 }
 0x100   :  { %v1257_v15 = vadd.f32 %v1256_v51, %v1194_v29  ;;  %v1890_v39 = vpop.f32.mrb[4].mxu0  ;;  %v1124_v61 = vadd.f32 %v1887_v25, %v1123_v58 }
 0x101   :  { %v563_v56 = vpop.f32.mrb[5].mxu0  ;;  %v1198_v2 = vmul.f32 %v1890_v39, %v1890_v39 }
 0x102   :  { %v1125_v62 = vadd.f32 %v1124_v61, %v563_v56  ;;  %v1196_v24 = vmul.f32 %v563_v56, %v563_v56  ;;  %v1258_v1 = vadd.f32 %v1257_v15, %v1195_v35  ;;  %v1891_v12 = vpop.f32.mrb[6].mxu0 }
 0x103   :  { %v1642_v13 = vpack.c.bf16 %v1891_v12, %v1890_v39  ;;  %v566_v52 = vpop.f32.mrb[7].mxu0  ;;  %v1199_v37 = vmul.f32 %v1891_v12, %v1891_v12 }
 0x104   :  { %v1259_v30 = vadd.f32 %v1258_v1, %v1196_v24  ;;  %v1637_v17 = vpack.c.bf16 %v566_v52, %v563_v56  ;;  %v1126_v11 = vadd.f32 %v1125_v62, %v566_v52  ;;  %v1197_v36 = vmul.f32 %v566_v52, %v566_v52 }
 0x105   :  { %1817 = vst [vmem:[%s2875_s5 + $0x18] sm:$0xff] %v1642_v13  }
 0x106   :  { %1816 = vst [vmem:[%s2875_s5 + $0x10] sm:$0xff] %v1637_v17   ;;  %v1127_v8 = vadd.f32 %v1890_v39, %v1126_v11  ;;  %v1260_v23 = vadd.f32 %v1259_v30, %v1197_v36 }
 0x108   :  { %v1261_v5 = vadd.f32 %v1260_v23, %v1198_v2  ;;  %v1894_v26 = vpop.f32.mrb[8].mxu0  ;;  %v1128_v31 = vadd.f32 %v1891_v12, %v1127_v8 }
 0x109   :  { %v579_v44 = vpop.f32.mrb[9].mxu0  ;;  %v1202_v28 = vmul.f32 %v1894_v26, %v1894_v26 }
 0x10a   :  { %v1129_v40 = vadd.f32 %v1128_v31, %v579_v44  ;;  %v1200_v49 = vmul.f32 %v579_v44, %v579_v44  ;;  %v1262_v27 = vadd.f32 %v1261_v5, %v1199_v37  ;;  %v1895_v18 = vpop.f32.mrb[10].mxu0 }
 0x10b   :  { %v1652_v45 = vpack.c.bf16 %v1895_v18, %v1894_v26  ;;  %v582_v16 = vpop.f32.mrb[11].mxu0  ;;  %v1203_v43 = vmul.f32 %v1895_v18, %v1895_v18 }
 0x10c   :  { %v1263_v32 = vadd.f32 %v1262_v27, %v1200_v49  ;;  %v1647_v0 = vpack.c.bf16 %v582_v16, %v579_v44  ;;  %v1130_v21 = vadd.f32 %v1129_v40, %v582_v16  ;;  %v1201_v14 = vmul.f32 %v582_v16, %v582_v16 }
 0x10d   :  { %1819 = vst [vmem:[%s2875_s5 + $0x28] sm:$0xff] %v1652_v45  }
 0x10e   :  { %1818 = vst [vmem:[%s2875_s5 + $0x20] sm:$0xff] %v1647_v0   ;;  %v1131_v3 = vadd.f32 %v1894_v26, %v1130_v21  ;;  %v1264_v6 = vadd.f32 %v1263_v32, %v1201_v14 }
 0x110   :  { %v1265_v41 = vadd.f32 %v1264_v6, %v1202_v28  ;;  %v1898_v46 = vpop.f32.mrb[12].mxu0  ;;  %v1132_v60 = vadd.f32 %v1895_v18, %v1131_v3 }
 0x111   :  { %v595_v54 = vpop.f32.mrb[13].mxu0  ;;  %v1206_v48 = vmul.f32 %v1898_v46, %v1898_v46 }
 0x112   :  { %v1133_v63 = vadd.f32 %v1132_v60, %v595_v54  ;;  %v1204_v9 = vmul.f32 %v595_v54, %v595_v54  ;;  %v1266_v50 = vadd.f32 %v1265_v41, %v1203_v43  ;;  %v1899_v38 = vpop.f32.mrb[14].mxu0 }
 0x113   :  { %v2600_v47 = vpop.f32.mrb[0].mxu1  ;;  %v1662_v59 = vpack.c.bf16 %v1899_v38, %v1898_v46  ;;  %v598_v53 = vpop.f32.mrb[15].mxu0  ;;  %v1207_v57 = vmul.f32 %v1899_v38, %v1899_v38 }
 0x114   :  { %v2602_v4 = vpop.f32.mrb[1].mxu1  ;;  %v1267_v33 = vadd.f32 %v1266_v50, %v1204_v9  ;;  %v1657_v19 = vpack.c.bf16 %v598_v53, %v595_v54  ;;  %v1134_v42 = vadd.f32 %v1133_v63, %v598_v53  ;;  %v1205_v22 = vmul.f32 %v598_v53, %v598_v53 }
 0x115   :  { %v2604_v20 = vpop.f32.mrb[2].mxu1  ;;  %1821 = vst [vmem:[%s2875_s5 + $0x38] sm:$0xff] %v1662_v59  }
 0x116   :  { %v2606_v25 = vpop.f32.mrb[3].mxu1  ;;  %v1712_v55 = vpack.c.bf16 %v2604_v20, %v2600_v47  ;;  %1820 = vst [vmem:[%s2875_s5 + $0x30] sm:$0xff] %v1657_v19   ;;  %v1135_v34 = vadd.f32 %v1898_v46, %v1134_v42  ;;  %v1268_v7 = vadd.f32 %v1267_v33, %v1205_v22 }
 0x117   :  { %v1707_v10 = vpack.c.bf16 %v2606_v25, %v2602_v4 }
 0x118   :  { %1831 = vst [vmem:[%s2875_s5 + $0x88] sm:$0xff] %v1712_v55   ;;  %v1269_v29 = vadd.f32 %v1268_v7, %v1206_v48  ;;  %v1902_v58 = vpop.f32.mrb[16].mxu0  ;;  %v1136_v51 = vadd.f32 %v1899_v38, %v1135_v34 }
 0x119   :  { %1830 = vst [vmem:[%s2875_s5 + $0x80] sm:$0xff] %v1707_v10   ;;  %v611_v35 = vpop.f32.mrb[17].mxu0  ;;  %v1210_v23 = vmul.f32 %v1902_v58, %v1902_v58 }
 0x11a   :  { %v1137_v39 = vadd.f32 %v1136_v51, %v611_v35  ;;  %v1208_v61 = vmul.f32 %v611_v35, %v611_v35  ;;  %v1270_v56 = vadd.f32 %v1269_v29, %v1207_v57  ;;  %v1903_v62 = vpop.f32.mrb[18].mxu0 }
 0x11b   :  { %v2624_v15 = vpop.f32.mrb[4].mxu1  ;;  %v1672_v1 = vpack.c.bf16 %v1903_v62, %v1902_v58  ;;  %v614_v12 = vpop.f32.mrb[19].mxu0  ;;  %v1211_v26 = vmul.f32 %v1903_v62, %v1903_v62 }
 0x11c   :  { %v2626_v24 = vpop.f32.mrb[5].mxu1  ;;  %v1271_v52 = vadd.f32 %v1270_v56, %v1208_v61  ;;  %v1667_v30 = vpack.c.bf16 %v614_v12, %v611_v35  ;;  %v1138_v17 = vadd.f32 %v1137_v39, %v614_v12  ;;  %v1209_v11 = vmul.f32 %v614_v12, %v614_v12 }
 0x11d   :  { %v2628_v13 = vpop.f32.mrb[6].mxu1  ;;  %1823 = vst [vmem:[%s2875_s5 + $0x48] sm:$0xff] %v1672_v1  }
 0x11e   :  { %v2630_v36 = vpop.f32.mrb[7].mxu1  ;;  %v1722_v2 = vpack.c.bf16 %v2628_v13, %v2624_v15  ;;  %1822 = vst [vmem:[%s2875_s5 + $0x40] sm:$0xff] %v1667_v30   ;;  %v1139_v37 = vadd.f32 %v1902_v58, %v1138_v17  ;;  %v1272_v5 = vadd.f32 %v1271_v52, %v1209_v11 }
 0x11f   :  { %v1717_v8 = vpack.c.bf16 %v2630_v36, %v2626_v24 }
 0x120   :  { %1833 = vst [vmem:[%s2875_s5 + $0x98] sm:$0xff] %v1722_v2   ;;  %v1273_v31 = vadd.f32 %v1272_v5, %v1210_v23  ;;  %v1906_v44 = vpop.f32.mrb[20].mxu0  ;;  %v1140_v40 = vadd.f32 %v1903_v62, %v1139_v37 }
 0x121   :  { %1832 = vst [vmem:[%s2875_s5 + $0x90] sm:$0xff] %v1717_v8   ;;  %v627_v49 = vpop.f32.mrb[21].mxu0  ;;  %v1214_v63 = vmul.f32 %v1906_v44, %v1906_v44 }
 0x122   :  { %v1141_v18 = vadd.f32 %v1140_v40, %v627_v49  ;;  %v1212_v45 = vmul.f32 %v627_v49, %v627_v49  ;;  %v1274_v16 = vadd.f32 %v1273_v31, %v1211_v26  ;;  %v1907_v32 = vpop.f32.mrb[22].mxu0 }
 0x123   :  { %v2648_v27 = vpop.f32.mrb[8].mxu1  ;;  %v1682_v21 = vpack.c.bf16 %v1907_v32, %v1906_v44  ;;  %v630_v14 = vpop.f32.mrb[23].mxu0  ;;  %v1215_v38 = vmul.f32 %v1907_v32, %v1907_v32 }
 0x124   :  { %v2650_v0 = vpop.f32.mrb[9].mxu1  ;;  %v1275_v3 = vadd.f32 %v1274_v16, %v1212_v45  ;;  %v1677_v6 = vpack.c.bf16 %v630_v14, %v627_v49  ;;  %v1142_v43 = vadd.f32 %v1141_v18, %v630_v14  ;;  %v1213_v41 = vmul.f32 %v630_v14, %v630_v14 }
 0x125   :  { %v2652_v28 = vpop.f32.mrb[10].mxu1  ;;  %1825 = vst [vmem:[%s2875_s5 + $0x58] sm:$0xff] %v1682_v21  }
 0x126   :  { %v2654_v46 = vpop.f32.mrb[11].mxu1  ;;  %v1732_v60 = vpack.c.bf16 %v2652_v28, %v2648_v27  ;;  %1824 = vst [vmem:[%s2875_s5 + $0x50] sm:$0xff] %v1677_v6   ;;  %v1143_v9 = vadd.f32 %v1906_v44, %v1142_v43  ;;  %v1276_v50 = vadd.f32 %v1275_v3, %v1213_v41 }
 0x127   :  { %v1727_v54 = vpack.c.bf16 %v2654_v46, %v2650_v0 }
 0x128   :  { %1835 = vst [vmem:[%s2875_s5 + $0xa8] sm:$0xff] %v1732_v60   ;;  %v1277_v59 = vadd.f32 %v1276_v50, %v1214_v63  ;;  %v1910_v53 = vpop.f32.mrb[24].mxu0  ;;  %v1144_v33 = vadd.f32 %v1907_v32, %v1143_v9  ;;  %v1224_v50 = vmul.f32 %v2602_v4, %v2602_v4 }
 0x129   :  { %1834 = vst [vmem:[%s2875_s5 + $0xa0] sm:$0xff] %v1727_v54   ;;  %v643_v19 = vpop.f32.mrb[25].mxu0  ;;  %v1218_v1 = vmul.f32 %v1910_v53, %v1910_v53 }
 0x12a   :  { %v1145_v22 = vadd.f32 %v1144_v33, %v643_v19  ;;  %v1216_v55 = vmul.f32 %v643_v19, %v643_v19  ;;  %v1278_v10 = vadd.f32 %v1277_v59, %v1215_v38  ;;  %v1911_v48 = vpop.f32.mrb[26].mxu0 }
 0x12b   :  { %v1692_v7 = vpack.c.bf16 %v1911_v48, %v1910_v53  ;;  %v646_v57 = vpop.f32.mrb[27].mxu0  ;;  %v1219_v30 = vmul.f32 %v1911_v48, %v1911_v48 }
 0x12c   :  { %v2672_v42 = vpop.f32.mrb[12].mxu1  ;;  %v1279_v58 = vadd.f32 %v1278_v10, %v1216_v55  ;;  %v1687_v51 = vpack.c.bf16 %v646_v57, %v643_v19  ;;  %v1146_v35 = vadd.f32 %v1145_v22, %v646_v57  ;;  %v1217_v39 = vmul.f32 %v646_v57, %v646_v57 }
 0x12d   :  { %v2674_v34 = vpop.f32.mrb[13].mxu1  ;;  %1827 = vst [vmem:[%s2875_s5 + $0x68] sm:$0xff] %v1692_v7   ;;  %v1225_v10 = vmul.f32 %v2606_v25, %v2606_v25 }
 0x12e   :  { %v2676_v29 = vpop.f32.mrb[14].mxu1  ;;  %1826 = vst [vmem:[%s2875_s5 + $0x60] sm:$0xff] %v1687_v51   ;;  %v1147_v12 = vadd.f32 %v1910_v53, %v1146_v35  ;;  %v1280_v52 = vadd.f32 %v1279_v58, %v1217_v39 }
 0x12f   :  { %v2678_v61 = vpop.f32.mrb[15].mxu1  ;;  %v1742_v56 = vpack.c.bf16 %v2676_v29, %v2672_v42 }
 0x130   :  { %v1737_v62 = vpack.c.bf16 %v2678_v61, %v2674_v34  ;;  %v1281_v17 = vadd.f32 %v1280_v52, %v1218_v1  ;;  %v1914_v11 = vpop.f32.mrb[28].mxu0  ;;  %v1148_v2 = vadd.f32 %v1911_v48, %v1147_v12 }
 0x131   :  { %1837 = vst [vmem:[%s2875_s5 + $0xb8] sm:$0xff] %v1742_v56   ;;  %v659_v8 = vpop.f32.mrb[29].mxu0  ;;  %v1222_v43 = vmul.f32 %v1914_v11, %v1914_v11  ;;  %v1228_v56 = vmul.f32 %v2626_v24, %v2626_v24 }
 0x132   :  { %1836 = vst [vmem:[%s2875_s5 + $0xb0] sm:$0xff] %v1737_v62   ;;  %v1149_v37 = vadd.f32 %v1148_v2, %v659_v8  ;;  %v1220_v5 = vmul.f32 %v659_v8, %v659_v8  ;;  %v1282_v26 = vadd.f32 %v1281_v17, %v1219_v30  ;;  %v1915_v31 = vpop.f32.mrb[30].mxu0 }
 0x133   :  { %v1702_v40 = vpack.c.bf16 %v1915_v31, %v1914_v11  ;;  %v662_v49 = vpop.f32.mrb[31].mxu0  ;;  %v1223_v54 = vmul.f32 %v1915_v31, %v1915_v31 }
 0x134   :  { %v2696_v23 = vpop.f32.mrb[16].mxu1  ;;  %v1283_v45 = vadd.f32 %v1282_v26, %v1220_v5  ;;  %v1697_v16 = vpack.c.bf16 %v662_v49, %v659_v8  ;;  %v1150_v32 = vadd.f32 %v1149_v37, %v662_v49  ;;  %v1221_v21 = vmul.f32 %v662_v49, %v662_v49 }
 0x135   :  { %v2698_v44 = vpop.f32.mrb[17].mxu1  ;;  %1829 = vst [vmem:[%s2875_s5 + $0x78] sm:$0xff] %v1702_v40   ;;  %v1232_v40 = vmul.f32 %v2650_v0, %v2650_v0 }
 0x136   :  { %v2700_v18 = vpop.f32.mrb[18].mxu1  ;;  %1828 = vst [vmem:[%s2875_s5 + $0x70] sm:$0xff] %v1697_v16   ;;  %v1151_v41 = vadd.f32 %v1914_v11, %v1150_v32  ;;  %v1284_v60 = vadd.f32 %v1283_v45, %v1221_v21  ;;  %v1229_v11 = vmul.f32 %v2630_v36, %v2630_v36 }
 0x137   :  { %v2702_v14 = vpop.f32.mrb[19].mxu1  ;;  %v1752_v3 = vpack.c.bf16 %v2700_v18, %v2696_v23 }
 0x138   :  { %v1747_v6 = vpack.c.bf16 %v2702_v14, %v2698_v44  ;;  %v1285_v63 = vadd.f32 %v1284_v60, %v1222_v43  ;;  %v1152_v9 = vadd.f32 %v1915_v31, %v1151_v41 }
 0x139   :  { %1839 = vst [vmem:[%s2875_s5 + $0xc8] sm:$0xff] %v1752_v3  }
 0x13a   :  { %1838 = vst [vmem:[%s2875_s5 + $0xc0] sm:$0xff] %v1747_v6   ;;  %v1153_v59 = vadd.f32 %v1152_v9, %v2602_v4  ;;  %v1286_v53 = vadd.f32 %v1285_v63, %v1223_v54  ;;  %v1226_v4 = vmul.f32 %v2600_v47, %v2600_v47  ;;  %v1233_v6 = vmul.f32 %v2654_v46, %v2654_v46 }
 0x13c   :  { %v2722_v38 = vpop.f32.mrb[20].mxu1  ;;  %v1287_v22 = vadd.f32 %v1286_v53, %v1224_v50  ;;  %v1154_v55 = vadd.f32 %v1153_v59, %v2606_v25  ;;  %v1227_v25 = vmul.f32 %v2604_v20, %v2604_v20  ;;  %v1236_v50 = vmul.f32 %v2674_v34, %v2674_v34 }
 0x13d   :  { %v2725_v33 = vpop.f32.mrb[21].mxu1 }
 0x13e   :  { %v2727_v19 = vpop.f32.mrb[22].mxu1  ;;  %v1155_v58 = vadd.f32 %v2600_v47, %v1154_v55  ;;  %v1288_v51 = vadd.f32 %v1287_v22, %v1225_v10  ;;  %v1237_v55 = vmul.f32 %v2678_v61, %v2678_v61  ;;  %v1238_v10 = vmul.f32 %v2672_v42, %v2672_v42 }
 0x13f   :  { %v1762_v48 = vpack.c.bf16 %v2727_v19, %v2722_v38  ;;  %v2734_v7 = vpop.f32.mrb[23].mxu1 }
 0x140   :  { %v1757_v57 = vpack.c.bf16 %v2734_v7, %v2725_v33  ;;  %v1289_v35 = vadd.f32 %v1288_v51, %v1226_v4  ;;  %v1156_v39 = vadd.f32 %v2604_v20, %v1155_v58 }
 0x141   :  { %1841 = vst [vmem:[%s2875_s5 + $0xd8] sm:$0xff] %v1762_v48  }
 0x142   :  { %1840 = vst [vmem:[%s2875_s5 + $0xd0] sm:$0xff] %v1757_v57   ;;  %v1157_v47 = vadd.f32 %v1156_v39, %v2626_v24  ;;  %v1290_v1 = vadd.f32 %v1289_v35, %v1227_v25  ;;  %v1230_v24 = vmul.f32 %v2624_v15, %v2624_v15  ;;  %v1241_v39 = vmul.f32 %v2702_v14, %v2702_v14 }
 0x144   :  { %v2752_v62 = vpop.f32.mrb[24].mxu1  ;;  %v1291_v30 = vadd.f32 %v1290_v1, %v1228_v56  ;;  %v1158_v17 = vadd.f32 %v1157_v47, %v2630_v36  ;;  %v1231_v36 = vmul.f32 %v2628_v13, %v2628_v13 }
 0x145   :  { %v2755_v12 = vpop.f32.mrb[25].mxu1 }
 0x146   :  { %v2757_v52 = vpop.f32.mrb[26].mxu1  ;;  %v1159_v37 = vadd.f32 %v2624_v15, %v1158_v17  ;;  %v1292_v5 = vadd.f32 %v1291_v30, %v1229_v11 }
 0x147   :  { %v1772_v20 = vpack.c.bf16 %v2757_v52, %v2752_v62  ;;  %v2764_v2 = vpop.f32.mrb[27].mxu1 }
 0x148   :  { %v1767_v8 = vpack.c.bf16 %v2764_v2, %v2755_v12  ;;  %v1293_v26 = vadd.f32 %v1292_v5, %v1230_v24  ;;  %v1160_v31 = vadd.f32 %v2628_v13, %v1159_v37 }
 0x149   :  { %1843 = vst [vmem:[%s2875_s5 + $0xe8] sm:$0xff] %v1772_v20  }
 0x14a   :  { %1842 = vst [vmem:[%s2875_s5 + $0xe0] sm:$0xff] %v1767_v8   ;;  %v1161_v15 = vadd.f32 %v1160_v31, %v2650_v0  ;;  %v1294_v45 = vadd.f32 %v1293_v26, %v1231_v36  ;;  %v1234_v0 = vmul.f32 %v2648_v27, %v2648_v27  ;;  %v1245_v8 = vmul.f32 %v2734_v7, %v2734_v7 }
 0x14c   :  { %v2782_v49 = vpop.f32.mrb[28].mxu1  ;;  %v1295_v21 = vadd.f32 %v1294_v45, %v1232_v40  ;;  %v1162_v3 = vadd.f32 %v1161_v15, %v2654_v46  ;;  %v1235_v46 = vmul.f32 %v2652_v28, %v2652_v28  ;;  %v1249_v15 = vmul.f32 %v2764_v2, %v2764_v2 }
 0x14d   :  { %v2785_v16 = vpop.f32.mrb[29].mxu1 }
 0x14e   :  { %v2787_v32 = vpop.f32.mrb[30].mxu1  ;;  %v1163_v60 = vadd.f32 %v2648_v27, %v1162_v3  ;;  %v1296_v54 = vadd.f32 %v1295_v21, %v1233_v6 }
 0x14f   :  { %v1782_v13 = vpack.c.bf16 %v2787_v32, %v2782_v49  ;;  %v790_v43 = vpop.f32.mrb[31].mxu1 }
 0x150   :  { %v1777_v41 = vpack.c.bf16 %v790_v43, %v2785_v16  ;;  %v1297_v63 = vadd.f32 %v1296_v54, %v1234_v0  ;;  %v1164_v9 = vadd.f32 %v2652_v28, %v1163_v60  ;;  %v1239_v28 = vmul.f32 %v2676_v29, %v2676_v29 }
 0x151   :  { %1845 = vst [vmem:[%s2875_s5 + $0xf8] sm:$0xff] %v1782_v13   ;;  %v1253_v60 = vmul.f32 %v790_v43, %v790_v43  ;;  %v1254_v54 = vmul.f32 %v2782_v49, %v2782_v49 }
 0x152   :  { %1844 = vst [vmem:[%s2875_s5 + $0xf0] sm:$0xff] %v1777_v41   ;;  %v1165_v27 = vadd.f32 %v1164_v9, %v2674_v34  ;;  %v1298_v59 = vadd.f32 %v1297_v63, %v1235_v46  ;;  %v1240_v34 = vmul.f32 %v2698_v44, %v2698_v44  ;;  %v1255_v63 = vmul.f32 %v2787_v32, %v2787_v32 }
 0x154   :  { %v1299_v53 = vadd.f32 %v1298_v59, %v1236_v50  ;;  %v1166_v22 = vadd.f32 %v1165_v27, %v2678_v61 }
 0x156   :  { %v1167_v48 = vadd.f32 %v2672_v42, %v1166_v22  ;;  %v1300_v57 = vadd.f32 %v1299_v53, %v1237_v55  ;;  %v1242_v42 = vmul.f32 %v2696_v23, %v2696_v23 }
 0x158   :  { %v1301_v4 = vadd.f32 %v1300_v57, %v1238_v10  ;;  %v1168_v58 = vadd.f32 %v2676_v29, %v1167_v48  ;;  %v1243_v29 = vmul.f32 %v2700_v18, %v2700_v18 }
 0x15a   :  { %v1169_v51 = vadd.f32 %v1168_v58, %v2698_v44  ;;  %v1302_v25 = vadd.f32 %v1301_v4, %v1239_v28  ;;  %v1244_v44 = vmul.f32 %v2725_v33, %v2725_v33 }
 0x15c   :  { %v1303_v35 = vadd.f32 %v1302_v25, %v1240_v34  ;;  %v1170_v61 = vadd.f32 %v1169_v51, %v2702_v14 }
 0x15e   :  { %v1171_v56 = vadd.f32 %v2696_v23, %v1170_v61  ;;  %v1304_v47 = vadd.f32 %v1303_v35, %v1241_v39  ;;  %v1246_v23 = vmul.f32 %v2722_v38, %v2722_v38 }
 0x160   :  { %v1305_v1 = vadd.f32 %v1304_v47, %v1242_v42  ;;  %v1172_v30 = vadd.f32 %v2700_v18, %v1171_v56  ;;  %v1247_v18 = vmul.f32 %v2727_v19, %v2727_v19 }
 0x162   :  { %v1173_v17 = vadd.f32 %v1172_v30, %v2725_v33  ;;  %v1306_v11 = vadd.f32 %v1305_v1, %v1243_v29  ;;  %v1248_v33 = vmul.f32 %v2755_v12, %v2755_v12 }
 0x164   :  { %v1307_v20 = vadd.f32 %v1306_v11, %v1244_v44  ;;  %v1174_v14 = vadd.f32 %v1173_v17, %v2734_v7 }
 0x166   :  { %v1175_v24 = vadd.f32 %v2722_v38, %v1174_v14  ;;  %v1308_v37 = vadd.f32 %v1307_v20, %v1245_v8  ;;  %v1250_v38 = vmul.f32 %v2752_v62, %v2752_v62 }
 0x168   :  { %v1309_v5 = vadd.f32 %v1308_v37, %v1246_v23  ;;  %v1176_v36 = vadd.f32 %v2727_v19, %v1175_v24  ;;  %v1251_v19 = vmul.f32 %v2757_v52, %v2757_v52 }
 0x16a   :  { %v1177_v26 = vadd.f32 %v1176_v36, %v2755_v12  ;;  %v1310_v31 = vadd.f32 %v1309_v5, %v1247_v18  ;;  %v1252_v12 = vmul.f32 %v2785_v16, %v2785_v16 }
 0x16c   :  { %v1311_v40 = vadd.f32 %v1310_v31, %v1248_v33  ;;  %v1178_v7 = vadd.f32 %v1177_v26, %v2764_v2 }
 0x16e   :  { %v1179_v45 = vadd.f32 %v2752_v62, %v1178_v7  ;;  %v1312_v21 = vadd.f32 %v1311_v40, %v1249_v15 }
 0x170   :  { %v1313_v3 = vadd.f32 %v1312_v21, %v1250_v38  ;;  %v1180_v6 = vadd.f32 %v2757_v52, %v1179_v45 }
 0x172   :  { %v1181_v13 = vadd.f32 %v1180_v6, %v2785_v16  ;;  %v1314_v41 = vadd.f32 %v1313_v3, %v1251_v19 }
 0x174   :  { %v1315_v0 = vadd.f32 %v1314_v41, %v1252_v12  ;;  %v1182_v2 = vadd.f32 %v1181_v13, %v790_v43 }
 0x176   :  { %v1183_v62 = vadd.f32 %v2782_v49, %v1182_v2  ;;  %v1316_v46 = vadd.f32 %v1315_v0, %v1253_v60 }
 0x178   :  { %v1184_v52 = vadd.f32 %v2787_v32, %v1183_v62  ;;  %v1317_v9 = vadd.f32 %v1316_v46, %v1254_v54 }
 0x17a   :  { %v1185_v50 = vrot.slane %v1184_v52, 4  ;;  %v1318_v27 = vadd.f32 %v1317_v9, %v1255_v63 }
 0x17c   :  { %v1186_v59 = vadd.f32 %v1185_v50, %v1184_v52  ;;  %v1319_v16 = vrot.slane %v1318_v27, 4 }
 0x17e   :  { %v1187_v53 = vrot.slane %v1186_v59, 2  ;;  %v1320_v22 = vadd.f32 %v1319_v16, %v1318_v27 }
 0x180   :  { %v1188_v55 = vadd.f32 %v1187_v53, %v1186_v59  ;;  %v1321_v43 = vrot.slane %v1320_v22, 2 }
 0x182   :  { %v1189_v10 = vrot.slane %v1188_v55, 1  ;;  %v1322_v48 = vadd.f32 %v1321_v43, %v1320_v22 }
 0x184   :  { %v1190_v57 = vadd.f32 %v1189_v10, %v1188_v55  ;;  %v1323_v28 = vrot.slane %v1322_v48, 1 }
 0x186   :  { %1191 = vst [vmem:[%s2876_s6] sm:$0x1] %v1190_v57  ;;  %v1324_v49 = vadd.f32 %v1323_v28, %v1322_v48 }
 0x188   :  { %1325 = vst [vmem:[%s2876_s6 + $0x1] sm:$0x1] %v1324_v49 }

// kernel: bottleneck_forward.5
= control target key start
LH: loop header
LB: loop body
LE: loop exit
PB: predicated region body
PF: predicated region fallthrough
CT: control target
= control target key end

     0   :  { %s5667_s21 = smov 0   ;;  %s7000_s0 = inlined_call_operand.vmem [shape: bf16[2,16,16,32], index: 0, kind: input, shape index: {}]   ;;  %s7001_s1 = inlined_call_operand.vmem [shape: f32[2,32], index: 1, kind: input, shape index: {}]   ;;  %s7002_s2 = inlined_call_operand.vmem [shape: f32[1,32], index: 2, kind: input, shape index: {}]   ;;  %s7003_s3 = inlined_call_operand.vmem [shape: f32[1,32], index: 3, kind: input, shape index: {}]   ;;  %s7004_s4 = inlined_call_operand.vmem [shape: bf16[288,32], index: 4, kind: input, shape index: {}]   ;;  %s7005_s5 = inlined_call_operand.vmem [shape: bf16[2,16,16,32], index: 5, kind: output, shape index: {0}]   ;;  %s7006_s6 = inlined_call_operand.vmem [shape: f32[2,2,32], index: 6, kind: output, shape index: {1}]  }
   0x1 LB: > { %s4671_s22 = sadd.s32 4294967295, %s5626_s21   ;;  %p4675_p0 = scmp.ge.s32.totalorder %s5626_s21, 1  ;;  %s5626_s21 = sphi %s5667_s21, %s17_s21  }
   0x2   : > { %p215_p1 = scmp.lt.s32.totalorder %s5626_s21, 3 }
   0x4   : > { %p216_p2 = pnand %p4675_p0, %p215_p1 }
   0x5   : > { %vm449_vm0 = vcmask (!%p216_p2), 257024   ;;  %vm452_vm1 = vcmask (!%p216_p2), 253952   ;;  %vm460_vm2 = vsmask.f32 (!%p216_p2), 256  ;;  %v5628_v0 = vmov (!%p216_p2), 0   ;;  %p249_p3 = scmp.lt.s32.totalorder (!%p216_p2), %s4671_s22, 1 }
   0x6   : > { %219 = sbr.rel (%p216_p2) target bundleno = 661 (0x295), region = 40  ;;  %450 = vst.msk [vmem:[#allocation2] sm:$0xf] (!%p216_p2), %vm449_vm0, %v5628_v0  ;;  %451 = vst.msk [vmem:[#allocation2 + $0x4] sm:$0xf] (!%p216_p2), %vm449_vm0, %v5628_v0  ;;  %vm1847_vm4 = vcmask (!%p216_p2), 1046528   ;;  %v342_v19 = vlaneseq (!%p216_p2) }
   0x7   : > { %453 = vst.msk [vmem:[#allocation2 + $0x8] sm:$0x1] (!%p216_p2), %vm452_vm1, %v5628_v0  ;;  %457 = vst.msk [vmem:[#allocation2 + $0xd4] sm:$0x1] (!%p216_p2), %vm452_vm1, %v5628_v0  ;;  %v264_v2 = vld [vmem:[%s7001_s1] sm:$0x1] (!%p216_p2) }
   0x8   : > { %455 = vst.msk [vmem:[#allocation2 + $0xcc] sm:$0xf] (!%p216_p2), %vm449_vm0, %v5628_v0  ;;  %456 = vst.msk [vmem:[#allocation2 + $0xd0] sm:$0xf] (!%p216_p2), %vm449_vm0, %v5628_v0  ;;  %v266_v3 = vld [vmem:[%s7001_s1 + $0x1] sm:$0x1] (!%p216_p2) }
   0x9   : > { %vm5683_vm3 = vmand (!%p216_p2), %vm452_vm1, %vm460_vm2  ;;  %v5695_v4 = vmul.f32 (!%p216_p2), 0.001953125, %v264_v2  ;;  %v267_v5 = vmul.f32 (!%p216_p2), 0.001953125, %v266_v3  ;;  %v468_v6 = vld [vmem:[#allocation2 + $0x24] sm:$0x1] (!%p216_p2)  ;;  %v465_v9 = vld [vmem:[#allocation2 + $0x18] sm:$0x1] (!%p216_p2) }
   0xa   : > { %v469_v8 = vsel (!%p216_p2), %vm5683_vm3, 0, %v468_v6  ;;  %v501_v10 = vld [vmem:[#allocation2 + $0xa8] sm:$0x1] (!%p216_p2)  ;;  %v466_v11 = vsel (!%p216_p2), %vm5683_vm3, 0, %v465_v9  ;;  %v462_v13 = vld [vmem:[#allocation2 + $0xc] sm:$0x1] (!%p216_p2) }
   0xb   : > { %v268_v7 = vmul.f32 (!%p216_p2), %v5695_v4, %v5695_v4  ;;  %470 = vst [vmem:[#allocation2 + $0x24] sm:$0x1] (!%p216_p2), %v469_v8  ;;  %v502_v12 = vsel (!%p216_p2), %vm5683_vm3, 0, %v501_v10  ;;  %467 = vst [vmem:[#allocation2 + $0x18] sm:$0x1] (!%p216_p2), %v466_v11  ;;  %v463_v14 = vsel (!%p216_p2), %vm5683_vm3, 0, %v462_v13 }
   0xc   : > { %503 = vst [vmem:[#allocation2 + $0xa8] sm:$0x1] (!%p216_p2), %v502_v12  ;;  %464 = vst [vmem:[#allocation2 + $0xc] sm:$0x1] (!%p216_p2), %v463_v14  ;;  %vm510_vm5 = vsmask.f32 (!%p216_p2), 7938 }
   0xd   : > { %s7016_s22 = smov (!%p249_p3, %s4671_s22), 1  ;;  %v269_v15 = vsub.f32 %v267_v5, %v268_v7  ;;  %v5360_v16 = vld [vmem:[#allocation2] sm:$0xfe]   ;;  %v5713_v28 = vshrl.u32 %v342_v19, 7  ;;  %s5629_s28 = smov 64   ;;  %vm5718_vm6 = vmand %vm452_vm1, %vm510_vm5  ;;  %vm1220_vm11 = vcmask 261120  }
   0xe   : > { %v5361_v17 = vld [vmem:[#allocation2 + $0x8] ss:$0 sps:$4 sm:$0x11]   ;;  %v5362_v18 = vld [vmem:[#allocation2] sm:$0xff]   ;;  %v1848_v20 = vrot.slane %v5360_v16, 1  ;;  %s5021_s27 = sshll.u32 %s7016_s22, 7  ;;  %vm5853_vm9 = vmand %vm449_vm0, %vm510_vm5 }
   0xf   : > { %v1849_v21 = vrot.slane %v5361_v17, 1  ;;  %v5363_v22 = vld [vmem:[#allocation2 + $0x8] ss:$0 sps:$4 sm:$0x11]   ;;  %v1415_v23 = vshrl.u32 %v5362_v18, 16  ;;  %v1417_v24 = vshll.u32 %v5362_v18, 16  ;;  %s5727_s7 = scalar_lea.vmem %s7000_s0, %s5021_s27  ;;  %s6762_s14 = scalar_lea.vmem %s7005_s5, %s5021_s27 }
  0x10   : > { %v271_v25 = vadd.f32 1e-05, %v269_v15  ;;  %v1422_v27 = vshll.u32 %v5363_v22, 16  ;;  %v471_v30 = vld [vmem:[#allocation2 + $0x30] sm:$0x1]  ;;  %v344_v39 = vsub.s32 0, %v5713_v28 }
  0x11   : > { %v1850_v26 = vsel %vm1847_vm4, %v1848_v20, %v1849_v21  ;;  %v1419_v29 = vrot.slane %v1417_v24, 1  ;;  %v504_v31 = vld [vmem:[#allocation2 + $0xb4] sm:$0x1]  ;;  %vm1413_vm7 = vsmask.f32 7424  ;;  %v472_v40 = vsel %vm5683_vm3, 0, %v471_v30 }
  0x12   : > { %1896 = vrot.lane.b32.xlu1 %v1850_v26, %s5629_s28  ;;  %5618 = vrsqrt.f32 %v271_v25  ;;  %v1424_v33 = vrot.slane %v1422_v27, 1  ;;  %v498_v34 = vld [vmem:[#allocation2 + $0x9c] sm:$0x1]  ;;  %v512_v36 = vld [vmem:[#allocation2 + $0x14] sm:$0x1]  ;;  %v505_v41 = vsel %vm5683_vm3, 0, %v504_v31 }
  0x13   : > { %v1420_v35 = vor.u32 %v1419_v29, %v1415_v23  ;;  %v515_v37 = vld [vmem:[#allocation2 + $0x20] sm:$0x1]  ;;  %v548_v38 = vld [vmem:[#allocation2 + $0xa4] sm:$0x1]  ;;  %v495_v42 = vld [vmem:[#allocation2 + $0x90] sm:$0x1] }
  0x14   : > { %v5736_v44 = vld [vmem:[%s5727_s7 + $0x10] sm:$0xff]   ;;  %473 = vst [vmem:[#allocation2 + $0x30] sm:$0x1] %v472_v40  ;;  %506 = vst [vmem:[#allocation2 + $0xb4] sm:$0x1] %v505_v41  ;;  %v499_v45 = vsel %vm5683_vm3, 0, %v498_v34 }
  0x15   : > { %v1425_v43 = vsel %vm1413_vm7, %v1420_v35, %v1424_v33  ;;  %v545_v46 = vld [vmem:[#allocation2 + $0x98] sm:$0x1]  ;;  %v518_v47 = vld [vmem:[#allocation2 + $0x2c] sm:$0x1]  ;;  %s5630_s8 = smov 32   ;;  %v513_v49 = vsel %vm5718_vm6, 0, %v512_v36  ;;  %v5097_v8 = vunpack.c.l.bf16 %v5736_v44  ;;  %v5098_v9 = vunpack.c.h.bf16 %v5736_v44 }
  0x16   : > { %1606 = vrot.lane.b32.xlu0 %v1425_v43, %s5630_s8  ;;  %v5742_v48 = vld [vmem:[%s5727_s7 + $0x8] sm:$0xff]   ;;  %500 = vst [vmem:[#allocation2 + $0x9c] sm:$0x1] %v499_v45  ;;  %v516_v50 = vsel %vm5718_vm6, 0, %v515_v37  ;;  %v549_v51 = vsel %vm5718_vm6, 0, %v548_v38  ;;  %v496_v55 = vsel %vm5683_vm3, 0, %v495_v42 }
  0x17   : > { %v551_v52 = vld [vmem:[#allocation2 + $0xb0] sm:$0x1]  ;;  %v270_v53 = vld [vmem:[%s7002_s2] sm:$0x1]  ;;  %v5754_v54 = vld [vmem:[%s5727_s7 + $0x68] sm:$0xff]   ;;  %v546_v56 = vsel %vm5718_vm6, 0, %v545_v46  ;;  %v5093_v15 = vunpack.c.l.bf16 %v5742_v48  ;;  %v5094_v16 = vunpack.c.h.bf16 %v5742_v48 }
  0x18   : > { %514 = vst [vmem:[#allocation2 + $0x14] sm:$0x1] %v513_v49  ;;  %517 = vst [vmem:[#allocation2 + $0x20] sm:$0x1] %v516_v50  ;;  %v519_v57 = vsel %vm5718_vm6, 0, %v518_v47  ;;  %v5763_v59 = vld [vmem:[%s5727_s7] sm:$0xff]   ;;  %v5141_v21 = vunpack.c.l.bf16 %v5754_v54  ;;  %v5142_v22 = vunpack.c.h.bf16 %v5754_v54 }
  0x19   : > { %550 = vst [vmem:[#allocation2 + $0xa4] sm:$0x1] %v549_v51  ;;  %v521_v58 = vld [vmem:[#allocation2 + $0x38] sm:$0x1]  ;;  %497 = vst [vmem:[#allocation2 + $0x90] sm:$0x1] %v496_v55  ;;  %v5089_v27 = vunpack.c.l.bf16 %v5763_v59  ;;  %v5090_v29 = vunpack.c.h.bf16 %v5763_v59 }
  0x1a   : > { %v5766_v60 = vld [vmem:[%s5727_s7 + $0x18] sm:$0xff]   ;;  %547 = vst [vmem:[#allocation2 + $0x98] sm:$0x1] %v546_v56  ;;  %520 = vst [vmem:[#allocation2 + $0x2c] sm:$0x1] %v519_v57  ;;  %v552_v61 = vsel %vm5718_vm6, 0, %v551_v52 }
  0x1b   : > { %v522_v62 = vsel %vm5718_vm6, 0, %v521_v58  ;;  %v554_v63 = vld [vmem:[#allocation2 + $0xbc] sm:$0x1]  ;;  %v5164_v2 = vld [vmem:[%s5727_s7 + $0x70] sm:$0xff]   ;;  %553 = vst [vmem:[#allocation2 + $0xb0] sm:$0x1] %v552_v61  ;;  %v5101_v30 = vunpack.c.l.bf16 %v5766_v60  ;;  %v5102_v31 = vunpack.c.h.bf16 %v5766_v60 }
  0x1c   : > { %v474_v0 = vld [vmem:[#allocation2 + $0x3c] sm:$0x1]  ;;  %523 = vst [vmem:[#allocation2 + $0x38] sm:$0x1] %v522_v62  ;;  %v555_v3 = vsel %vm5718_vm6, 0, %v554_v63  ;;  %v5619_v14 = vpop.eup %5618  ;;  %v5162_v23 = vld [vmem:[%s5727_s7 + $0x60] sm:$0xff]   ;;  %v5145_v35 = vunpack.c.l.bf16 %v5164_v2  ;;  %v5146_v36 = vunpack.c.h.bf16 %v5164_v2 }
  0x1d   : > { %v475_v5 = vsel %vm5683_vm3, 0, %v474_v0  ;;  %v524_v6 = vld [vmem:[#allocation2 + $0x44] sm:$0x1]  ;;  %v507_v7 = vld [vmem:[#allocation2 + $0xc0] sm:$0x1]  ;;  %v273_v20 = vmul.f32 %v5619_v14, %v270_v53  ;;  %v5793_v24 = vld [vmem:[%s5727_s7 + $0x58] sm:$0xff]   ;;  %v5137_v37 = vunpack.c.l.bf16 %v5162_v23  ;;  %v5138_v38 = vunpack.c.h.bf16 %v5162_v23 }
  0x1e   : > { %556 = vst [vmem:[#allocation2 + $0xbc] sm:$0x1] %v555_v3  ;;  %476 = vst [vmem:[#allocation2 + $0x3c] sm:$0x1] %v475_v5  ;;  %v525_v10 = vsel %vm5718_vm6, 0, %v524_v6  ;;  %v508_v11 = vsel %vm5683_vm3, 0, %v507_v7  ;;  %v5133_v40 = vunpack.c.l.bf16 %v5793_v24  ;;  %v5134_v41 = vunpack.c.h.bf16 %v5793_v24 }
  0x1f   : > { %v557_v12 = vld [vmem:[#allocation2 + $0xc8] sm:$0x1]  ;;  %526 = vst [vmem:[#allocation2 + $0x44] sm:$0x1] %v525_v10  ;;  %509 = vst [vmem:[#allocation2 + $0xc0] sm:$0x1] %v508_v11  ;;  %v275_v33 = vmul.f32 %v273_v20, %v5695_v4  ;;  %v5807_v34 = vrot.slane %v273_v20, %v344_v39 }
  0x20   : > { %v477_v13 = vld [vmem:[#allocation2 + $0x48] sm:$0x1]  ;;  %v558_v17 = vsel %vm5718_vm6, 0, %v557_v12  ;;  %v527_v19 = vld [vmem:[#allocation2 + $0x50] sm:$0x1]  ;;  %s5631_s13 = smov 96  }
  0x21   : > { %v478_v18 = vsel %vm5683_vm3, 0, %v477_v13  ;;  %559 = vst [vmem:[#allocation2 + $0xc8] sm:$0x1] %v558_v17  ;;  %v528_v25 = vsel %vm5718_vm6, 0, %v527_v19  ;;  %v274_v26 = vld [vmem:[%s7003_s3] sm:$0x1]  ;;  %v351_v43 = vmul.f32 %v5097_v8, %v5807_v34  ;;  %v352_v44 = vmul.f32 %v5098_v9, %v5807_v34 }
  0x22   : > { %479 = vst [vmem:[#allocation2 + $0x48] sm:$0x1] %v478_v18  ;;  %529 = vst [vmem:[#allocation2 + $0x50] sm:$0x1] %v528_v25  ;;  %v276_v42 = vsub.f32 %v274_v26, %v275_v33  ;;  %v349_v45 = vmul.f32 %v5093_v15, %v5807_v34  ;;  %v350_v4 = vmul.f32 %v5094_v16, %v5807_v34  ;;  %vm656_vm8 = vsmask.f32 4368 }
  0x23   : > { %v373_v46 = vmul.f32 %v5141_v21, %v5807_v34  ;;  %v374_v47 = vmul.f32 %v5142_v22, %v5807_v34  ;;  %v347_v48 = vmul.f32 %v5089_v27, %v5807_v34  ;;  %v348_v50 = vmul.f32 %v5090_v29, %v5807_v34  ;;  %vm5861_vm10 = vmor %vm460_vm2, %vm656_vm8  ;;  %s4680_s27 = sshll.u32 %s7016_s22, 1 }
  0x24   : > { %v5820_v49 = vrot.slane %v276_v42, %v344_v39  ;;  %v5824_v51 = vmul.f32 %v5101_v30, %v5807_v34  ;;  %v5827_v52 = vmul.f32 %v5102_v31, %v5807_v34  ;;  %v5830_v53 = vmul.f32 %v5145_v35, %v5807_v34  ;;  %v994_v35 = vld [vmem:[#allocation2 + $0x24] sm:$0xf]  ;;  %s262_s17 = scalar_lea.vmem %s7006_s6, %s4680_s27 }
  0x25   : > { %v5833_v54 = vmul.f32 %v5146_v36, %v5807_v34  ;;  %v5836_v55 = vmul.f32 %v5137_v37, %v5807_v34  ;;  %v5839_v28 = vmul.f32 %v5138_v38, %v5807_v34  ;;  %vm1654_vm12 = vcmask 523520  }
  0x26   : > { %v389_v39 = vadd.f32 %v5820_v49, %v351_v43  ;;  %v390_v56 = vadd.f32 %v5820_v49, %v352_v44  ;;  %v387_v57 = vadd.f32 %v5820_v49, %v349_v45  ;;  %v388_v58 = vadd.f32 %v5820_v49, %v350_v4 }
  0x27   : > { %v411_v59 = vadd.f32 %v5820_v49, %v373_v46  ;;  %v412_v60 = vadd.f32 %v5820_v49, %v374_v47  ;;  %v385_v61 = vadd.f32 %v5820_v49, %v347_v48  ;;  %v386_v62 = vadd.f32 %v5820_v49, %v348_v50  ;;  %v987_v46 = vld [vmem:[#allocation2 + $0x18] sm:$0xf] }
  0x28   : > { %v421_v63 = vmax.f32 %v389_v39, 0.0  ;;  %v422_v0 = vmax.f32 %v390_v56, 0.0  ;;  %v419_v2 = vmax.f32 %v387_v57, 0.0  ;;  %v420_v3 = vmax.f32 %v388_v58, 0.0  ;;  %v1071_v56 = vld [vmem:[#allocation2 + $0xa8] sm:$0xf] }
  0x29   : > { %v443_v5 = vmax.f32 %v411_v59, 0.0  ;;  %v444_v6 = vmax.f32 %v412_v60, 0.0  ;;  %v417_v7 = vmax.f32 %v385_v61, 0.0  ;;  %v418_v8 = vmax.f32 %v386_v62, 0.0 }
  0x2a   : > { %v5027_v9 = vpack.c.bf16 %v421_v63, %v421_v63  ;;  %v5028_v10 = vpack.c.bf16 %v422_v0, %v422_v0  ;;  %v5025_v11 = vpack.c.bf16 %v419_v2, %v419_v2  ;;  %v5026_v12 = vpack.c.bf16 %v420_v3, %v420_v3 }
  0x2b   : > { %v5049_v13 = vpack.c.bf16 %v443_v5, %v443_v5  ;;  %v5050_v14 = vpack.c.bf16 %v444_v6, %v444_v6  ;;  %v5023_v15 = vpack.c.bf16 %v417_v7, %v417_v7  ;;  %v5849_v16 = vpack.c.bf16 %v418_v8, %v418_v8  ;;  %v980_v7 = vld [vmem:[#allocation2 + $0xc] sm:$0xf] }
  0x2c   : > { %v693_v17 = vshrl.u32 %v5027_v9, 16  ;;  %v696_v18 = vshll.u32 %v5027_v9, 16  ;;  %v701_v19 = vshrl.u32 %v5028_v10, 16  ;;  %v704_v20 = vshll.u32 %v5028_v10, 16 }
  0x2d   : > { %v676_v21 = vshrl.u32 %v5025_v11, 16  ;;  %v679_v22 = vshll.u32 %v5025_v11, 16  ;;  %v684_v23 = vshrl.u32 %v5026_v12, 16  ;;  %v687_v25 = vshll.u32 %v5026_v12, 16 }
  0x2e   : > { %v695_v27 = vrot.slane %v693_v17, 7  ;;  %v5857_v29 = vrot.slane %v701_v19, 7  ;;  %v880_v30 = vshrl.u32 %v5049_v13, 16  ;;  %v883_v31 = vshll.u32 %v5049_v13, 16  ;;  %v984_v17 = vld [vmem:[#allocation2 + $0x14] sm:$0x1] }
  0x2f   : > { %v678_v36 = vrot.slane %v676_v21, 7  ;;  %v5865_v37 = vrot.slane %v684_v23, 7  ;;  %v888_v38 = vshrl.u32 %v5050_v14, 16  ;;  %v891_v42 = vshll.u32 %v5050_v14, 16 }
  0x30   : > { %v698_v43 = vor.u32 %v696_v18, %v695_v27  ;;  %v699_v44 = vrot.slane %v695_v27, 4  ;;  %v706_v45 = vor.u32 %v704_v20, %v5857_v29  ;;  %v708_v4 = vrot.slane %v5857_v29, 4  ;;  %v991_v18 = vld [vmem:[#allocation2 + $0x20] sm:$0x1] }
  0x31   : > { %v681_v47 = vor.u32 %v679_v22, %v678_v36  ;;  %v682_v48 = vrot.slane %v678_v36, 4  ;;  %v689_v50 = vor.u32 %v687_v25, %v5865_v37  ;;  %v691_v39 = vrot.slane %v5865_v37, 4 }
  0x32   : > { %v707_v57 = vsel %vm5861_vm10, %v699_v44, %v706_v45  ;;  %v995_v58 = vsel %vm5853_vm9, %v698_v43, %v994_v35  ;;  %v882_v59 = vrot.slane %v880_v30, 7  ;;  %v5875_v60 = vrot.slane %v888_v38, 7 }
  0x33   : > { %996 = vst [vmem:[#allocation2 + $0x24] sm:$0xf] %v995_v58  ;;  %997 = vst.msk [vmem:[#allocation2 + $0x28] sm:$0xf] %vm449_vm0, %v707_v57  ;;  %v690_v61 = vsel %vm5861_vm10, %v682_v48, %v689_v50  ;;  %v988_v62 = vsel %vm5853_vm9, %v681_v47, %v987_v46  ;;  %v659_v63 = vshrl.u32 %v5023_v15, 16  ;;  %v662_v0 = vshll.u32 %v5023_v15, 16 }
  0x34   : > { %989 = vst [vmem:[#allocation2 + $0x18] sm:$0xf] %v988_v62  ;;  %990 = vst.msk [vmem:[#allocation2 + $0x1c] sm:$0xf] %vm449_vm0, %v690_v61  ;;  %v885_v2 = vor.u32 %v883_v31, %v882_v59  ;;  %v886_v3 = vrot.slane %v882_v59, 4  ;;  %v893_v5 = vor.u32 %v891_v42, %v5875_v60  ;;  %v895_v6 = vrot.slane %v5875_v60, 4 }
  0x35   : > { %v661_v8 = vrot.slane %v659_v63, 7  ;;  %v667_v9 = vshrl.u32 %v5849_v16, 16  ;;  %v670_v10 = vshll.u32 %v5849_v16, 16  ;;  %v391_v11 = vadd.f32 %v5820_v49, %v5824_v51  ;;  %v998_v31 = vld [vmem:[#allocation2 + $0x2c] sm:$0x1] }
  0x36   : > { %v894_v12 = vsel %vm5861_vm10, %v886_v3, %v893_v5  ;;  %v1072_v13 = vsel %vm5853_vm9, %v885_v2, %v1071_v56  ;;  %v392_v14 = vadd.f32 %v5820_v49, %v5827_v52  ;;  %v413_v15 = vadd.f32 %v5820_v49, %v5830_v53  ;;  %v1001_v50 = vld [vmem:[#allocation2 + $0x30] sm:$0xf] }
  0x37   : > { %1073 = vst [vmem:[#allocation2 + $0xa8] sm:$0xf] %v1072_v13  ;;  %1074 = vst.msk [vmem:[#allocation2 + $0xac] sm:$0xf] %vm449_vm0, %v894_v12  ;;  %v664_v16 = vor.u32 %v662_v0, %v661_v8  ;;  %v665_v19 = vrot.slane %v661_v8, 4  ;;  %v669_v51 = vrot.slane %v667_v9, 7  ;;  %v414_v22 = vadd.f32 %v5820_v49, %v5833_v54 }
  0x38   : > { %v423_v20 = vmax.f32 %v391_v11, 0.0  ;;  %v424_v21 = vmax.f32 %v392_v14, 0.0  ;;  %v445_v23 = vmax.f32 %v413_v15, 0.0  ;;  %v409_v52 = vadd.f32 %v5820_v49, %v5836_v55  ;;  %v1075_v12 = vld [vmem:[#allocation2 + $0xb0] sm:$0x1] }
  0x39   : > { %v672_v25 = vor.u32 %v670_v10, %v669_v51  ;;  %v674_v27 = vrot.slane %v669_v51, 4  ;;  %v981_v53 = vsel %vm5853_vm9, %v664_v16, %v980_v7  ;;  %v446_v37 = vmax.f32 %v414_v22, 0.0  ;;  %v1005_v13 = vld [vmem:[#allocation2 + $0x38] sm:$0x1] }
  0x3a   : > { %v5029_v30 = vpack.c.bf16 %v423_v20, %v423_v20  ;;  %v5364_v35 = vld [vmem:[#allocation2 + $0x24] sm:$0xff]   ;;  %982 = vst [vmem:[#allocation2 + $0xc] sm:$0xf] %v981_v53  ;;  %v5030_v36 = vpack.c.bf16 %v424_v21, %v424_v21  ;;  %v5051_v38 = vpack.c.bf16 %v445_v23, %v445_v23  ;;  %v410_v42 = vadd.f32 %v5820_v49, %v5839_v28 }
  0x3b   : > { %v5365_v54 = vld [vmem:[#allocation2 + $0x18] sm:$0xff]   ;;  %v673_v43 = vsel %vm5861_vm10, %v665_v19, %v672_v25  ;;  %v985_v44 = vsel %vm5683_vm3, %v674_v27, %v984_v17  ;;  %v992_v45 = vsel %vm5683_vm3, %v691_v39, %v991_v18  ;;  %2941 = vrot.lane.b32.xlu0 %v5364_v35, %s5629_s28  ;;  %v5052_v28 = vpack.c.bf16 %v446_v37, %v446_v37  ;;  %v1078_v39 = vld [vmem:[#allocation2 + $0xb4] sm:$0xf]  ;;  %v1068_v37 = vld [vmem:[#allocation2 + $0xa4] sm:$0x1] }
  0x3c   : > { %v710_v55 = vshrl.u32 %v5029_v30, 16  ;;  %983 = vst.msk [vmem:[#allocation2 + $0x10] sm:$0xf] %vm449_vm0, %v673_v43  ;;  %v713_v46 = vshll.u32 %v5029_v30, 16  ;;  %v718_v47 = vshrl.u32 %v5030_v36, 16  ;;  %v721_v48 = vshll.u32 %v5030_v36, 16  ;;  %2939 = vrot.lane.b32.xlu1 %v5365_v54, %s5629_s28 }
  0x3d   : > { %986 = vst [vmem:[#allocation2 + $0x14] sm:$0x1] %v985_v44  ;;  %993 = vst [vmem:[#allocation2 + $0x20] sm:$0x1] %v992_v45  ;;  %v897_v57 = vshrl.u32 %v5051_v38, 16  ;;  %v900_v58 = vshll.u32 %v5051_v38, 16  ;;  %v369_v63 = vmul.f32 %v5133_v40, %v5807_v34  ;;  %v370_v0 = vmul.f32 %v5134_v41, %v5807_v34 }
  0x3e   : > { %v712_v56 = vrot.slane %v710_v55, 7  ;;  %v441_v59 = vmax.f32 %v409_v52, 0.0  ;;  %v5366_v61 = vld [vmem:[#allocation2 + $0xa8] sm:$0xff]   ;;  %v720_v62 = vrot.slane %v718_v47, 7  ;;  %v999_v2 = vsel %vm5683_vm3, %v708_v4, %v998_v31  ;;  %v1082_v4 = vld [vmem:[#allocation2 + $0xbc] sm:$0x1] }
  0x3f   : > { %v899_v7 = vrot.slane %v897_v57, 7  ;;  %v905_v8 = vshrl.u32 %v5052_v28, 16  ;;  %1000 = vst [vmem:[#allocation2 + $0x2c] sm:$0x1] %v999_v2  ;;  %2963 = vrot.lane.b32.xlu0 %v5366_v61, %s5629_s28  ;;  %v908_v11 = vshll.u32 %v5052_v28, 16  ;;  %v442_v40 = vmax.f32 %v410_v42, 0.0 }
  0x40   : > { %v715_v3 = vor.u32 %v713_v46, %v712_v56  ;;  %v716_v5 = vrot.slane %v712_v56, 4  ;;  %v723_v9 = vor.u32 %v721_v48, %v720_v62  ;;  %v725_v10 = vrot.slane %v720_v62, 4  ;;  %v5930_v16 = vld [vmem:[#allocation2 + $0x18] sm:$0xfe]  }
  0x41   : > { %v902_v41 = vor.u32 %v900_v58, %v899_v7  ;;  %v903_v29 = vrot.slane %v899_v7, 4  ;;  %v907_v14 = vrot.slane %v905_v8, 7  ;;  %v5047_v17 = vpack.c.bf16 %v441_v59, %v441_v59  ;;  %v5369_v53 = vld [vmem:[#allocation2 + $0x18] sm:$0xff]  }
  0x42   : > { %v1002_v24 = vsel %vm5853_vm9, %v715_v3, %v1001_v50  ;;  %v724_v15 = vsel %vm5861_vm10, %v716_v5, %v723_v9  ;;  %v5048_v18 = vpack.c.bf16 %v442_v40, %v442_v40  ;;  %v407_v22 = vadd.f32 %v5820_v49, %v369_v63  ;;  %v1064_v31 = vld [vmem:[#allocation2 + $0x9c] sm:$0xf]  ;;  %v1057_v9 = vld [vmem:[#allocation2 + $0x90] sm:$0xf] }
  0x43   : > { %1003 = vst [vmem:[#allocation2 + $0x30] sm:$0xf] %v1002_v24  ;;  %v5367_v19 = vld [vmem:[#allocation2 + $0xc] sm:$0xff]   ;;  %1004 = vst.msk [vmem:[#allocation2 + $0x34] sm:$0xf] %vm449_vm0, %v724_v15  ;;  %v910_v51 = vor.u32 %v908_v11, %v907_v14  ;;  %v912_v20 = vrot.slane %v907_v14, 4  ;;  %v1079_v21 = vsel %vm5853_vm9, %v902_v41, %v1078_v39  ;;  %v408_v38 = vadd.f32 %v5820_v49, %v370_v0 }
  0x44   : > { %1080 = vst [vmem:[#allocation2 + $0xb4] sm:$0xf] %v1079_v21  ;;  %v863_v23 = vshrl.u32 %v5047_v17, 16  ;;  %v866_v52 = vshll.u32 %v5047_v17, 16  ;;  %v871_v25 = vshrl.u32 %v5048_v18, 16  ;;  %v874_v27 = vshll.u32 %v5048_v18, 16  ;;  %2073 = vrot.lane.b32.xlu1 %v5367_v19, %s5631_s13 }
  0x45   : > { %v911_v30 = vsel %vm5861_vm10, %v903_v29, %v910_v51  ;;  %v5372_v35 = vld [vmem:[#allocation2 + $0xc] sm:$0xfe]   ;;  %v5373_v36 = vld [vmem:[#allocation2 + $0x14] ss:$0 sps:$4 sm:$0x11]   ;;  %v1076_v42 = vsel %vm5683_vm3, %v895_v6, %v1075_v12  ;;  %v1006_v54 = vsel %vm5683_vm3, %v725_v10, %v1005_v13  ;;  %v1083_v44 = vsel %vm5683_vm3, %v912_v20, %v1082_v4 }
  0x46   : > { %1081 = vst.msk [vmem:[#allocation2 + $0xb8] sm:$0xf] %vm449_vm0, %v911_v30  ;;  %v865_v43 = vrot.slane %v863_v23, 7  ;;  %v873_v55 = vrot.slane %v871_v25, 7  ;;  %1077 = vst [vmem:[#allocation2 + $0xb0] sm:$0x1] %v1076_v42 }
  0x47   : > { %1007 = vst [vmem:[#allocation2 + $0x38] sm:$0x1] %v1006_v54  ;;  %v2714_v45 = vrot.slane %v5372_v35, 1  ;;  %v5949_v46 = vld [vmem:[#allocation2 + $0x20] ss:$0 sps:$4 sm:$0x11]  }
  0x48   : > { %v2717_v60 = vrot.slane %v5930_v16, 1  ;;  %v439_v47 = vmax.f32 %v407_v22, 0.0  ;;  %1084 = vst [vmem:[#allocation2 + $0xbc] sm:$0x1] %v1083_v44  ;;  %v868_v6 = vor.u32 %v866_v52, %v865_v43  ;;  %v869_v48 = vrot.slane %v865_v43, 4  ;;  %2075 = vrot.lane.b32.xlu1 %v5369_v53, %s5631_s13  ;;  %v5393_v52 = vld [vmem:[#allocation2 + $0xc] sm:$0xff]  }
  0x49   : > { %v876_v50 = vor.u32 %v874_v27, %v873_v55  ;;  %v878_v28 = vrot.slane %v873_v55, 4  ;;  %v2715_v56 = vrot.slane %v5373_v36, 1  ;;  %v5953_v57 = vld [vmem:[#allocation2 + $0xc] sm:$0xfe]   ;;  %v440_v58 = vmax.f32 %v408_v38, 0.0  ;;  %v5374_v27 = vld [vmem:[#allocation2 + $0x24] sm:$0xff]  }
  0x4a   : > { %v5045_v59 = vpack.c.bf16 %v439_v47, %v439_v47  ;;  %v5368_v61 = vld [vmem:[#allocation2 + $0x30] sm:$0xff]   ;;  %v1065_v39 = vsel %vm5853_vm9, %v868_v6, %v1064_v31  ;;  %v2718_v2 = vrot.slane %v5949_v46, 1  ;;  %v1851_v7 = vrot.slane %v5953_v57, 1  ;;  %v1061_v24 = vld [vmem:[#allocation2 + $0x98] sm:$0x1] }
  0x4b   : > { %v877_v62 = vsel %vm5861_vm10, %v869_v48, %v876_v50  ;;  %v5378_v63 = vld [vmem:[#allocation2 + $0x14] ss:$0 sps:$4 sm:$0x11]   ;;  %v1069_v0 = vsel %vm5683_vm3, %v878_v28, %v1068_v37  ;;  %1066 = vst [vmem:[#allocation2 + $0x9c] sm:$0xf] %v1065_v39  ;;  %v5046_v3 = vpack.c.bf16 %v440_v58, %v440_v58  ;;  %2943 = vrot.lane.b32.xlu0 %v5368_v61, %s5629_s28  ;;  %v5395_v38 = vld [vmem:[#allocation2 + $0x18] sm:$0xff]  }
  0x4c   : > { %1067 = vst.msk [vmem:[#allocation2 + $0xa0] sm:$0xf] %vm449_vm0, %v877_v62  ;;  %1070 = vst [vmem:[#allocation2 + $0xa4] sm:$0x1] %v1069_v0  ;;  %v846_v5 = vshrl.u32 %v5045_v59, 16  ;;  %v849_v8 = vshll.u32 %v5045_v59, 16  ;;  %v2716_v51 = vsel %vm1847_vm4, %v2714_v45, %v2715_v56  ;;  %v2719_v42 = vsel %vm1847_vm4, %v2717_v60, %v2718_v2 }
  0x4d   : > { %v5370_v10 = vld [vmem:[#allocation2 + $0xb4] sm:$0xff]   ;;  %v854_v40 = vshrl.u32 %v5046_v3, 16  ;;  %v857_v12 = vshll.u32 %v5046_v3, 16  ;;  %v1852_v13 = vrot.slane %v5378_v63, 1  ;;  %v5383_v41 = vld [vmem:[#allocation2 + $0x24] sm:$0xfe]  }
  0x4e   : > { %v848_v11 = vrot.slane %v846_v5, 7  ;;  %v5384_v29 = vld [vmem:[#allocation2 + $0x2c] ss:$0 sps:$4 sm:$0x11]   ;;  %v2720_v17 = vrot.slane %v5383_v41, 1  ;;  %v1427_v45 = vshrl.u32 %v5393_v52, 16 }
  0x4f   : > { %v856_v15 = vrot.slane %v854_v40, 7  ;;  %2965 = vrot.lane.b32.xlu0 %v5370_v10, %s5629_s28  ;;  %v2721_v18 = vrot.slane %v5384_v29, 1  ;;  %v5966_v19 = vld [vmem:[#allocation2 + $0x18] sm:$0xfe]   ;;  %v5387_v54 = vld [vmem:[#allocation2 + $0xa8] sm:$0xfe]   ;;  %v1853_v28 = vsel %vm1847_vm4, %v1851_v7, %v1852_v13 }
  0x50   : > { %v851_v14 = vor.u32 %v849_v8, %v848_v11  ;;  %v852_v4 = vrot.slane %v848_v11, 4  ;;  %v5386_v23 = vld [vmem:[#allocation2 + $0x20] ss:$0 sps:$4 sm:$0x11]   ;;  %v1854_v53 = vrot.slane %v5966_v19, 1  ;;  %v2753_v46 = vrot.slane %v5387_v54, 1 }
  0x51   : > { %v859_v20 = vor.u32 %v857_v12, %v856_v15  ;;  %v861_v21 = vrot.slane %v856_v15, 4  ;;  %v1855_v37 = vrot.slane %v5386_v23, 1  ;;  %v5388_v44 = vld [vmem:[#allocation2 + $0xb0] ss:$0 sps:$4 sm:$0x11]   ;;  %v1429_v47 = vshll.u32 %v5393_v52, 16 }
  0x52   : > { %v1058_v22 = vsel %vm5853_vm9, %v851_v14, %v1057_v9  ;;  %v2754_v6 = vrot.slane %v5388_v44, 1  ;;  %v3180_v50 = vshrl.u32 %v5395_v38, 16  ;;  %v3182_v58 = vshll.u32 %v5395_v38, 16  ;;  %v5391_v0 = vld [vmem:[#allocation2 + $0x30] sm:$0xfe]   ;;  %v5399_v13 = vld [vmem:[#allocation2 + $0x24] sm:$0xff]  }
  0x53   : > { %v5371_v25 = vld [vmem:[#allocation2 + $0x9c] sm:$0xff]   ;;  %1059 = vst [vmem:[#allocation2 + $0x90] sm:$0xf] %v1058_v22  ;;  %v860_v30 = vsel %vm5861_vm10, %v852_v4, %v859_v20  ;;  %v1062_v31 = vsel %vm5683_vm3, %v861_v21, %v1061_v24  ;;  %2762 = vrot.lane.b32.xlu0 %v2716_v51, %s5630_s8  ;;  %v5380_v36 = vld [vmem:[#allocation2 + $0xa4] ss:$0 sps:$4 sm:$0x11]   ;;  %v2722_v63 = vsel %vm1847_vm4, %v2720_v17, %v2721_v18 }
  0x54   : > { %2097 = vrot.lane.b32.xlu1 %v5371_v25, %s5631_s13  ;;  %v5379_v35 = vld [vmem:[#allocation2 + $0x9c] sm:$0xfe]   ;;  %1060 = vst.msk [vmem:[#allocation2 + $0x94] sm:$0xf] %vm449_vm0, %v860_v30  ;;  %1063 = vst [vmem:[#allocation2 + $0x98] sm:$0x1] %v1062_v31  ;;  %v2755_v40 = vsel %vm1847_vm4, %v2753_v46, %v2754_v6  ;;  %v1856_v24 = vsel %vm1847_vm4, %v1854_v53, %v1855_v37 }
  0x55   : > { %v2750_v43 = vrot.slane %v5379_v35, 1  ;;  %v2751_v55 = vrot.slane %v5380_v36, 1  ;;  %v5389_v48 = vld [vmem:[#allocation2 + $0x9c] sm:$0xfe]   ;;  %v1431_v60 = vrot.slane %v1429_v47, 1  ;;  %v3184_v5 = vrot.slane %v3182_v58, 1 }
  0x56   : > { %v5390_v56 = vld [vmem:[#allocation2 + $0xa4] ss:$0 sps:$4 sm:$0x11]   ;;  %v1887_v57 = vrot.slane %v5389_v48, 1  ;;  %v2723_v7 = vrot.slane %v5391_v0, 1  ;;  %v3192_v23 = vshrl.u32 %v5399_v13, 16 }
  0x57   : > { %2764 = vrot.lane.b32.xlu0 %v2719_v42, %s5630_s8  ;;  %v2752_v16 = vsel %vm1847_vm4, %v2750_v43, %v2751_v55  ;;  %v1888_v62 = vrot.slane %v5390_v56, 1  ;;  %v5392_v2 = vld [vmem:[#allocation2 + $0x38] ss:$0 sps:$4 sm:$0x11]   ;;  %v1432_v14 = vor.u32 %v1431_v60, %v1427_v45  ;;  %v5154_v17 = vld [vmem:[%s5727_s7 + $0x20] sm:$0xff]   ;;  %v3185_v51 = vor.u32 %v3184_v5, %v3180_v50  ;;  %v5401_v36 = vld [vmem:[#allocation2 + $0xa8] sm:$0xff]  }
  0x58   : > { %2077 = vrot.lane.b32.xlu1 %v5374_v27, %s5631_s13  ;;  %v2724_v8 = vrot.slane %v5392_v2, 1  ;;  %v5394_v10 = vld [vmem:[#allocation2 + $0x14] ss:$0 sps:$4 sm:$0x11]   ;;  %v3194_v52 = vshll.u32 %v5399_v13, 16  ;;  %v5403_v38 = vld [vmem:[#allocation2 + $0x18] sm:$0xff]   ;;  %v5105_v42 = vunpack.c.l.bf16 %v5154_v17  ;;  %v5106_v54 = vunpack.c.h.bf16 %v5154_v17 }
  0x59   : > { %v5396_v12 = vld [vmem:[#allocation2 + $0x20] ss:$0 sps:$4 sm:$0x11]   ;;  %v1434_v41 = vshll.u32 %v5394_v10, 16  ;;  %v1889_v25 = vsel %vm1847_vm4, %v1887_v57, %v1888_v62  ;;  %v3324_v47 = vshrl.u32 %v5401_v36, 16  ;;  %v3326_v6 = vshll.u32 %v5401_v36, 16 }
  0x5a   : > { %v3187_v4 = vshll.u32 %v5396_v12, 16  ;;  %v2725_v18 = vsel %vm1847_vm4, %v2723_v7, %v2724_v8  ;;  %v5400_v53 = vld [vmem:[#allocation2 + $0x2c] ss:$0 sps:$4 sm:$0x11]   ;;  %v3196_v31 = vrot.slane %v3194_v52, 1  ;;  %v5405_v56 = vld [vmem:[#allocation2 + $0x9c] sm:$0xff]   ;;  %v355_v58 = vmul.f32 %v5105_v42, %v5807_v34 }
  0x5b   : > { %v5381_v59 = vld [vmem:[#allocation2 + $0x90] sm:$0xfe]   ;;  %2786 = vrot.lane.b32.xlu0 %v2752_v16, %s5630_s8  ;;  %v5382_v61 = vld [vmem:[#allocation2 + $0x98] ss:$0 sps:$4 sm:$0x11]   ;;  %v1436_v19 = vrot.slane %v1434_v41, 1 }
  0x5c   : > { %1898 = vrot.lane.b32.xlu1 %v1853_v28, %s5629_s28  ;;  %v1884_v39 = vrot.slane %v5381_v59, 1  ;;  %v1885_v3 = vrot.slane %v5382_v61, 1  ;;  %v5397_v11 = vld [vmem:[#allocation2 + $0x90] sm:$0xff]   ;;  %v5398_v15 = vld [vmem:[#allocation2 + $0x98] ss:$0 sps:$4 sm:$0x11]   ;;  %v3197_v44 = vor.u32 %v3196_v31, %v3192_v23  ;;  %v356_v59 = vmul.f32 %v5106_v54, %v5807_v34 }
  0x5d   : > { %v1559_v29 = vshrl.u32 %v5397_v11, 16  ;;  %v1561_v20 = vshll.u32 %v5397_v11, 16  ;;  %v3189_v21 = vrot.slane %v3187_v4, 1  ;;  %v1566_v22 = vshll.u32 %v5398_v15, 16  ;;  %v5407_v10 = vld [vmem:[#allocation2 + $0x30] sm:$0xff]   ;;  %v5165_v11 = vld [vmem:[%s5727_s7 + $0x78] sm:$0xff]  }
  0x5e   : > { %v1886_v9 = vsel %vm1847_vm4, %v1884_v39, %v1885_v3  ;;  %v3199_v35 = vshll.u32 %v5400_v53, 16  ;;  %v5402_v37 = vld [vmem:[#allocation2 + $0xb0] ss:$0 sps:$4 sm:$0x11]   ;;  %v1437_v43 = vsel %vm1413_vm7, %v1432_v14, %v1436_v19  ;;  %v1439_v28 = vshrl.u32 %v5403_v38, 16  ;;  %v5409_v4 = vld [vmem:[#allocation2 + $0xb4] sm:$0xff]  }
  0x5f   : > { %2766 = vrot.lane.b32.xlu0 %v2722_v63, %s5630_s8  ;;  %v1563_v27 = vrot.slane %v1561_v20, 1  ;;  %v1568_v30 = vrot.slane %v1566_v22, 1  ;;  %v3190_v55 = vsel %vm1413_vm7, %v3185_v51, %v3189_v21  ;;  %v5404_v48 = vld [vmem:[#allocation2 + $0x20] ss:$0 sps:$4 sm:$0x11]   ;;  %v3331_v50 = vshll.u32 %v5402_v37, 16 }
  0x60   : > { %1920 = vrot.lane.b32.xlu1 %v1886_v9, %s5629_s28  ;;  %v3201_v46 = vrot.slane %v3199_v35, 1  ;;  %v1441_v16 = vshll.u32 %v5403_v38, 16  ;;  %v3328_v60 = vrot.slane %v3326_v6, 1  ;;  %v1446_v57 = vshll.u32 %v5404_v48, 16  ;;  %v5411_v23 = vld [vmem:[#allocation2 + $0x24] sm:$0xff]  }
  0x61   : > { %v1564_v45 = vor.u32 %v1563_v27, %v1559_v29  ;;  %v3333_v62 = vrot.slane %v3331_v50, 1  ;;  %v5406_v63 = vld [vmem:[#allocation2 + $0xa4] ss:$0 sps:$4 sm:$0x11]   ;;  %v1571_v0 = vshrl.u32 %v5405_v56, 16  ;;  %v1573_v7 = vshll.u32 %v5405_v56, 16 }
  0x62   : > { %v3202_v61 = vsel %vm1413_vm7, %v3197_v44, %v3201_v46  ;;  %v1443_v39 = vrot.slane %v1441_v16, 1  ;;  %v3329_v3 = vor.u32 %v3328_v60, %v3324_v47  ;;  %v1448_v5 = vrot.slane %v1446_v57, 1  ;;  %v5408_v12 = vld [vmem:[#allocation2 + $0x38] ss:$0 sps:$4 sm:$0x11]   ;;  %v5155_v52 = vld [vmem:[%s5727_s7 + $0x28] sm:$0xff]  }
  0x63   : > { %2788 = vrot.lane.b32.xlu0 %v2755_v40, %s5630_s8  ;;  %v1569_v2 = vsel %vm1413_vm7, %v1564_v45, %v1568_v30  ;;  %v1578_v9 = vshll.u32 %v5406_v63, 16  ;;  %v1575_v40 = vrot.slane %v1573_v7, 1  ;;  %v393_v13 = vadd.f32 %v5820_v49, %v355_v58  ;;  %v5410_v19 = vld [vmem:[#allocation2 + $0xbc] ss:$0 sps:$4 sm:$0x11]  }
  0x64   : > { %1900 = vrot.lane.b32.xlu1 %v1856_v24, %s5629_s28  ;;  %v1444_v8 = vor.u32 %v1443_v39, %v1439_v28  ;;  %v3204_v29 = vshrl.u32 %v5407_v10, 16  ;;  %v3206_v14 = vshll.u32 %v5407_v10, 16  ;;  %v3334_v15 = vsel %vm1413_vm7, %v3329_v3, %v3333_v62  ;;  %v5412_v36 = vld [vmem:[#allocation2 + $0x2c] ss:$0 sps:$4 sm:$0x11]  }
  0x65   : > { %v1580_v41 = vrot.slane %v1578_v9, 1  ;;  %v1576_v17 = vor.u32 %v1575_v40, %v1571_v0  ;;  %v394_v51 = vadd.f32 %v5820_v49, %v356_v59  ;;  %v3336_v21 = vshrl.u32 %v5409_v4, 16  ;;  %v5415_v50 = vld [vmem:[#allocation2 + $0x24] sm:$0xfe]   ;;  %v1012_v9 = vld [vmem:[#allocation2 + $0x44] sm:$0x1] }
  0x66   : > { %v1449_v24 = vsel %vm1413_vm7, %v1444_v8, %v1448_v5  ;;  %v3208_v20 = vrot.slane %v3206_v14, 1  ;;  %v3338_v22 = vshll.u32 %v5409_v4, 16  ;;  %v3343_v27 = vshll.u32 %v5410_v19, 16  ;;  %v5416_v58 = vld [vmem:[#allocation2 + $0x2c] ss:$0 sps:$4 sm:$0x11]  }
  0x67   : > { %2768 = vrot.lane.b32.xlu0 %v2725_v18, %s5630_s8  ;;  %v3211_v18 = vshll.u32 %v5408_v12, 16  ;;  %v5149_v53 = vunpack.c.l.bf16 %v5165_v11  ;;  %v5150_v30 = vunpack.c.h.bf16 %v5165_v11  ;;  %v1451_v37 = vshrl.u32 %v5411_v23, 16  ;;  %v5422_v3 = vld [vmem:[#allocation2 + $0xa8] sm:$0xff]  }
  0x68   : > { %1922 = vrot.lane.b32.xlu1 %v1889_v25, %s5629_s28  ;;  %v3209_v31 = vor.u32 %v3208_v20, %v3204_v29  ;;  %v3340_v35 = vrot.slane %v3338_v22, 1  ;;  %v1453_v38 = vshll.u32 %v5411_v23, 16  ;;  %v1581_v42 = vsel %vm1413_vm7, %v1576_v17, %v1580_v41  ;;  %v5413_v11 = vld [vmem:[#allocation2 + $0xa8] sm:$0xff]  }
  0x69   : > { %v3213_v25 = vrot.slane %v3211_v18, 1  ;;  %v3345_v54 = vrot.slane %v3343_v27, 1  ;;  %v1458_v47 = vshll.u32 %v5412_v36, 16  ;;  %v377_v28 = vmul.f32 %v5149_v53, %v5807_v34  ;;  %v5425_v36 = vld [vmem:[#allocation2 + $0xa8] sm:$0xfe]  }
  0x6a   : > { %v3341_v45 = vor.u32 %v3340_v35, %v3336_v21  ;;  %v1455_v46 = vrot.slane %v1453_v38, 1  ;;  %v5109_v16 = vunpack.c.l.bf16 %v5155_v52  ;;  %v378_v59 = vmul.f32 %v5150_v30, %v5807_v34  ;;  %v5419_v38 = vld [vmem:[#allocation2 + $0x30] sm:$0xff]  }
  0x6b   : > { %3371 = vrot.lane.b32.xlu0 %v3190_v55, %s5631_s13  ;;  %v426_v55 = vmax.f32 %v394_v51, 0.0  ;;  %v3214_v44 = vsel %vm1413_vm7, %v3209_v31, %v3213_v25  ;;  %v1460_v57 = vrot.slane %v1458_v47, 1  ;;  %v5110_v5 = vunpack.c.h.bf16 %v5155_v52  ;;  %v6043_v31 = vld [vmem:[#allocation2 + $0x30] sm:$0xff]  }
  0x6c   : > { %1608 = vrot.lane.b32.xlu1 %v1437_v43, %s5630_s8  ;;  %v425_v43 = vmax.f32 %v393_v13, 0.0  ;;  %v3346_v56 = vsel %vm1413_vm7, %v3341_v45, %v3345_v54  ;;  %v1456_v60 = vor.u32 %v1455_v46, %v1451_v37  ;;  %v415_v10 = vadd.f32 %v5820_v49, %v377_v28  ;;  %v1085_v45 = vld [vmem:[#allocation2 + $0xc0] sm:$0xf]  ;;  %v5426_v46 = vld [vmem:[#allocation2 + $0xb0] ss:$0 sps:$4 sm:$0x11]  }
  0x6d   : > { %v5032_v48 = vpack.c.bf16 %v426_v55, %v426_v55  ;;  %v1857_v40 = vrot.slane %v5415_v50, 1  ;;  %v1858_v12 = vrot.slane %v5416_v58, 1  ;;  %v416_v13 = vadd.f32 %v5820_v49, %v378_v59 }
  0x6e   : > { %v5031_v6 = vpack.c.bf16 %v425_v43, %v425_v43  ;;  %v1461_v0 = vsel %vm1413_vm7, %v1456_v60, %v1460_v57  ;;  %v1585_v17 = vshll.u32 %v5422_v3, 16  ;;  %v358_v18 = vmul.f32 %v5110_v5, %v5807_v34 }
  0x6f   : > { %3373 = vrot.lane.b32.xlu0 %v3202_v61, %s5631_s13  ;;  %v735_v39 = vshrl.u32 %v5032_v48, 16  ;;  %v738_v63 = vshll.u32 %v5032_v48, 16  ;;  %v447_v21 = vmax.f32 %v415_v10, 0.0  ;;  %v448_v23 = vmax.f32 %v416_v13, 0.0 }
  0x70   : > { %1630 = vrot.lane.b32.xlu1 %v1569_v2, %s5630_s8  ;;  %v727_v61 = vshrl.u32 %v5031_v6, 16  ;;  %v730_v62 = vshll.u32 %v5031_v6, 16  ;;  %v1008_v2 = vld [vmem:[#allocation2 + $0x3c] sm:$0xf]  ;;  %v1859_v25 = vsel %vm1847_vm4, %v1857_v40, %v1858_v12  ;;  %v1583_v27 = vshrl.u32 %v5422_v3, 16 }
  0x71   : > { %v737_v8 = vrot.slane %v735_v39, 7  ;;  %v1587_v53 = vrot.slane %v1585_v17, 1  ;;  %v5053_v30 = vpack.c.bf16 %v447_v21, %v447_v21  ;;  %v5054_v35 = vpack.c.bf16 %v448_v23, %v448_v23  ;;  %v5421_v13 = vld [vmem:[#allocation2 + $0xbc] ss:$0 sps:$4 sm:$0x11]  }
  0x72   : > { %v729_v7 = vrot.slane %v727_v61, 7  ;;  %v396_v37 = vadd.f32 %v5820_v49, %v358_v18  ;;  %v1890_v28 = vrot.slane %v5425_v36, 1  ;;  %v1465_v60 = vshll.u32 %v6043_v31, 16 }
  0x73   : > { %1610 = vrot.lane.b32.xlu0 %v1449_v24, %s5630_s8  ;;  %v357_v24 = vmul.f32 %v5109_v16, %v5807_v34  ;;  %v740_v14 = vor.u32 %v738_v63, %v737_v8  ;;  %v742_v4 = vrot.slane %v737_v8, 4  ;;  %v917_v54 = vshll.u32 %v5053_v30, 16  ;;  %v1089_v16 = vld [vmem:[#allocation2 + $0xc8] sm:$0x1] }
  0x74   : > { %3395 = vrot.lane.b32.xlu1 %v3334_v15, %s5631_s13  ;;  %v732_v41 = vor.u32 %v730_v62, %v729_v7  ;;  %v733_v29 = vrot.slane %v729_v7, 4  ;;  %v5423_v15 = vld [vmem:[#allocation2 + $0xb0] ss:$0 sps:$4 sm:$0x11]   ;;  %v922_v55 = vshrl.u32 %v5054_v35, 16  ;;  %v1588_v47 = vor.u32 %v1587_v53, %v1583_v27 }
  0x75   : > { %v1013_v20 = vsel %vm5683_vm3, %v742_v4, %v1012_v9  ;;  %v1590_v22 = vshll.u32 %v5423_v15, 16  ;;  %v395_v52 = vadd.f32 %v5820_v49, %v357_v24  ;;  %v428_v57 = vmax.f32 %v396_v37, 0.0  ;;  %v5420_v62 = vld [vmem:[#allocation2 + $0xb4] sm:$0xfe]  }
  0x76   : > { %v741_v19 = vsel %vm5861_vm10, %v733_v29, %v740_v14  ;;  %v1009_v51 = vsel %vm5853_vm9, %v732_v41, %v1008_v2  ;;  %1014 = vst [vmem:[#allocation2 + $0x44] sm:$0x1] %v1013_v20  ;;  %v924_v50 = vrot.slane %v922_v55, 7  ;;  %v1891_v9 = vrot.slane %v5426_v46, 1  ;;  %v1015_v20 = vld [vmem:[#allocation2 + $0x48] sm:$0xf] }
  0x77   : > { %3375 = vrot.lane.b32.xlu0 %v3214_v44, %s5631_s13  ;;  %1010 = vst [vmem:[#allocation2 + $0x3c] sm:$0xf] %v1009_v51  ;;  %1011 = vst.msk [vmem:[#allocation2 + $0x40] sm:$0xf] %vm449_vm0, %v741_v19  ;;  %v1592_v43 = vrot.slane %v1590_v22, 1  ;;  %v925_v44 = vshll.u32 %v5054_v35, 16 }
  0x78   : > { %1632 = vrot.lane.b32.xlu1 %v1581_v42, %s5630_s8  ;;  %v914_v42 = vshrl.u32 %v5053_v30, 16  ;;  %v427_v48 = vmax.f32 %v395_v52, 0.0  ;;  %v929_v7 = vrot.slane %v924_v50, 4  ;;  %v1892_v19 = vsel %vm1847_vm4, %v1890_v28, %v1891_v9  ;;  %v1019_v52 = vld [vmem:[#allocation2 + $0x50] sm:$0x1] }
  0x79   : > { %v927_v39 = vor.u32 %v925_v44, %v924_v50  ;;  %v1593_v5 = vsel %vm1413_vm7, %v1588_v47, %v1592_v43  ;;  %v2756_v21 = vrot.slane %v5420_v62, 1  ;;  %v2757_v27 = vrot.slane %v5421_v13, 1  ;;  %v6068_v44 = vld [vmem:[#allocation2 + $0xb4] sm:$0xff]  }
  0x7a   : > { %v916_v6 = vrot.slane %v914_v42, 7  ;;  %v5033_v63 = vpack.c.bf16 %v427_v48, %v427_v48  ;;  %v1090_v24 = vsel %vm5683_vm3, %v929_v7, %v1089_v16  ;;  %v1463_v30 = vshrl.u32 %v6043_v31, 16  ;;  %v6076_v47 = vld [vmem:[#allocation2 + $0x30] sm:$0xfe]  }
  0x7b   : > { %1612 = vrot.lane.b32.xlu0 %v1461_v0, %s5630_s8  ;;  %v5034_v0 = vpack.c.bf16 %v428_v57, %v428_v57  ;;  %1091 = vst [vmem:[#allocation2 + $0xc8] sm:$0x1] %v1090_v24  ;;  %v1467_v35 = vrot.slane %v1465_v60, 1  ;;  %v6089_v7 = vld [vmem:[#allocation2 + $0xcc] sm:$0xff]   ;;  %vm1944_vm13 = vcmask 785920   ;;  %vm2121_vm14 = vcmask 1048320  }
  0x7c   : > { %3397 = vrot.lane.b32.xlu1 %v3346_v56, %s5631_s13  ;;  %v5432_v56 = vld [vmem:[#allocation2 + $0x38] ss:$0 sps:$4 sm:$0x11]   ;;  %v919_v59 = vor.u32 %v917_v54, %v916_v6  ;;  %v920_v61 = vrot.slane %v916_v6, 4  ;;  %v744_v14 = vshrl.u32 %v5033_v63, 16  ;;  %v747_v4 = vshll.u32 %v5033_v63, 16 }
  0x7d   : > { %v5418_v3 = vld [vmem:[#allocation2 + $0x44] ss:$0 sps:$4 sm:$0x11]   ;;  %v1470_v29 = vshll.u32 %v5432_v56, 16  ;;  %v752_v15 = vshrl.u32 %v5034_v0, 16  ;;  %v755_v51 = vshll.u32 %v5034_v0, 16  ;;  %v2758_v6 = vsel %vm1847_vm4, %v2756_v21, %v2757_v27 }
  0x7e   : > { %v5414_v58 = vld [vmem:[#allocation2 + $0x3c] sm:$0xff]   ;;  %v1086_v8 = vsel %vm5853_vm9, %v919_v59, %v1085_v45  ;;  %v928_v10 = vsel %vm5861_vm10, %v920_v61, %v927_v39  ;;  %v3223_v12 = vshll.u32 %v5418_v3, 16  ;;  %v746_v22 = vrot.slane %v744_v14, 7  ;;  %v5428_v53 = vld [vmem:[#allocation2 + $0x44] ss:$0 sps:$4 sm:$0x11]  }
  0x7f   : > { %2945 = vrot.lane.b32.xlu0 %v5414_v58, %s5629_s28  ;;  %v5417_v2 = vld [vmem:[#allocation2 + $0x3c] sm:$0xff]   ;;  %1087 = vst [vmem:[#allocation2 + $0xc0] sm:$0xf] %v1086_v8  ;;  %1088 = vst.msk [vmem:[#allocation2 + $0xc4] sm:$0xf] %vm449_vm0, %v928_v10  ;;  %v754_v23 = vrot.slane %v752_v15, 7  ;;  %v1468_v14 = vor.u32 %v1467_v35, %v1463_v30 }
  0x80   : > { %2099 = vrot.lane.b32.xlu1 %v5413_v11, %s5631_s13  ;;  %v3216_v11 = vshrl.u32 %v5417_v2, 16  ;;  %v3218_v40 = vshll.u32 %v5417_v2, 16  ;;  %v6059_v41 = vld [vmem:[#allocation2 + $0x3c] sm:$0xfe]   ;;  %v3225_v18 = vrot.slane %v3223_v12, 1  ;;  %v6064_v36 = vrot.slane %v1470_v29, 1 }
  0x81   : > { %v749_v37 = vor.u32 %v747_v4, %v746_v22  ;;  %v757_v42 = vor.u32 %v755_v51, %v754_v23  ;;  %v2726_v43 = vrot.slane %v6059_v41, 1  ;;  %v759_v55 = vrot.slane %v754_v23, 4  ;;  %v5156_v45 = vld [vmem:[%s5727_s7 + $0x30] sm:$0xff]   ;;  %v6083_v58 = vld [vmem:[%s5727_s7 + $0x38] sm:$0xff]   ;;  %v6092_v8 = vld [vmem:[%s5727_s7 + $0x40] sm:$0xff]  }
  0x82   : > { %v3220_v17 = vrot.slane %v3218_v40, 1  ;;  %v5430_v50 = vld [vmem:[#allocation2 + $0xc8] ss:$0 sps:$4 sm:$0x11]   ;;  %v2727_v16 = vrot.slane %v5428_v53, 1  ;;  %v5113_v62 = vunpack.c.l.bf16 %v5156_v45  ;;  %v1595_v0 = vshrl.u32 %v6068_v44, 16 }
  0x83   : > { %v1016_v46 = vsel %vm5853_vm9, %v749_v37, %v1015_v20  ;;  %v1020_v28 = vsel %vm5683_vm3, %v759_v55, %v1019_v52  ;;  %v3355_v57 = vshll.u32 %v5430_v50, 16  ;;  %v5436_v61 = vld [vmem:[#allocation2 + $0x38] ss:$0 sps:$4 sm:$0x11]   ;;  %v1597_v2 = vshll.u32 %v6068_v44, 16 }
  0x84   : > { %1902 = vrot.lane.b32.xlu1 %v1859_v25, %s5629_s28  ;;  %v3221_v25 = vor.u32 %v3220_v17, %v3216_v11  ;;  %1017 = vst [vmem:[#allocation2 + $0x48] sm:$0xf] %v1016_v46  ;;  %1021 = vst [vmem:[#allocation2 + $0x50] sm:$0x1] %v1020_v28  ;;  %v1860_v3 = vrot.slane %v6076_v47, 1  ;;  %v5114_v11 = vunpack.c.h.bf16 %v5156_v45  ;;  %v5117_v40 = vunpack.c.l.bf16 %v6083_v58  ;;  %v5433_v12 = vld [vmem:[#allocation2 + $0xb4] sm:$0xff]  }
  0x85   : > { %v3357_v63 = vrot.slane %v3355_v57, 1  ;;  %v5450_v10 = vld [vmem:[#allocation2 + $0xd4] ss:$0 sps:$4 sm:$0x11]   ;;  %v2728_v41 = vsel %vm1847_vm4, %v2726_v43, %v2727_v16  ;;  %v359_v4 = vmul.f32 %v5113_v62, %v5807_v34  ;;  %v1861_v15 = vrot.slane %v5436_v61, 1  ;;  %v6121_v47 = vld [vmem:[#allocation2 + $0x3c] sm:$0xff]  }
  0x86   : > { %v3226_v54 = vsel %vm1413_vm7, %v3221_v25, %v3225_v18  ;;  %v5429_v48 = vld [vmem:[#allocation2 + $0xc0] sm:$0xff]   ;;  %v6098_v24 = vld [vmem:[#allocation2 + $0xc8] ss:$0 sps:$4 sm:$0x11]   ;;  %v5118_v51 = vunpack.c.h.bf16 %v6083_v58  ;;  %v1599_v20 = vrot.slane %v1597_v2, 1  ;;  %v360_v23 = vmul.f32 %v5114_v11, %v5807_v34 }
  0x87   : > { %3377 = vrot.lane.b32.xlu0 %v3226_v54, %s5631_s13  ;;  %v3348_v56 = vshrl.u32 %v5429_v48, 16  ;;  %v3350_v60 = vshll.u32 %v5429_v48, 16  ;;  %v5424_v59 = vld [vmem:[#allocation2 + $0xc0] sm:$0xff]   ;;  %v6105_v21 = vld [vmem:[#allocation2 + $0xb4] sm:$0xfe]   ;;  %v361_v52 = vmul.f32 %v5117_v40, %v5807_v34  ;;  %v5121_v25 = vunpack.c.l.bf16 %v6092_v8 }
  0x88   : > { %2079 = vrot.lane.b32.xlu1 %v5419_v38, %s5631_s13  ;;  %v750_v38 = vrot.slane %v746_v22, 4  ;;  %v6096_v13 = vld [vmem:[#allocation2 + $0xc0] sm:$0xfe]   ;;  %v6107_v22 = vld [vmem:[#allocation2 + $0xbc] ss:$0 sps:$4 sm:$0x11]   ;;  %v1473_v37 = vsel %vm1413_vm7, %v1468_v14, %v6064_v36  ;;  %v397_v54 = vadd.f32 %v5820_v49, %v359_v4  ;;  %v1862_v48 = vsel %vm1847_vm4, %v1860_v3, %v1861_v15  ;;  %v1607_v4 = vpop.permute.xlu0 %1606 }
  0x89   : > { %v3352_v39 = vrot.slane %v3350_v60, 1  ;;  %v3360_v30 = vshrl.u32 %v6089_v7, 16  ;;  %v3362_v35 = vshll.u32 %v6089_v7, 16  ;;  %v2759_v45 = vrot.slane %v6096_v13, 1  ;;  %v5439_v57 = vld [vmem:[#allocation2 + $0x3c] sm:$0xff]  }
  0x8a   : > { %v758_v31 = vsel %vm5861_vm10, %v750_v38, %v757_v42  ;;  %v3367_v42 = vshll.u32 %v5450_v10, 16  ;;  %v1893_v36 = vrot.slane %v6105_v21, 1  ;;  %v1894_v50 = vrot.slane %v6107_v22, 1  ;;  %v530_v61 = vld [vmem:[#allocation2 + $0x5c] sm:$0x1]  ;;  %v5477_v13 = vld [vmem:[%s7004_s4 + $0x40] sm:$0xff]  }
  0x8b   : > { %1018 = vst.msk [vmem:[#allocation2 + $0x4c] sm:$0xf] %vm449_vm0, %v758_v31  ;;  %2790 = vrot.lane.b32.xlu0 %v2758_v6, %s5630_s8  ;;  %v3353_v9 = vor.u32 %v3352_v39, %v3348_v56  ;;  %v5438_v18 = vld [vmem:[#allocation2 + $0x50] ss:$0 sps:$4 sm:$0x11]   ;;  %v2760_v31 = vrot.slane %v6098_v24, 1  ;;  %v398_v16 = vadd.f32 %v5820_v49, %v360_v23  ;;  %v362_v62 = vmul.f32 %v5118_v51, %v5807_v34 }
  0x8c   : > { %1634 = vrot.lane.b32.xlu1 %v1593_v5, %s5630_s8  ;;  %v5443_v5 = vld [vmem:[#allocation2 + $0xbc] ss:$0 sps:$4 sm:$0x11]   ;;  %v3235_v53 = vshll.u32 %v5438_v18, 16  ;;  %v480_v6 = vld [vmem:[#allocation2 + $0x54] sm:$0x1]  ;;  %v6136_v3 = vadd.f32 %v5820_v49, %v361_v52  ;;  %v363_v40 = vmul.f32 %v5121_v25, %v5807_v34  ;;  %5166 = vmatprep.subr.bf16.mxu0 %v5477_v13 }
  0x8d   : > { %v3358_v29 = vsel %vm1413_vm7, %v3353_v9, %v3357_v63  ;;  %v5457_v56 = vld [vmem:[#allocation2] sm:$0xff]   ;;  %v6130_v58 = vld [vmem:[#allocation2 + $0x50] ss:$0 sps:$4 sm:$0x11]   ;;  %v6133_v63 = vrot.slane %v3367_v42, 1  ;;  %v1600_v9 = vor.u32 %v1599_v20, %v1595_v0  ;;  %v1475_v10 = vshrl.u32 %v6121_v47, 16  ;;  %v1897_v0 = vpop.permute.xlu1 %1896  ;;  %5332 = vmatprep.subr.bf16.mxu1 %v5477_v13 }
  0x8e   : > { %v3237_v60 = vrot.slane %v3235_v53, 1  ;;  %v5452_v2 = vld [vmem:[#allocation2 + $0x44] ss:$0 sps:$4 sm:$0x11]   ;;  %v429_v11 = vmax.f32 %v397_v54, 0.0  ;;  %v481_v14 = vsel %vm5683_vm3, 0, %v480_v6  ;;  %v400_v20 = vadd.f32 %v5820_v49, %v362_v62 }
  0x8f   : > { %2967 = vrot.lane.b32.xlu0 %v5424_v59, %s5629_s28  ;;  %v3364_v59 = vrot.slane %v3362_v35, 1  ;;  %482 = vst [vmem:[#allocation2 + $0x54] sm:$0x1] %v481_v14  ;;  %v6150_v18 = vld [vmem:[#allocation2 + $0x3c] sm:$0xfe]   ;;  %1221 = vst.msk [vmem:[#allocation3] sm:$0xff] %vm1220_vm11, %v5457_v56  ;;  %v6170_v6 = vadd.f32 %v5820_v49, %v363_v40 }
  0x90   : > { %1924 = vrot.lane.b32.xlu1 %v1892_v19, %s5629_s28  ;;  %v1602_v19 = vshll.u32 %v5443_v5, 16  ;;  %v5122_v5 = vunpack.c.h.bf16 %v6092_v8  ;;  %v1482_v8 = vshll.u32 %v5452_v2, 16  ;;  %v5035_v44 = vpack.c.bf16 %v429_v11, %v429_v11  ;;  %1655 = vst.msk [vmem:[#allocation3] sm:$0xff] %vm1654_vm12, %v1607_v4 }
  0x91   : > { %v531_v51 = vsel %vm5718_vm6, 0, %v530_v61  ;;  %v2730_v22 = vrot.slane %v6130_v58, 1  ;;  %1945 = vst.msk [vmem:[#allocation3] sm:$0xff] %vm1944_vm13, %v1897_v0  ;;  %v1863_v62 = vrot.slane %v6150_v18, 1  ;;  %v432_v2 = vmax.f32 %v400_v20, 0.0 }
  0x92   : > { %v5437_v17 = vld [vmem:[#allocation2 + $0x48] sm:$0xff]   ;;  %v1604_v46 = vrot.slane %v1602_v19, 1  ;;  %v6152_v19 = vld [vmem:[#allocation2 + $0x44] ss:$0 sps:$4 sm:$0x11]   ;;  %v761_v23 = vshrl.u32 %v5035_v44, 16 }
  0x93   : > { %2770 = vrot.lane.b32.xlu0 %v2728_v41, %s5630_s8  ;;  %v3230_v27 = vshll.u32 %v5437_v17, 16  ;;  %v3228_v38 = vshrl.u32 %v5437_v17, 16  ;;  %v5434_v43 = vld [vmem:[#allocation2 + $0x48] sm:$0xff]   ;;  %v1477_v41 = vshll.u32 %v6121_v47, 16  ;;  %v764_v52 = vshll.u32 %v5035_v44, 16  ;;  %v5453_v47 = vld [vmem:[#allocation2 + $0xc0] sm:$0xff]  }
  0x94   : > { %3399 = vrot.lane.b32.xlu1 %v3358_v29, %s5631_s13  ;;  %v6126_v28 = vld [vmem:[#allocation2 + $0x48] sm:$0xfe]   ;;  %v430_v29 = vmax.f32 %v398_v16, 0.0  ;;  %532 = vst [vmem:[#allocation2 + $0x5c] sm:$0x1] %v531_v51  ;;  %v1605_v25 = vsel %vm1413_vm7, %v1600_v9, %v1604_v46  ;;  %v6166_v42 = vrot.slane %v1482_v8, 1  ;;  %v2761_v46 = vsel %vm1847_vm4, %v2759_v45, %v2760_v31 }
  0x95   : > { %v3232_v55 = vrot.slane %v3230_v27, 1  ;;  %v1479_v27 = vrot.slane %v1477_v41, 1  ;;  %v763_v54 = vrot.slane %v761_v23, 7  ;;  %v3365_v16 = vor.u32 %v3364_v59, %v3360_v30  ;;  %v6202_v41 = vld [vmem:[#allocation2 + $0xc] sm:$0xff]  }
  0x96   : > { %v5036_v17 = vpack.c.bf16 %v430_v29, %v430_v29  ;;  %v1864_v24 = vrot.slane %v6152_v19, 1  ;;  %v1022_v31 = vld [vmem:[#allocation2 + $0x54] sm:$0xf]  ;;  %v431_v30 = vmax.f32 %v6136_v3, 0.0  ;;  %v5038_v0 = vpack.c.bf16 %v432_v2, %v432_v2  ;;  %v486_v2 = vld [vmem:[#allocation2 + $0x6c] sm:$0x1] }
  0x97   : > { %1614 = vrot.lane.b32.xlu0 %v1473_v37, %s5630_s8  ;;  %v3233_v39 = vor.u32 %v3232_v55, %v3228_v38  ;;  %v6162_v37 = vld [vmem:[#allocation2 + $0x48] sm:$0xff]   ;;  %v483_v38 = vld [vmem:[#allocation2 + $0x60] sm:$0x1]  ;;  %v364_v55 = vmul.f32 %v5122_v5, %v5807_v34  ;;  %v767_v61 = vrot.slane %v763_v54, 4  ;;  %v3370_v14 = vsel %vm1413_vm7, %v3365_v16, %v6133_v63 }
  0x98   : > { %2101 = vrot.lane.b32.xlu1 %v5433_v12, %s5631_s13  ;;  %v2729_v12 = vrot.slane %v6126_v28, 1  ;;  %v769_v53 = vshrl.u32 %v5036_v17, 16  ;;  %v772_v35 = vshll.u32 %v5036_v17, 16  ;;  %v1489_v7 = vshll.u32 %v6162_v37, 16 }
  0x99   : > { %v3238_v15 = vsel %vm1413_vm7, %v3233_v39, %v3237_v60  ;;  %v5464_v60 = vld [vmem:[#allocation2 + $0x50] ss:$0 sps:$4 sm:$0x11]   ;;  %v484_v5 = vsel %vm5683_vm3, 0, %v483_v38  ;;  %v5037_v11 = vpack.c.bf16 %v431_v30, %v431_v30  ;;  %v6205_v29 = vadd.f32 %v5820_v49, %v364_v55 }
  0x9a   : > { %v771_v56 = vrot.slane %v769_v53, 7  ;;  %v1494_v39 = vshll.u32 %v5464_v60, 16  ;;  %485 = vst [vmem:[#allocation2 + $0x60] sm:$0x1] %v484_v5  ;;  %v1487_v44 = vshrl.u32 %v6162_v37, 16  ;;  %v2731_v63 = vsel %vm1847_vm4, %v2729_v12, %v2730_v22 }
  0x9b   : > { %2947 = vrot.lane.b32.xlu0 %v5434_v43, %s5629_s28  ;;  %v533_v43 = vld [vmem:[#allocation2 + $0x68] sm:$0x1]  ;;  %v1026_v3 = vld [vmem:[#allocation2 + $0x5c] sm:$0x1]  ;;  %v1480_v51 = vor.u32 %v1479_v27, %v1475_v10  ;;  %v778_v23 = vshrl.u32 %v5037_v11, 16  ;;  %v786_v53 = vshrl.u32 %v5038_v0, 16 }
  0x9c   : > { %1904 = vrot.lane.b32.xlu1 %v1862_v48, %s5629_s28  ;;  %v1895_v48 = vsel %vm1847_vm4, %v1893_v36, %v1894_v50  ;;  %v774_v21 = vor.u32 %v772_v35, %v771_v56  ;;  %v776_v45 = vrot.slane %v771_v56, 4  ;;  %v5479_v36 = vld [vmem:[%s7004_s4] sm:$0xff]   ;;  %v5444_v50 = vld [vmem:[#allocation2 + $0xcc] sm:$0xff]   ;;  %v534_v40 = vsel %vm5718_vm6, 0, %v533_v43 }
  0x9d   : > { %5167 = vmatpush3.bf16.msra.mxu0 %v5479_v36  ;;  %v6218_v17 = vld [vmem:[#allocation2 + $0x50] ss:$0 sps:$4 sm:$0x11]   ;;  %535 = vst [vmem:[#allocation2 + $0x68] sm:$0x1] %v534_v40  ;;  %5340 = vmatpush3.bf16.msra.mxu1 %v5479_v36  ;;  %v789_v35 = vshll.u32 %v5038_v0, 16  ;;  %v1485_v16 = vsel %vm1413_vm7, %v1480_v51, %v6166_v42  ;;  %v1865_v42 = vsel %vm1847_vm4, %v1863_v62, %v1864_v24 }
  0x9e   : > { %v775_v9 = vsel %vm5861_vm10, %v767_v61, %v774_v21  ;;  %v1027_v4 = vsel %vm5683_vm3, %v776_v45, %v1026_v3  ;;  %v780_v58 = vrot.slane %v778_v23, 7  ;;  %v781_v37 = vshll.u32 %v5037_v11, 16  ;;  %v5475_v43 = vld [vmem:[#allocation2 + $0x14] ss:$0 sps:$4 sm:$0x11]   ;;  %v6245_v61 = vld [vmem:[#allocation2 + $0x18] sm:$0xff]  }
  0x9f   : > { %3379 = vrot.lane.b32.xlu0 %v3238_v15, %s5631_s13  ;;  %1025 = vst.msk [vmem:[#allocation2 + $0x58] sm:$0xf] %vm449_vm0, %v775_v9  ;;  %v6216_v15 = vld [vmem:[#allocation2 + $0x48] sm:$0xfe]   ;;  %1028 = vst [vmem:[#allocation2 + $0x5c] sm:$0x1] %v1027_v4 }
  0xa0   : > { %2081 = vrot.lane.b32.xlu1 %v5439_v57, %s5631_s13  ;;  %v766_v57 = vor.u32 %v764_v52, %v763_v54  ;;  %v1491_v52 = vrot.slane %v1489_v7, 1  ;;  %v2315_v28 = vshrl.u32 %v6202_v41, 16  ;;  %v2317_v12 = vshll.u32 %v6202_v41, 16 }
  0xa1   : > { %v788_v10 = vrot.slane %v786_v53, 7  ;;  %v1866_v22 = vrot.slane %v6216_v15, 1  ;;  %v1867_v27 = vrot.slane %v6218_v17, 1  ;;  %v433_v38 = vmax.f32 %v6170_v6, 0.0  ;;  %v1029_v9 = vld [vmem:[#allocation2 + $0x60] sm:$0xf] }
  0xa2   : > { %v1023_v59 = vsel %vm5853_vm9, %v766_v57, %v1022_v31  ;;  %v784_v54 = vrot.slane %v780_v58, 4  ;;  %v434_v55 = vmax.f32 %v6205_v29, 0.0  ;;  %v2319_v57 = vrot.slane %v2317_v12, 1 }
  0xa3   : > { %2792 = vrot.lane.b32.xlu0 %v2761_v46, %s5630_s8  ;;  %1024 = vst [vmem:[#allocation2 + $0x54] sm:$0xf] %v1023_v59  ;;  %v793_v60 = vrot.slane %v788_v10, 4  ;;  %v783_v45 = vor.u32 %v781_v37, %v780_v58  ;;  %v5460_v59 = vld [vmem:[#allocation2 + $0x48] sm:$0xff]   ;;  %v1492_v5 = vor.u32 %v1491_v52, %v1487_v44  ;;  %v2322_v11 = vshll.u32 %v5475_v43, 16 }
  0xa4   : > { %1636 = vrot.lane.b32.xlu1 %v1605_v25, %s5630_s8  ;;  %v6230_v25 = vrot.slane %v1494_v39, 1  ;;  %v1033_v3 = vld [vmem:[#allocation2 + $0x68] sm:$0x1]  ;;  %v5039_v19 = vpack.c.bf16 %v433_v38, %v433_v38  ;;  %v2327_v18 = vshrl.u32 %v6245_v61, 16  ;;  %v2320_v44 = vor.u32 %v2319_v57, %v2315_v28 }
  0xa5   : > { %v1030_v41 = vsel %vm5853_vm9, %v783_v45, %v1029_v9  ;;  %v1034_v4 = vsel %vm5683_vm3, %v793_v60, %v1033_v3  ;;  %v5040_v23 = vpack.c.bf16 %v434_v55, %v434_v55  ;;  %v487_v58 = vsel %vm5683_vm3, 0, %v486_v2  ;;  %v5484_v55 = vld [vmem:[%s7004_s4 + $0x48] sm:$0xff]  }
  0xa6   : > { %v5459_v21 = vld [vmem:[#allocation2 + $0x5c] ss:$0 sps:$4 sm:$0x11]   ;;  %1031 = vst [vmem:[#allocation2 + $0x60] sm:$0xf] %v1030_v41  ;;  %v795_v37 = vshrl.u32 %v5039_v19, 16  ;;  %v1497_v28 = vsel %vm1413_vm7, %v1492_v5, %v6230_v25  ;;  %5168 = vmatprep.subr.bf16.mxu0 %v5484_v55  ;;  %5333 = vmatprep.subr.bf16.mxu1 %v5484_v55 }
  0xa7   : > { %2969 = vrot.lane.b32.xlu0 %v5444_v50, %s5629_s28  ;;  %v3247_v50 = vshll.u32 %v5459_v21, 16  ;;  %v5462_v39 = vld [vmem:[#allocation2 + $0x5c] ss:$0 sps:$4 sm:$0x11]   ;;  %1035 = vst [vmem:[#allocation2 + $0x68] sm:$0x1] %v1034_v4 }
  0xa8   : > { %1926 = vrot.lane.b32.xlu1 %v1895_v48, %s5629_s28  ;;  %v791_v48 = vor.u32 %v789_v35, %v788_v10  ;;  %v5474_v51 = vld [vmem:[#allocation2 + $0x5c] ss:$0 sps:$4 sm:$0x11]   ;;  %v2324_v35 = vrot.slane %v2322_v11, 1  ;;  %488 = vst [vmem:[#allocation2 + $0x6c] sm:$0x1] %v487_v58 }
  0xa9   : > { %v3249_v24 = vrot.slane %v3247_v50, 1  ;;  %v797_v43 = vrot.slane %v795_v37, 7  ;;  %v806_v25 = vshll.u32 %v5040_v23, 16 }
  0xaa   : > { %v5454_v6 = vld [vmem:[#allocation2 + $0x54] sm:$0xff]   ;;  %v792_v31 = vsel %vm5861_vm10, %v784_v54, %v791_v48  ;;  %v2325_v54 = vsel %vm1413_vm7, %v2320_v44, %v2324_v35  ;;  %v798_v48 = vshll.u32 %v5039_v19, 16 }
  0xab   : > { %2772 = vrot.lane.b32.xlu0 %v2731_v63, %s5630_s8  ;;  %v5458_v13 = vld [vmem:[#allocation2 + $0x54] sm:$0xff]   ;;  %1032 = vst.msk [vmem:[#allocation2 + $0x64] sm:$0xf] %vm449_vm0, %v792_v31  ;;  %v2733_v63 = vrot.slane %v5462_v39, 1  ;;  %v801_v57 = vrot.slane %v797_v43, 4  ;;  %v1868_v31 = vsel %vm1847_vm4, %v1866_v22, %v1867_v27 }
  0xac   : > { %3401 = vrot.lane.b32.xlu1 %v3370_v14, %s5631_s13  ;;  %v5461_v7 = vld [vmem:[#allocation2 + $0x54] sm:$0xfe]   ;;  %v3240_v30 = vshrl.u32 %v5458_v13, 16  ;;  %v3242_v36 = vshll.u32 %v5458_v13, 16  ;;  %2522 = vst.msk [vmem:[#allocation3 + $0x8] sm:$0xff] %vm1220_vm11, %v2325_v54  ;;  %v2329_v13 = vshll.u32 %v6245_v61, 16  ;;  %v800_v50 = vor.u32 %v798_v48, %v797_v43 }
  0xad   : > { %v6227_v20 = vpop.permute.xlu0 %2941  ;;  %v2732_v40 = vrot.slane %v5461_v7, 1  ;;  %v5473_v29 = vld [vmem:[#allocation2 + $0x54] sm:$0xff]   ;;  %v5489_v54 = vld [vmem:[#allocation2 + $0x9c] sm:$0xff]   ;;  %v5490_v43 = vld [vmem:[#allocation2 + $0xa4] ss:$0 sps:$4 sm:$0x11]  }
  0xae   : > { %v6213_v8 = vpop.permute.xlu1 %2939  ;;  %v3244_v62 = vrot.slane %v3242_v36, 1  ;;  %v1501_v53 = vshll.u32 %v5473_v29, 16  ;;  %v1499_v10 = vshrl.u32 %v5473_v29, 16  ;;  %v5469_v7 = vld [vmem:[#allocation2 + $0x68] ss:$0 sps:$4 sm:$0x11]  }
  0xaf   : > { %1616 = vrot.lane.b32.xlu0 %v1485_v16, %s5630_s8  ;;  %v803_v16 = vshrl.u32 %v5040_v23, 16  ;;  %v2734_v60 = vsel %vm1847_vm4, %v2732_v40, %v2733_v63  ;;  %v3259_v17 = vshll.u32 %v5469_v7, 16  ;;  %v5472_v9 = vld [vmem:[#allocation2 + $0x68] ss:$0 sps:$4 sm:$0x11]   ;;  %v5470_v15 = vld [vmem:[#allocation2 + $0x54] sm:$0xff]  }
  0xb0   : > { %2103 = vrot.lane.b32.xlu1 %v5453_v47, %s5631_s13  ;;  %v3245_v0 = vor.u32 %v3244_v62, %v3240_v30  ;;  %v1503_v38 = vrot.slane %v1501_v53, 1  ;;  %v1036_v19 = vld [vmem:[#allocation2 + $0x6c] sm:$0xf]  ;;  %v5481_v29 = vld [vmem:[#allocation2 + $0x5c] ss:$0 sps:$4 sm:$0x11]  }
  0xb1   : > { %v6242_v56 = vpop.permute.xlu0 %2963  ;;  %v6287_v45 = vrot.slane %v803_v16, 7  ;;  %v5487_v62 = vld [vmem:[%s7004_s4 + $0x8] sm:$0xff]   ;;  %v3261_v40 = vrot.slane %v3259_v17, 1  ;;  %v2331_v63 = vrot.slane %v2329_v13, 1  ;;  %v2736_v53 = vrot.slane %v5472_v9, 1  ;;  %v5491_v61 = vld [vmem:[%s7004_s4 + $0x50] sm:$0xff]  }
  0xb2   : > { %v3250_v12 = vsel %vm1413_vm7, %v3245_v0, %v3249_v24  ;;  %v5465_v21 = vld [vmem:[#allocation2 + $0x60] sm:$0xff]   ;;  %v1504_v27 = vor.u32 %v1503_v38, %v1499_v10  ;;  %5169 = vmatpush3.bf16.msra.mxu0 %v5487_v62  ;;  %5341 = vmatpush3.bf16.msra.mxu1 %v5487_v62  ;;  %v1870_v58 = vrot.slane %v5481_v29, 1  ;;  %v5499_v29 = vld [vmem:[%s7004_s4 + $0x58] sm:$0xff]  }
  0xb3   : > { %2949 = vrot.lane.b32.xlu0 %v5454_v6, %s5629_s28  ;;  %v6283_v6 = vld [vmem:[#allocation2 + $0x54] sm:$0xfe]   ;;  %v808_v39 = vor.u32 %v806_v25, %v6287_v45  ;;  %v5483_v0 = vld [vmem:[#allocation2 + $0x20] ss:$0 sps:$4 sm:$0x11]   ;;  %v2332_v37 = vor.u32 %v2331_v63, %v2327_v18  ;;  %v2459_v25 = vshrl.u32 %v5489_v54, 16  ;;  %5170 = vmatprep.subr.bf16.mxu0 %v5491_v61 }
  0xb4   : > { %1906 = vrot.lane.b32.xlu1 %v1865_v42, %s5629_s28  ;;  %v5468_v42 = vld [vmem:[#allocation2 + $0x60] sm:$0xff]   ;;  %v1869_v4 = vrot.slane %v6283_v6, 1  ;;  %v5494_v18 = vld [vmem:[%s7004_s4 + $0x10] sm:$0xff]   ;;  %5334 = vmatprep.subr.bf16.mxu1 %v5491_v61 }
  0xb5   : > { %v3252_v2 = vshrl.u32 %v5468_v42, 16  ;;  %v3254_v5 = vshll.u32 %v5468_v42, 16  ;;  %v809_v11 = vsel %vm5861_vm10, %v801_v57, %v808_v39  ;;  %v2466_v57 = vshll.u32 %v5490_v43, 16  ;;  %v5495_v6 = vld [vmem:[#allocation2 + $0x60] sm:$0xff]  }
  0xb6   : > { %v2074_v46 = vpop.permute.xlu1 %2073  ;;  %1039 = vst.msk [vmem:[#allocation2 + $0x70] sm:$0xf] %vm449_vm0, %v809_v11  ;;  %5171 = vmatpush3.bf16.msra.mxu0 %v5494_v18  ;;  %5342 = vmatpush3.bf16.msra.mxu1 %v5494_v18  ;;  %v1513_v17 = vshll.u32 %v5495_v6, 16  ;;  %v5502_v18 = vld [vmem:[#allocation2 + $0x60] sm:$0xfe]  }
  0xb7   : > { %2122 = vst.msk [vmem:[#allocation3] sm:$0xff] %vm2121_vm14, %v2074_v46  ;;  %3381 = vrot.lane.b32.xlu0 %v3250_v12, %s5631_s13  ;;  %v1506_v46 = vshll.u32 %v5474_v51, 16  ;;  %v3256_v24 = vrot.slane %v3254_v5, 1  ;;  %v536_v51 = vld [vmem:[#allocation2 + $0x74] sm:$0x1]  ;;  %v2334_v12 = vshll.u32 %v5483_v0, 16  ;;  %5172 = vmatprep.subr.bf16.mxu0 %v5499_v29 }
  0xb8   : > { %2083 = vrot.lane.b32.xlu1 %v5460_v59, %s5631_s13  ;;  %v5471_v59 = vld [vmem:[#allocation2 + $0x60] sm:$0xfe]   ;;  %v537_v35 = vsel %vm5718_vm6, 0, %v536_v51  ;;  %v1511_v5 = vshrl.u32 %v5495_v6, 16  ;;  %5335 = vmatprep.subr.bf16.mxu1 %v5499_v29 }
  0xb9   : > { %v2735_v22 = vrot.slane %v5471_v59, 1  ;;  %v1508_v3 = vrot.slane %v1506_v46, 1  ;;  %v3257_v23 = vor.u32 %v3256_v24, %v3252_v2  ;;  %538 = vst [vmem:[#allocation2 + $0x74] sm:$0x1] %v537_v35  ;;  %v810_v46 = vrot.slane %v6287_v45, 4 }
  0xba   : > { %v6266_v52 = vpop.permute.xlu1 %2075  ;;  %v2336_v48 = vrot.slane %v2334_v12, 1  ;;  %v1871_v45 = vsel %vm1847_vm4, %v1869_v4, %v1870_v58  ;;  %v5159_v4 = vld [vmem:[%s5727_s7 + $0x48] sm:$0xff]   ;;  %v489_v12 = vld [vmem:[#allocation2 + $0x78] sm:$0x1] }
  0xbb   : > { %2774 = vrot.lane.b32.xlu0 %v2734_v60, %s5630_s8  ;;  %v1509_v10 = vsel %vm1413_vm7, %v1504_v27, %v1508_v3  ;;  %v2737_v16 = vsel %vm1847_vm4, %v2735_v22, %v2736_v53  ;;  %v2461_v60 = vshll.u32 %v5489_v54, 16  ;;  %v5488_v27 = vld [vmem:[#allocation2 + $0x60] sm:$0xff]   ;;  %v5496_v3 = vld [vmem:[#allocation2 + $0x68] ss:$0 sps:$4 sm:$0x11]   ;;  %v5501_v53 = vld [vmem:[%s7004_s4 + $0x18] sm:$0xff]  }
  0xbc   : > { %1618 = vrot.lane.b32.xlu1 %v1497_v28, %s5630_s8  ;;  %v3262_v28 = vsel %vm1413_vm7, %v3257_v23, %v3261_v40  ;;  %v2337_v13 = vsel %vm1413_vm7, %v2332_v37, %v2336_v48  ;;  %v1518_v40 = vshll.u32 %v5496_v3, 16  ;;  %v5498_v0 = vld [vmem:[#allocation2 + $0x2c] ss:$0 sps:$4 sm:$0x11]   ;;  %v5125_v23 = vunpack.c.l.bf16 %v5159_v4  ;;  %5173 = vmatpush3.bf16.msra.mxu0 %v5501_v53 }
  0xbd   : > { %v6261_v14 = vpop.permute.xlu0 %2943  ;;  %2523 = vst.msk [vmem:[#allocation3 + $0x20] sm:$0xff] %vm1220_vm11, %v2337_v13  ;;  %v5126_v37 = vunpack.c.h.bf16 %v5159_v4  ;;  %v490_v43 = vsel %vm5683_vm3, 0, %v489_v12  ;;  %5343 = vmatpush3.bf16.msra.mxu1 %v5501_v53  ;;  %v5503_v6 = vld [vmem:[#allocation2 + $0x68] ss:$0 sps:$4 sm:$0x11]  }
  0xbe   : > { %v1520_v58 = vrot.slane %v1518_v40, 1  ;;  %v365_v54 = vmul.f32 %v5125_v23, %v5807_v34  ;;  %491 = vst [vmem:[#allocation2 + $0x78] sm:$0x1] %v490_v43  ;;  %v5511_v23 = vld [vmem:[#allocation2 + $0x30] sm:$0xff]  }
  0xbf   : > { %2951 = vrot.lane.b32.xlu0 %v5465_v21, %s5629_s28  ;;  %v366_v61 = vmul.f32 %v5126_v37, %v5807_v34 }
  0xc0   : > { %1908 = vrot.lane.b32.xlu1 %v1868_v31, %s5629_s28  ;;  %v2463_v31 = vrot.slane %v2461_v60, 1  ;;  %v1040_v39 = vld [vmem:[#allocation2 + $0x74] sm:$0x1] }
  0xc1   : > { %v6274_v47 = vpop.permute.xlu0 %2965  ;;  %v1041_v9 = vsel %vm5683_vm3, %v810_v46, %v1040_v39  ;;  %v5506_v46 = vld [vmem:[%s7004_s4 + $0x60] sm:$0xff]  }
  0xc2   : > { %v2464_v2 = vor.u32 %v2463_v31, %v2459_v25  ;;  %1042 = vst [vmem:[#allocation2 + $0x74] sm:$0x1] %v1041_v9  ;;  %5174 = vmatprep.subr.bf16.mxu0 %v5506_v46  ;;  %5336 = vmatprep.subr.bf16.mxu1 %v5506_v46  ;;  %v1873_v9 = vrot.slane %v5503_v6, 1  ;;  %v5512_v6 = vld [vmem:[#allocation2 + $0x38] ss:$0 sps:$4 sm:$0x11]  }
  0xc3   : > { %3383 = vrot.lane.b32.xlu0 %v3262_v28, %s5631_s13 }
  0xc4   : > { %2085 = vrot.lane.b32.xlu1 %v5470_v15, %s5631_s13 }
  0xc5   : > { %v2763_v36 = vpop.permute.xlu0 %2762  ;;  %v1043_v12 = vld [vmem:[#allocation2 + $0x78] sm:$0xf] }
  0xc6   : > { %v6294_v30 = vpop.permute.xlu1 %2097  ;;  %2810 = vst.msk [vmem:[#allocation3 + $0x8] sm:$0xff] %vm1654_vm12, %v2763_v36  ;;  %v2468_v36 = vrot.slane %v2466_v57, 1  ;;  %v403_v57 = vadd.f32 %v5820_v49, %v365_v54 }
  0xc7   : > { %2987 = vst.msk [vmem:[#allocation3 + $0x8] sm:$0xff] %vm1944_vm13, %v6213_v8  ;;  %v1037_v8 = vsel %vm5853_vm9, %v800_v50, %v1036_v19  ;;  %2776 = vrot.lane.b32.xlu0 %v2737_v16, %s5630_s8  ;;  %v5497_v19 = vld [vmem:[#allocation2 + $0x24] sm:$0xff]  }
  0xc8   : > { %1038 = vst [vmem:[#allocation2 + $0x6c] sm:$0xf] %v1037_v8  ;;  %1620 = vrot.lane.b32.xlu1 %v1509_v10, %s5630_s8  ;;  %v2469_v11 = vsel %vm1413_vm7, %v2464_v2, %v2468_v36  ;;  %v2339_v63 = vshrl.u32 %v5497_v19, 16  ;;  %v2341_v51 = vshll.u32 %v5497_v19, 16  ;;  %v2346_v10 = vshll.u32 %v5498_v0, 16  ;;  %v5509_v19 = vld [vmem:[%s7004_s4 + $0x20] sm:$0xff]  }
  0xc9   : > { %v2765_v44 = vpop.permute.xlu0 %2764  ;;  %2534 = vst.msk [vmem:[#allocation3 + $0x128] sm:$0xff] %vm1220_vm11, %v2469_v11  ;;  %v5486_v13 = vld [vmem:[#allocation2 + $0x74] ss:$0 sps:$4 sm:$0x11]   ;;  %v435_v39 = vmax.f32 %v403_v57, 0.0  ;;  %5175 = vmatpush3.bf16.msra.mxu0 %v5509_v19  ;;  %5344 = vmatpush3.bf16.msra.mxu1 %v5509_v19 }
  0xca   : > { %v6307_v41 = vpop.permute.xlu1 %2077  ;;  %2811 = vst.msk [vmem:[#allocation3 + $0x20] sm:$0xff] %vm1654_vm12, %v2765_v44  ;;  %v2343_v28 = vrot.slane %v2341_v51, 1  ;;  %v2348_v60 = vrot.slane %v2346_v10, 1  ;;  %v5505_v11 = vld [vmem:[#allocation2 + $0xb0] ss:$0 sps:$4 sm:$0x11]  }
  0xcb   : > { %2988 = vst.msk [vmem:[#allocation3 + $0x20] sm:$0xff] %vm1944_vm13, %v6227_v20  ;;  %v1515_v20 = vrot.slane %v1513_v17, 1  ;;  %v492_v19 = vld [vmem:[#allocation2 + $0x84] sm:$0x1] }
  0xcc   : > { %1910 = vrot.lane.b32.xlu1 %v1871_v45, %s5629_s28  ;;  %v2344_v25 = vor.u32 %v2343_v28, %v2339_v63  ;;  %v1872_v45 = vrot.slane %v5502_v18, 1  ;;  %v2478_v28 = vshll.u32 %v5505_v11, 16  ;;  %v2351_v18 = vshrl.u32 %v5511_v23, 16 }
  0xcd   : > { %v2787_v55 = vpop.permute.xlu0 %2786  ;;  %v1516_v44 = vor.u32 %v1515_v20, %v1511_v5  ;;  %v3271_v5 = vshll.u32 %v5486_v13, 16 }
  0xce   : > { %v6321_v38 = vpop.permute.xlu1 %1898  ;;  %2822 = vst.msk [vmem:[#allocation3 + $0x128] sm:$0xff] %vm1654_vm12, %v2787_v55  ;;  %v6375_v55 = vld [vmem:[#allocation2 + $0xa8] sm:$0xff]   ;;  %v2349_v36 = vsel %vm1413_vm7, %v2344_v25, %v2348_v60  ;;  %v1874_v4 = vsel %vm1847_vm4, %v1872_v45, %v1873_v9  ;;  %v2353_v25 = vshll.u32 %v5511_v23, 16  ;;  %v5519_v9 = vld [vmem:[#allocation2 + $0x74] ss:$0 sps:$4 sm:$0x11]  }
  0xcf   : > { %v5478_v21 = vld [vmem:[#allocation2 + $0x6c] sm:$0xff]   ;;  %2999 = vst.msk [vmem:[#allocation3 + $0x128] sm:$0xff] %vm1944_vm13, %v6242_v56  ;;  %v1521_v48 = vsel %vm1413_vm7, %v1516_v44, %v1520_v58  ;;  %v2473_v20 = vshll.u32 %v6375_v55, 16  ;;  %v3273_v40 = vrot.slane %v3271_v5, 1  ;;  %v539_v44 = vld [vmem:[#allocation2 + $0x80] sm:$0x1] }
  0xd0   : > { %v6340_v7 = vld [vmem:[#allocation2 + $0x6c] sm:$0xff]   ;;  %2953 = vrot.lane.b32.xlu0 %v5478_v21, %s5629_s28  ;;  %2087 = vrot.lane.b32.xlu1 %v5488_v27, %s5631_s13  ;;  %v404_v21 = vadd.f32 %v5820_v49, %v366_v61  ;;  %2524 = vst.msk [vmem:[#allocation3 + $0x38] sm:$0xff] %vm1220_vm11, %v2349_v36  ;;  %v540_v46 = vsel %vm5718_vm6, 0, %v539_v44  ;;  %v2480_v61 = vrot.slane %v2478_v28, 1  ;;  %v2355_v45 = vrot.slane %v2353_v25, 1 }
  0xd1   : > { %v6336_v42 = vpop.permute.xlu0 %2766  ;;  %v6344_v59 = vld [vmem:[#allocation2 + $0x6c] sm:$0xfe]   ;;  %v3264_v15 = vshrl.u32 %v6340_v7, 16  ;;  %v3266_v22 = vshll.u32 %v6340_v7, 16  ;;  %541 = vst [vmem:[#allocation2 + $0x80] sm:$0x1] %v540_v46 }
  0xd2   : > { %v6342_v50 = vpop.permute.xlu1 %1920  ;;  %v2738_v24 = vrot.slane %v6344_v59, 1  ;;  %v5493_v7 = vld [vmem:[#allocation2 + $0x74] ss:$0 sps:$4 sm:$0x11]   ;;  %v436_v17 = vmax.f32 %v404_v21, 0.0  ;;  %2812 = vst.msk [vmem:[#allocation3 + $0x38] sm:$0xff] %vm1654_vm12, %v6336_v42 }
  0xd3   : > { %v3268_v35 = vrot.slane %v3266_v22, 1  ;;  %v2471_v22 = vshrl.u32 %v6375_v55, 16  ;;  %v2739_v3 = vrot.slane %v5493_v7, 1  ;;  %2989 = vst.msk [vmem:[#allocation3 + $0x38] sm:$0xff] %vm1944_vm13, %v6261_v14  ;;  %v2475_v42 = vrot.slane %v2473_v20, 1  ;;  %v5510_v51 = vld [vmem:[#allocation2 + $0x6c] sm:$0xff]  }
  0xd4   : > { %1622 = vrot.lane.b32.xlu1 %v1521_v48, %s5630_s8  ;;  %v5042_v29 = vpack.c.bf16 %v436_v17, %v436_v17  ;;  %v5513_v14 = vld [vmem:[#allocation2 + $0xc] sm:$0xff]   ;;  %v2356_v17 = vor.u32 %v2355_v45, %v2351_v18  ;;  %v1530_v11 = vshll.u32 %v5519_v9, 16  ;;  %v493_v23 = vsel %vm5683_vm3, 0, %v492_v19 }
  0xd5   : > { %v6354_v62 = vpop.permute.xlu0 %2788  ;;  %v3269_v31 = vor.u32 %v3268_v35, %v3264_v15  ;;  %v5041_v15 = vpack.c.bf16 %v435_v39, %v435_v39  ;;  %v2740_v54 = vsel %vm1847_vm4, %v2738_v24, %v2739_v3  ;;  %v2476_v55 = vor.u32 %v2475_v42, %v2471_v22  ;;  %1222 = vst.msk [vmem:[#allocation3 + $0x18] sm:$0xff] %vm1220_vm11, %v5513_v14  ;;  %v5517_v7 = vld [vmem:[%s7004_s4 + $0x28] sm:$0xff]   ;;  %v5520_v22 = vld [vmem:[#allocation2 + $0x90] sm:$0xff]  }
  0xd6   : > { %v6359_v8 = vpop.permute.xlu1 %1900  ;;  %v820_v58 = vshrl.u32 %v5042_v29, 16  ;;  %v823_v37 = vshll.u32 %v5042_v29, 16  ;;  %1233 = vst.msk [vmem:[#allocation3 + $0x120] sm:$0xff] %vm1220_vm11, %v5520_v22  ;;  %v5160_v20 = vld [vmem:[%s5727_s7 + $0x50] sm:$0xff]   ;;  %494 = vst [vmem:[#allocation2 + $0x84] sm:$0x1] %v493_v23 }
  0xd7   : > { %v812_v0 = vshrl.u32 %v5041_v15, 16  ;;  %v815_v63 = vshll.u32 %v5041_v15, 16  ;;  %v3274_v35 = vsel %vm1413_vm7, %v3269_v31, %v3273_v40  ;;  %v2481_v21 = vsel %vm1413_vm7, %v2476_v55, %v2480_v61  ;;  %v5514_v31 = vld [vmem:[%s7004_s4 + $0x68] sm:$0xff]   ;;  %v5521_v15 = vld [vmem:[%s7004_s4 + $0x70] sm:$0xff]  }
  0xd8   : > { %1912 = vrot.lane.b32.xlu1 %v1874_v4, %s5629_s28  ;;  %3385 = vrot.lane.b32.xlu0 %v3274_v35, %s5631_s13  ;;  %v822_v48 = vrot.slane %v820_v58, 7  ;;  %2535 = vst.msk [vmem:[#allocation3 + $0x140] sm:$0xff] %vm1220_vm11, %v2481_v21  ;;  %v5129_v44 = vunpack.c.l.bf16 %v5160_v20  ;;  %v542_v61 = vld [vmem:[#allocation2 + $0x8c] sm:$0x1] }
  0xd9   : > { %v6380_v56 = vpop.permute.xlu0 %2768  ;;  %v814_v43 = vrot.slane %v812_v0, 7  ;;  %2823 = vst.msk [vmem:[#allocation3 + $0x140] sm:$0xff] %vm1654_vm12, %v6354_v62  ;;  %5176 = vmatprep.subr.bf16.mxu0 %v5514_v31  ;;  %5337 = vmatprep.subr.bf16.mxu1 %v5514_v31  ;;  %v5130_v0 = vunpack.c.h.bf16 %v5160_v20  ;;  %v543_v45 = vsel %vm5718_vm6, 0, %v542_v61  ;;  %v5541_v61 = vld [vmem:[#allocation2 + $0x90] sm:$0xff]  }
  0xda   : > { %v6384_v16 = vpop.permute.xlu1 %1922  ;;  %v825_v24 = vor.u32 %v823_v37, %v822_v48  ;;  %v827_v13 = vrot.slane %v822_v48, 4  ;;  %3000 = vst.msk [vmem:[#allocation3 + $0x140] sm:$0xff] %vm1944_vm13, %v6274_v47  ;;  %5177 = vmatpush3.bf16.msra.mxu0 %v5517_v7  ;;  %5345 = vmatpush3.bf16.msra.mxu1 %v5517_v7  ;;  %v1047_v47 = vld [vmem:[#allocation2 + $0x80] sm:$0x1]  ;;  %v367_v35 = vmul.f32 %v5129_v44, %v5807_v34  ;;  %v5524_v37 = vld [vmem:[#allocation2 + $0x6c] sm:$0xfe]  }
  0xdb   : > { %v817_v60 = vor.u32 %v815_v63, %v814_v43  ;;  %v818_v57 = vrot.slane %v814_v43, 4  ;;  %5178 = vmatprep.subr.bf16.mxu0 %v5521_v15  ;;  %v5523_v63 = vld [vmem:[%s7004_s4 + $0x30] sm:$0xff]   ;;  %5338 = vmatprep.subr.bf16.mxu1 %v5521_v15  ;;  %v368_v58 = vmul.f32 %v5130_v0, %v5807_v34  ;;  %v1875_v34 = vrot.slane %v5524_v37, 1  ;;  %544 = vst [vmem:[#allocation2 + $0x8c] sm:$0x1] %v543_v45 }
  0xdc   : > { %2089 = vrot.lane.b32.xlu1 %v5510_v51, %s5631_s13  ;;  %2778 = vrot.lane.b32.xlu0 %v2740_v54, %s5630_s8  ;;  %v1048_v42 = vsel %vm5683_vm3, %v827_v13, %v1047_v47  ;;  %v1532_v51 = vrot.slane %v1530_v11, 1  ;;  %v405_v14 = vadd.f32 %v5820_v49, %v367_v35  ;;  %v5531_v11 = vld [vmem:[#allocation2 + $0x18] sm:$0xff]  }
  0xdd   : > { %v3372_v2 = vpop.permute.xlu0 %3371  ;;  %v1044_v39 = vsel %vm5853_vm9, %v817_v60, %v1043_v12  ;;  %v826_v5 = vsel %vm5861_vm10, %v818_v57, %v825_v24  ;;  %1049 = vst [vmem:[#allocation2 + $0x80] sm:$0x1] %v1048_v42  ;;  %v5526_v12 = vld [vmem:[%s7004_s4 + $0x78] sm:$0xff]   ;;  %v1050_v32 = vld [vmem:[#allocation2 + $0x84] sm:$0xf]  ;;  %1223 = vst.msk [vmem:[#allocation3 + $0x30] sm:$0xff] %vm1220_vm11, %v5531_v11 }
  0xde   : > { %v1609_v27 = vpop.permute.xlu1 %1608  ;;  %3419 = vst.msk [vmem:[#allocation3 + $0x8] sm:$0xff] %vm2121_vm14, %v3372_v2  ;;  %v2358_v2 = vshll.u32 %v5512_v6, 16  ;;  %1045 = vst [vmem:[#allocation2 + $0x78] sm:$0xf] %v1044_v39  ;;  %5179 = vmatpush3.bf16.msra.mxu0 %v5523_v63  ;;  %5346 = vmatpush3.bf16.msra.mxu1 %v5523_v63  ;;  %v437_v55 = vmax.f32 %v405_v14, 0.0  ;;  %v5529_v6 = vld [vmem:[%s7004_s4 + $0x38] sm:$0xff]  }
  0xdf   : > { %1656 = vst.msk [vmem:[#allocation3 + $0x18] sm:$0xff] %vm1654_vm12, %v1609_v27  ;;  %5180 = vmatprep.subr.bf16.mxu0 %v5526_v12  ;;  %5339 = vmatprep.subr.bf16.mxu1 %v5526_v12  ;;  %v3691_v63 = vld [vmem:[#allocation3] sm:$0xff] }
  0xe0   : > { %1946 = vst.msk [vmem:[#allocation3 + $0x18] sm:$0xff] %vm1944_vm13, %v6321_v38  ;;  %v5518_v38 = vld [vmem:[#allocation2 + $0x6c] sm:$0xff]   ;;  %v5043_v57 = vpack.c.bf16 %v437_v55, %v437_v55 }
  0xe1   : > { %v3374_v53 = vpop.permute.xlu0 %3373  ;;  %2123 = vst.msk [vmem:[#allocation3 + $0x18] sm:$0xff] %vm2121_vm14, %v6266_v52  ;;  %v2360_v52 = vrot.slane %v2358_v2, 1  ;;  %v1523_v27 = vshrl.u32 %v5518_v38, 16  ;;  %v1525_v3 = vshll.u32 %v5518_v38, 16 }
  0xe2   : > { %v1631_v10 = vpop.permute.xlu1 %1630  ;;  %3420 = vst.msk [vmem:[#allocation3 + $0x20] sm:$0xff] %vm2121_vm14, %v3374_v53  ;;  %5181 = vmatpush3.bf16.msra.mxu0 %v5529_v6  ;;  %v829_v2 = vshrl.u32 %v5043_v57, 16  ;;  %v832_v38 = vshll.u32 %v5043_v57, 16  ;;  %5347 = vmatpush3.bf16.msra.mxu1 %v5529_v6  ;;  %v1054_v35 = vld [vmem:[#allocation2 + $0x8c] sm:$0x1] }
  0xe3   : > { %1046 = vst.msk [vmem:[#allocation2 + $0x7c] sm:$0xf] %vm449_vm0, %v826_v5  ;;  %v2361_v29 = vsel %vm1413_vm7, %v2356_v17, %v2360_v52  ;;  %v1527_v4 = vrot.slane %v1525_v3, 1 }
  0xe4   : > { %1667 = vst.msk [vmem:[#allocation3 + $0x120] sm:$0xff] %vm1654_vm12, %v1631_v10  ;;  %v5508_v24 = vld [vmem:[#allocation2 + $0x80] ss:$0 sps:$4 sm:$0x11]   ;;  %v831_v3 = vrot.slane %v829_v2, 7 }
  0xe5   : > { %v6414_v59 = vpop.permute.xlu0 %1610  ;;  %2525 = vst.msk [vmem:[#allocation3 + $0x50] sm:$0xff] %vm1220_vm11, %v2361_v29  ;;  %v1528_v53 = vor.u32 %v1527_v4, %v1523_v27  ;;  %v5516_v7 = vld [vmem:[#allocation2 + $0x80] ss:$0 sps:$4 sm:$0x11]   ;;  %v3283_v39 = vshll.u32 %v5508_v24, 16 }
  0xe6   : > { %v3396_v36 = vpop.permute.xlu1 %3395  ;;  %1957 = vst.msk [vmem:[#allocation3 + $0x120] sm:$0xff] %vm1944_vm13, %v6342_v50  ;;  %v5525_v50 = vld [vmem:[#allocation2 + $0x74] ss:$0 sps:$4 sm:$0x11]   ;;  %v2742_v22 = vrot.slane %v5516_v7, 1  ;;  %v834_v19 = vor.u32 %v832_v38, %v831_v3  ;;  %v835_v47 = vrot.slane %v831_v3, 4 }
  0xe7   : > { %3431 = vst.msk [vmem:[#allocation3 + $0x128] sm:$0xff] %vm2121_vm14, %v3396_v36  ;;  %2134 = vst.msk [vmem:[#allocation3 + $0x120] sm:$0xff] %vm2121_vm14, %v6294_v30  ;;  %v406_v30 = vadd.f32 %v5820_v49, %v368_v58  ;;  %v1876_v48 = vrot.slane %v5525_v50, 1  ;;  %v3285_v27 = vrot.slane %v3283_v39, 1  ;;  %v5532_v4 = vld [vmem:[#allocation2 + $0x9c] sm:$0xff]   ;;  %v3302_v38 = vshll.u32 %v5541_v61, 16 }
  0xe8   : > { %2813 = vst.msk [vmem:[#allocation3 + $0x50] sm:$0xff] %vm1654_vm12, %v6380_v56  ;;  %v1533_v56 = vsel %vm1413_vm7, %v1528_v53, %v1532_v51  ;;  %v3692_v0 = vld [vmem:[#allocation3 + $0x8] sm:$0xff]  ;;  %v1051_v53 = vsel %vm5853_vm9, %v834_v19, %v1050_v32  ;;  %1657 = vst.msk [vmem:[#allocation3 + $0x30] sm:$0xff] %vm1654_vm12, %v6414_v59  ;;  %v6534_v32 = vld [vmem:[#allocation2 + $0x90] sm:$0xfe]  }
  0xe9   : > { %v3376_v62 = vpop.permute.xlu0 %3375  ;;  %1624 = vrot.lane.b32.xlu1 %v1533_v56, %s5630_s8  ;;  %v438_v46 = vmax.f32 %v406_v30, 0.0  ;;  %v1877_v21 = vsel %vm1847_vm4, %v1875_v34, %v1876_v48  ;;  %1234 = vst.msk [vmem:[#allocation3 + $0x138] sm:$0xff] %vm1220_vm11, %v5532_v4  ;;  %3963 = vmatprep.mubr.bf16.mxu0 %v3692_v0  ;;  %1052 = vst [vmem:[#allocation2 + $0x84] sm:$0xf] %v1051_v53  ;;  %v3695_v37 = vld [vmem:[#allocation3 + $0x20] sm:$0xff]  ;;  %v3304_v19 = vrot.slane %v3302_v38, 1 }
  0xea   : > { %v6444_v40 = vpop.permute.xlu1 %1632  ;;  %3421 = vst.msk [vmem:[#allocation3 + $0x38] sm:$0xff] %vm2121_vm14, %v3376_v62  ;;  %v5500_v10 = vld [vmem:[#allocation2 + $0x78] sm:$0xff]   ;;  %3964 = vmatmul.mubr.bf16.vlgmr.msra.gmra.mrb[0].mxu0 %v3691_v63  ;;  %v5536_v59 = vld [vmem:[#allocation2 + $0x80] ss:$0 sps:$4 sm:$0x11]  }
  0xeb   : > { %v5507_v54 = vld [vmem:[#allocation2 + $0x78] sm:$0xff]   ;;  %2955 = vrot.lane.b32.xlu0 %v5500_v10, %s5629_s28  ;;  %v5044_v13 = vpack.c.bf16 %v438_v46, %v438_v46  ;;  %1947 = vst.msk [vmem:[#allocation3 + $0x30] sm:$0xff] %vm1944_vm13, %v6359_v8  ;;  %3971 = vmatprep.mubr.bf16.mxu0 %v3695_v37  ;;  %v1542_v12 = vshll.u32 %v5536_v59, 16 }
  0xec   : > { %v5515_v43 = vld [vmem:[#allocation2 + $0x78] sm:$0xfe]   ;;  %v3276_v25 = vshrl.u32 %v5507_v54, 16  ;;  %v3278_v49 = vshll.u32 %v5507_v54, 16  ;;  %1668 = vst.msk [vmem:[#allocation3 + $0x138] sm:$0xff] %vm1654_vm12, %v6444_v40  ;;  %v3694_v54 = vld [vmem:[#allocation3 + $0x18] sm:$0xff] }
  0xed   : > { %v2741_v60 = vrot.slane %v5515_v43, 1  ;;  %1914 = vrot.lane.b32.xlu1 %v1877_v21, %s5629_s28  ;;  %v6483_v36 = vpop.permute.xlu0 %1612  ;;  %v837_v5 = vshrl.u32 %v5044_v13, 16  ;;  %v840_v52 = vshll.u32 %v5044_v13, 16  ;;  %v5530_v62 = vld [vmem:[#allocation2 + $0x78] sm:$0xff]   ;;  %2124 = vst.msk [vmem:[#allocation3 + $0x30] sm:$0xff] %vm2121_vm14, %v6307_v41  ;;  %v1544_v14 = vrot.slane %v1542_v12, 1 }
  0xee   : > { %v3398_v28 = vpop.permute.xlu1 %3397  ;;  %v3280_v31 = vrot.slane %v3278_v49, 1  ;;  %v5535_v26 = vld [vmem:[#allocation2 + $0x78] sm:$0xff]   ;;  %1958 = vst.msk [vmem:[#allocation3 + $0x138] sm:$0xff] %vm1944_vm13, %v6384_v16  ;;  %v3728_v1 = vld [vmem:[#allocation3 + $0x128] sm:$0xff] }
  0xef   : > { %3432 = vst.msk [vmem:[#allocation3 + $0x140] sm:$0xff] %vm2121_vm14, %v3398_v28  ;;  %v839_v15 = vrot.slane %v837_v5, 7  ;;  %v2743_v51 = vsel %vm1847_vm4, %v2741_v60, %v2742_v22  ;;  %v1535_v50 = vshrl.u32 %v5535_v26, 16  ;;  %v1537_v8 = vshll.u32 %v5535_v26, 16  ;;  %4059 = vmatprep.mubr.bf16.mxu1 %v3728_v1  ;;  %v3727_v40 = vld [vmem:[#allocation3 + $0x120] sm:$0xff]  ;;  %v5540_v28 = vld [vmem:[#allocation2 + $0x24] sm:$0xff]  }
  0xf0   : > { %v3281_v9 = vor.u32 %v3280_v31, %v3276_v25  ;;  %4060 = vmatmul.mubr.bf16.vlgmr.msra.gmra.mrb[0].mxu1 %v3727_v40  ;;  %v5538_v41 = vld [vmem:[#allocation2 + $0x78] sm:$0xfe]   ;;  %1224 = vst.msk [vmem:[#allocation3 + $0x48] sm:$0xff] %vm1220_vm11, %v5540_v28  ;;  %v5539_v16 = vld [vmem:[#allocation2 + $0x80] ss:$0 sps:$4 sm:$0x11]  }
  0xf1   : > { %v842_v29 = vor.u32 %v840_v52, %v839_v15  ;;  %2091 = vrot.lane.b32.xlu1 %v5530_v62, %s5631_s13  ;;  %v844_v44 = vrot.slane %v839_v15, 4  ;;  %v2946_v42 = vpop.permute.xlu0 %2945  ;;  %v1539_v56 = vrot.slane %v1537_v8, 1  ;;  %1658 = vst.msk [vmem:[#allocation3 + $0x48] sm:$0xff] %vm1654_vm12, %v6483_v36  ;;  %v1878_v34 = vrot.slane %v5538_v41, 1  ;;  %v5551_v40 = vld [vmem:[#allocation2 + $0xb4] sm:$0xff]  }
  0xf2   : > { %v6474_v18 = vpop.permute.xlu1 %2099  ;;  %v3286_v20 = vsel %vm1413_vm7, %v3281_v9, %v3285_v27  ;;  %2990 = vst.msk [vmem:[#allocation3 + $0x50] sm:$0xff] %vm1944_vm13, %v2946_v42  ;;  %v1879_v55 = vrot.slane %v5539_v16, 1  ;;  %3972 = vmatmul.mubr.bf16.gmra.mrb[4].mxu0 %v3694_v54  ;;  %v5542_v31 = vld [vmem:[#allocation2 + $0x98] ss:$0 sps:$4 sm:$0x11]   ;;  %v3698_v9 = vld [vmem:[#allocation3 + $0x38] sm:$0xff] }
  0xf3   : > { %3387 = vrot.lane.b32.xlu0 %v3286_v20, %s5631_s13  ;;  %v843_v23 = vsel %vm5861_vm10, %v835_v47, %v842_v29  ;;  %v1055_v33 = vsel %vm5683_vm3, %v844_v44, %v1054_v35  ;;  %2135 = vst.msk [vmem:[#allocation3 + $0x138] sm:$0xff] %vm2121_vm14, %v6474_v18  ;;  %v1540_v10 = vor.u32 %v1539_v56, %v1535_v50  ;;  %v3307_v5 = vshll.u32 %v5542_v31, 16  ;;  %v5537_v42 = vld [vmem:[#allocation2 + $0x90] sm:$0xff]   ;;  %v5545_v53 = vld [vmem:[#allocation2 + $0x98] ss:$0 sps:$4 sm:$0x11]  }
  0xf4   : > { %1053 = vst.msk [vmem:[#allocation2 + $0x88] sm:$0xf] %vm449_vm0, %v843_v23  ;;  %1056 = vst [vmem:[#allocation2 + $0x8c] sm:$0x1] %v1055_v33  ;;  %v1880_v60 = vsel %vm1847_vm4, %v1878_v34, %v1879_v55  ;;  %3979 = vmatprep.mubr.bf16.mxu0 %v3698_v9  ;;  %v3300_v20 = vshrl.u32 %v5541_v61, 16  ;;  %v3697_v23 = vld [vmem:[#allocation3 + $0x30] sm:$0xff] }
  0xf5   : > { %v1545_v48 = vsel %vm1413_vm7, %v1540_v10, %v1544_v14  ;;  %v3309_v29 = vrot.slane %v3307_v5, 1  ;;  %v5552_v14 = vld [vmem:[#allocation2 + $0xbc] ss:$0 sps:$4 sm:$0x11]   ;;  %v2483_v16 = vshrl.u32 %v5551_v40, 16  ;;  %v2485_v10 = vshll.u32 %v5551_v40, 16 }
  0xf6   : > { %v6485_v17 = vpop.permute.xlu1 %1902  ;;  %1626 = vrot.lane.b32.xlu1 %v1545_v48, %s5630_s8  ;;  %v3731_v27 = vld [vmem:[#allocation3 + $0x140] sm:$0xff]  ;;  %v3305_v59 = vor.u32 %v3304_v19, %v3300_v20  ;;  %v5553_v34 = vld [vmem:[#allocation2 + $0xa8] sm:$0xff]   ;;  %v2748_v55 = vrot.slane %v5545_v53, 1  ;;  %v2490_v48 = vshll.u32 %v5552_v14, 16  ;;  %v5566_v40 = vld [vmem:[%s7004_s4 + $0x80] sm:$0xff]  }
  0xf7   : > { %2780 = vrot.lane.b32.xlu0 %v2743_v51, %s5630_s8  ;;  %1948 = vst.msk [vmem:[#allocation3 + $0x48] sm:$0xff] %vm1944_vm13, %v6485_v17  ;;  %4067 = vmatprep.mubr.bf16.mxu1 %v3731_v27  ;;  %v2747_v51 = vrot.slane %v6534_v32, 1  ;;  %v5554_v54 = vld [vmem:[#allocation2 + $0x9c] sm:$0xff]   ;;  %v5559_v27 = vld [vmem:[#allocation2 + $0x30] sm:$0xff]  }
  0xf8   : > { %1235 = vst.msk [vmem:[#allocation3 + $0x150] sm:$0xff] %vm1220_vm11, %v5553_v34  ;;  %v5548_v5 = vld [vmem:[#allocation2 + $0x9c] sm:$0xff]   ;;  %1225 = vst.msk [vmem:[#allocation3 + $0x60] sm:$0xff] %vm1220_vm11, %v5559_v27  ;;  %v5562_v19 = vld [vmem:[#allocation2 + $0xb4] sm:$0xff]   ;;  %5296 = vmatprep.subr.bf16.mxu1 %v5566_v40 }
  0xf9   : > { %v3378_v46 = vpop.permute.xlu0 %3377  ;;  %v2749_v38 = vsel %vm1847_vm4, %v2747_v51, %v2748_v55  ;;  %1236 = vst.msk [vmem:[#allocation3 + $0x168] sm:$0xff] %vm1220_vm11, %v5562_v19  ;;  %5297 = vmatpush3.bf16.msra.mxu1 %v5566_v40  ;;  %v5574_v27 = vld [vmem:[#allocation2 + $0x2c] ss:$0 sps:$4 sm:$0x11]  }
  0xfa   : > { %v2080_v58 = vpop.permute.xlu1 %2079  ;;  %3422 = vst.msk [vmem:[#allocation3 + $0x50] sm:$0xff] %vm2121_vm14, %v3378_v46  ;;  %1916 = vrot.lane.b32.xlu1 %v1880_v60, %s5629_s28  ;;  %v3730_v62 = vld [vmem:[#allocation3 + $0x138] sm:$0xff]  ;;  %3980 = vmatmul.mubr.bf16.gmra.mrb[8].mxu0 %v3697_v23  ;;  %v3314_v60 = vshll.u32 %v5554_v54, 16 }
  0xfb   : > { %v5522_v43 = vld [vmem:[#allocation2 + $0x84] sm:$0xff]   ;;  %2125 = vst.msk [vmem:[#allocation3 + $0x48] sm:$0xff] %vm2121_vm14, %v2080_v58  ;;  %v5528_v25 = vld [vmem:[#allocation2 + $0x8c] ss:$0 sps:$4 sm:$0x11]   ;;  %4068 = vmatmul.mubr.bf16.gmra.mrb[4].mxu1 %v3730_v62 }
  0xfc   : > { %2957 = vrot.lane.b32.xlu0 %v5522_v43, %s5629_s28  ;;  %v5527_v18 = vld [vmem:[#allocation2 + $0x84] sm:$0xff]   ;;  %v3295_v24 = vshll.u32 %v5528_v25, 16  ;;  %v5534_v13 = vld [vmem:[#allocation2 + $0x8c] ss:$0 sps:$4 sm:$0x11]   ;;  %v3310_v43 = vsel %vm1413_vm7, %v3305_v59, %v3309_v29 }
  0xfd   : > { %v5533_v49 = vld [vmem:[#allocation2 + $0x84] sm:$0xfe]   ;;  %v3288_v57 = vshrl.u32 %v5527_v18, 16  ;;  %v3290_v6 = vshll.u32 %v5527_v18, 16  ;;  %v6527_v21 = vpop.permute.xlu0 %2790  ;;  %v2745_v2 = vrot.slane %v5534_v13, 1  ;;  %v2487_v18 = vrot.slane %v2485_v10, 1 }
  0xfe   : > { %v6517_v30 = vpop.permute.xlu1 %1634  ;;  %v3297_v36 = vrot.slane %v3295_v24, 1  ;;  %v2744_v39 = vrot.slane %v5533_v49, 1  ;;  %v5543_v17 = vld [vmem:[#allocation2 + $0x84] sm:$0xff]   ;;  %v5547_v4 = vld [vmem:[#allocation2 + $0x8c] ss:$0 sps:$4 sm:$0x11]  }
  0xff   : > { %v3292_v7 = vrot.slane %v3290_v6, 1  ;;  %v5546_v3 = vld [vmem:[#allocation2 + $0x84] sm:$0xff]   ;;  %2093 = vrot.lane.b32.xlu1 %v5543_v17, %s5631_s13  ;;  %v1554_v58 = vshll.u32 %v5547_v4, 16  ;;  %v5550_v50 = vld [vmem:[#allocation2 + $0x8c] ss:$0 sps:$4 sm:$0x11]   ;;  %v2488_v31 = vor.u32 %v2487_v18, %v2483_v16 }
 0x100   : > { %v2746_v47 = vsel %vm1847_vm4, %v2744_v39, %v2745_v2  ;;  %v1547_v44 = vshrl.u32 %v5546_v3, 16  ;;  %v1549_v0 = vshll.u32 %v5546_v3, 16  ;;  %v5549_v26 = vld [vmem:[#allocation2 + $0x84] sm:$0xfe]   ;;  %v1882_v56 = vrot.slane %v5550_v50, 1  ;;  %1669 = vst.msk [vmem:[#allocation3 + $0x150] sm:$0xff] %vm1654_vm12, %v6517_v30 }
 0x101   : > { %v3293_v22 = vor.u32 %v3292_v7, %v3288_v57  ;;  %v6532_v52 = vpop.permute.xlu0 %2967  ;;  %v1556_v1 = vrot.slane %v1554_v58, 1  ;;  %v1881_v12 = vrot.slane %v5549_v26, 1  ;;  %v5555_v25 = vld [vmem:[#allocation2 + $0xa4] ss:$0 sps:$4 sm:$0x11]   ;;  %v3312_v49 = vshrl.u32 %v5554_v54, 16 }
 0x102   : > { %v6529_v45 = vpop.permute.xlu1 %1924  ;;  %v1551_v35 = vrot.slane %v1549_v0, 1  ;;  %v5556_v57 = vld [vmem:[#allocation2 + $0x90] sm:$0xff]   ;;  %v2492_v6 = vrot.slane %v2490_v48, 1  ;;  %v3701_v24 = vld [vmem:[#allocation3 + $0x50] sm:$0xff]  ;;  %v3316_v7 = vrot.slane %v3314_v60, 1  ;;  %v3700_v39 = vld [vmem:[#allocation3 + $0x48] sm:$0xff] }
 0x103   : > { %v3298_v15 = vsel %vm1413_vm7, %v3293_v22, %v3297_v36  ;;  %v1883_v46 = vsel %vm1847_vm4, %v1881_v12, %v1882_v56  ;;  %v3319_v36 = vshll.u32 %v5555_v25, 16  ;;  %1959 = vst.msk [vmem:[#allocation3 + $0x150] sm:$0xff] %vm1944_vm13, %v6529_v45  ;;  %v5557_v2 = vld [vmem:[#allocation2 + $0x3c] sm:$0xff]   ;;  %3987 = vmatprep.mubr.bf16.mxu0 %v3701_v24  ;;  %v5558_v22 = vld [vmem:[#allocation2 + $0x44] ss:$0 sps:$4 sm:$0x11]  }
 0x104   : > { %3389 = vrot.lane.b32.xlu0 %v3298_v15, %s5631_s13  ;;  %v1552_v37 = vor.u32 %v1551_v35, %v1547_v44  ;;  %v2493_v17 = vsel %vm1413_vm7, %v2488_v31, %v2492_v6  ;;  %3988 = vmatmul.mubr.bf16.gmra.mrb[12].mxu0 %v3700_v39  ;;  %v2363_v32 = vshrl.u32 %v5557_v2, 16  ;;  %v2365_v45 = vshll.u32 %v5557_v2, 16  ;;  %v5560_v3 = vld [vmem:[#allocation2 + $0xc0] sm:$0xff]   ;;  %v5561_v29 = vld [vmem:[#allocation2 + $0xc8] ss:$0 sps:$4 sm:$0x11]  }
 0x105   : > { %v6542_v63 = vpop.permute.xlu0 %2770  ;;  %v3321_v9 = vrot.slane %v3319_v36, 1  ;;  %2536 = vst.msk [vmem:[#allocation3 + $0x158] sm:$0xff] %vm1220_vm11, %v2493_v17  ;;  %v3317_v62 = vor.u32 %v3316_v7, %v3312_v49  ;;  %v2370_v20 = vshll.u32 %v5558_v22, 16  ;;  %v2495_v4 = vshrl.u32 %v5560_v3, 16  ;;  %v5565_v12 = vld [vmem:[#allocation2 + $0x3c] sm:$0xff]   ;;  %v5567_v16 = vld [vmem:[#allocation2 + $0x54] sm:$0xff]  }
 0x106   : > { %v6538_v11 = vpop.permute.xlu1 %3399  ;;  %v1557_v28 = vsel %vm1413_vm7, %v1552_v37, %v1556_v1  ;;  %2824 = vst.msk [vmem:[#allocation3 + $0x158] sm:$0xff] %vm1654_vm12, %v6527_v21  ;;  %v2497_v44 = vshll.u32 %v5560_v3, 16  ;;  %v5563_v21 = vld [vmem:[#allocation2 + $0x48] sm:$0xff]   ;;  %v2502_v23 = vshll.u32 %v5561_v29, 16  ;;  %v2387_v55 = vshrl.u32 %v5567_v16, 16  ;;  %v5575_v25 = vld [vmem:[#allocation2 + $0x60] sm:$0xff]  }
 0x107   : > { %1628 = vrot.lane.b32.xlu1 %v1557_v28, %s5630_s8  ;;  %3001 = vst.msk [vmem:[#allocation3 + $0x158] sm:$0xff] %vm1944_vm13, %v6532_v52  ;;  %v3322_v35 = vsel %vm1413_vm7, %v3317_v62, %v3321_v9  ;;  %v2375_v37 = vshrl.u32 %v5563_v21, 16  ;;  %v2377_v50 = vshll.u32 %v5563_v21, 16  ;;  %v5568_v54 = vld [vmem:[#allocation2 + $0x5c] ss:$0 sps:$4 sm:$0x11]  }
 0x108   : > { %2782 = vrot.lane.b32.xlu0 %v2746_v47, %s5630_s8  ;;  %v2367_v47 = vrot.slane %v2365_v45, 1  ;;  %3433 = vst.msk [vmem:[#allocation3 + $0x158] sm:$0xff] %vm2121_vm14, %v6538_v11  ;;  %v2499_v52 = vrot.slane %v2497_v44, 1  ;;  %v5564_v11 = vld [vmem:[#allocation2 + $0x50] ss:$0 sps:$4 sm:$0x11]  }
 0x109   : > { %v1615_v8 = vpop.permute.xlu0 %1614  ;;  %v2504_v26 = vrot.slane %v2502_v23, 1  ;;  %v2379_v14 = vrot.slane %v2377_v50, 1  ;;  %1226 = vst.msk [vmem:[#allocation3 + $0x78] sm:$0xff] %vm1220_vm11, %v5565_v12  ;;  %v5570_v48 = vld [vmem:[#allocation2 + $0x48] sm:$0xff]   ;;  %v2394_v18 = vshll.u32 %v5568_v54, 16  ;;  %v2401_v39 = vshll.u32 %v5575_v25, 16 }
 0x10a   : > { %v2102_v33 = vpop.permute.xlu1 %2101  ;;  %1659 = vst.msk [vmem:[#allocation3 + $0x60] sm:$0xff] %vm1654_vm12, %v1615_v8  ;;  %v2368_v51 = vor.u32 %v2367_v47, %v2363_v32  ;;  %v2382_v8 = vshll.u32 %v5564_v11, 16  ;;  %v5571_v31 = vld [vmem:[#allocation2 + $0x18] sm:$0xfe]   ;;  %v5573_v22 = vld [vmem:[#allocation2 + $0x24] sm:$0xfe]  }
 0x10b   : > { %1918 = vrot.lane.b32.xlu1 %v1883_v46, %s5629_s28  ;;  %2136 = vst.msk [vmem:[#allocation3 + $0x150] sm:$0xff] %vm2121_vm14, %v2102_v33  ;;  %v2500_v33 = vor.u32 %v2499_v52, %v2495_v4  ;;  %v2389_v46 = vshll.u32 %v5567_v16, 16  ;;  %v5572_v36 = vld [vmem:[#allocation2 + $0x20] ss:$0 sps:$4 sm:$0x11]   ;;  %v2403_v45 = vrot.slane %v2401_v39, 1 }
 0x10c   : > { %2959 = vrot.lane.b32.xlu0 %v5537_v42, %s5629_s28  ;;  %v2372_v42 = vrot.slane %v2370_v20, 1  ;;  %1227 = vst.msk [vmem:[#allocation3 + $0x90] sm:$0xff] %vm1220_vm11, %v5570_v48  ;;  %v3612_v9 = vrot.slane %v5572_v36, 1  ;;  %v3614_v62 = vrot.slane %v5573_v22, 1  ;;  %v3615_v47 = vrot.slane %v5574_v27, 1  ;;  %v6617_v4 = vld [vmem:[#allocation2 + $0x6c] sm:$0xff]  }
 0x10d   : > { %v6551_v61 = vpop.permute.xlu0 %2947  ;;  %v2505_v28 = vsel %vm1413_vm7, %v2500_v33, %v2504_v26  ;;  %v2391_v60 = vrot.slane %v2389_v46, 1  ;;  %v5576_v29 = vld [vmem:[#allocation2 + $0x68] ss:$0 sps:$4 sm:$0x11]   ;;  %v5577_v44 = vld [vmem:[#allocation2 + $0x30] sm:$0xfe]  }
 0x10e   : > { %v1905_v41 = vpop.permute.xlu1 %1904  ;;  %v2373_v58 = vsel %vm1413_vm7, %v2368_v51, %v2372_v42  ;;  %2537 = vst.msk [vmem:[#allocation3 + $0x170] sm:$0xff] %vm1220_vm11, %v2505_v28  ;;  %v3616_v42 = vsel %vm1847_vm4, %v3614_v62, %v3615_v47  ;;  %v2406_v51 = vshll.u32 %v5576_v29, 16  ;;  %v5578_v52 = vld [vmem:[#allocation2 + $0x38] ss:$0 sps:$4 sm:$0x11]   ;;  %v3617_v23 = vrot.slane %v5577_v44, 1 }
 0x10f   : > { %2095 = vrot.lane.b32.xlu1 %v5556_v57, %s5631_s13  ;;  %1949 = vst.msk [vmem:[#allocation3 + $0x60] sm:$0xff] %vm1944_vm13, %v1905_v41  ;;  %v2384_v41 = vrot.slane %v2382_v8, 1  ;;  %v3734_v10 = vld [vmem:[#allocation3 + $0x158] sm:$0xff]  ;;  %v2392_v7 = vor.u32 %v2391_v60, %v2387_v55  ;;  %v3618_v11 = vrot.slane %v5578_v52, 1  ;;  %v2413_v26 = vshll.u32 %v6617_v4, 16  ;;  %v5588_v8 = vld [vmem:[#allocation2 + $0x60] sm:$0xff]  }
 0x110   : > { %3391 = vrot.lane.b32.xlu0 %v3310_v43, %s5631_s13  ;;  %2526 = vst.msk [vmem:[#allocation3 + $0x68] sm:$0xff] %vm1220_vm11, %v2373_v58  ;;  %4075 = vmatprep.mubr.bf16.mxu1 %v3734_v10  ;;  %v2380_v43 = vor.u32 %v2379_v14, %v2375_v37  ;;  %v5581_v57 = vld [vmem:[#allocation2 + $0x54] sm:$0xff]   ;;  %3676 = vst.msk [vmem:[#allocation3 + $0x28] sm:$0xff] %vm1220_vm11, %v3616_v42  ;;  %v5579_v58 = vld [vmem:[#allocation2 + $0x3c] sm:$0xfe]   ;;  %v2411_v48 = vshrl.u32 %v6617_v4, 16 }
 0x111   : > { %v6562_v30 = vpop.permute.xlu0 %3379  ;;  %2814 = vst.msk [vmem:[#allocation3 + $0x68] sm:$0xff] %vm1654_vm12, %v6542_v63  ;;  %v5569_v63 = vld [vmem:[%s7004_s4 + $0x88] sm:$0xff]   ;;  %v5580_v33 = vld [vmem:[#allocation2 + $0x44] ss:$0 sps:$4 sm:$0x11]   ;;  %v3620_v50 = vrot.slane %v5579_v58, 1 }
 0x112   : > { %v2082_v13 = vpop.permute.xlu1 %2081  ;;  %v3733_v1 = vld [vmem:[#allocation3 + $0x150] sm:$0xff]  ;;  %2991 = vst.msk [vmem:[#allocation3 + $0x68] sm:$0xff] %vm1944_vm13, %v6551_v61  ;;  %5298 = vmatprep.subr.bf16.mxu1 %v5569_v63  ;;  %v2385_v49 = vsel %vm1413_vm7, %v2380_v43, %v2384_v41  ;;  %v3621_v40 = vrot.slane %v5580_v33, 1  ;;  %v5583_v41 = vld [vmem:[#allocation2 + $0x50] ss:$0 sps:$4 sm:$0x11]  }
 0x113   : > { %2126 = vst.msk [vmem:[#allocation3 + $0x60] sm:$0xff] %vm2121_vm14, %v2082_v13  ;;  %3423 = vst.msk [vmem:[#allocation3 + $0x68] sm:$0xff] %vm2121_vm14, %v6562_v30  ;;  %4076 = vmatmul.mubr.bf16.gmra.mrb[8].mxu1 %v3733_v1  ;;  %v2396_v13 = vrot.slane %v2394_v18, 1  ;;  %v2399_v30 = vshrl.u32 %v5575_v25, 16  ;;  %v3619_v1 = vsel %vm1847_vm4, %v3617_v23, %v3618_v11  ;;  %v5582_v28 = vld [vmem:[#allocation2 + $0x48] sm:$0xfe]  }
 0x114   : > { %2784 = vrot.lane.b32.xlu0 %v2749_v38, %s5630_s8  ;;  %2527 = vst.msk [vmem:[#allocation3 + $0x80] sm:$0xff] %vm1220_vm11, %v2385_v49  ;;  %5299 = vmatpush3.bf16.msra.mxu1 %v5569_v63  ;;  %1228 = vst.msk [vmem:[#allocation3 + $0xa8] sm:$0xff] %vm1220_vm11, %v5581_v57  ;;  %v3611_v38 = vrot.slane %v5571_v31, 1  ;;  %v3622_v16 = vsel %vm1847_vm4, %v3620_v50, %v3621_v40  ;;  %v3623_v63 = vrot.slane %v5582_v28, 1  ;;  %v6634_v10 = vld [vmem:[#allocation2 + $0x78] sm:$0xff]   ;;  %v3624_v55 = vrot.slane %v5583_v41, 1 }
 0x115   : > { %v2793_v0 = vpop.permute.xlu0 %2792  ;;  %v2397_v17 = vsel %vm1413_vm7, %v2392_v7, %v2396_v13  ;;  %v2404_v21 = vor.u32 %v2403_v45, %v2399_v30  ;;  %3677 = vst.msk [vmem:[#allocation3 + $0x40] sm:$0xff] %vm1220_vm11, %v3619_v1  ;;  %1229 = vst.msk [vmem:[#allocation3 + $0xc0] sm:$0xff] %vm1220_vm11, %v5588_v8  ;;  %v5584_v46 = vld [vmem:[#allocation2 + $0x54] sm:$0xfe]   ;;  %v2415_v18 = vrot.slane %v2413_v26, 1  ;;  %v2423_v57 = vshrl.u32 %v6634_v10, 16 }
 0x116   : > { %v1637_v15 = vpop.permute.xlu1 %1636  ;;  %2825 = vst.msk [vmem:[#allocation3 + $0x170] sm:$0xff] %vm1654_vm12, %v2793_v0  ;;  %v3625_v49 = vsel %vm1847_vm4, %v3623_v63, %v3624_v55  ;;  %v3626_v60 = vrot.slane %v5584_v46, 1  ;;  %v2425_v7 = vshll.u32 %v6634_v10, 16  ;;  %v5595_v33 = vld [vmem:[#allocation2 + $0x78] sm:$0xfe]   ;;  %v6671_v10 = vld [vmem:[#allocation2 + $0x90] sm:$0xff]  }
 0x117   : > { %1670 = vst.msk [vmem:[#allocation3 + $0x168] sm:$0xff] %vm1654_vm12, %v1637_v15  ;;  %v3613_v15 = vsel %vm1847_vm4, %v3611_v38, %v3612_v9  ;;  %v3696_v54 = vld [vmem:[#allocation3 + $0x28] sm:$0xff]  ;;  %v2416_v39 = vor.u32 %v2415_v18, %v2411_v48  ;;  %v5599_v38 = vld [vmem:[#allocation2 + $0x6c] sm:$0xff]   ;;  %v3635_v50 = vrot.slane %v5595_v33, 1 }
 0x118   : > { %2961 = vrot.lane.b32.xlu0 %v5548_v5, %s5629_s28  ;;  %2528 = vst.msk [vmem:[#allocation3 + $0x98] sm:$0xff] %vm1220_vm11, %v2397_v17  ;;  %3675 = vst.msk [vmem:[#allocation3 + $0x10] sm:$0xff] %vm1220_vm11, %v3613_v15  ;;  %v5590_v17 = vld [vmem:[#allocation2 + $0x68] ss:$0 sps:$4 sm:$0x11]  }
 0x119   : > { %v2970_v59 = vpop.permute.xlu0 %2969  ;;  %3678 = vst.msk [vmem:[#allocation3 + $0x58] sm:$0xff] %vm1220_vm11, %v3622_v16  ;;  %3679 = vst.msk [vmem:[#allocation3 + $0x70] sm:$0xff] %vm1220_vm11, %v3625_v49  ;;  %v6649_v9 = vld [vmem:[#allocation2 + $0x84] sm:$0xff]   ;;  %v5591_v15 = vld [vmem:[#allocation2 + $0x6c] sm:$0xfe]  }
 0x11a   : > { %v1927_v53 = vpop.permute.xlu1 %1926  ;;  %3002 = vst.msk [vmem:[#allocation3 + $0x170] sm:$0xff] %vm1944_vm13, %v2970_v59  ;;  %v3703_v6 = vld [vmem:[#allocation3 + $0x60] sm:$0xff]  ;;  %v3704_v5 = vld [vmem:[#allocation3 + $0x68] sm:$0xff]  ;;  %v2437_v23 = vshll.u32 %v6649_v9, 16  ;;  %v2435_v55 = vshrl.u32 %v6649_v9, 16 }
 0x11b   : > { %1960 = vst.msk [vmem:[#allocation3 + $0x168] sm:$0xff] %vm1944_vm13, %v1927_v53  ;;  %3995 = vmatprep.mubr.bf16.mxu0 %v3704_v5  ;;  %v5589_v5 = vld [vmem:[#allocation2 + $0x60] sm:$0xfe]   ;;  %v5598_v40 = vld [vmem:[#allocation2 + $0x8c] ss:$0 sps:$4 sm:$0x11]  }
 0x11c   : > { %3393 = vrot.lane.b32.xlu0 %v3322_v35, %s5631_s13  ;;  %3996 = vmatmul.mubr.bf16.gmra.mrb[16].mxu0 %v3703_v6  ;;  %v2408_v35 = vrot.slane %v2406_v51, 1  ;;  %v3699_v31 = vld [vmem:[#allocation3 + $0x40] sm:$0xff]  ;;  %1230 = vst.msk [vmem:[#allocation3 + $0xd8] sm:$0xff] %vm1220_vm11, %v5599_v38  ;;  %v3629_v45 = vrot.slane %v5589_v5, 1  ;;  %v3639_v63 = vrot.slane %v5598_v40, 1 }
 0x11d   : > { %v2773_v34 = vpop.permute.xlu0 %2772  ;;  %v5602_v48 = vld [vmem:[#allocation2 + $0x9c] sm:$0xfe]   ;;  %v5603_v49 = vld [vmem:[#allocation2 + $0xa4] ss:$0 sps:$4 sm:$0x11]  }
 0x11e   : > { %v3402_v56 = vpop.permute.xlu1 %3401  ;;  %2815 = vst.msk [vmem:[#allocation3 + $0x80] sm:$0xff] %vm1654_vm12, %v2773_v34  ;;  %v2409_v37 = vsel %vm1413_vm7, %v2404_v21, %v2408_v35  ;;  %v5594_v21 = vld [vmem:[#allocation2 + $0x80] ss:$0 sps:$4 sm:$0x11]  }
 0x11f   : > { %3434 = vst.msk [vmem:[#allocation3 + $0x170] sm:$0xff] %vm2121_vm14, %v3402_v56  ;;  %v3693_v12 = vld [vmem:[#allocation3 + $0x10] sm:$0xff]  ;;  %v2430_v58 = vshll.u32 %v5594_v21, 16  ;;  %v5608_v9 = vld [vmem:[#allocation2 + $0xb0] ss:$0 sps:$4 sm:$0x11]  }
 0x120   : > { %2529 = vst.msk [vmem:[#allocation3 + $0xb0] sm:$0xff] %vm1220_vm11, %v2409_v37  ;;  %v3702_v22 = vld [vmem:[#allocation3 + $0x58] sm:$0xff]  ;;  %v3705_v4 = vld [vmem:[#allocation3 + $0x70] sm:$0xff]  ;;  %v5606_v37 = vld [vmem:[#allocation2 + $0x78] sm:$0xff]  }
 0x121   : > { %v1617_v24 = vpop.permute.xlu0 %1616  ;;  %v2432_v1 = vrot.slane %v2430_v58, 1  ;;  %1231 = vst.msk [vmem:[#allocation3 + $0xf0] sm:$0xff] %vm1220_vm11, %v5606_v37  ;;  %v5612_v21 = vld [vmem:[#allocation2 + $0x98] ss:$0 sps:$4 sm:$0x11]  }
 0x122   : > { %v2104_v61 = vpop.permute.xlu1 %2103  ;;  %1660 = vst.msk [vmem:[#allocation3 + $0x78] sm:$0xff] %vm1654_vm12, %v1617_v24  ;;  %v5587_v24 = vld [vmem:[#allocation2 + $0x74] ss:$0 sps:$4 sm:$0x11]  }
 0x123   : > { %2137 = vst.msk [vmem:[#allocation3 + $0x168] sm:$0xff] %vm2121_vm14, %v2104_v61  ;;  %v5585_v61 = vld [vmem:[#allocation2 + $0x5c] ss:$0 sps:$4 sm:$0x11]  }
 0x124   : > { %v3627_v6 = vrot.slane %v5585_v61, 1  ;;  %v2439_v61 = vrot.slane %v2437_v23, 1  ;;  %v5616_v37 = vld [vmem:[#allocation2 + $0xd4] ss:$0 sps:$4 sm:$0x11]  }
 0x125   : > { %v2950_v32 = vpop.permute.xlu0 %2949 }
 0x126   : > { %v1907_v2 = vpop.permute.xlu1 %1906  ;;  %2992 = vst.msk [vmem:[#allocation3 + $0x80] sm:$0xff] %vm1944_vm13, %v2950_v32  ;;  %v3737_v3 = vld [vmem:[#allocation3 + $0x170] sm:$0xff]  ;;  %v3628_v36 = vsel %vm1847_vm4, %v3626_v60, %v3627_v6  ;;  %v2449_v60 = vshll.u32 %v6671_v10, 16  ;;  %v3644_v6 = vrot.slane %v5602_v48, 1  ;;  %v2440_v38 = vor.u32 %v2439_v61, %v2435_v55 }
 0x127   : > { %1950 = vst.msk [vmem:[#allocation3 + $0x78] sm:$0xff] %vm1944_vm13, %v1907_v2  ;;  %4083 = vmatprep.mubr.bf16.mxu1 %v3737_v3  ;;  %v2418_v2 = vshll.u32 %v5587_v24, 16  ;;  %v3630_v3 = vrot.slane %v5590_v17, 1  ;;  %v5617_v24 = vld [vmem:[#allocation2 + $0x84] sm:$0xff]  }
 0x128   : > { %3680 = vst.msk [vmem:[#allocation3 + $0x88] sm:$0xff] %vm1220_vm11, %v3628_v36  ;;  %1232 = vst.msk [vmem:[#allocation3 + $0x108] sm:$0xff] %vm1220_vm11, %v5617_v24  ;;  %v5607_v17 = vld [vmem:[#allocation2 + $0xa8] sm:$0xfe]  }
 0x129   : > { %v3382_v0 = vpop.permute.xlu0 %3381  ;;  %v2420_v32 = vrot.slane %v2418_v2, 1  ;;  %v3631_v44 = vsel %vm1847_vm4, %v3629_v45, %v3630_v3  ;;  %v3647_v3 = vrot.slane %v5607_v17, 1 }
 0x12a   : > { %v3736_v20 = vld [vmem:[#allocation3 + $0x168] sm:$0xff]  ;;  %v2084_v19 = vpop.permute.xlu1 %2083  ;;  %3424 = vst.msk [vmem:[#allocation3 + $0x80] sm:$0xff] %vm2121_vm14, %v3382_v0  ;;  %v3632_v0 = vrot.slane %v5591_v15, 1  ;;  %v3648_v15 = vrot.slane %v5608_v9, 1 }
 0x12b   : > { %4084 = vmatmul.mubr.bf16.gmra.mrb[12].mxu1 %v3736_v20  ;;  %2127 = vst.msk [vmem:[#allocation3 + $0x78] sm:$0xff] %vm2121_vm14, %v2084_v19  ;;  %v2421_v62 = vsel %vm1413_vm7, %v2416_v39, %v2420_v32  ;;  %v5592_v20 = vld [vmem:[#allocation2 + $0x74] ss:$0 sps:$4 sm:$0x11]   ;;  %v2427_v19 = vrot.slane %v2425_v7, 1 }
 0x12c   : > { %5300 = vmatprep.mubr.msk.bf16.mxu1 %vm1220_vm11, %v3693_v12  ;;  %2530 = vst.msk [vmem:[#allocation3 + $0xc8] sm:$0xff] %vm1220_vm11, %v2421_v62  ;;  %3681 = vst.msk [vmem:[#allocation3 + $0xa0] sm:$0xff] %vm1220_vm11, %v3631_v44  ;;  %v3633_v42 = vrot.slane %v5592_v20, 1  ;;  %v5597_v12 = vld [vmem:[#allocation2 + $0x84] sm:$0xfe]  }
 0x12d   : > { %v2775_v59 = vpop.permute.xlu0 %2774  ;;  %v2428_v11 = vor.u32 %v2427_v19, %v2423_v57  ;;  %v3638_v16 = vrot.slane %v5597_v12, 1  ;;  %v5605_v7 = vld [vmem:[#allocation2 + $0x8c] ss:$0 sps:$4 sm:$0x11]   ;;  %v5609_v62 = vld [vmem:[#allocation2 + $0xb4] sm:$0xfe]  }
 0x12e   : > { %v1619_v53 = vpop.permute.xlu1 %1618  ;;  %2816 = vst.msk [vmem:[#allocation3 + $0x98] sm:$0xff] %vm1654_vm12, %v2775_v59  ;;  %v3634_v35 = vsel %vm1847_vm4, %v3632_v0, %v3633_v42  ;;  %v5596_v59 = vld [vmem:[#allocation2 + $0x80] ss:$0 sps:$4 sm:$0x11]  }
 0x12f   : > { %1661 = vst.msk [vmem:[#allocation3 + $0x90] sm:$0xff] %vm1654_vm12, %v1619_v53  ;;  %v3708_v53 = vld [vmem:[#allocation3 + $0x88] sm:$0xff]  ;;  %v3636_v8 = vrot.slane %v5596_v59, 1  ;;  %v2433_v28 = vsel %vm1413_vm7, %v2428_v11, %v2432_v1  ;;  %v5614_v11 = vld [vmem:[#allocation2 + $0xc8] ss:$0 sps:$4 sm:$0x11]  }
 0x130   : > { %3682 = vst.msk [vmem:[#allocation3 + $0xb8] sm:$0xff] %vm1220_vm11, %v3634_v35  ;;  %2531 = vst.msk [vmem:[#allocation3 + $0xe0] sm:$0xff] %vm1220_vm11, %v2433_v28  ;;  %v5613_v35 = vld [vmem:[#allocation2 + $0xc0] sm:$0xfe]   ;;  %v5615_v59 = vld [vmem:[#allocation2 + $0xcc] sm:$0xfe]  }
 0x131   : > { %v2952_v34 = vpop.permute.xlu0 %2951  ;;  %v3707_v43 = vld [vmem:[#allocation3 + $0x80] sm:$0xff]  ;;  %v3637_v41 = vsel %vm1847_vm4, %v3635_v50, %v3636_v8  ;;  %v3653_v33 = vrot.slane %v5613_v35, 1  ;;  %v3656_v28 = vrot.slane %v5615_v59, 1 }
 0x132   : > { %v1909_v56 = vpop.permute.xlu1 %1908  ;;  %v3706_v14 = vld [vmem:[#allocation3 + $0x78] sm:$0xff]  ;;  %2993 = vst.msk [vmem:[#allocation3 + $0x98] sm:$0xff] %vm1944_vm13, %v2952_v34  ;;  %4003 = vmatprep.mubr.bf16.mxu0 %v3707_v43  ;;  %v5601_v43 = vld [vmem:[#allocation2 + $0x98] ss:$0 sps:$4 sm:$0x11]  }
 0x133   : > { %1951 = vst.msk [vmem:[#allocation3 + $0x90] sm:$0xff] %vm1944_vm13, %v1909_v56  ;;  %5301 = vmatmul.mubr.msk.bf16.vlgmr.msra.gmra.mrb[16].mxu1 %vm1220_vm11, %v3696_v54  ;;  %4004 = vmatmul.mubr.bf16.gmra.mrb[20].mxu0 %v3706_v14  ;;  %v3711_v14 = vld [vmem:[#allocation3 + $0xa0] sm:$0xff]  ;;  %v5600_v34 = vld [vmem:[#allocation2 + $0x90] sm:$0xfe]   ;;  %v3640_v54 = vsel %vm1847_vm4, %v3638_v16, %v3639_v63 }
 0x134   : > { %5304 = vmatprep.mubr.msk.bf16.mxu1 %vm1220_vm11, %v3699_v31  ;;  %3683 = vst.msk [vmem:[#allocation3 + $0xd0] sm:$0xff] %vm1220_vm11, %v3637_v41  ;;  %3684 = vst.msk [vmem:[#allocation3 + $0xe8] sm:$0xff] %vm1220_vm11, %v3640_v54  ;;  %v3641_v46 = vrot.slane %v5600_v34, 1  ;;  %v3645_v31 = vrot.slane %v5603_v49, 1 }
 0x135   : > { %v3384_v13 = vpop.permute.xlu0 %3383 }
 0x136   : > { %v2086_v25 = vpop.permute.xlu1 %2085  ;;  %3425 = vst.msk [vmem:[#allocation3 + $0x98] sm:$0xff] %vm2121_vm14, %v3384_v13  ;;  %v3646_v2 = vsel %vm1847_vm4, %v3644_v6, %v3645_v31 }
 0x137   : > { %2128 = vst.msk [vmem:[#allocation3 + $0x90] sm:$0xff] %vm2121_vm14, %v2086_v25  ;;  %v3714_v18 = vld [vmem:[#allocation3 + $0xb8] sm:$0xff]  ;;  %v3642_v25 = vrot.slane %v5601_v43, 1 }
 0x138   : > { %3686 = vst.msk [vmem:[#allocation3 + $0x118] sm:$0xff] %vm1220_vm11, %v3646_v2 }
 0x139   : > { %v2777_v27 = vpop.permute.xlu0 %2776  ;;  %v3643_v13 = vsel %vm1847_vm4, %v3641_v46, %v3642_v25 }
 0x13a   : > { %v1621_v30 = vpop.permute.xlu1 %1620  ;;  %2817 = vst.msk [vmem:[#allocation3 + $0xb0] sm:$0xff] %vm1654_vm12, %v2777_v27  ;;  %v2451_v27 = vrot.slane %v2449_v60, 1 }
 0x13b   : > { %1662 = vst.msk [vmem:[#allocation3 + $0xa8] sm:$0xff] %vm1654_vm12, %v1621_v30  ;;  %5305 = vmatmul.mubr.msk.bf16.gmra.mrb[20].mxu1 %vm1220_vm11, %v3702_v22  ;;  %v3717_v39 = vld [vmem:[#allocation3 + $0xd0] sm:$0xff]  ;;  %v2442_v30 = vshll.u32 %v5605_v7, 16  ;;  %v2447_v22 = vshrl.u32 %v6671_v10, 16  ;;  %v3720_v20 = vld [vmem:[#allocation3 + $0xe8] sm:$0xff] }
 0x13c   : > { %5308 = vmatprep.mubr.msk.bf16.mxu1 %vm1220_vm11, %v3705_v4  ;;  %3685 = vst.msk [vmem:[#allocation3 + $0x100] sm:$0xff] %vm1220_vm11, %v3643_v13  ;;  %v3650_v4 = vrot.slane %v5609_v62, 1 }
 0x13d   : > { %v3710_v52 = vld [vmem:[#allocation3 + $0x98] sm:$0xff]  ;;  %v2444_v32 = vrot.slane %v2442_v30, 1  ;;  %v2452_v23 = vor.u32 %v2451_v27, %v2447_v22 }
 0x13e   : > { %v1911_v47 = vpop.permute.xlu1 %1910  ;;  %v3709_v29 = vld [vmem:[#allocation3 + $0x90] sm:$0xff]  ;;  %4011 = vmatprep.mubr.bf16.mxu0 %v3710_v52 }
 0x13f   : > { %1952 = vst.msk [vmem:[#allocation3 + $0xa8] sm:$0xff] %vm1944_vm13, %v1911_v47  ;;  %4012 = vmatmul.mubr.bf16.gmra.mrb[24].mxu0 %v3709_v29  ;;  %v2445_v19 = vsel %vm1413_vm7, %v2440_v38, %v2444_v32  ;;  %v5610_v47 = vld [vmem:[#allocation2 + $0xbc] ss:$0 sps:$4 sm:$0x11]   ;;  %v3649_v29 = vsel %vm1847_vm4, %v3647_v3, %v3648_v15  ;;  %v3726_v50 = vld [vmem:[#allocation3 + $0x118] sm:$0xff] }
 0x140   : > { %2532 = vst.msk [vmem:[#allocation3 + $0xf8] sm:$0xff] %vm1220_vm11, %v2445_v19  ;;  %3687 = vst.msk [vmem:[#allocation3 + $0x130] sm:$0xff] %vm1220_vm11, %v3649_v29  ;;  %v3651_v42 = vrot.slane %v5610_v47, 1 }
 0x142   : > { %v2954_v51 = vpop.permute.xlu0 %2953  ;;  %v2088_v26 = vpop.permute.xlu1 %2087  ;;  %v3652_v52 = vsel %vm1847_vm4, %v3650_v4, %v3651_v42 }
 0x143   : > { %2994 = vst.msk [vmem:[#allocation3 + $0xb0] sm:$0xff] %vm1944_vm13, %v2954_v51  ;;  %5309 = vmatmul.mubr.msk.bf16.gmra.mrb[24].mxu1 %vm1220_vm11, %v3708_v53  ;;  %v3723_v0 = vld [vmem:[#allocation3 + $0x100] sm:$0xff]  ;;  %v2454_v53 = vshll.u32 %v5612_v21, 16 }
 0x144   : > { %2129 = vst.msk [vmem:[#allocation3 + $0xa8] sm:$0xff] %vm2121_vm14, %v2088_v26  ;;  %5312 = vmatprep.mubr.msk.bf16.mxu1 %vm1220_vm11, %v3711_v14  ;;  %v3654_v26 = vrot.slane %v5614_v11, 1 }
 0x145   : > { %3688 = vst.msk [vmem:[#allocation3 + $0x148] sm:$0xff] %vm1220_vm11, %v3652_v52  ;;  %v2456_v58 = vrot.slane %v2454_v53, 1 }
 0x146   : > { %v1623_v56 = vpop.permute.xlu1 %1622  ;;  %v3655_v40 = vsel %vm1847_vm4, %v3653_v33, %v3654_v26 }
 0x147   : > { %1663 = vst.msk [vmem:[#allocation3 + $0xc0] sm:$0xff] %vm1654_vm12, %v1623_v56  ;;  %v2457_v8 = vsel %vm1413_vm7, %v2452_v23, %v2456_v58  ;;  %v3729_v12 = vld [vmem:[#allocation3 + $0x130] sm:$0xff]  ;;  %v3657_v56 = vrot.slane %v5616_v37, 1 }
 0x148   : > { %2533 = vst.msk [vmem:[#allocation3 + $0x110] sm:$0xff] %vm1220_vm11, %v2457_v8  ;;  %3689 = vst.msk [vmem:[#allocation3 + $0x160] sm:$0xff] %vm1220_vm11, %v3655_v40 }
 0x149   : > { %v3658_v41 = vsel %vm1847_vm4, %v3656_v28, %v3657_v56 }
 0x14a   : > { %v1913_v57 = vpop.permute.xlu1 %1912  ;;  %v3386_v36 = vpop.permute.xlu0 %3385  ;;  %3690 = vst.msk [vmem:[#allocation3 + $0x178] sm:$0xff] %vm1220_vm11, %v3658_v41 }
 0x14b   : > { %1953 = vst.msk [vmem:[#allocation3 + $0xc0] sm:$0xff] %vm1944_vm13, %v1913_v57  ;;  %5313 = vmatmul.mubr.msk.bf16.gmra.mrb[28].mxu1 %vm1220_vm11, %v3714_v18  ;;  %v3712_v44 = vld [vmem:[#allocation3 + $0xa8] sm:$0xff] }
 0x14c   : > { %3426 = vst.msk [vmem:[#allocation3 + $0xb0] sm:$0xff] %vm2121_vm14, %v3386_v36  ;;  %5316 = vmatprep.mubr.msk.bf16.mxu1 %vm1220_vm11, %v3717_v39  ;;  %v3732_v63 = vld [vmem:[#allocation3 + $0x148] sm:$0xff] }
 0x14e   : > { %v2090_v5 = vpop.permute.xlu1 %2089  ;;  %v2779_v45 = vpop.permute.xlu0 %2778 }
 0x14f   : > { %2130 = vst.msk [vmem:[#allocation3 + $0xc0] sm:$0xff] %vm2121_vm14, %v2090_v5  ;;  %v3735_v10 = vld [vmem:[#allocation3 + $0x160] sm:$0xff] }
 0x150   : > { %2818 = vst.msk [vmem:[#allocation3 + $0xc8] sm:$0xff] %vm1654_vm12, %v2779_v45 }
 0x151   : > { %v3738_v55 = vld [vmem:[#allocation3 + $0x178] sm:$0xff] }
 0x153   : > { %v3713_v51 = vld [vmem:[#allocation3 + $0xb0] sm:$0xff]  ;;  %5317 = vmatmul.mubr.msk.bf16.gmra.mrb[32].mxu1 %vm1220_vm11, %v3720_v20 }
 0x154   : > { %4019 = vmatprep.mubr.bf16.mxu0 %v3713_v51  ;;  %5320 = vmatprep.mubr.msk.bf16.mxu1 %vm1220_vm11, %v3723_v0 }
 0x155   : > { %4020 = vmatmul.mubr.bf16.gmra.mrb[28].mxu0 %v3712_v44 }
 0x156   : > { %v3715_v46 = vld [vmem:[#allocation3 + $0xc0] sm:$0xff] }
 0x15b   : > { %v1625_v1 = vpop.permute.xlu1 %1624  ;;  %5321 = vmatmul.mubr.msk.bf16.gmra.mrb[36].mxu1 %vm1220_vm11, %v3726_v50 }
 0x15c   : > { %1664 = vst.msk [vmem:[#allocation3 + $0xd8] sm:$0xff] %vm1654_vm12, %v1625_v1  ;;  %5324 = vmatprep.mubr.msk.bf16.mxu1 %vm1220_vm11, %v3729_v12 }
 0x15d   : > { %v2956_v14 = vpop.permute.xlu0 %2955 }
 0x15e   : > { %2995 = vst.msk [vmem:[#allocation3 + $0xc8] sm:$0xff] %vm1944_vm13, %v2956_v14 }
 0x15f   : > { %v1915_v16 = vpop.permute.xlu1 %1914 }
 0x160   : > { %1954 = vst.msk [vmem:[#allocation3 + $0xd8] sm:$0xff] %vm1944_vm13, %v1915_v16 }
 0x163   : > { %v2092_v34 = vpop.permute.xlu1 %2091  ;;  %5325 = vmatmul.mubr.msk.bf16.gmra.mrb[40].mxu1 %vm1220_vm11, %v3732_v63 }
 0x164   : > { %2131 = vst.msk [vmem:[#allocation3 + $0xd8] sm:$0xff] %vm2121_vm14, %v2092_v34  ;;  %5328 = vmatprep.mubr.msk.bf16.mxu1 %vm1220_vm11, %v3735_v10 }
 0x165   : > { %v3388_v54 = vpop.permute.xlu0 %3387 }
 0x166   : > { %3427 = vst.msk [vmem:[#allocation3 + $0xc8] sm:$0xff] %vm2121_vm14, %v3388_v54 }
 0x168   : > { %v1627_v18 = vpop.permute.xlu1 %1626 }
 0x169   : > { %v2781_v43 = vpop.permute.xlu0 %2780  ;;  %1665 = vst.msk [vmem:[#allocation3 + $0xf0] sm:$0xff] %vm1654_vm12, %v1627_v18 }
 0x16a   : > { %2819 = vst.msk [vmem:[#allocation3 + $0xe0] sm:$0xff] %vm1654_vm12, %v2781_v43 }
 0x16b   : > { %5329 = vmatmul.mubr.msk.bf16.gmra.mrb[44].mxu1 %vm1220_vm11, %v3738_v55  ;;  %v3718_v6 = vld [vmem:[#allocation3 + $0xd8] sm:$0xff] }
 0x16c   : > { %v1917_v25 = vpop.permute.xlu1 %1916 }
 0x16d   : > { %v3716_v48 = vld [vmem:[#allocation3 + $0xc8] sm:$0xff]  ;;  %1955 = vst.msk [vmem:[#allocation3 + $0xf0] sm:$0xff] %vm1944_vm13, %v1917_v25 }
 0x16e   : > { %4027 = vmatprep.mubr.bf16.mxu0 %v3716_v48  ;;  %v2958_v61 = vpop.permute.xlu0 %2957 }
 0x16f   : > { %4028 = vmatmul.mubr.bf16.gmra.mrb[32].mxu0 %v3715_v46  ;;  %2996 = vst.msk [vmem:[#allocation3 + $0xe0] sm:$0xff] %vm1944_vm13, %v2958_v61 }
 0x171   : > { %v2094_v49 = vpop.permute.xlu1 %2093 }
 0x172   : > { %2132 = vst.msk [vmem:[#allocation3 + $0xf0] sm:$0xff] %vm2121_vm14, %v2094_v49 }
 0x176   : > { %v3390_v60 = vpop.permute.xlu0 %3389 }
 0x177   : > { %3428 = vst.msk [vmem:[#allocation3 + $0xe0] sm:$0xff] %vm2121_vm14, %v3390_v60 }
 0x179   : > { %v1629_v31 = vpop.permute.xlu1 %1628  ;;  %v3721_v38 = vld [vmem:[#allocation3 + $0xf0] sm:$0xff] }
 0x17a   : > { %v2783_v57 = vpop.permute.xlu0 %2782  ;;  %1666 = vst.msk [vmem:[#allocation3 + $0x108] sm:$0xff] %vm1654_vm12, %v1629_v31 }
 0x17b   : > { %2820 = vst.msk [vmem:[#allocation3 + $0xf8] sm:$0xff] %vm1654_vm12, %v2783_v57 }
 0x17d   : > { %v1919_v36 = vpop.permute.xlu1 %1918 }
 0x17e   : > { %v2960_v24 = vpop.permute.xlu0 %2959  ;;  %v3719_v13 = vld [vmem:[#allocation3 + $0xe0] sm:$0xff]  ;;  %1956 = vst.msk [vmem:[#allocation3 + $0x108] sm:$0xff] %vm1944_vm13, %v1919_v36 }
 0x17f   : > { %2997 = vst.msk [vmem:[#allocation3 + $0xf8] sm:$0xff] %vm1944_vm13, %v2960_v24  ;;  %4035 = vmatprep.mubr.bf16.mxu0 %v3719_v13 }
 0x180   : > { %4036 = vmatmul.mubr.bf16.gmra.mrb[36].mxu0 %v3718_v6 }
 0x181   : > { %v2096_v2 = vpop.permute.xlu1 %2095 }
 0x182   : > { %v3392_v7 = vpop.permute.xlu0 %3391  ;;  %2133 = vst.msk [vmem:[#allocation3 + $0x108] sm:$0xff] %vm2121_vm14, %v2096_v2 }
 0x183   : > { %3429 = vst.msk [vmem:[#allocation3 + $0xf8] sm:$0xff] %vm2121_vm14, %v3392_v7 }
 0x186   : > { %v2785_v39 = vpop.permute.xlu0 %2784 }
 0x187   : > { %2821 = vst.msk [vmem:[#allocation3 + $0x110] sm:$0xff] %vm1654_vm12, %v2785_v39 }
 0x189   : > { %v3724_v9 = vld [vmem:[#allocation3 + $0x108] sm:$0xff] }
 0x18a   : > { %v2962_v30 = vpop.permute.xlu0 %2961  ;;  %v3722_v5 = vld [vmem:[#allocation3 + $0xf8] sm:$0xff] }
 0x18b   : > { %2998 = vst.msk [vmem:[#allocation3 + $0x110] sm:$0xff] %vm1944_vm13, %v2962_v30  ;;  %4043 = vmatprep.mubr.bf16.mxu0 %v3722_v5 }
 0x18c   : > { %4044 = vmatmul.mubr.bf16.gmra.mrb[40].mxu0 %v3721_v38 }
 0x18e   : > { %v3394_v17 = vpop.permute.xlu0 %3393 }
 0x18f   : > { %3430 = vst.msk [vmem:[#allocation3 + $0x110] sm:$0xff] %vm2121_vm14, %v3394_v17 }
 0x196   : > { %v3725_v22 = vld [vmem:[#allocation3 + $0x110] sm:$0xff] }
 0x197   : > { %4051 = vmatprep.mubr.bf16.mxu0 %v3725_v22 }
 0x198   : > { %4052 = vmatmul.mubr.bf16.gmra.mrb[44].mxu0 %v3724_v9 }
 0x1bd   : > { %v5182_v32 = vpop.f32.mrb[0].mxu0 }
 0x1be   : > { %v5183_v27 = vpop.f32.mrb[1].mxu0 }
 0x1bf   : > { %v5184_v45 = vadd.f32 %v5183_v27, %v5182_v32  ;;  %v5185_v3 = vpop.f32.mrb[2].mxu0 }
 0x1c0   : > { %v5186_v15 = vpop.f32.mrb[3].mxu0 }
 0x1c1   : > { %v6731_v20 = vadd.f32 %v5186_v15, %v5185_v3 }
 0x1c3   : > { %v5254_v62 = vpop.f32.mrb[0].mxu1 }
 0x1c4   : > { %v5255_v19 = vpop.f32.mrb[1].mxu1 }
 0x1c5   : > { %v6733_v47 = vadd.f32 %v5255_v19, %v5254_v62  ;;  %v5257_v29 = vpop.f32.mrb[2].mxu1  ;;  %v5188_v0 = vpop.f32.mrb[4].mxu0 }
 0x1c6   : > { %v5258_v4 = vpop.f32.mrb[3].mxu1  ;;  %v5189_v42 = vpop.f32.mrb[5].mxu0 }
 0x1c7   : > { %v6735_v44 = vadd.f32 %v5258_v4, %v5257_v29  ;;  %v5190_v21 = vadd.f32 %v5189_v42, %v5188_v0  ;;  %v5191_v51 = vpop.f32.mrb[6].mxu0 }
 0x1c8   : > { %v5192_v52 = vpop.f32.mrb[7].mxu0 }
 0x1c9   : > { %v5193_v23 = vadd.f32 %v5192_v52, %v5191_v51 }
 0x1cd   : > { %v5194_v33 = vpop.f32.mrb[8].mxu0 }
 0x1ce   : > { %v5260_v53 = vpop.f32.mrb[4].mxu1  ;;  %v5195_v59 = vpop.f32.mrb[9].mxu0 }
 0x1cf   : > { %v5261_v35 = vpop.f32.mrb[5].mxu1  ;;  %v6741_v1 = vadd.f32 %v5195_v59, %v5194_v33  ;;  %v5197_v50 = vpop.f32.mrb[10].mxu0 }
 0x1d0   : > { %v6737_v11 = vadd.f32 %v5261_v35, %v5260_v53  ;;  %v5263_v58 = vpop.f32.mrb[6].mxu1  ;;  %v5198_v8 = vpop.f32.mrb[11].mxu0 }
 0x1d1   : > { %v5264_v26 = vpop.f32.mrb[7].mxu1  ;;  %v6743_v12 = vadd.f32 %v5198_v8, %v5197_v50 }
 0x1d2   : > { %v6739_v37 = vadd.f32 %v5264_v26, %v5263_v58 }
 0x1d7   : > { %v5200_v40 = vpop.f32.mrb[12].mxu0 }
 0x1d8   : > { %v5201_v28 = vpop.f32.mrb[13].mxu0 }
 0x1d9   : > { %v5202_v56 = vadd.f32 %v5201_v28, %v5200_v40  ;;  %v5203_v14 = vpop.f32.mrb[14].mxu0 }
 0x1da   : > { %v5204_v41 = vpop.f32.mrb[15].mxu0 }
 0x1db   : > { %v5205_v16 = vadd.f32 %v5204_v41, %v5203_v14 }
 0x1e6   : > { %v5266_v63 = vpop.f32.mrb[8].mxu1 }
 0x1e7   : > { %v5267_v10 = vpop.f32.mrb[9].mxu1 }
 0x1e8   : > { %v6745_v34 = vadd.f32 %v5267_v10, %v5266_v63  ;;  %v5269_v54 = vpop.f32.mrb[10].mxu1 }
 0x1e9   : > { %v5270_v43 = vpop.f32.mrb[11].mxu1 }
 0x1ea   : > { %v6747_v55 = vadd.f32 %v5270_v43, %v5269_v54 }
 0x1ef   : > { %v5206_v46 = vpop.f32.mrb[16].mxu0 }
 0x1f0   : > { %v5207_v48 = vpop.f32.mrb[17].mxu0 }
 0x1f1   : > { %v6749_v61 = vadd.f32 %v5207_v48, %v5206_v46  ;;  %v5209_v18 = vpop.f32.mrb[18].mxu0 }
 0x1f2   : > { %v5210_v49 = vpop.f32.mrb[19].mxu0 }
 0x1f3   : > { %v6751_v57 = vadd.f32 %v5210_v49, %v5209_v18 }
 0x1fe   : > { %v5272_v25 = vpop.f32.mrb[12].mxu1 }
 0x1ff   : > { %v5273_v60 = vpop.f32.mrb[13].mxu1 }
 0x200   : > { %v6753_v6 = vadd.f32 %v5273_v60, %v5272_v25  ;;  %v5275_v24 = vpop.f32.mrb[14].mxu1 }
 0x201   : > { %v5276_v13 = vpop.f32.mrb[15].mxu1 }
 0x202   : > { %v6755_v31 = vadd.f32 %v5276_v13, %v5275_v24 }
 0x206   : > { %v5302_v7 = vpop.f32.mrb[16].mxu1  ;;  %v5212_v39 = vpop.f32.mrb[20].mxu0 }
 0x207   : > { %v4135_v36 = vadd.f32 %v5302_v7, %v5190_v21  ;;  %v4126_v2 = vpop.f32.mrb[17].mxu1  ;;  %v5213_v30 = vpop.f32.mrb[21].mxu0 }
 0x208   : > { %v4127_v38 = vadd.f32 %v5184_v45, %v4126_v2  ;;  %v5303_v5 = vpop.f32.mrb[18].mxu1  ;;  %v6764_v9 = vadd.f32 %v5213_v30, %v5212_v39  ;;  %v5215_v22 = vpop.f32.mrb[22].mxu0 }
 0x209   : > { %v5057_v17 = vpack.c.bf16 %v4135_v36, %v4135_v36  ;;  %v4129_v32 = vpop.f32.mrb[19].mxu1  ;;  %v4138_v3 = vadd.f32 %v5303_v5, %v5193_v23  ;;  %v5216_v15 = vpop.f32.mrb[23].mxu0  ;;  %v4485_v45 = vmul.f32 %v4135_v36, %v4135_v36  ;;  %v4416_v52 = vsel %vm1220_vm11, %v4135_v36, 0.0 }
 0x20a   : > { %v5055_v27 = vpack.c.bf16 %v4127_v38, %v4127_v38  ;;  %v4483_v62 = vmul.f32 %v4127_v38, %v4127_v38  ;;  %v4130_v19 = vadd.f32 %v6731_v20, %v4129_v32  ;;  %v6769_v29 = vadd.f32 %v5216_v15, %v5215_v22 }
 0x20b   : > { %4383 = vst.msk [vmem:[%s6762_s14 + $0x8] sm:$0xf] %vm449_vm0, %v5057_v17  ;;  %v5058_v4 = vpack.c.bf16 %v4138_v3, %v4138_v3  ;;  %v4413_v0 = vsel %vm1220_vm11, %v4127_v38, 0.0  ;;  %v4486_v35 = vmul.f32 %v4138_v3, %v4138_v3  ;;  %v4518_v28 = vsel %vm1220_vm11, %v4485_v45, 0.0 }
 0x20c   : > { %4381 = vst.msk [vmem:[%s6762_s14] sm:$0xf] %vm449_vm0, %v5055_v27  ;;  %v5056_v42 = vpack.c.bf16 %v4130_v19, %v4130_v19  ;;  %v4414_v21 = vsel %vm1220_vm11, %v4130_v19, 0.0  ;;  %v4484_v51 = vmul.f32 %v4130_v19, %v4130_v19  ;;  %v4515_v20 = vsel %vm1220_vm11, %v4483_v62, 0.0 }
 0x20d   : > { %4384 = vst.msk [vmem:[%s6762_s14 + $0xc] sm:$0xf] %vm449_vm0, %v5058_v4  ;;  %v4415_v23 = vadd.f32 %v4414_v21, %v4413_v0  ;;  %v4418_v14 = vsel %vm1220_vm11, %v4138_v3, 0.0  ;;  %v4520_v48 = vsel %vm1220_vm11, %v4486_v35, 0.0 }
 0x20e   : > { %v5306_v53 = vpop.f32.mrb[20].mxu1  ;;  %4382 = vst.msk [vmem:[%s6762_s14 + $0x4] sm:$0xf] %vm449_vm0, %v5056_v42  ;;  %v4516_v58 = vsel %vm1220_vm11, %v4484_v51, 0.0 }
 0x20f   : > { %v4151_v33 = vadd.f32 %v5306_v53, %v5202_v56  ;;  %v4142_v26 = vpop.f32.mrb[21].mxu1  ;;  %v4417_v59 = vadd.f32 %v4416_v52, %v4415_v23  ;;  %v4517_v50 = vadd.f32 %v4516_v58, %v4515_v20 }
 0x210   : > { %v4143_v8 = vadd.f32 %v6741_v1, %v4142_v26  ;;  %v5307_v40 = vpop.f32.mrb[22].mxu1 }
 0x211   : > { %v5061_v41 = vpack.c.bf16 %v4151_v33, %v4151_v33  ;;  %v4154_v63 = vadd.f32 %v5307_v40, %v5205_v16  ;;  %v4145_v10 = vpop.f32.mrb[23].mxu1  ;;  %v4519_v54 = vadd.f32 %v4518_v28, %v4517_v50  ;;  %v4419_v46 = vadd.f32 %v4418_v14, %v4417_v59 }
 0x212   : > { %v5059_v43 = vpack.c.bf16 %v4143_v8, %v4143_v8  ;;  %v4420_v56 = vsel %vm1220_vm11, %v4143_v8, 0.0  ;;  %v4487_v1 = vmul.f32 %v4143_v8, %v4143_v8  ;;  %v5218_v25 = vpop.f32.mrb[24].mxu0  ;;  %v4489_v49 = vmul.f32 %v4151_v33, %v4151_v33 }
 0x213   : > { %4387 = vst.msk [vmem:[%s6762_s14 + $0x18] sm:$0xf] %vm449_vm0, %v5061_v41  ;;  %v5062_v18 = vpack.c.bf16 %v4154_v63, %v4154_v63  ;;  %v4421_v60 = vadd.f32 %v4420_v56, %v4419_v46  ;;  %v4521_v24 = vadd.f32 %v4520_v48, %v4519_v54  ;;  %v4146_v16 = vadd.f32 %v6743_v12, %v4145_v10  ;;  %v5219_v13 = vpop.f32.mrb[25].mxu0 }
 0x214   : > { %4385 = vst.msk [vmem:[%s6762_s14 + $0x10] sm:$0xf] %vm449_vm0, %v5059_v43  ;;  %v4522_v7 = vsel %vm1220_vm11, %v4487_v1, 0.0  ;;  %v5220_v36 = vadd.f32 %v5219_v13, %v5218_v25  ;;  %v5221_v39 = vpop.f32.mrb[26].mxu0  ;;  %v4424_v15 = vsel %vm1220_vm11, %v4151_v33, 0.0  ;;  %v4526_v62 = vsel %vm1220_vm11, %v4489_v49, 0.0 }
 0x215   : > { %4388 = vst.msk [vmem:[%s6762_s14 + $0x1c] sm:$0xf] %vm449_vm0, %v5062_v18  ;;  %v4523_v2 = vadd.f32 %v4522_v7, %v4521_v24  ;;  %v5060_v38 = vpack.c.bf16 %v4146_v16, %v4146_v16  ;;  %v4422_v30 = vsel %vm1220_vm11, %v4146_v16, 0.0  ;;  %v5222_v5 = vpop.f32.mrb[27].mxu0  ;;  %v4488_v32 = vmul.f32 %v4146_v16, %v4146_v16 }
 0x216   : > { %v5310_v17 = vpop.f32.mrb[24].mxu1  ;;  %v4423_v22 = vadd.f32 %v4422_v30, %v4421_v60  ;;  %v5223_v27 = vadd.f32 %v5222_v5, %v5221_v39  ;;  %v4490_v4 = vmul.f32 %v4154_v63, %v4154_v63 }
 0x217   : > { %v4167_v3 = vadd.f32 %v5310_v17, %v6764_v9  ;;  %v4158_v12 = vpop.f32.mrb[25].mxu1  ;;  %4386 = vst.msk [vmem:[%s6762_s14 + $0x14] sm:$0xf] %vm449_vm0, %v5060_v38  ;;  %v4524_v42 = vsel %vm1220_vm11, %v4488_v32, 0.0  ;;  %v4426_v9 = vsel %vm1220_vm11, %v4154_v63, 0.0 }
 0x218   : > { %v4159_v19 = vadd.f32 %v6749_v61, %v4158_v12  ;;  %v5311_v45 = vpop.f32.mrb[26].mxu1  ;;  %v4425_v0 = vadd.f32 %v4424_v15, %v4423_v22  ;;  %v4525_v52 = vadd.f32 %v4524_v42, %v4523_v2  ;;  %v4528_v26 = vsel %vm1220_vm11, %v4490_v4, 0.0 }
 0x219   : > { %v5065_v21 = vpack.c.bf16 %v4167_v3, %v4167_v3  ;;  %v4161_v51 = vpop.f32.mrb[27].mxu1  ;;  %v4170_v61 = vadd.f32 %v5311_v45, %v6769_v29  ;;  %v4493_v63 = vmul.f32 %v4167_v3, %v4167_v3  ;;  %v4432_v54 = vsel %vm1220_vm11, %v4167_v3, 0.0 }
 0x21a   : > { %v5063_v23 = vpack.c.bf16 %v4159_v19, %v4159_v19  ;;  %v4428_v53 = vsel %vm1220_vm11, %v4159_v19, 0.0  ;;  %v4427_v20 = vadd.f32 %v4426_v9, %v4425_v0  ;;  %v4491_v35 = vmul.f32 %v4159_v19, %v4159_v19 }
 0x21b   : > { %4391 = vst.msk [vmem:[%s6762_s14 + $0x28] sm:$0xf] %vm449_vm0, %v5065_v21  ;;  %v4162_v58 = vadd.f32 %v6751_v57, %v4161_v51  ;;  %v4527_v33 = vadd.f32 %v4526_v62, %v4525_v52  ;;  %v5066_v8 = vpack.c.bf16 %v4170_v61, %v4170_v61  ;;  %v4494_v46 = vmul.f32 %v4170_v61, %v4170_v61 }
 0x21c   : > { %4389 = vst.msk [vmem:[%s6762_s14 + $0x20] sm:$0xf] %vm449_vm0, %v5063_v23  ;;  %v4429_v59 = vadd.f32 %v4428_v53, %v4427_v20  ;;  %v4530_v50 = vsel %vm1220_vm11, %v4491_v35, 0.0  ;;  %v4434_v1 = vsel %vm1220_vm11, %v4170_v61, 0.0  ;;  %v4534_v7 = vsel %vm1220_vm11, %v4493_v63, 0.0 }
 0x21d   : > { %v4529_v40 = vadd.f32 %v4528_v26, %v4527_v33  ;;  %v5064_v28 = vpack.c.bf16 %v4162_v58, %v4162_v58  ;;  %v4430_v14 = vsel %vm1220_vm11, %v4162_v58, 0.0  ;;  %4392 = vst.msk [vmem:[%s6762_s14 + $0x2c] sm:$0xf] %vm449_vm0, %v5066_v8  ;;  %v4492_v57 = vmul.f32 %v4162_v58, %v4162_v58 }
 0x21e   : > { %v5314_v41 = vpop.f32.mrb[28].mxu1  ;;  %v4431_v29 = vadd.f32 %v4430_v14, %v4429_v59  ;;  %v4536_v38 = vsel %vm1220_vm11, %v4494_v46, 0.0 }
 0x21f   : > { %v4174_v10 = vpop.f32.mrb[29].mxu1  ;;  %v4531_v43 = vadd.f32 %v4530_v50, %v4529_v40  ;;  %4390 = vst.msk [vmem:[%s6762_s14 + $0x24] sm:$0xf] %vm449_vm0, %v5064_v28  ;;  %v4532_v25 = vsel %vm1220_vm11, %v4492_v57, 0.0 }
 0x220   : > { %v4175_v56 = vadd.f32 %v5220_v36, %v4174_v10  ;;  %v5315_v48 = vpop.f32.mrb[30].mxu1  ;;  %v4433_v18 = vadd.f32 %v4432_v54, %v4431_v29 }
 0x221   : > { %v4177_v49 = vpop.f32.mrb[31].mxu1  ;;  %v4533_v60 = vadd.f32 %v4532_v25, %v4531_v43 }
 0x222   : > { %v5067_v24 = vpack.c.bf16 %v4175_v56, %v4175_v56  ;;  %v4436_v16 = vsel %vm1220_vm11, %v4175_v56, 0.0  ;;  %v4495_v13 = vmul.f32 %v4175_v56, %v4175_v56  ;;  %v4435_v39 = vadd.f32 %v4434_v1, %v4433_v18 }
 0x223   : > { %v4178_v2 = vadd.f32 %v5223_v27, %v4177_v49  ;;  %v4535_v36 = vadd.f32 %v4534_v7, %v4533_v60 }
 0x224   : > { %4393 = vst.msk [vmem:[%s6762_s14 + $0x30] sm:$0xf] %vm449_vm0, %v5067_v24  ;;  %v4538_v30 = vsel %vm1220_vm11, %v4495_v13, 0.0  ;;  %v4437_v5 = vadd.f32 %v4436_v16, %v4435_v39 }
 0x225   : > { %v5068_v17 = vpack.c.bf16 %v4178_v2, %v4178_v2  ;;  %v4438_v22 = vsel %vm1220_vm11, %v4178_v2, 0.0  ;;  %v4496_v32 = vmul.f32 %v4178_v2, %v4178_v2  ;;  %v4537_v3 = vadd.f32 %v4536_v38, %v4535_v36 }
 0x226   : > { %v6828_v12 = vpop.f32.mrb[32].mxu1  ;;  %v4439_v15 = vadd.f32 %v4438_v22, %v4437_v5 }
 0x227   : > { %4394 = vst.msk [vmem:[%s6762_s14 + $0x34] sm:$0xf] %vm449_vm0, %v5068_v17  ;;  %v4540_v27 = vsel %vm1220_vm11, %v4496_v32, 0.0  ;;  %v6833_v62 = vpop.f32.mrb[33].mxu1  ;;  %v4539_v45 = vadd.f32 %v4538_v30, %v4537_v3 }
 0x228   : > { %v5224_v19 = vpop.f32.mrb[28].mxu0  ;;  %v6835_v4 = vpop.f32.mrb[34].mxu1 }
 0x229   : > { %v5225_v0 = vpop.f32.mrb[29].mxu0  ;;  %v6837_v42 = vpop.f32.mrb[35].mxu1  ;;  %v4541_v9 = vadd.f32 %v4540_v27, %v4539_v45 }
 0x22a   : > { %v5226_v21 = vadd.f32 %v5225_v0, %v5224_v19  ;;  %v5227_v51 = vpop.f32.mrb[30].mxu0 }
 0x22b   : > { %v5228_v52 = vpop.f32.mrb[31].mxu0 }
 0x22c   : > { %v4183_v23 = vadd.f32 %v5314_v41, %v5226_v21  ;;  %v5229_v53 = vadd.f32 %v5228_v52, %v5227_v51 }
 0x22e   : > { %v5069_v20 = vpack.c.bf16 %v4183_v23, %v4183_v23  ;;  %v4440_v35 = vsel %vm1220_vm11, %v4183_v23, 0.0  ;;  %v4497_v61 = vmul.f32 %v4183_v23, %v4183_v23  ;;  %v4186_v58 = vadd.f32 %v5315_v48, %v5229_v53  ;;  %v6840_v33 = vpop.f32.mrb[36].mxu1 }
 0x22f   : > { %v4441_v26 = vadd.f32 %v4440_v35, %v4439_v15  ;;  %v6842_v59 = vpop.f32.mrb[37].mxu1 }
 0x230   : > { %4395 = vst.msk [vmem:[%s6762_s14 + $0x38] sm:$0xf] %vm449_vm0, %v5069_v20  ;;  %v4542_v50 = vsel %vm1220_vm11, %v4497_v61, 0.0  ;;  %v5070_v8 = vpack.c.bf16 %v4186_v58, %v4186_v58  ;;  %v4442_v40 = vsel %vm1220_vm11, %v4186_v58, 0.0  ;;  %v4498_v28 = vmul.f32 %v4186_v58, %v4186_v58  ;;  %v6848_v14 = vpop.f32.mrb[38].mxu1 }
 0x231   : > { %v4543_v41 = vadd.f32 %v4542_v50, %v4541_v9  ;;  %v4443_v63 = vadd.f32 %v4442_v40, %v4441_v26  ;;  %v6850_v29 = vpop.f32.mrb[39].mxu1 }
 0x232   : > { %4396 = vst.msk [vmem:[%s6762_s14 + $0x3c] sm:$0xf] %vm449_vm0, %v5070_v8  ;;  %v4544_v57 = vsel %vm1220_vm11, %v4498_v28, 0.0 }
 0x233   : > { %v4545_v10 = vadd.f32 %v4544_v57, %v4543_v41 }
 0x236   : > { %v5326_v54 = vpop.f32.mrb[40].mxu1 }
 0x237   : > { %v6856_v43 = vadd.f32 %v5326_v54, %v6737_v11  ;;  %v4222_v46 = vpop.f32.mrb[41].mxu1 }
 0x238   : > { %v6859_v56 = vadd.f32 %v6733_v47, %v4222_v46  ;;  %v5327_v48 = vpop.f32.mrb[42].mxu1 }
 0x239   : > { %v5081_v1 = vpack.c.bf16 %v6856_v43, %v6856_v43  ;;  %v6864_v18 = vadd.f32 %v5327_v48, %v6739_v37  ;;  %v4225_v25 = vpop.f32.mrb[43].mxu1 }
 0x23a   : > { %v5079_v49 = vpack.c.bf16 %v6859_v56, %v6859_v56  ;;  %v6869_v60 = vadd.f32 %v6735_v44, %v4225_v25 }
 0x23b   : > { %4407 = vst.msk [vmem:[%s6762_s14 + $0x68] sm:$0xf] %vm449_vm0, %v5081_v1  ;;  %v5082_v47 = vpack.c.bf16 %v6864_v18, %v6864_v18 }
 0x23c   : > { %4405 = vst.msk [vmem:[%s6762_s14 + $0x60] sm:$0xf] %vm449_vm0, %v5079_v49  ;;  %v5080_v11 = vpack.c.bf16 %v6869_v60, %v6869_v60 }
 0x23d   : > { %4408 = vst.msk [vmem:[%s6762_s14 + $0x6c] sm:$0xf] %vm449_vm0, %v5082_v47 }
 0x23e   : > { %4406 = vst.msk [vmem:[%s6762_s14 + $0x64] sm:$0xf] %vm449_vm0, %v5080_v11  ;;  %v5330_v37 = vpop.f32.mrb[44].mxu1 }
 0x23f   : > { %v6884_v24 = vadd.f32 %v5330_v37, %v6753_v6  ;;  %v4238_v44 = vpop.f32.mrb[45].mxu1 }
 0x240   : > { %v6887_v13 = vadd.f32 %v6745_v34, %v4238_v44  ;;  %v5331_v7 = vpop.f32.mrb[46].mxu1 }
 0x241   : > { %v5085_v2 = vpack.c.bf16 %v6884_v24, %v6884_v24  ;;  %v6892_v38 = vadd.f32 %v5331_v7, %v6755_v31  ;;  %v4241_v36 = vpop.f32.mrb[47].mxu1 }
 0x242   : > { %v5230_v16 = vpop.f32.mrb[32].mxu0  ;;  %v5083_v6 = vpack.c.bf16 %v6887_v13, %v6887_v13  ;;  %v6904_v31 = vadd.f32 %v6747_v55, %v4241_v36 }
 0x243   : > { %v5231_v39 = vpop.f32.mrb[33].mxu0  ;;  %4411 = vst.msk [vmem:[%s6762_s14 + $0x78] sm:$0xf] %vm449_vm0, %v5085_v2  ;;  %v5086_v34 = vpack.c.bf16 %v6892_v38, %v6892_v38 }
 0x244   : > { %v5232_v30 = vadd.f32 %v5231_v39, %v5230_v16  ;;  %v5233_v5 = vpop.f32.mrb[34].mxu0  ;;  %4409 = vst.msk [vmem:[%s6762_s14 + $0x70] sm:$0xf] %vm449_vm0, %v5083_v6  ;;  %v5084_v0 = vpack.c.bf16 %v6904_v31, %v6904_v31 }
 0x245   : > { %v5234_v17 = vpop.f32.mrb[35].mxu0  ;;  %4412 = vst.msk [vmem:[%s6762_s14 + $0x7c] sm:$0xf] %vm449_vm0, %v5086_v34 }
 0x246   : > { %v5235_v22 = vadd.f32 %v5234_v17, %v5233_v5  ;;  %v4191_v32 = vadd.f32 %v5232_v30, %v6833_v62  ;;  %4410 = vst.msk [vmem:[%s6762_s14 + $0x74] sm:$0xf] %vm449_vm0, %v5084_v0 }
 0x248   : > { %v5071_v3 = vpack.c.bf16 %v4191_v32, %v4191_v32  ;;  %v4444_v15 = vsel %vm1220_vm11, %v4191_v32, 0.0  ;;  %v4499_v27 = vmul.f32 %v4191_v32, %v4191_v32  ;;  %v4194_v19 = vadd.f32 %v5235_v22, %v6837_v42 }
 0x249   : > { %v4445_v45 = vadd.f32 %v4444_v15, %v4443_v63 }
 0x24a   : > { %4397 = vst.msk [vmem:[%s6762_s14 + $0x40] sm:$0xf] %vm449_vm0, %v5071_v3  ;;  %v4546_v62 = vsel %vm1220_vm11, %v4499_v27, 0.0  ;;  %v5072_v21 = vpack.c.bf16 %v4194_v19, %v4194_v19  ;;  %v4446_v55 = vsel %vm1220_vm11, %v4194_v19, 0.0  ;;  %v4500_v51 = vmul.f32 %v4194_v19, %v4194_v19 }
 0x24b   : > { %v4547_v9 = vadd.f32 %v4546_v62, %v4545_v10  ;;  %v4447_v52 = vadd.f32 %v4446_v55, %v4445_v45 }
 0x24c   : > { %4398 = vst.msk [vmem:[%s6762_s14 + $0x44] sm:$0xf] %vm449_vm0, %v5072_v21  ;;  %v4548_v42 = vsel %vm1220_vm11, %v4500_v51, 0.0 }
 0x24d   : > { %v4549_v23 = vadd.f32 %v4548_v42, %v4547_v9 }
 0x253   : > { %v5236_v53 = vpop.f32.mrb[36].mxu0 }
 0x254   : > { %v5237_v20 = vpop.f32.mrb[37].mxu0 }
 0x255   : > { %v5238_v35 = vadd.f32 %v5237_v20, %v5236_v53  ;;  %v5239_v61 = vpop.f32.mrb[38].mxu0 }
 0x256   : > { %v5240_v58 = vpop.f32.mrb[39].mxu0 }
 0x257   : > { %v4199_v26 = vadd.f32 %v6828_v12, %v5238_v35  ;;  %v5241_v50 = vadd.f32 %v5240_v58, %v5239_v61  ;;  %v4460_v58 = vsel %vm1220_vm11, %v6859_v56, 0.0 }
 0x259   : > { %v5073_v8 = vpack.c.bf16 %v4199_v26, %v4199_v26  ;;  %v4448_v40 = vsel %vm1220_vm11, %v4199_v26, 0.0  ;;  %v4501_v28 = vmul.f32 %v4199_v26, %v4199_v26  ;;  %v4202_v41 = vadd.f32 %v6835_v4, %v5241_v50 }
 0x25a   : > { %v4449_v63 = vadd.f32 %v4448_v40, %v4447_v52  ;;  %v4507_v52 = vmul.f32 %v6859_v56, %v6859_v56  ;;  %v4509_v40 = vmul.f32 %v6856_v43, %v6856_v43  ;;  %v4464_v56 = vsel %vm1220_vm11, %v6856_v43, 0.0 }
 0x25b   : > { %4399 = vst.msk [vmem:[%s6762_s14 + $0x48] sm:$0xf] %vm449_vm0, %v5073_v8  ;;  %v4550_v57 = vsel %vm1220_vm11, %v4501_v28, 0.0  ;;  %v5074_v10 = vpack.c.bf16 %v4202_v41, %v4202_v41  ;;  %v4450_v54 = vsel %vm1220_vm11, %v4202_v41, 0.0  ;;  %v4502_v46 = vmul.f32 %v4202_v41, %v4202_v41 }
 0x25c   : > { %v4551_v48 = vadd.f32 %v4550_v57, %v4549_v23  ;;  %v4451_v1 = vadd.f32 %v4450_v54, %v4449_v63  ;;  %v4562_v28 = vsel %vm1220_vm11, %v4507_v52, 0.0  ;;  %v4462_v41 = vsel %vm1220_vm11, %v6869_v60, 0.0 }
 0x25d   : > { %4400 = vst.msk [vmem:[%s6762_s14 + $0x4c] sm:$0xf] %vm449_vm0, %v5074_v10  ;;  %v4552_v12 = vsel %vm1220_vm11, %v4502_v46, 0.0  ;;  %v4510_v10 = vmul.f32 %v6864_v18, %v6864_v18  ;;  %v4468_v43 = vsel %vm1220_vm11, %v6887_v13, 0.0 }
 0x25e   : > { %v4553_v25 = vadd.f32 %v4552_v12, %v4551_v48  ;;  %v4466_v12 = vsel %vm1220_vm11, %v6864_v18, 0.0 }
 0x25f   : > { %v5242_v49 = vpop.f32.mrb[40].mxu0 }
 0x260   : > { %v5243_v47 = vpop.f32.mrb[41].mxu0 }
 0x261   : > { %v5244_v4 = vadd.f32 %v5243_v47, %v5242_v49  ;;  %v5245_v11 = vpop.f32.mrb[42].mxu0  ;;  %v4568_v47 = vsel %vm1220_vm11, %v4510_v10, 0.0 }
 0x262   : > { %v5246_v37 = vpop.f32.mrb[43].mxu0 }
 0x263   : > { %v4207_v44 = vadd.f32 %v5244_v4, %v6842_v59  ;;  %v5247_v16 = vadd.f32 %v5246_v37, %v5245_v11  ;;  %v4512_v4 = vmul.f32 %v6904_v31, %v6904_v31 }
 0x265   : > { %v5075_v7 = vpack.c.bf16 %v4207_v44, %v4207_v44  ;;  %v4452_v39 = vsel %vm1220_vm11, %v4207_v44, 0.0  ;;  %v4503_v2 = vmul.f32 %v4207_v44, %v4207_v44  ;;  %v4210_v36 = vadd.f32 %v5247_v16, %v6850_v29 }
 0x266   : > { %v4453_v30 = vadd.f32 %v4452_v39, %v4451_v1  ;;  %v4566_v1 = vsel %vm1220_vm11, %v4509_v40, 0.0  ;;  %v4513_v44 = vmul.f32 %v6884_v24, %v6884_v24  ;;  %v4470_v16 = vsel %vm1220_vm11, %v6904_v31, 0.0 }
 0x267   : > { %4401 = vst.msk [vmem:[%s6762_s14 + $0x50] sm:$0xf] %vm449_vm0, %v5075_v7  ;;  %v4554_v5 = vsel %vm1220_vm11, %v4503_v2, 0.0  ;;  %v5076_v6 = vpack.c.bf16 %v4210_v36, %v4210_v36  ;;  %v4454_v17 = vsel %vm1220_vm11, %v4210_v36, 0.0  ;;  %v4504_v34 = vmul.f32 %v4210_v36, %v4210_v36 }
 0x268   : > { %v4555_v22 = vadd.f32 %v4554_v5, %v4553_v25  ;;  %v4455_v32 = vadd.f32 %v4454_v17, %v4453_v30  ;;  %v4472_v2 = vsel %vm1220_vm11, %v6884_v24, 0.0  ;;  %v4572_v36 = vsel %vm1220_vm11, %v4512_v4, 0.0 }
 0x269   : > { %4402 = vst.msk [vmem:[%s6762_s14 + $0x54] sm:$0xf] %vm449_vm0, %v5076_v6  ;;  %v4556_v59 = vsel %vm1220_vm11, %v4504_v34, 0.0  ;;  %v4574_v6 = vsel %vm1220_vm11, %v4513_v44, 0.0  ;;  %v4474_v17 = vsel %vm1220_vm11, %v6892_v38, 0.0 }
 0x26a   : > { %v4557_v3 = vadd.f32 %v4556_v59, %v4555_v22 }
 0x26b   : > { %v5248_v15 = vpop.f32.mrb[44].mxu0 }
 0x26c   : > { %v5249_v27 = vpop.f32.mrb[45].mxu0 }
 0x26d   : > { %v5250_v29 = vadd.f32 %v5249_v27, %v5248_v15  ;;  %v5251_v19 = vpop.f32.mrb[46].mxu0 }
 0x26e   : > { %v5252_v45 = vpop.f32.mrb[47].mxu0 }
 0x26f   : > { %v4215_v0 = vadd.f32 %v6840_v33, %v5250_v29  ;;  %v5253_v62 = vadd.f32 %v5252_v45, %v5251_v19 }
 0x271   : > { %v5077_v21 = vpack.c.bf16 %v4215_v0, %v4215_v0  ;;  %v4456_v55 = vsel %vm1220_vm11, %v4215_v0, 0.0  ;;  %v4505_v51 = vmul.f32 %v4215_v0, %v4215_v0  ;;  %v4218_v9 = vadd.f32 %v6848_v14, %v5253_v62 }
 0x272   : > { %v4457_v42 = vadd.f32 %v4456_v55, %v4455_v32  ;;  %v4508_v14 = vmul.f32 %v6869_v60, %v6869_v60  ;;  %v4511_v60 = vmul.f32 %v6887_v13, %v6887_v13  ;;  %v4514_v13 = vmul.f32 %v6892_v38, %v6892_v38 }
 0x273   : > { %4403 = vst.msk [vmem:[%s6762_s14 + $0x58] sm:$0xf] %vm449_vm0, %v5077_v21  ;;  %v4558_v23 = vsel %vm1220_vm11, %v4505_v51, 0.0  ;;  %v5078_v53 = vpack.c.bf16 %v4218_v9, %v4218_v9  ;;  %v4458_v20 = vsel %vm1220_vm11, %v4218_v9, 0.0  ;;  %v4506_v33 = vmul.f32 %v4218_v9, %v4218_v9 }
 0x274   : > { %v4559_v35 = vadd.f32 %v4558_v23, %v4557_v3  ;;  %v4459_v61 = vadd.f32 %v4458_v20, %v4457_v42  ;;  %v4564_v54 = vsel %vm1220_vm11, %v4508_v14, 0.0  ;;  %v4570_v18 = vsel %vm1220_vm11, %v4511_v60, 0.0 }
 0x275   : > { %4404 = vst.msk [vmem:[%s6762_s14 + $0x5c] sm:$0xf] %vm449_vm0, %v5078_v53  ;;  %v4560_v26 = vsel %vm1220_vm11, %v4506_v33, 0.0  ;;  %v4576_v22 = vsel %vm1220_vm11, %v4514_v13, 0.0 }
 0x276   : > { %v4461_v50 = vadd.f32 %v4460_v58, %v4459_v61  ;;  %v4561_v8 = vadd.f32 %v4560_v26, %v4559_v35 }
 0x278   : > { %v4463_v63 = vadd.f32 %v4462_v41, %v4461_v50  ;;  %v4563_v57 = vadd.f32 %v4562_v28, %v4561_v8 }
 0x27a   : > { %v4465_v46 = vadd.f32 %v4464_v56, %v4463_v63  ;;  %v4565_v48 = vadd.f32 %v4564_v54, %v4563_v57 }
 0x27c   : > { %v4467_v25 = vadd.f32 %v4466_v12, %v4465_v46  ;;  %v4567_v49 = vadd.f32 %v4566_v1, %v4565_v48 }
 0x27e   : > { %v4469_v11 = vadd.f32 %v4468_v43, %v4467_v25  ;;  %v4569_v37 = vadd.f32 %v4568_v47, %v4567_v49 }
 0x280   : > { %v4471_v7 = vadd.f32 %v4470_v16, %v4469_v11  ;;  %v4571_v39 = vadd.f32 %v4570_v18, %v4569_v37 }
 0x282   : > { %v4473_v30 = vadd.f32 %v4472_v2, %v4471_v7  ;;  %v4573_v5 = vadd.f32 %v4572_v36, %v4571_v39 }
 0x284   : > { %v4475_v34 = vadd.f32 %v4474_v17, %v4473_v30  ;;  %v4575_v31 = vadd.f32 %v4574_v6, %v4573_v5 }
 0x286   : > { %v4476_v32 = vrot.slane %v4475_v34, 4  ;;  %v4577_v59 = vadd.f32 %v4576_v22, %v4575_v31 }
 0x288   : > { %v4477_v24 = vadd.f32 %v4476_v32, %v4475_v34  ;;  %v4578_v3 = vrot.slane %v4577_v59, 4 }
 0x28a   : > { %v4478_v15 = vrot.slane %v4477_v24, 2  ;;  %v4579_v27 = vadd.f32 %v4578_v3, %v4577_v59 }
 0x28c   : > { %v4479_v29 = vadd.f32 %v4478_v15, %v4477_v24  ;;  %v4580_v19 = vrot.slane %v4579_v27, 2 }
 0x28e   : > { %v4480_v45 = vrot.slane %v4479_v29, 1  ;;  %v4581_v0 = vadd.f32 %v4580_v19, %v4579_v27 }
 0x290   : > { %v4481_v38 = vadd.f32 %v4480_v45, %v4479_v29  ;;  %v4582_v62 = vrot.slane %v4581_v0, 1 }
 0x292   : > { %4482 = vst.msk [vmem:[%s262_s17] sm:$0x1] %vm452_vm1, %v4481_v38  ;;  %v4583_v21 = vadd.f32 %v4582_v62, %v4581_v0 }
 0x294   : > { %4584 = vst.msk [vmem:[%s262_s17 + $0x1] sm:$0x1] %vm452_vm1, %v4583_v21 }
 0x295 PF: > { %s17_s21 = sadd.s32 1, %s5626_s21  }
 0x296   : > { %p14_p4 = scmp.ge.s32.totalorder %s17_s21, 4  }
 0x298   :  { %16 = sbr.rel (!%p14_p4) target bundleno = 1 (0x1), region = 85 }

</bundles_post_ra>
